<compile_context>
chip_gen: v5e
topology: v5e:2x2
jax: 0.10.0
libtpu: 0.0.40
codegen_flags: <defaults>
</compile_context>

<pallas_src>
import functools

import numpy as np
import jax
import jax.numpy as jnp
from jax import lax
from jax.experimental import pallas as pl
from jax.experimental.pallas import tpu as pltpu

# ---- static model configuration: ConvNet(kernel=3, num_in_channels=4, num_filters=2) on
# 10x10 inputs so torch.flatten yields exactly 64 features for Linear(64, 1) ----
K = 3                                  # conv / pool kernel size
CIN = 4                                # num_in_channels
NF = 2                                 # num_filters
C1 = 4 * NF                            # conv1 out channels = 8
C2 = 2 * NF                            # conv2 out channels = 4
H = W = 10                             # input spatial size
H1, W1 = H - K + 1, W - K + 1          # 8, 8   after conv1
H2, W2 = H1 - K + 1, W1 - K + 1        # 6, 6   after conv2
HP, WP = H2 - K + 1, W2 - K + 1        # 4, 4   after maxpool
F_IN = CIN * H * W                     # 400
F1 = C1 * H1 * W1                      # 512
FP = C2 * HP * WP                      # 64
TAPW = 128                             # lane-aligned width of one pool tap block
NTAP = K * K                           # 9
BN_EPS = 1e-5

# packed per-channel parameter vector layout (one small DMA)
_OFF_GA1, _OFF_BE1 = 0, C1
_OFF_GA2, _OFF_BE2 = 2 * C1, 2 * C1 + C2
_OFF_B3 = 2 * C1 + 2 * C2
_OFF_W3 = 128
SP_LANES = 256

CHUNK_MAX = 256                        # rows of x streamed per grid step


# ---------------- static (numpy) lowering helpers, built once at import ----------------
def _shift_onehot(in_size, out_size):
    # A[k, i, o] = 1.0 iff i == o + k   (valid-conv index coupling)
    k = np.arange(K)[:, None, None]
    i = np.arange(in_size)[None, :, None]
    o = np.arange(out_size)[None, None, :]
    return (i == o + k).astype(np.float32)


_A1 = _shift_onehot(H, H1)     # (3, 10, 8)
_B1 = _shift_onehot(W, W1)     # (3, 10, 8)
_A2 = _shift_onehot(H1, H2)    # (3, 8, 6)
_B2 = _shift_onehot(W1, W2)    # (3, 8, 6)

# 0/1 channel-group matrices (feature order is (c, h, w)); G2 has zero rows for pad lanes
_G1 = (np.arange(F1)[:, None] // (H1 * W1) == np.arange(C1)[None, :]).astype(np.float32)
_G2 = np.zeros((TAPW, C2), np.float32)
_G2[np.arange(FP), np.arange(FP) // (HP * WP)] = 1.0


def pack_params(params):
    """One-time lowering of PyTorch-layout params into the kernel's matmul operands."""
    w1, b1, g1_, be1, w2, b2, g2_, be2, w3, b3 = params
    del b1, b2   # conv biases are exactly cancelled by training-mode BatchNorm (see kernel)

    # conv1 as a dense (400, 512) matrix: rows in NCHW-flatten order of x, cols in (c1,h1,w1)
    t1 = jnp.einsum('ocyx,yiu,xjv->cijouv', w1, _A1, _B1).reshape(F_IN, F1)

    # conv2 as (512, C2, 6, 6); gather the 9 max-pool tap views and pad each tap block to
    # 128 lanes so every tap slice in the kernel is whole-vreg aligned -> one 512x1152 matmul
    t2 = jnp.einsum('ocyx,yiu,xjv->cijouv', w2, _A2, _B2).reshape(F1, C2, H2, W2)
    taps = []
    for kh in range(K):
        for kw in range(K):
            tap = t2[:, :, kh:kh + HP, kw:kw + WP].reshape(F1, FP)
            taps.append(jnp.pad(tap, ((0, 0), (0, TAPW - FP))))
    t2big = jnp.concatenate(taps, axis=1)                       # (512, 1152)

    # all tiny per-channel params packed into one lane-dense (1, 256) vector
    sp = jnp.zeros((1, SP_LANES), jnp.float32)
    sp = sp.at[0, _OFF_GA1:_OFF_GA1 + C1].set(g1_)
    sp = sp.at[0, _OFF_BE1:_OFF_BE1 + C1].set(be1)
    sp = sp.at[0, _OFF_GA2:_OFF_GA2 + C2].set(g2_)
    sp = sp.at[0, _OFF_BE2:_OFF_BE2 + C2].set(be2)
    sp = sp.at[0, _OFF_B3].set(b3[0])
    sp = sp.at[0, _OFF_W3:_OFF_W3 + FP].set(w3[0])              # lanes 192..255 stay zero

    return (t1.astype(jnp.bfloat16), t2big.astype(jnp.bfloat16),
            jnp.asarray(_G1), jnp.asarray(_G1.T),
            jnp.asarray(_G2), jnp.asarray(_G2.T), sp)


# --------------------------------- Pallas kernel ---------------------------------------
def convnet_kernel(x_ref, t1_ref, t2_ref, g1_ref, g1t_ref, g2_ref, g2t_ref, sp_ref,
                   out_ref, y1_ref, cs_ref, cq_ref, *, n_logical):
    step = pl.program_id(0)
    nsteps = pl.num_programs(0)
    chunk = x_ref.shape[0]
    npad = y1_ref.shape[0]

    # ---------- streamed group1 conv: (chunk,400)bf16 x (400,512)bf16 -> f32 ----------
    y1c = jnp.dot(x_ref[...], t1_ref[...], preferred_element_type=jnp.float32)

    # per-chunk BN1 partial stats on the MXU (padded x rows are all-zero -> contribute 0)
    ones = jnp.ones((1, chunk), jnp.float32)
    cs = jnp.dot(ones, y1c, preferred_element_type=jnp.float32)           # (1, 512)
    cq = jnp.dot(ones, y1c * y1c, preferred_element_type=jnp.float32)     # (1, 512)

    @pl.when(step == 0)
    def _init():
        cs_ref[...] = jnp.zeros_like(cs_ref)
        cq_ref[...] = jnp.zeros_like(cq_ref)

    cs_ref[...] += cs
    cq_ref[...] += cq

    # stash the (bias-free) conv1 output; conv biases cancel under training-mode BatchNorm
    row0 = pl.multiple_of(step * chunk, chunk)
    y1_ref[pl.ds(row0, chunk), :] = y1c.astype(jnp.bfloat16)

    # ------------- last chunk: BN1 -> group2 -> BN2 -> linear -> sigmoid -------------
    @pl.when(step == nsteps - 1)
    def _tail():
        sp = sp_ref[...]
        ga1, be1 = sp[:, _OFF_GA1:_OFF_GA1 + C1], sp[:, _OFF_BE1:_OFF_BE1 + C1]
        ga2, be2 = sp[:, _OFF_GA2:_OFF_GA2 + C2], sp[:, _OFF_BE2:_OFF_BE2 + C2]
        b3 = sp[:, _OFF_B3:_OFF_B3 + 1]
        w3 = sp[:, _OFF_W3:_OFF_W3 + TAPW]        # (1, 128); lanes >= 64 are zero

        # BN1 finalize (training-mode batch stats, biased variance, eps=1e-5)
        cnt1 = float(n_logical * H1 * W1)
        s1 = jnp.dot(cs_ref[...], g1_ref[...], preferred_element_type=jnp.float32)   # (1, 8)
        q1 = jnp.dot(cq_ref[...], g1_ref[...], preferred_element_type=jnp.float32)   # (1, 8)
        m1 = s1 / cnt1
        v1 = q1 / cnt1 - m1 * m1
        sc1 = ga1 * lax.rsqrt(v1 + BN_EPS)
        sh1 = be1 - m1 * sc1
        rs1 = lax.broadcasted_iota(jnp.int32, (2, C1), 0) == 0
        e1 = jnp.dot(jnp.where(rs1, sc1, sh1), g1t_ref[...],
                     preferred_element_type=jnp.float32)                             # (2, 512)

        h1 = jnp.maximum(y1_ref[...].astype(jnp.float32) * e1[0:1, :] + e1[1:2, :], 0.0)

        # conv2 + all 9 max-pool taps in ONE lane-aligned (512 x 1152) matmul
        y2 = jnp.dot(h1.astype(jnp.bfloat16), t2_ref[...],
                     preferred_element_type=jnp.float32)                             # (npad, 1152)
        pooled = y2[:, 0:TAPW]
        for k in range(1, NTAP):
            pooled = jnp.maximum(pooled, y2[:, k * TAPW:(k + 1) * TAPW])              # vreg-aligned

        # BN2 stats over the logical rows only (masked ones-row matmuls on the MXU)
        rows = lax.broadcasted_iota(jnp.int32, (1, npad), 1)
        ones_m = (rows < n_logical).astype(jnp.float32)
        cnt2 = float(n_logical * HP * WP)
        s2 = jnp.dot(jnp.dot(ones_m, pooled, preferred_element_type=jnp.float32),
                     g2_ref[...], preferred_element_type=jnp.float32)                 # (1, 4)
        q2 = jnp.dot(jnp.dot(ones_m, pooled * pooled, preferred_element_type=jnp.float32),
                     g2_ref[...], preferred_element_type=jnp.float32)                 # (1, 4)
        m2 = s2 / cnt2
        v2 = q2 / cnt2 - m2 * m2
        sc2 = ga2 * lax.rsqrt(v2 + BN_EPS)
        sh2 = be2 - m2 * sc2
        rs2 = lax.broadcasted_iota(jnp.int32, (2, C2), 0) == 0
        e2 = jnp.dot(jnp.where(rs2, sc2, sh2), g2t_ref[...],
                     preferred_element_type=jnp.float32)                              # (2, 128)
        h2 = jnp.maximum(pooled * e2[0:1, :] + e2[1:2, :], 0.0)                        # (npad, 128)

        # flatten (already (c,h,w) order) -> Linear(64,1) -> sigmoid(z/100); lane-dense (1,npad)
        z = lax.dot_general(w3, h2, (((1,), (1,)), ((), ())),
                            preferred_element_type=jnp.float32) + b3                  # (1, npad)
        out_ref[...] = 1.0 / (1.0 + jnp.exp(-z * 0.01))


@jax.jit
def convnet_forward(x_nchw, packed):
    """x_nchw: (N, CIN, 10, 10) float32 (PyTorch layout). Returns (N, 1) float32."""
    t1, t2big, g1, g1t, g2, g2t, sp = packed
    n = x_nchw.shape[0]

    # pad N so every matmul runs full-M and the (1, Npad) output store is lane-dense
    if n <= CHUNK_MAX:
        npad = max(128, ((n + 127) // 128) * 128)
        chunk = npad
    else:
        npad = ((n + CHUNK_MAX - 1) // CHUNK_MAX) * CHUNK_MAX
        chunk = CHUNK_MAX
    nsteps = npad // chunk

    x2d = x_nchw.reshape(n, F_IN).astype(jnp.bfloat16)   # NCHW flatten: metadata-only reshape
    if npad != n:
        x2d = jnp.pad(x2d, ((0, npad - n), (0, 0)))      # zero rows are inert for BN1 stats

    out = pl.pallas_call(
        functools.partial(convnet_kernel, n_logical=n),
        out_shape=jax.ShapeDtypeStruct((1, npad), jnp.float32),
        grid=(nsteps,),
        in_specs=[
            pl.BlockSpec((chunk, F_IN), lambda i: (i, 0)),          # x: streamed over N
            pl.BlockSpec((F_IN, F1), lambda i: (0, 0)),             # conv1 matrix (resident)
            pl.BlockSpec((F1, NTAP * TAPW), lambda i: (0, 0)),      # conv2+pool matrix (resident)
            pl.BlockSpec((F1, C1), lambda i: (0, 0)),               # channel fold  g1
            pl.BlockSpec((C1, F1), lambda i: (0, 0)),               # channel expand g1^T
            pl.BlockSpec((TAPW, C2), lambda i: (0, 0)),             # channel fold  g2
            pl.BlockSpec((C2, TAPW), lambda i: (0, 0)),             # channel expand g2^T
            pl.BlockSpec((1, SP_LANES), lambda i: (0, 0)),          # packed per-channel params
        ],
        out_specs=pl.BlockSpec((1, npad), lambda i: (0, 0)),
        scratch_shapes=[
            pltpu.VMEM((npad, F1), jnp.bfloat16),   # resident conv1-output slab
            pltpu.VMEM((1, F1), jnp.float32),       # BN1 column sums
            pltpu.VMEM((1, F1), jnp.float32),       # BN1 column sums of squares
        ],
        compiler_params=pltpu.CompilerParams(
            dimension_semantics=("arbitrary",),     # sequential: stats + resident slab carry
            vmem_limit_bytes=40 * 1024 * 1024,      # safe on v7x (64 MiB) and v5e/v6e
        ),
    )(x2d, t1, t2big, g1, g1t, g2, g2t, sp)
    return out[0, :n].reshape(n, 1)                 # (1, Npad) -> (N, 1) slice/reshape is free


# ------------------------------ params & pure-JAX reference ----------------------------
def init_params(key):
    ks = jax.random.split(key, 6)
    w1 = jax.random.normal(ks[0], (C1, CIN, K, K), jnp.float32) * 0.1   # PyTorch OIHW
    b1 = jax.random.normal(ks[1], (C1,), jnp.float32) * 0.1
    g1 = jnp.ones((C1,), jnp.float32)
    be1 = jnp.zeros((C1,), jnp.float32)
    w2 = jax.random.normal(ks[2], (C2, C1, K, K), jnp.float32) * 0.1
    b2 = jax.random.normal(ks[3], (C2,), jnp.float32) * 0.1
    g2 = jnp.ones((C2,), jnp.float32)
    be2 = jnp.zeros((C2,), jnp.float32)
    w3 = jax.random.normal(ks[4], (1, FP), jnp.float32) * 0.1           # (1, 64)
    b3 = jax.random.normal(ks[5], (1,), jnp.float32) * 0.1
    return (w1, b1, g1, be1, w2, b2, g2, be2, w3, b3)


def convnet_reference(x_nchw, params):
    """Independent pure-JAX/XLA reference of the PyTorch forward (training-mode BN)."""
    w1, b1, g1, be1, w2, b2, g2, be2, w3, b3 = params
    dn = ('NCHW', 'OIHW', 'NCHW')
    y1 = lax.conv_general_dilated(x_nchw, w1, (1, 1), 'VALID', dimension_numbers=dn)
    y1 = y1 + b1[None, :, None, None]
    m1 = jnp.mean(y1, axis=(0, 2, 3), keepdims=True)
    v1 = jnp.mean((y1 - m1) ** 2, axis=(0, 2, 3), keepdims=True)
    h1 = jnp.maximum((y1 - m1) * lax.rsqrt(v1 + BN_EPS) * g1[None, :, None, None]
                     + be1[None, :, None, None], 0.0)
    y2 = lax.conv_general_dilated(h1, w2, (1, 1), 'VALID', dimension_numbers=dn)
    y2 = y2 + b2[None, :, None, None]
    p = lax.reduce_window(y2, -jnp.inf, lax.max, (1, 1, K, K), (1, 1, 1, 1), 'VALID')
    m2 = jnp.mean(p, axis=(0, 2, 3), keepdims=True)
    v2 = jnp.mean((p - m2) ** 2, axis=(0, 2, 3), keepdims=True)
    h2 = jnp.maximum((p - m2) * lax.rsqrt(v2 + BN_EPS) * g2[None, :, None, None]
                     + be2[None, :, None, None], 0.0)
    flat = h2.reshape(h2.shape[0], -1)
    z = flat @ w3.T + b3[None, :]
    return 1.0 / (1.0 + jnp.exp(-z / 100.0))


if __name__ == "__main__":
    key = jax.random.PRNGKey(0)
    kx, kp = jax.random.split(key)
    x = jax.random.normal(kx, (2, CIN, H, W), jnp.float32)   # NCHW, like PyTorch
    params = init_params(kp)
    packed = pack_params(params)                              # one-time weight lowering

    out = jax.block_until_ready(convnet_forward(x, packed))
    assert out.shape == (2, 1) and out.dtype == jnp.float32

    ref = jax.block_until_ready(convnet_reference(x, params))
    np.testing.assert_allclose(np.asarray(out), np.asarray(ref), rtol=0.0, atol=1e-3)
    print("KERNEL_OK")
</pallas_src>

<mosaic_0001>
module attributes {stable_mosaic.version = 11 : i64} {
  func.func @convnet_kernel(%arg0: i32, %arg1: memref<128x400xbf16, #tpu.memory_space<vmem>>, %arg2: memref<400x512xbf16, #tpu.memory_space<vmem>>, %arg3: memref<512x1152xbf16, #tpu.memory_space<vmem>>, %arg4: memref<512x8xf32, #tpu.memory_space<vmem>>, %arg5: memref<8x512xf32, #tpu.memory_space<vmem>>, %arg6: memref<128x4xf32, #tpu.memory_space<vmem>>, %arg7: memref<4x128xf32, #tpu.memory_space<vmem>>, %arg8: memref<1x256xf32, #tpu.memory_space<vmem>>, %arg9: memref<1x128xf32, #tpu.memory_space<vmem>>, %arg10: memref<128x512xbf16, #tpu.memory_space<vmem>>, %arg11: memref<1x512xf32, #tpu.memory_space<vmem>>, %arg12: memref<1x512xf32, #tpu.memory_space<vmem>>) attributes {dimension_semantics = [#tpu.dimension_semantics<arbitrary>], iteration_bounds = array<i64: 1>, scalar_prefetch = 0 : i64, scratch_operands = 3 : i64, tpu.core_type = #tpu.core_type<tc>, window_params = [{transform_indices = @transform_0, window_bounds = array<i64: 128, 400>}, {pipeline_mode = #tpu.pipeline_mode<synchronous>, transform_indices = @transform_1, window_bounds = array<i64: 400, 512>}, {pipeline_mode = #tpu.pipeline_mode<synchronous>, transform_indices = @transform_2, window_bounds = array<i64: 512, 1152>}, {pipeline_mode = #tpu.pipeline_mode<synchronous>, transform_indices = @transform_3, window_bounds = array<i64: 512, 8>}, {pipeline_mode = #tpu.pipeline_mode<synchronous>, transform_indices = @transform_4, window_bounds = array<i64: 8, 512>}, {pipeline_mode = #tpu.pipeline_mode<synchronous>, transform_indices = @transform_5, window_bounds = array<i64: 128, 4>}, {pipeline_mode = #tpu.pipeline_mode<synchronous>, transform_indices = @transform_6, window_bounds = array<i64: 4, 128>}, {pipeline_mode = #tpu.pipeline_mode<synchronous>, transform_indices = @transform_7, window_bounds = array<i64: 1, 256>}, {pipeline_mode = #tpu.pipeline_mode<synchronous>, transform_indices = @transform_8, window_bounds = array<i64: 1, 128>}]} {
    %c0 = arith.constant 0 : index
    %c0_0 = arith.constant 0 : index
    %0 = vector.load %arg1[%c0, %c0_0] : memref<128x400xbf16, #tpu.memory_space<vmem>>, vector<128x400xbf16>
    %c0_1 = arith.constant 0 : index
    %c0_2 = arith.constant 0 : index
    %1 = vector.load %arg2[%c0_1, %c0_2] : memref<400x512xbf16, #tpu.memory_space<vmem>>, vector<400x512xbf16>
    %cst = arith.constant dense<0.000000e+00> : vector<128x512xf32>
    %2 = tpu.matmul %0, %1, %cst {dimension_numbers = #tpu.dot_dimension_numbers<[1], [0], [0], [1], [0, 0, 1, 1], [], []>} : vector<128x400xbf16>, vector<400x512xbf16>, vector<128x512xf32> -> vector<128x512xf32>
    %cst_3 = arith.constant 1.000000e+00 : f32
    %3 = vector.broadcast %cst_3 : f32 to vector<1x128xf32>
    %cst_4 = arith.constant dense<0.000000e+00> : vector<1x512xf32>
    %4 = tpu.matmul %3, %2, %cst_4 {dimension_numbers = #tpu.dot_dimension_numbers<[1], [0], [0], [1], [0, 0, 1, 1], [], []>} : vector<1x128xf32>, vector<128x512xf32>, vector<1x512xf32> -> vector<1x512xf32>
    %5 = arith.mulf %2, %2 : vector<128x512xf32>
    %cst_5 = arith.constant dense<0.000000e+00> : vector<1x512xf32>
    %6 = tpu.matmul %3, %5, %cst_5 {dimension_numbers = #tpu.dot_dimension_numbers<[1], [0], [0], [1], [0, 0, 1, 1], [], []>} : vector<1x128xf32>, vector<128x512xf32>, vector<1x512xf32> -> vector<1x512xf32>
    %c0_i32 = arith.constant 0 : i32
    %7 = arith.cmpi eq, %arg0, %c0_i32 : i32
    %8 = arith.extui %7 : i1 to i32
    %c0_i32_6 = arith.constant 0 : i32
    %9 = arith.cmpi ne, %8, %c0_i32_6 : i32
    scf.if %9 {
      %cst_18 = arith.constant 0.000000e+00 : f32
      %24 = vector.broadcast %cst_18 : f32 to vector<1x512xf32>
      %c0_19 = arith.constant 0 : index
      %c0_20 = arith.constant 0 : index
      %25 = vector.load %arg11[%c0_19, %c0_20] : memref<1x512xf32, #tpu.memory_space<vmem>>, vector<1x512xf32>
      tpu.vector_store %arg11[%c0_19, %c0_20], %24 {strides = array<i32>} : memref<1x512xf32, #tpu.memory_space<vmem>>, vector<1x512xf32>,
      %cst_21 = arith.constant 0.000000e+00 : f32
      %26 = vector.broadcast %cst_21 : f32 to vector<1x512xf32>
      %c0_22 = arith.constant 0 : index
      %c0_23 = arith.constant 0 : index
      %27 = vector.load %arg12[%c0_22, %c0_23] : memref<1x512xf32, #tpu.memory_space<vmem>>, vector<1x512xf32>
      tpu.vector_store %arg12[%c0_22, %c0_23], %26 {strides = array<i32>} : memref<1x512xf32, #tpu.memory_space<vmem>>, vector<1x512xf32>,
    } else {
    }
    %c0_7 = arith.constant 0 : index
    %c0_8 = arith.constant 0 : index
    %10 = vector.load %arg11[%c0_7, %c0_8] : memref<1x512xf32, #tpu.memory_space<vmem>>, vector<1x512xf32>
    %11 = arith.addf %10, %4 : vector<1x512xf32>
    %c0_9 = arith.constant 0 : index
    %c0_10 = arith.constant 0 : index
    %12 = vector.load %arg11[%c0_9, %c0_10] : memref<1x512xf32, #tpu.memory_space<vmem>>, vector<1x512xf32>
    tpu.vector_store %arg11[%c0_9, %c0_10], %11 {strides = array<i32>} : memref<1x512xf32, #tpu.memory_space<vmem>>, vector<1x512xf32>,
    %c0_11 = arith.constant 0 : index
    %c0_12 = arith.constant 0 : index
    %13 = vector.load %arg12[%c0_11, %c0_12] : memref<1x512xf32, #tpu.memory_space<vmem>>, vector<1x512xf32>
    %14 = arith.addf %13, %6 : vector<1x512xf32>
    %c0_13 = arith.constant 0 : index
    %c0_14 = arith.constant 0 : index
    %15 = vector.load %arg12[%c0_13, %c0_14] : memref<1x512xf32, #tpu.memory_space<vmem>>, vector<1x512xf32>
    tpu.vector_store %arg12[%c0_13, %c0_14], %14 {strides = array<i32>} : memref<1x512xf32, #tpu.memory_space<vmem>>, vector<1x512xf32>,
    %c128_i32 = arith.constant 128 : i32
    %16 = arith.muli %arg0, %c128_i32 : i32
    %17 = tpu.assume_multiple %16, 128 : i32
    %18 = arith.truncf %2 : vector<128x512xf32> to vector<128x512xbf16>
    %19 = arith.index_cast %17 : i32 to index
    %c0_15 = arith.constant 0 : index
    %20 = vector.load %arg10[%19, %c0_15] : memref<128x512xbf16, #tpu.memory_space<vmem>>, vector<128x512xbf16>
    tpu.vector_store %arg10[%19, %c0_15], %18 {strides = array<i32>} : memref<128x512xbf16, #tpu.memory_space<vmem>>, vector<128x512xbf16>,
    %c0_i32_16 = arith.constant 0 : i32
    %21 = arith.cmpi eq, %arg0, %c0_i32_16 : i32
    %22 = arith.extui %21 : i1 to i32
    %c0_i32_17 = arith.constant 0 : i32
    %23 = arith.cmpi ne, %22, %c0_i32_17 : i32
    scf.if %23 {
      %c0_18 = arith.constant 0 : index
      %c0_19 = arith.constant 0 : index
      %24 = vector.load %arg8[%c0_18, %c0_19] : memref<1x256xf32, #tpu.memory_space<vmem>>, vector<1x256xf32>
      %25 = vector.extract_strided_slice %24 {offsets = [0, 0], sizes = [1, 8], strides = [1, 1]} : vector<1x256xf32> to vector<1x8xf32>
      %26 = vector.extract_strided_slice %24 {offsets = [0, 8], sizes = [1, 8], strides = [1, 1]} : vector<1x256xf32> to vector<1x8xf32>
      %27 = vector.extract_strided_slice %24 {offsets = [0, 16], sizes = [1, 4], strides = [1, 1]} : vector<1x256xf32> to vector<1x4xf32>
      %28 = vector.extract_strided_slice %24 {offsets = [0, 20], sizes = [1, 4], strides = [1, 1]} : vector<1x256xf32> to vector<1x4xf32>
      %29 = vector.extract_strided_slice %24 {offsets = [0, 24], sizes = [1, 1], strides = [1, 1]} : vector<1x256xf32> to vector<1x1xf32>
      %30 = vector.extract_strided_slice %24 {offsets = [0, 128], sizes = [1, 128], strides = [1, 1]} : vector<1x256xf32> to vector<1x128xf32>
      %c0_20 = arith.constant 0 : index
      %c0_21 = arith.constant 0 : index
      %31 = vector.load %arg11[%c0_20, %c0_21] : memref<1x512xf32, #tpu.memory_space<vmem>>, vector<1x512xf32>
      %c0_22 = arith.constant 0 : index
      %c0_23 = arith.constant 0 : index
      %32 = vector.load %arg4[%c0_22, %c0_23] : memref<512x8xf32, #tpu.memory_space<vmem>>, vector<512x8xf32>
      %cst_24 = arith.constant dense<0.000000e+00> : vector<1x8xf32>
      %33 = tpu.matmul %31, %32, %cst_24 {dimension_numbers = #tpu.dot_dimension_numbers<[1], [0], [0], [1], [0, 0, 1, 1], [], []>} : vector<1x512xf32>, vector<512x8xf32>, vector<1x8xf32> -> vector<1x8xf32>
      %c0_25 = arith.constant 0 : index
      %c0_26 = arith.constant 0 : index
      %34 = vector.load %arg12[%c0_25, %c0_26] : memref<1x512xf32, #tpu.memory_space<vmem>>, vector<1x512xf32>
      %c0_27 = arith.constant 0 : index
      %c0_28 = arith.constant 0 : index
      %35 = vector.load %arg4[%c0_27, %c0_28] : memref<512x8xf32, #tpu.memory_space<vmem>>, vector<512x8xf32>
      %cst_29 = arith.constant dense<0.000000e+00> : vector<1x8xf32>
      %36 = tpu.matmul %34, %35, %cst_29 {dimension_numbers = #tpu.dot_dimension_numbers<[1], [0], [0], [1], [0, 0, 1, 1], [], []>} : vector<1x512xf32>, vector<512x8xf32>, vector<1x8xf32> -> vector<1x8xf32>
      %cst_30 = arith.constant 1.280000e+02 : f32
      %37 = vector.broadcast %cst_30 : f32 to vector<1x8xf32>
      %38 = arith.divf %33, %37 : vector<1x8xf32>
      %cst_31 = arith.constant 1.280000e+02 : f32
      %39 = vector.broadcast %cst_31 : f32 to vector<1x8xf32>
      %40 = arith.divf %36, %39 : vector<1x8xf32>
      %41 = arith.mulf %38, %38 : vector<1x8xf32>
      %42 = arith.subf %40, %41 : vector<1x8xf32>
      %cst_32 = arith.constant 9.99999974E-6 : f32
      %43 = vector.broadcast %cst_32 : f32 to vector<1x8xf32>
      %44 = arith.addf %42, %43 : vector<1x8xf32>
      %45 = math.rsqrt %44 : vector<1x8xf32>
      %46 = arith.mulf %25, %45 : vector<1x8xf32>
      %47 = arith.mulf %38, %46 : vector<1x8xf32>
      %48 = arith.subf %26, %47 : vector<1x8xf32>
      %49 = tpu.iota {dimensions = array<i32: 0>} : vector<2x8xi32>
      %c0_i32_33 = arith.constant 0 : i32
      %50 = vector.broadcast %c0_i32_33 : i32 to vector<2x8xi32>
      %51 = arith.cmpi eq, %49, %50 : vector<2x8xi32>
      %52 = vector.shape_cast %46 : vector<1x8xf32> to vector<1x8xf32>
      %53 = vector.broadcast %52 : vector<1x8xf32> to vector<2x8xf32>
      %54 = vector.shape_cast %48 : vector<1x8xf32> to vector<1x8xf32>
      %55 = vector.broadcast %54 : vector<1x8xf32> to vector<2x8xf32>
      %56 = arith.select %51, %53, %55 : vector<2x8xi1>, vector<2x8xf32>
      %c0_34 = arith.constant 0 : index
      %c0_35 = arith.constant 0 : index
      %57 = vector.load %arg5[%c0_34, %c0_35] : memref<8x512xf32, #tpu.memory_space<vmem>>, vector<8x512xf32>
      %cst_36 = arith.constant dense<0.000000e+00> : vector<2x512xf32>
      %58 = tpu.matmul %56, %57, %cst_36 {dimension_numbers = #tpu.dot_dimension_numbers<[1], [0], [0], [1], [0, 0, 1, 1], [], []>} : vector<2x8xf32>, vector<8x512xf32>, vector<2x512xf32> -> vector<2x512xf32>
      %c0_37 = arith.constant 0 : index
      %c0_38 = arith.constant 0 : index
      %59 = vector.load %arg10[%c0_37, %c0_38] : memref<128x512xbf16, #tpu.memory_space<vmem>>, vector<128x512xbf16>
      %60 = arith.extf %59 : vector<128x512xbf16> to vector<128x512xf32>
      %61 = vector.extract_strided_slice %58 {offsets = [0, 0], sizes = [1, 512], strides = [1, 1]} : vector<2x512xf32> to vector<1x512xf32>
      %62 = vector.broadcast %61 : vector<1x512xf32> to vector<128x512xf32>
      %63 = arith.mulf %60, %62 : vector<128x512xf32>
      %64 = vector.extract_strided_slice %58 {offsets = [1, 0], sizes = [1, 512], strides = [1, 1]} : vector<2x512xf32> to vector<1x512xf32>
      %65 = vector.broadcast %64 : vector<1x512xf32> to vector<128x512xf32>
      %66 = arith.addf %63, %65 : vector<128x512xf32>
      %cst_39 = arith.constant 0.000000e+00 : f32
      %67 = vector.broadcast %cst_39 : f32 to vector<128x512xf32>
      %68 = arith.maximumf %66, %67 : vector<128x512xf32>
      %69 = arith.truncf %68 : vector<128x512xf32> to vector<128x512xbf16>
      %c0_40 = arith.constant 0 : index
      %c0_41 = arith.constant 0 : index
      %70 = vector.load %arg3[%c0_40, %c0_41] : memref<512x1152xbf16, #tpu.memory_space<vmem>>, vector<512x1152xbf16>
      %cst_42 = arith.constant dense<0.000000e+00> : vector<128x1152xf32>
      %71 = tpu.matmul %69, %70, %cst_42 {dimension_numbers = #tpu.dot_dimension_numbers<[1], [0], [0], [1], [0, 0, 1, 1], [], []>} : vector<128x512xbf16>, vector<512x1152xbf16>, vector<128x1152xf32> -> vector<128x1152xf32>
      %72 = vector.extract_strided_slice %71 {offsets = [0, 0], sizes = [128, 128], strides = [1, 1]} : vector<128x1152xf32> to vector<128x128xf32>
      %73 = vector.extract_strided_slice %71 {offsets = [0, 128], sizes = [128, 128], strides = [1, 1]} : vector<128x1152xf32> to vector<128x128xf32>
      %74 = arith.maximumf %72, %73 : vector<128x128xf32>
      %75 = vector.extract_strided_slice %71 {offsets = [0, 256], sizes = [128, 128], strides = [1, 1]} : vector<128x1152xf32> to vector<128x128xf32>
      %76 = arith.maximumf %74, %75 : vector<128x128xf32>
      %77 = vector.extract_strided_slice %71 {offsets = [0, 384], sizes = [128, 128], strides = [1, 1]} : vector<128x1152xf32> to vector<128x128xf32>
      %78 = arith.maximumf %76, %77 : vector<128x128xf32>
      %79 = vector.extract_strided_slice %71 {offsets = [0, 512], sizes = [128, 128], strides = [1, 1]} : vector<128x1152xf32> to vector<128x128xf32>
      %80 = arith.maximumf %78, %79 : vector<128x128xf32>
      %81 = vector.extract_strided_slice %71 {offsets = [0, 640], sizes = [128, 128], strides = [1, 1]} : vector<128x1152xf32> to vector<128x128xf32>
      %82 = arith.maximumf %80, %81 : vector<128x128xf32>
      %83 = vector.extract_strided_slice %71 {offsets = [0, 768], sizes = [128, 128], strides = [1, 1]} : vector<128x1152xf32> to vector<128x128xf32>
      %84 = arith.maximumf %82, %83 : vector<128x128xf32>
      %85 = vector.extract_strided_slice %71 {offsets = [0, 896], sizes = [128, 128], strides = [1, 1]} : vector<128x1152xf32> to vector<128x128xf32>
      %86 = arith.maximumf %84, %85 : vector<128x128xf32>
      %87 = vector.extract_strided_slice %71 {offsets = [0, 1024], sizes = [128, 128], strides = [1, 1]} : vector<128x1152xf32> to vector<128x128xf32>
      %88 = arith.maximumf %86, %87 : vector<128x128xf32>
      %89 = tpu.iota {dimensions = array<i32: 1>} : vector<1x128xi32>
      %c2_i32 = arith.constant 2 : i32
      %90 = vector.broadcast %c2_i32 : i32 to vector<1x128xi32>
      %91 = arith.cmpi slt, %89, %90 : vector<1x128xi32>
      %92 = arith.extui %91 : vector<1x128xi1> to vector<1x128xi32>
      %93 = arith.sitofp %92 : vector<1x128xi32> to vector<1x128xf32>
      %cst_43 = arith.constant dense<0.000000e+00> : vector<1x128xf32>
      %94 = tpu.matmul %93, %88, %cst_43 {dimension_numbers = #tpu.dot_dimension_numbers<[1], [0], [0], [1], [0, 0, 1, 1], [], []>} : vector<1x128xf32>, vector<128x128xf32>, vector<1x128xf32> -> vector<1x128xf32>
      %c0_44 = arith.constant 0 : index
      %c0_45 = arith.constant 0 : index
      %95 = vector.load %arg6[%c0_44, %c0_45] : memref<128x4xf32, #tpu.memory_space<vmem>>, vector<128x4xf32>
      %cst_46 = arith.constant dense<0.000000e+00> : vector<1x4xf32>
      %96 = tpu.matmul %94, %95, %cst_46 {dimension_numbers = #tpu.dot_dimension_numbers<[1], [0], [0], [1], [0, 0, 1, 1], [], []>} : vector<1x128xf32>, vector<128x4xf32>, vector<1x4xf32> -> vector<1x4xf32>
      %97 = arith.mulf %88, %88 : vector<128x128xf32>
      %cst_47 = arith.constant dense<0.000000e+00> : vector<1x128xf32>
      %98 = tpu.matmul %93, %97, %cst_47 {dimension_numbers = #tpu.dot_dimension_numbers<[1], [0], [0], [1], [0, 0, 1, 1], [], []>} : vector<1x128xf32>, vector<128x128xf32>, vector<1x128xf32> -> vector<1x128xf32>
      %c0_48 = arith.constant 0 : index
      %c0_49 = arith.constant 0 : index
      %99 = vector.load %arg6[%c0_48, %c0_49] : memref<128x4xf32, #tpu.memory_space<vmem>>, vector<128x4xf32>
      %cst_50 = arith.constant dense<0.000000e+00> : vector<1x4xf32>
      %100 = tpu.matmul %98, %99, %cst_50 {dimension_numbers = #tpu.dot_dimension_numbers<[1], [0], [0], [1], [0, 0, 1, 1], [], []>} : vector<1x128xf32>, vector<128x4xf32>, vector<1x4xf32> -> vector<1x4xf32>
      %cst_51 = arith.constant 3.200000e+01 : f32
      %101 = vector.broadcast %cst_51 : f32 to vector<1x4xf32>
      %102 = arith.divf %96, %101 : vector<1x4xf32>
      %cst_52 = arith.constant 3.200000e+01 : f32
      %103 = vector.broadcast %cst_52 : f32 to vector<1x4xf32>
      %104 = arith.divf %100, %103 : vector<1x4xf32>
      %105 = arith.mulf %102, %102 : vector<1x4xf32>
      %106 = arith.subf %104, %105 : vector<1x4xf32>
      %cst_53 = arith.constant 9.99999974E-6 : f32
      %107 = vector.broadcast %cst_53 : f32 to vector<1x4xf32>
      %108 = arith.addf %106, %107 : vector<1x4xf32>
      %109 = math.rsqrt %108 : vector<1x4xf32>
      %110 = arith.mulf %27, %109 : vector<1x4xf32>
      %111 = arith.mulf %102, %110 : vector<1x4xf32>
      %112 = arith.subf %28, %111 : vector<1x4xf32>
      %113 = tpu.iota {dimensions = array<i32: 0>} : vector<2x4xi32>
      %c0_i32_54 = arith.constant 0 : i32
      %114 = vector.broadcast %c0_i32_54 : i32 to vector<2x4xi32>
      %115 = arith.cmpi eq, %113, %114 : vector<2x4xi32>
      %116 = vector.shape_cast %110 : vector<1x4xf32> to vector<1x4xf32>
      %117 = vector.broadcast %116 : vector<1x4xf32> to vector<2x4xf32>
      %118 = vector.shape_cast %112 : vector<1x4xf32> to vector<1x4xf32>
      %119 = vector.broadcast %118 : vector<1x4xf32> to vector<2x4xf32>
      %120 = arith.select %115, %117, %119 : vector<2x4xi1>, vector<2x4xf32>
      %c0_55 = arith.constant 0 : index
      %c0_56 = arith.constant 0 : index
      %121 = vector.load %arg7[%c0_55, %c0_56] : memref<4x128xf32, #tpu.memory_space<vmem>>, vector<4x128xf32>
      %cst_57 = arith.constant dense<0.000000e+00> : vector<2x128xf32>
      %122 = tpu.matmul %120, %121, %cst_57 {dimension_numbers = #tpu.dot_dimension_numbers<[1], [0], [0], [1], [0, 0, 1, 1], [], []>} : vector<2x4xf32>, vector<4x128xf32>, vector<2x128xf32> -> vector<2x128xf32>
      %123 = vector.extract_strided_slice %122 {offsets = [0, 0], sizes = [1, 128], strides = [1, 1]} : vector<2x128xf32> to vector<1x128xf32>
      %124 = vector.broadcast %123 : vector<1x128xf32> to vector<128x128xf32>
      %125 = arith.mulf %88, %124 : vector<128x128xf32>
      %126 = vector.extract_strided_slice %122 {offsets = [1, 0], sizes = [1, 128], strides = [1, 1]} : vector<2x128xf32> to vector<1x128xf32>
      %127 = vector.broadcast %126 : vector<1x128xf32> to vector<128x128xf32>
      %128 = arith.addf %125, %127 : vector<128x128xf32>
      %cst_58 = arith.constant 0.000000e+00 : f32
      %129 = vector.broadcast %cst_58 : f32 to vector<128x128xf32>
      %130 = arith.maximumf %128, %129 : vector<128x128xf32>
      %cst_59 = arith.constant dense<0.000000e+00> : vector<1x128xf32>
      %131 = tpu.matmul %30, %130, %cst_59 {dimension_numbers = #tpu.dot_dimension_numbers<[1], [1], [0], [0], [0, 0, 1, 0], [], []>} : vector<1x128xf32>, vector<128x128xf32>, vector<1x128xf32> -> vector<1x128xf32>
      %132 = vector.broadcast %29 : vector<1x1xf32> to vector<1x128xf32>
      %133 = arith.addf %131, %132 : vector<1x128xf32>
      %cst_60 = arith.constant 0.000000e+00 : f32
      %134 = vector.broadcast %cst_60 : f32 to vector<1x128xf32>
      %135 = arith.subf %134, %133 : vector<1x128xf32>
      %cst_61 = arith.constant 0.00999999977 : f32
      %136 = vector.broadcast %cst_61 : f32 to vector<1x128xf32>
      %137 = arith.mulf %135, %136 : vector<1x128xf32>
      %138 = math.exp %137 : vector<1x128xf32>
      %cst_62 = arith.constant 1.000000e+00 : f32
      %139 = vector.broadcast %cst_62 : f32 to vector<1x128xf32>
      %140 = arith.addf %139, %138 : vector<1x128xf32>
      %cst_63 = arith.constant 1.000000e+00 : f32
      %141 = vector.broadcast %cst_63 : f32 to vector<1x128xf32>
      %142 = arith.divf %141, %140 : vector<1x128xf32>
      %c0_64 = arith.constant 0 : index
      %c0_65 = arith.constant 0 : index
      %143 = vector.load %arg9[%c0_64, %c0_65] : memref<1x128xf32, #tpu.memory_space<vmem>>, vector<1x128xf32>
      tpu.vector_store %arg9[%c0_64, %c0_65], %142 {strides = array<i32>} : memref<1x128xf32, #tpu.memory_space<vmem>>, vector<1x128xf32>,
    } else {
    }
    return
  }
  func.func @transform_0(%arg0: i32) -> (i32, i32) {
    %c0_i32 = arith.constant 0 : i32
    %c0_i32_0 = arith.constant 0 : i32
    return %arg0, %c0_i32 : i32, i32
  }
  func.func @transform_1(%arg0: i32) -> (i32, i32) {
    %c0_i32 = arith.constant 0 : i32
    %c0_i32_0 = arith.constant 0 : i32
    %c0_i32_1 = arith.constant 0 : i32
    return %c0_i32, %c0_i32_0 : i32, i32
  }
  func.func @transform_2(%arg0: i32) -> (i32, i32) {
    %c0_i32 = arith.constant 0 : i32
    %c0_i32_0 = arith.constant 0 : i32
    %c0_i32_1 = arith.constant 0 : i32
    return %c0_i32, %c0_i32_0 : i32, i32
  }
  func.func @transform_3(%arg0: i32) -> (i32, i32) {
    %c0_i32 = arith.constant 0 : i32
    %c0_i32_0 = arith.constant 0 : i32
    %c0_i32_1 = arith.constant 0 : i32
    return %c0_i32, %c0_i32_0 : i32, i32
  }
  func.func @transform_4(%arg0: i32) -> (i32, i32) {
    %c0_i32 = arith.constant 0 : i32
    %c0_i32_0 = arith.constant 0 : i32
    %c0_i32_1 = arith.constant 0 : i32
    return %c0_i32, %c0_i32_0 : i32, i32
  }
  func.func @transform_5(%arg0: i32) -> (i32, i32) {
    %c0_i32 = arith.constant 0 : i32
    %c0_i32_0 = arith.constant 0 : i32
    %c0_i32_1 = arith.constant 0 : i32
    return %c0_i32, %c0_i32_0 : i32, i32
  }
  func.func @transform_6(%arg0: i32) -> (i32, i32) {
    %c0_i32 = arith.constant 0 : i32
    %c0_i32_0 = arith.constant 0 : i32
    %c0_i32_1 = arith.constant 0 : i32
    return %c0_i32, %c0_i32_0 : i32, i32
  }
  func.func @transform_7(%arg0: i32) -> (i32, i32) {
    %c0_i32 = arith.constant 0 : i32
    %c0_i32_0 = arith.constant 0 : i32
    %c0_i32_1 = arith.constant 0 : i32
    return %c0_i32, %c0_i32_0 : i32, i32
  }
  func.func @transform_8(%arg0: i32) -> (i32, i32) {
    %c0_i32 = arith.constant 0 : i32
    %c0_i32_0 = arith.constant 0 : i32
    %c0_i32_1 = arith.constant 0 : i32
    return %c0_i32, %c0_i32_0 : i32, i32
  }
}

</mosaic_0001>

<bundles_post_ra>
// kernel: convnet_forward.1
= control target key start
LH: loop header
LB: loop body
LE: loop exit
PB: predicated region body
PF: predicated region fallthrough
CT: control target
= control target key end

     0   :  { %13 = vsyncpa [#allocation6], 0  ;;  %s12226_s0 = inlined_call_operand.vmem [shape: bf16[128,400], index: 0, kind: input, shape index: {}]   ;;  %s12227_s1 = inlined_call_operand.hbm [shape: bf16[400,512], index: 1, kind: input, shape index: {}]   ;;  %s12228_s2 = inlined_call_operand.hbm [shape: bf16[512,1152], index: 2, kind: input, shape index: {}]   ;;  %s12229_s3 = inlined_call_operand.vmem [shape: f32[512,8], index: 3, kind: input, shape index: {}]   ;;  %s12230_s4 = inlined_call_operand.hbm [shape: f32[8,512], index: 4, kind: input, shape index: {}]   ;;  %s12231_s5 = inlined_call_operand.vmem [shape: f32[128,4], index: 5, kind: input, shape index: {}]   ;;  %s12232_s6 = inlined_call_operand.hbm [shape: f32[4,128], index: 6, kind: input, shape index: {}]   ;;  %s12233_s7 = inlined_call_operand.hbm [shape: f32[1,256], index: 7, kind: input, shape index: {}]   ;;  %s12234_s8 = inlined_call_operand.vmem [shape: f32[1,128], index: 8, kind: output, shape index: {}]  }
   0x1   :  { %14 = vsyncpa [#allocation8], 0  ;;  %s35_s29 = sshll.u32 %s12228_s2, 4  ;;  %s36_s29 = int_to_ptr.hbm [resolvable:$true] %s35_s29 }
   0x2   :  { %15 = vsyncpa [#allocation11], 0  ;;  %s9033_s30 = smov [#allocation7]   ;;  %s64_s12 = sshll.u32 %s12232_s6, 4  ;;  %s65_s12 = int_to_ptr.hbm [resolvable:$true] %s64_s12 }
   0x3   :  { %s37_s9 = sshll.u32 %s9033_s30, 4  ;;  %s9034_s13 = smov 576   ;;  %s38_s9 = int_to_ptr.vmem [resolvable:$true] %s37_s9 }
   0x4   :  { %s9035_s14 = smov 36   ;;  %s9036_s15 = smov [#allocation10]  }
   0x5   :  { %43 = dma.hbm_to_vmem [thread:$0]  %s36_s29, 36864, %s38_s9, [#allocation8], %s9034_s13, %s9034_s13, %s9035_s14  }
   0x6   :  { %s66_s16 = sshll.u32 %s9036_s15, 4  ;;  %s22_s19 = sshll.u32 %s12227_s1, 4  ;;  %s67_s16 = int_to_ptr.vmem [resolvable:$true] %s66_s16  ;;  %s23_s19 = int_to_ptr.hbm [resolvable:$true] %s22_s19 }
   0x7   :  { %69 = dma.hbm_to_vmem [thread:$0]  %s65_s12, 64, %s67_s16, [#allocation11]  }
   0x8   :  { %s9037_s2 = smov [#allocation5]   ;;  %s51_s6 = sshll.u32 %s12230_s4, 4  ;;  %s52_s6 = int_to_ptr.hbm [resolvable:$true] %s51_s6 }
   0x9   :  { %s24_s20 = sshll.u32 %s9037_s2, 4  ;;  %s9038_s23 = smov 256   ;;  %s25_s20 = int_to_ptr.vmem [resolvable:$true] %s24_s20 }
   0xa   :  { %s9039_s24 = smov 16   ;;  %s9040_s25 = smov [#allocation9]  }
   0xb   :  { %30 = dma.hbm_to_vmem [thread:$0]  %s23_s19, 12800, %s25_s20, [#allocation6], %s9038_s23, %s9038_s23, %s9039_s24  }
   0xc   :  { %s53_s26 = sshll.u32 %s9040_s25, 4  ;;  %s75_s1 = sshll.u32 %s12233_s7, 4  ;;  %s54_s26 = int_to_ptr.vmem [resolvable:$true] %s53_s26  ;;  %s76_s1 = int_to_ptr.hbm [resolvable:$true] %s75_s1 }
   0xd   :  { %56 = dma.hbm_to_vmem [thread:$0]  %s52_s6, 512, %s54_s26, [#allocation8]  }
   0xe   :  { %s9041_s29 = smov [#allocation12]  }
   0xf   :  { %s77_s30 = sshll.u32 %s9041_s29, 4  ;;  %s78_s30 = int_to_ptr.vmem [resolvable:$true] %s77_s30 }
  0x10   :  { %80 = dma.hbm_to_vmem [thread:$0]  %s76_s1, 32, %s78_s30, [#allocation11]  }
  0x11   :  { %9027 = dma.done.wait [#allocation6], 12800  }
  0x12   :  { %9028 = vsyncadd [#allocation6], 4294954496 }
  0x13   :  { %9029 = dma.done.wait [#allocation8], 37376  }
  0x14   :  { %9030 = vsyncadd [#allocation8], 4294929920 }
  0x15   :  { %9031 = dma.done.wait [#allocation11], 96  }
  0x16   :  { %9032 = vsyncadd [#allocation11], 4294967200  ;;  %v6966_v0 = vld [vmem:[#allocation5 + $0xe0] sm:$0xf]  ;;  %v8507_v1 = vld [vmem:[#allocation5 + $0xec] sm:$0xf0] }
  0x17   :  { %v7094_v2 = vld [vmem:[#allocation5 + $0x1e0] sm:$0xf]  ;;  %v6967_v3 = vor.u32 %v8507_v1, %v6966_v0  ;;  %v8539_v4 = vld [vmem:[#allocation5 + $0x1ec] sm:$0xf0]  ;;  %v8446_v9 = vld [vmem:[%s12226_s0 + $0xc] sm:$0xf] }
  0x18   :  { %v7238_v5 = vld [vmem:[#allocation5 + $0x300] sm:$0xf]  ;;  %v8575_v6 = vld [vmem:[#allocation5 + $0x30c] sm:$0xf0]  ;;  %v7095_v7 = vor.u32 %v8539_v4, %v7094_v2  ;;  %v6736_v10 = vld [vmem:[%s12226_s0 + $0x18] sm:$0xf0] }
  0x19   :  { %v7239_v8 = vor.u32 %v8575_v6, %v7238_v5  ;;  %v6950_v11 = vld [vmem:[#allocation5 + $0xc0] sm:$0xf]  ;;  %911 = vmatpush.bf16.msra.mxu0 %v6967_v3  ;;  %v9119_v12 = vor.u32 %v8446_v9, %v6736_v10  ;;  %v8503_v13 = vld [vmem:[#allocation5 + $0xcc] sm:$0xf0]  ;;  %vm886_vm0 = vcmask 130048   ;;  %vm1937_vm2 = vcmask 1040384  }
  0x1a   :  { %v7078_v14 = vld [vmem:[#allocation5 + $0x1c0] sm:$0xf]  ;;  %v8535_v15 = vld [vmem:[#allocation5 + $0x1cc] sm:$0xf0]  ;;  %8865 = vmatpush.bf16.msra.mxu2 %v7095_v7  ;;  %v6951_v16 = vor.u32 %v8503_v13, %v6950_v11  ;;  %960 = vmatpush.bf16.msra.mxu1 %v7095_v7  ;;  %v8450_v35 = vld [vmem:[%s12226_s0 + $0x2c] sm:$0xf] }
  0x1b   :  { %12416 = vst [vmem:[#allocation16_spill] sm:$0xff] %v9119_v12  ;;  %1065 = vmatpush.bf16.msra.mxu3 %v7239_v8  ;;  %v7079_v17 = vor.u32 %v8535_v15, %v7078_v14  ;;  %v6934_v18 = vld [vmem:[#allocation5 + $0xa0] sm:$0xf]  ;;  %v8499_v19 = vld [vmem:[#allocation5 + $0xac] sm:$0xf0]  ;;  %vm1939_vm3 = vcmask 1042434  }
  0x1c   :  { %v7062_v20 = vld [vmem:[#allocation5 + $0x1a0] sm:$0xf]  ;;  %v8531_v21 = vld [vmem:[#allocation5 + $0x1ac] sm:$0xf0]  ;;  %v6935_v22 = vor.u32 %v8499_v19, %v6934_v18  ;;  %v6752_v37 = vld [vmem:[%s12226_s0 + $0x38] sm:$0xf0] }
  0x1d   :  { %912 = vmatpush.bf16.msra.mxu0 %v6951_v16  ;;  %v7063_v23 = vor.u32 %v8531_v21, %v7062_v20  ;;  %v6918_v24 = vld [vmem:[#allocation5 + $0x80] sm:$0xf]  ;;  %v8495_v25 = vld [vmem:[#allocation5 + $0x8c] sm:$0xf0]  ;;  %v9129_v42 = vor.u32 %v8450_v35, %v6752_v37  ;;  %v6726_v58 = vld [vmem:[%s12226_s0] sm:$0xf] }
  0x1e   :  { %7252 = vmatmul.msk.bf16.vlgmr.msra.gmra.mxu3 %vm886_vm0, %v9119_v12  ;;  %8866 = vmatpush.bf16.msra.mxu2 %v7079_v17  ;;  %v7046_v26 = vld [vmem:[#allocation5 + $0x180] sm:$0xf]  ;;  %v8527_v27 = vld [vmem:[#allocation5 + $0x18c] sm:$0xf0]  ;;  %v6919_v28 = vor.u32 %v8495_v25, %v6918_v24  ;;  %v8447_v59 = vld [vmem:[%s12226_s0 + $0xc] sm:$0xf0] }
  0x1f   :  { %961 = vmatpush.bf16.msra.mxu1 %v7079_v17  ;;  %v7047_v29 = vor.u32 %v8527_v27, %v7046_v26  ;;  %v6902_v30 = vld [vmem:[#allocation5 + $0x60] sm:$0xf]  ;;  %v8491_v31 = vld [vmem:[#allocation5 + $0x6c] sm:$0xf0]  ;;  %v8469_v61 = vld [vmem:[%s12226_s0 + $0xc4] sm:$0xf]  ;;  %v9151_v2 = vor.u32 %v8447_v59, %v6726_v58 }
  0x20   :  { %v7030_v32 = vld [vmem:[#allocation5 + $0x160] sm:$0xf]  ;;  %v8523_v33 = vld [vmem:[#allocation5 + $0x16c] sm:$0xf0]  ;;  %v6903_v34 = vor.u32 %v8491_v31, %v6902_v30  ;;  %v6824_v62 = vld [vmem:[%s12226_s0 + $0xd0] sm:$0xf0] }
  0x21   :  { %913 = vmatpush.bf16.msra.mxu0 %v6935_v22  ;;  %v7031_v36 = vor.u32 %v8523_v33, %v7030_v32  ;;  %v6886_v38 = vld [vmem:[#allocation5 + $0x40] sm:$0xf]  ;;  %v8487_v39 = vld [vmem:[#allocation5 + $0x4c] sm:$0xf0]  ;;  %v8445_v0 = vld [vmem:[%s12226_s0 + $0x4] sm:$0xf]  ;;  %v9153_v5 = vor.u32 %v8469_v61, %v6824_v62 }
  0x22   :  { %8867 = vmatpush.bf16.msra.mxu2 %v7063_v23  ;;  %v7014_v40 = vld [vmem:[#allocation5 + $0x140] sm:$0xf]  ;;  %v8519_v41 = vld [vmem:[#allocation5 + $0x14c] sm:$0xf0]  ;;  %v6887_v43 = vor.u32 %v8487_v39, %v6886_v38  ;;  %v6728_v1 = vld [vmem:[%s12226_s0 + $0x10] sm:$0xf0] }
  0x23   :  { %962 = vmatpush.bf16.msra.mxu1 %v7063_v23  ;;  %v7015_v44 = vor.u32 %v8519_v41, %v7014_v40  ;;  %v6870_v45 = vld [vmem:[#allocation5 + $0x20] sm:$0xf]  ;;  %v8483_v46 = vld [vmem:[#allocation5 + $0x2c] sm:$0xf0]  ;;  %12417 = vst [vmem:[#allocation17_spill] sm:$0xff] %v9151_v2  ;;  %v9161_v8 = vor.u32 %v8445_v0, %v6728_v1  ;;  %vm1941_vm4 = vcmask 1041408  }
  0x24   :  { %v6998_v47 = vld [vmem:[#allocation5 + $0x120] sm:$0xf]  ;;  %v8515_v48 = vld [vmem:[#allocation5 + $0x12c] sm:$0xf0]  ;;  %v6871_v49 = vor.u32 %v8483_v46, %v6870_v45  ;;  %12418 = vst [vmem:[#allocation18_spill] sm:$0xff] %v9153_v5  ;;  %s9046_s6 = smov 120  }
  0x25   :  { %914 = vmatpush.bf16.msra.mxu0 %v6919_v28  ;;  %v6999_v50 = vor.u32 %v8515_v48, %v6998_v47  ;;  %v6854_v51 = vld [vmem:[#allocation5] sm:$0xf]  ;;  %v8479_v52 = vld [vmem:[#allocation5 + $0xc] sm:$0xf0]  ;;  %v8454_v6 = vld [vmem:[%s12226_s0 + $0x4c] sm:$0xf] }
  0x26   :  { %8868 = vmatpush.bf16.msra.mxu2 %v7047_v29  ;;  %v6982_v53 = vld [vmem:[#allocation5 + $0x100] sm:$0xf]  ;;  %v8511_v54 = vld [vmem:[#allocation5 + $0x10c] sm:$0xf0]  ;;  %v6855_v57 = vor.u32 %v8479_v52, %v6854_v51  ;;  %v6768_v7 = vld [vmem:[%s12226_s0 + $0x58] sm:$0xf0] }
  0x27   :  { %963 = vmatpush.bf16.msra.mxu1 %v7047_v29  ;;  %v7222_v55 = vld [vmem:[#allocation5 + $0x2e0] sm:$0xf]  ;;  %v8571_v56 = vld [vmem:[#allocation5 + $0x2ec] sm:$0xf0]  ;;  %v6983_v60 = vor.u32 %v8511_v54, %v6982_v53  ;;  %v9165_v13 = vor.u32 %v8454_v6, %v6768_v7  ;;  %v6742_v20 = vld [vmem:[%s12226_s0 + $0x20] sm:$0xf] }
  0x28   :  { %v7223_v63 = vor.u32 %v8571_v56, %v7222_v55  ;;  %v7206_v3 = vld [vmem:[#allocation5 + $0x2c0] sm:$0xf]  ;;  %v8567_v4 = vld [vmem:[#allocation5 + $0x2cc] sm:$0xf0]  ;;  %v8451_v21 = vld [vmem:[%s12226_s0 + $0x2c] sm:$0xf0] }
  0x29   :  { %915 = vmatpush.bf16.msra.mxu0 %v6903_v34  ;;  %v7207_v9 = vor.u32 %v8567_v4, %v7206_v3  ;;  %v7190_v10 = vld [vmem:[#allocation5 + $0x2a0] sm:$0xf]  ;;  %v8563_v11 = vld [vmem:[#allocation5 + $0x2ac] sm:$0xf0]  ;;  %12419 = vst [vmem:[#allocation19_spill] sm:$0xff] %v9165_v13  ;;  %v9188_v27 = vor.u32 %v8451_v21, %v6742_v20  ;;  %vm2327_vm10 = vcmask 64512  }
  0x2a   :  { %8869 = vmatpush.bf16.msra.mxu2 %v7031_v36  ;;  %v7191_v14 = vor.u32 %v8563_v11, %v7190_v10  ;;  %v7174_v15 = vld [vmem:[#allocation5 + $0x280] sm:$0xf]  ;;  %v8559_v16 = vld [vmem:[#allocation5 + $0x28c] sm:$0xf0]  ;;  %v8473_v22 = vld [vmem:[%s12226_s0 + $0xe4] sm:$0xf] }
  0x2b   :  { %964 = vmatpush.bf16.msra.mxu1 %v7031_v36  ;;  %v7175_v17 = vor.u32 %v8559_v16, %v7174_v15  ;;  %v7158_v18 = vld [vmem:[#allocation5 + $0x260] sm:$0xf]  ;;  %v8555_v19 = vld [vmem:[#allocation5 + $0x26c] sm:$0xf0]  ;;  %v6840_v23 = vld [vmem:[%s12226_s0 + $0xf0] sm:$0xf0] }
  0x2c   :  { %v7159_v24 = vor.u32 %v8555_v19, %v7158_v18  ;;  %v8449_v25 = vld [vmem:[%s12226_s0 + $0x24] sm:$0xf]  ;;  %v6744_v26 = vld [vmem:[%s12226_s0 + $0x30] sm:$0xf0]  ;;  %12420 = vst [vmem:[#allocation20_spill] sm:$0xff] %v9188_v27  ;;  %v9190_v30 = vor.u32 %v8473_v22, %v6840_v23  ;;  %s9049_s28 = smov 20  }
  0x2d   :  { %916 = vmatpush.bf16.msra.mxu0 %v6887_v43  ;;  %v7142_v28 = vld [vmem:[#allocation5 + $0x240] sm:$0xf]  ;;  %v8551_v29 = vld [vmem:[#allocation5 + $0x24c] sm:$0xf0]  ;;  %v8458_v31 = vld [vmem:[%s12226_s0 + $0x6c] sm:$0xf]  ;;  %v9198_v33 = vor.u32 %v8449_v25, %v6744_v26 }
  0x2e   :  { %7253 = vmatmul.msk.bf16.gmra.mxu3 %vm886_vm0, %v9129_v42  ;;  %8870 = vmatpush.bf16.msra.mxu2 %v7015_v44  ;;  %12421 = vst [vmem:[#allocation21_spill] sm:$0xff] %v9190_v30  ;;  %v6784_v32 = vld [vmem:[%s12226_s0 + $0x78] sm:$0xf0]  ;;  %v7143_v34 = vor.u32 %v8551_v29, %v7142_v28  ;;  %v7126_v35 = vld [vmem:[#allocation5 + $0x220] sm:$0xf]  ;;  %s9050_s1 = smov 124  }
  0x2f   :  { %965 = vmatpush.bf16.msra.mxu1 %v7015_v44  ;;  %v8547_v36 = vld [vmem:[#allocation5 + $0x22c] sm:$0xf0]  ;;  %v9202_v37 = vor.u32 %v8458_v31, %v6784_v32  ;;  %v7110_v39 = vld [vmem:[#allocation5 + $0x200] sm:$0xf]  ;;  %v6758_v43 = vld [vmem:[%s12226_s0 + $0x40] sm:$0xf] }
  0x30   :  { %v7127_v38 = vor.u32 %v8547_v36, %v7126_v35  ;;  %v8543_v40 = vld [vmem:[#allocation5 + $0x20c] sm:$0xf0]  ;;  %v8455_v44 = vld [vmem:[%s12226_s0 + $0x4c] sm:$0xf0]  ;;  %v6734_v45 = vld [vmem:[%s12226_s0 + $0x8] sm:$0xf] }
  0x31   :  { %917 = vmatpush.bf16.msra.mxu0 %v6871_v49  ;;  %12422 = vst [vmem:[#allocation22_spill] sm:$0xff] %v9202_v37  ;;  %v7111_v41 = vor.u32 %v8543_v40, %v7110_v39  ;;  %v8448_v46 = vld [vmem:[%s12226_s0 + $0x14] sm:$0xf0]  ;;  %v8453_v47 = vld [vmem:[%s12226_s0 + $0x44] sm:$0xf]  ;;  %v9225_v49 = vor.u32 %v8455_v44, %v6758_v43 }
  0x32   :  { %8871 = vmatpush.bf16.msra.mxu2 %v6999_v50  ;;  %v6760_v48 = vld [vmem:[%s12226_s0 + $0x50] sm:$0xf0]  ;;  %v8462_v51 = vld [vmem:[%s12226_s0 + $0x8c] sm:$0xf]  ;;  %v6800_v52 = vld [vmem:[%s12226_s0 + $0x98] sm:$0xf0] }
  0x33   :  { %966 = vmatpush.bf16.msra.mxu1 %v6999_v50  ;;  %v9227_v50 = vor.u32 %v8448_v46, %v6734_v45  ;;  %v9235_v53 = vor.u32 %v8453_v47, %v6760_v48  ;;  %v9239_v54 = vor.u32 %v8462_v51, %v6800_v52  ;;  %v8505_v55 = vld [vmem:[#allocation5 + $0xe4] sm:$0xf]  ;;  %v6968_v56 = vld [vmem:[#allocation5 + $0xf0] sm:$0xf0]  ;;  %v8459_v0 = vld [vmem:[%s12226_s0 + $0x6c] sm:$0xf0] }
  0x34   :  { %v8501_v58 = vld [vmem:[#allocation5 + $0xc4] sm:$0xf]  ;;  %v6952_v59 = vld [vmem:[#allocation5 + $0xd0] sm:$0xf0]  ;;  %v6750_v1 = vld [vmem:[%s12226_s0 + $0x28] sm:$0xf] }
  0x35   :  { %918 = vmatpush.bf16.msra.mxu0 %v6855_v57  ;;  %12423 = vst [vmem:[#allocation23_spill] sm:$0xff] %v9235_v53  ;;  %v6971_v57 = vor.u32 %v8505_v55, %v6968_v56  ;;  %v8497_v61 = vld [vmem:[#allocation5 + $0xa4] sm:$0xf]  ;;  %v6936_v62 = vld [vmem:[#allocation5 + $0xb0] sm:$0xf0] }
  0x36   :  { %8872 = vmatpush.bf16.msra.mxu2 %v6983_v60  ;;  %12424 = vst [vmem:[#allocation24_spill] sm:$0xff] %v9239_v54  ;;  %v8452_v3 = vld [vmem:[%s12226_s0 + $0x34] sm:$0xf0]  ;;  %v6939_v4 = vor.u32 %v8497_v61, %v6936_v62  ;;  %v8457_v6 = vld [vmem:[%s12226_s0 + $0x64] sm:$0xf] }
  0x37   :  { %967 = vmatpush.bf16.msra.mxu1 %v6983_v60  ;;  %1107 = vmatpush.bf16.msrb.mxu3 %v6971_v57  ;;  %v6955_v60 = vor.u32 %v8501_v58, %v6952_v59  ;;  %v6776_v7 = vld [vmem:[%s12226_s0 + $0x70] sm:$0xf0]  ;;  %v9264_v10 = vor.u32 %v8452_v3, %v6750_v1  ;;  %v8466_v11 = vld [vmem:[%s12226_s0 + $0xac] sm:$0xf]  ;;  %v6904_v21 = vld [vmem:[#allocation5 + $0x70] sm:$0xf0] }
  0x38   :  { %919 = vmatmul.bf16.vlgmr.msra.gmra.mxu0 %v9151_v2  ;;  %v9272_v15 = vor.u32 %v8457_v6, %v6776_v7  ;;  %v8493_v16 = vld [vmem:[#allocation5 + $0x84] sm:$0xf]  ;;  %v6872_v28 = vld [vmem:[#allocation5 + $0x30] sm:$0xf0]  ;;  %v6790_v29 = vld [vmem:[%s12226_s0 + $0x80] sm:$0xf] }
  0x39   :  { %998 = vmatmul.bf16.vlgmr.msra.gmra.mxu2 %v9153_v5  ;;  %v8489_v20 = vld [vmem:[#allocation5 + $0x64] sm:$0xf]  ;;  %v8463_v31 = vld [vmem:[%s12226_s0 + $0x8c] sm:$0xf0]  ;;  %v6766_v32 = vld [vmem:[%s12226_s0 + $0x48] sm:$0xf] }
  0x3a   :  { %1009 = vmatpush.bf16.msrb.mxu2 %v7223_v63  ;;  %968 = vmatmul.bf16.vlgmr.msra.gmra.mxu1 %v9161_v8  ;;  %v6774_v63 = vld [vmem:[%s12226_s0 + $0x60] sm:$0xf]  ;;  %v6907_v22 = vor.u32 %v8489_v20, %v6904_v21  ;;  %v8485_v23 = vld [vmem:[#allocation5 + $0x44] sm:$0xf]  ;;  %v8461_v36 = vld [vmem:[%s12226_s0 + $0x84] sm:$0xf]  ;;  %v9299_v39 = vor.u32 %v8463_v31, %v6790_v29 }
  0x3b   :  { %1108 = vmatpush.bf16.msrb.mxu3 %v6955_v60  ;;  %v8481_v26 = vld [vmem:[#allocation5 + $0x24] sm:$0xf]  ;;  %v6832_v43 = vld [vmem:[%s12226_s0 + $0xd8] sm:$0xf0]  ;;  %v6806_v51 = vld [vmem:[%s12226_s0 + $0xa0] sm:$0xf] }
  0x3c   :  { %v6875_v35 = vor.u32 %v8481_v26, %v6872_v28  ;;  %v8477_v45 = vld [vmem:[#allocation5 + $0x4] sm:$0xf]  ;;  %v6856_v46 = vld [vmem:[#allocation5 + $0x10] sm:$0xf0]  ;;  %v8467_v52 = vld [vmem:[%s12226_s0 + $0xac] sm:$0xf0] }
  0x3d   :  { %v6859_v47 = vor.u32 %v8477_v45, %v6856_v46  ;;  %v6782_v55 = vld [vmem:[%s12226_s0 + $0x68] sm:$0xf]  ;;  %v8460_v56 = vld [vmem:[%s12226_s0 + $0x74] sm:$0xf0]  ;;  %v8465_v57 = vld [vmem:[%s12226_s0 + $0xa4] sm:$0xf]  ;;  %v9336_v59 = vor.u32 %v8467_v52, %v6806_v51 }
  0x3e   :  { %1010 = vmatpush.bf16.msrb.mxu2 %v7207_v9  ;;  %7254 = vmatmul.msk.bf16.gmra.mxu3 %vm886_vm0, %v9165_v13  ;;  %v9262_v9 = vor.u32 %v8459_v0, %v6774_v63  ;;  %v6808_v58 = vld [vmem:[%s12226_s0 + $0xb0] sm:$0xf0]  ;;  %v9338_v60 = vor.u32 %v8460_v56, %v6782_v55  ;;  %v8474_v61 = vld [vmem:[%s12226_s0 + $0xec] sm:$0xf]  ;;  %v6848_v62 = vld [vmem:[%s12226_s0 + $0xf8] sm:$0xf0] }
  0x3f   :  { %1109 = vmatpush.bf16.msrb.mxu3 %v6939_v4  ;;  %v9346_v63 = vor.u32 %v8465_v57, %v6808_v58  ;;  %v9350_v0 = vor.u32 %v8474_v61, %v6848_v62  ;;  %v8537_v1 = vld [vmem:[#allocation5 + $0x1e4] sm:$0xf]  ;;  %v7096_v3 = vld [vmem:[#allocation5 + $0x1f0] sm:$0xf0]  ;;  %v6822_v6 = vld [vmem:[%s12226_s0 + $0xc0] sm:$0xf] }
  0x40   :  { %12425 = vst [vmem:[#allocation25_spill] sm:$0xff] %v9262_v9  ;;  %v7099_v4 = vor.u32 %v8537_v1, %v7096_v3  ;;  %v8471_v7 = vld [vmem:[%s12226_s0 + $0xcc] sm:$0xf0]  ;;  %v7208_v26 = vld [vmem:[#allocation5 + $0x2d0] sm:$0xf0] }
  0x41   :  { %12428 = vst [vmem:[#allocation28_spill] sm:$0xff] %v9346_v63  ;;  %v8529_v29 = vld [vmem:[#allocation5 + $0x1a4] sm:$0xf]  ;;  %v7064_v31 = vld [vmem:[#allocation5 + $0x1b0] sm:$0xf0] }
  0x42   :  { %1011 = vmatpush.bf16.msrb.mxu2 %v7191_v14  ;;  %v6816_v14 = vld [vmem:[%s12226_s0 + $0xb8] sm:$0xf0]  ;;  %12429 = vst [vmem:[#allocation29_spill] sm:$0xff] %v9350_v0  ;;  %1156 = vmatpush.bf16.msrb.mxu0 %v7099_v4  ;;  %v6838_v51 = vld [vmem:[%s12226_s0 + $0xe0] sm:$0xf] }
  0x43   :  { %v9276_v19 = vor.u32 %v8466_v11, %v6816_v14  ;;  %v6798_v11 = vld [vmem:[%s12226_s0 + $0x88] sm:$0xf]  ;;  %v8464_v14 = vld [vmem:[%s12226_s0 + $0x94] sm:$0xf0]  ;;  %v7176_v46 = vld [vmem:[#allocation5 + $0x290] sm:$0xf0] }
  0x44   :  { %v9369_v21 = vor.u32 %v8464_v14, %v6798_v11  ;;  %v8475_v52 = vld [vmem:[%s12226_s0 + $0xec] sm:$0xf0]  ;;  %v8521_v55 = vld [vmem:[#allocation5 + $0x164] sm:$0xf]  ;;  %v7032_v56 = vld [vmem:[#allocation5 + $0x170] sm:$0xf0] }
  0x45   :  { %12426 = vst [vmem:[#allocation26_spill] sm:$0xff] %v9276_v19  ;;  %v6814_v57 = vld [vmem:[%s12226_s0 + $0xa8] sm:$0xf]  ;;  %v8468_v58 = vld [vmem:[%s12226_s0 + $0xb4] sm:$0xf0]  ;;  %v7035_v61 = vor.u32 %v8521_v55, %v7032_v56  ;;  %v9386_v3 = vor.u32 %v8475_v52, %v6838_v51 }
  0x46   :  { %1012 = vmatpush.bf16.msrb.mxu2 %v7175_v17  ;;  %v6920_v17 = vld [vmem:[#allocation5 + $0x90] sm:$0xf0]  ;;  %12431 = vst [vmem:[#allocation31_spill] sm:$0xff] %v9369_v21  ;;  %v8553_v62 = vld [vmem:[#allocation5 + $0x264] sm:$0xf] }
  0x47   :  { %v6923_v18 = vor.u32 %v8493_v16, %v6920_v17  ;;  %v8569_v16 = vld [vmem:[#allocation5 + $0x2e4] sm:$0xf]  ;;  %v7224_v17 = vld [vmem:[#allocation5 + $0x2f0] sm:$0xf0]  ;;  %12432 = vst [vmem:[#allocation32_spill] sm:$0xff] %v9386_v3 }
  0x48   :  { %924 = vmatmul.bf16.gmra.mxu0 %v9188_v27  ;;  %v7227_v20 = vor.u32 %v8569_v16, %v7224_v17  ;;  %v7160_v1 = vld [vmem:[#allocation5 + $0x270] sm:$0xf0]  ;;  %v8549_v16 = vld [vmem:[#allocation5 + $0x244] sm:$0xf] }
  0x49   :  { %1003 = vmatmul.bf16.gmra.mxu2 %v9190_v30  ;;  %1110 = vmatpush.bf16.msrb.mxu3 %v6923_v18  ;;  %v9367_v18 = vor.u32 %v8471_v7, %v6822_v6  ;;  %v7163_v4 = vor.u32 %v8553_v62, %v7160_v1  ;;  %v9388_v6 = vor.u32 %v8468_v58, %v6814_v57  ;;  %v8517_v7 = vld [vmem:[#allocation5 + $0x144] sm:$0xf]  ;;  %v7016_v11 = vld [vmem:[#allocation5 + $0x150] sm:$0xf0] }
  0x4a   :  { %1013 = vmatpush.bf16.msrb.mxu2 %v7159_v24  ;;  %973 = vmatmul.bf16.gmra.mxu1 %v9198_v33  ;;  %v6888_v24 = vld [vmem:[#allocation5 + $0x50] sm:$0xf0]  ;;  %v7019_v14 = vor.u32 %v8517_v7, %v7016_v11  ;;  %v8476_v7 = vld [vmem:[%s12226_s0 + $0xf4] sm:$0xf0] }
  0x4b   :  { %v6891_v25 = vor.u32 %v8485_v23, %v6888_v24  ;;  %12430 = vst [vmem:[#allocation30_spill] sm:$0xff] %v9367_v18  ;;  %v7080_v23 = vld [vmem:[#allocation5 + $0x1d0] sm:$0xf0]  ;;  %1205 = vmatpush.bf16.msrb.mxu1 %v7227_v20 }
  0x4c   :  { %12433 = vst [vmem:[#allocation33_spill] sm:$0xff] %v9388_v6  ;;  %v7144_v17 = vld [vmem:[#allocation5 + $0x250] sm:$0xf0] }
  0x4d   :  { %1111 = vmatpush.bf16.msrb.mxu3 %v6907_v22  ;;  %v8533_v22 = vld [vmem:[#allocation5 + $0x1c4] sm:$0xf]  ;;  %v7147_v20 = vor.u32 %v8549_v16, %v7144_v17 }
  0x4e   :  { %1014 = vmatpush.bf16.msrb.mxu2 %v7143_v34  ;;  %7255 = vmatmul.msk.bf16.gmra.mxu3 %vm886_vm0, %v9202_v37  ;;  %v8456_v34 = vld [vmem:[%s12226_s0 + $0x54] sm:$0xf0]  ;;  %v7083_v24 = vor.u32 %v8533_v22, %v7080_v23  ;;  %v8513_v22 = vld [vmem:[#allocation5 + $0x124] sm:$0xf]  ;;  %v7000_v23 = vld [vmem:[#allocation5 + $0x130] sm:$0xf0] }
  0x4f   :  { %v9301_v40 = vor.u32 %v8456_v34, %v6766_v32  ;;  %v7067_v32 = vor.u32 %v8529_v29, %v7064_v31  ;;  %v8561_v34 = vld [vmem:[#allocation5 + $0x2a4] sm:$0xf] }
  0x50   :  { %1157 = vmatpush.bf16.msrb.mxu0 %v7083_v24  ;;  %v7003_v24 = vor.u32 %v8513_v22, %v7000_v23  ;;  %v8509_v31 = vld [vmem:[#allocation5 + $0x104] sm:$0xf] }
  0x51   :  { %1112 = vmatpush.bf16.msrb.mxu3 %v6891_v25  ;;  %v8565_v25 = vld [vmem:[#allocation5 + $0x2c4] sm:$0xf] }
  0x52   :  { %1015 = vmatpush.bf16.msrb.mxu2 %v7127_v38  ;;  %v6792_v38 = vld [vmem:[%s12226_s0 + $0x90] sm:$0xf0]  ;;  %v7211_v28 = vor.u32 %v8565_v25, %v7208_v26  ;;  %v8545_v25 = vld [vmem:[#allocation5 + $0x224] sm:$0xf]  ;;  %v7128_v26 = vld [vmem:[#allocation5 + $0x230] sm:$0xf0] }
  0x53   :  { %v9309_v44 = vor.u32 %v8461_v36, %v6792_v38  ;;  %v8525_v38 = vld [vmem:[#allocation5 + $0x184] sm:$0xf] }
  0x54   :  { %1206 = vmatpush.bf16.msrb.mxu1 %v7211_v28  ;;  %1158 = vmatpush.bf16.msrb.mxu0 %v7067_v32  ;;  %v7131_v28 = vor.u32 %v8545_v25, %v7128_v26  ;;  %v6984_v32 = vld [vmem:[#allocation5 + $0x110] sm:$0xf0] }
  0x55   :  { %12427 = vst [vmem:[#allocation27_spill] sm:$0xff] %v9309_v44  ;;  %1113 = vmatpush.bf16.msrb.mxu3 %v6875_v35  ;;  %v7192_v35 = vld [vmem:[#allocation5 + $0x2b0] sm:$0xf0] }
  0x56   :  { %1016 = vmatpush.bf16.msrb.mxu2 %v7111_v41  ;;  %v8470_v41 = vld [vmem:[%s12226_s0 + $0xcc] sm:$0xf]  ;;  %v7195_v36 = vor.u32 %v8561_v34, %v7192_v35  ;;  %v6987_v35 = vor.u32 %v8509_v31, %v6984_v32 }
  0x57   :  { %v9313_v48 = vor.u32 %v8470_v41, %v6832_v43  ;;  %v7048_v41 = vld [vmem:[#allocation5 + $0x190] sm:$0xf0]  ;;  %v8557_v43 = vld [vmem:[#allocation5 + $0x284] sm:$0xf] }
  0x58   :  { %929 = vmatmul.bf16.gmra.mxu0 %v9225_v49  ;;  %1207 = vmatpush.bf16.msrb.mxu1 %v7195_v36  ;;  %v7051_v45 = vor.u32 %v8525_v38, %v7048_v41  ;;  %v8573_v34 = vld [vmem:[#allocation5 + $0x304] sm:$0xf]  ;;  %v7240_v36 = vld [vmem:[#allocation5 + $0x310] sm:$0xf0] }
  0x59   :  { %1017 = vmatmul.bf16.vlgmr.msrb.gmra.mxu2 %v9227_v50  ;;  %1114 = vmatpush.bf16.msrb.mxu3 %v6859_v47  ;;  %v7179_v47 = vor.u32 %v8557_v43, %v7176_v46  ;;  %v8541_v38 = vld [vmem:[#allocation5 + $0x204] sm:$0xf]  ;;  %v7112_v41 = vld [vmem:[#allocation5 + $0x210] sm:$0xf0]  ;;  %v7243_v43 = vor.u32 %v8573_v34, %v7240_v36  ;;  %v6830_v46 = vld [vmem:[%s12226_s0 + $0xc8] sm:$0xf] }
  0x5a   :  { %978 = vmatmul.bf16.gmra.mxu1 %v9235_v53  ;;  %1159 = vmatpush.bf16.msrb.mxu0 %v7051_v45  ;;  %v7115_v45 = vor.u32 %v8541_v38, %v7112_v41  ;;  %v6974_v36 = vld [vmem:[#allocation5 + $0xe8] sm:$0xf]  ;;  %v8508_v38 = vld [vmem:[#allocation5 + $0xf4] sm:$0xf0] }
  0x5b   :  { %1261 = vmatpush.bf16.msra.mxu2 %v7243_v43  ;;  %v6975_v43 = vor.u32 %v8508_v38, %v6974_v36 }
  0x5c   :  { %1208 = vmatpush.bf16.msrb.mxu1 %v7179_v47  ;;  %v8472_v47 = vld [vmem:[%s12226_s0 + $0xd4] sm:$0xf0] }
  0x5d   :  { %v9399_v52 = vor.u32 %v8472_v47, %v6830_v46  ;;  %1303 = vmatpush.bf16.msra.mxu3 %v6975_v43  ;;  %v6926_v43 = vld [vmem:[#allocation5 + $0x88] sm:$0xf] }
  0x5e   :  { %7256 = vmatmul.msk.bf16.gmra.mxu3 %vm886_vm0, %v9239_v54  ;;  %1160 = vmatpush.bf16.msrb.mxu0 %v7035_v61 }
  0x5f   :  { %12434 = vst [vmem:[#allocation34_spill] sm:$0xff] %v9399_v52 }
  0x60   :  { %1209 = vmatpush.bf16.msrb.mxu1 %v7163_v4  ;;  %v6846_v4 = vld [vmem:[%s12226_s0 + $0xe8] sm:$0xf] }
  0x61   :  { %v9417_v16 = vor.u32 %v8476_v7, %v6846_v4  ;;  %v6958_v4 = vld [vmem:[#allocation5 + $0xc8] sm:$0xf]  ;;  %v8504_v7 = vld [vmem:[#allocation5 + $0xd4] sm:$0xf0] }
  0x62   :  { %1161 = vmatpush.bf16.msrb.mxu0 %v7019_v14 }
  0x63   :  { %12435 = vst [vmem:[#allocation35_spill] sm:$0xff] %v9417_v16 }
  0x64   :  { %1210 = vmatpush.bf16.msrb.mxu1 %v7147_v20 }
  0x66   :  { %1162 = vmatpush.bf16.msrb.mxu0 %v7003_v24 }
  0x68   :  { %934 = vmatmul.bf16.gmra.mxu0 %v9262_v9  ;;  %1211 = vmatpush.bf16.msrb.mxu1 %v7131_v28 }
  0x69   :  { %1022 = vmatmul.bf16.gmra.mxu2 %v9264_v10 }
  0x6a   :  { %983 = vmatmul.bf16.gmra.mxu1 %v9272_v15  ;;  %1163 = vmatpush.bf16.msrb.mxu0 %v6987_v35 }
  0x6c   :  { %1212 = vmatpush.bf16.msrb.mxu1 %v7115_v45 }
  0x6e   :  { %7257 = vmatmul.msk.bf16.gmra.mxu3 %vm886_vm0, %v9276_v19 }
  0x78   :  { %939 = vmatmul.bf16.gmra.mxu0 %v9299_v39 }
  0x79   :  { %1027 = vmatmul.bf16.gmra.mxu2 %v9301_v40 }
  0x7a   :  { %988 = vmatmul.bf16.gmra.mxu1 %v9309_v44 }
  0x7e   :  { %7258 = vmatmul.msk.bf16.gmra.mxu3 %vm886_vm0, %v9313_v48 }
  0x88   :  { %944 = vmatmul.bf16.gmra.mxu0 %v9336_v59 }
  0x89   :  { %1032 = vmatmul.bf16.gmra.mxu2 %v9338_v60 }
  0x8a   :  { %993 = vmatmul.bf16.gmra.mxu1 %v9346_v63 }
  0x8e   :  { %7259 = vmatmul.msk.bf16.gmra.mxu3 %vm886_vm0, %v9350_v0 }
  0x98   :  { %949 = vmatmul.bf16.gmra.mxu0 %v9367_v18 }
  0x99   :  { %1037 = vmatmul.bf16.gmra.mxu2 %v9369_v21 }
  0x9a   :  { %1213 = vmatmul.bf16.vlgmr.msrb.gmra.mxu1 %v9227_v50 }
  0x9e   :  { %1115 = vmatmul.bf16.vlgmr.msrb.gmra.mxu3 %v9151_v2 }
  0xa1   :  { %v1067_v29 = vpop.f32.mrf.mxu3 }
  0xa8   :  { %954 = vmatmul.bf16.gmra.mxu0 %v9386_v3 }
  0xa9   :  { %1042 = vmatmul.bf16.gmra.mxu2 %v9388_v6  ;;  %v1069_v55 = vpop.f32.mrf.mxu3 }
  0xaa   :  { %1218 = vmatmul.bf16.gmra.mxu1 %v9264_v10 }
  0xae   :  { %1120 = vmatmul.bf16.gmra.mxu3 %v9188_v27 }
  0xb1   :  { %v9407_v1 = vpop.f32.mrf.mxu3 }
  0xb5   :  { %v920_v51 = vpop.f32.mrf.mxu0 }
  0xb7   :  { %v969_v56 = vpop.f32.mrf.mxu1 }
  0xb8   :  { %v970_v57 = vadd.f32 %v969_v56, %v920_v51  ;;  %1164 = vmatmul.bf16.vlgmr.msrb.gmra.mxu0 %v9161_v8 }
  0xb9   :  { %1047 = vmatmul.bf16.gmra.mxu2 %v9399_v52  ;;  %v9420_v20 = vpop.f32.mrf.mxu3 }
  0xba   :  { %1223 = vmatmul.bf16.gmra.mxu1 %v9301_v40 }
  0xbc   :  { %v9404_v58 = vpop.f32.mrf.mxu2 }
  0xbd   :  { %v922_v61 = vpop.f32.mrf.mxu0 }
  0xbe   :  { %1125 = vmatmul.bf16.gmra.mxu3 %v9225_v49 }
  0xbf   :  { %v971_v62 = vpop.f32.mrf.mxu1 }
  0xc1   :  { %v9427_v26 = vpop.f32.mrf.mxu3 }
  0xc4   :  { %v9415_v11 = vpop.f32.mrf.mxu2 }
  0xc5   :  { %v925_v14 = vpop.f32.mrf.mxu0 }
  0xc7   :  { %v974_v17 = vpop.f32.mrf.mxu1 }
  0xc8   :  { %v975_v22 = vadd.f32 %v974_v17, %v925_v14  ;;  %1169 = vmatmul.bf16.gmra.mxu0 %v9198_v33  ;;  %v6959_v17 = vor.u32 %v8504_v7, %v6958_v4 }
  0xc9   :  { %1052 = vmatmul.bf16.gmra.mxu2 %v9417_v16  ;;  %v9432_v34 = vpop.f32.mrf.mxu3 }
  0xca   :  { %1304 = vmatpush.bf16.msra.mxu3 %v6959_v17  ;;  %1228 = vmatmul.bf16.gmra.mxu1 %v9338_v60  ;;  %v6894_v17 = vld [vmem:[#allocation5 + $0x48] sm:$0xf] }
  0xcc   :  { %v9424_v23 = vpop.f32.mrf.mxu2 }
  0xcd   :  { %v927_v24 = vpop.f32.mrf.mxu0 }
  0xce   :  { %1130 = vmatmul.bf16.gmra.mxu3 %v9262_v9 }
  0xcf   :  { %v976_v25 = vpop.f32.mrf.mxu1 }
  0xd1   :  { %v9442_v56 = vpop.f32.mrf.mxu3 }
  0xd4   :  { %v9429_v28 = vpop.f32.mrf.mxu2 }
  0xd5   :  { %v930_v31 = vpop.f32.mrf.mxu0 }
  0xd7   :  { %v979_v32 = vpop.f32.mrf.mxu1 }
  0xd8   :  { %v9434_v35 = vadd.f32 %v979_v32, %v930_v31  ;;  %1174 = vmatmul.bf16.gmra.mxu0 %v9235_v53  ;;  %v972_v31 = vadd.f32 %v971_v62, %v922_v61  ;;  %v6942_v32 = vld [vmem:[#allocation5 + $0xa8] sm:$0xf] }
  0xd9   :  { %7260 = vmatmul.msk.bf16.vlgmr.msra.gmra.mxu2 %vm886_vm0, %v9119_v12  ;;  %v8500_v12 = vld [vmem:[#allocation5 + $0xb4] sm:$0xf0]  ;;  %v6910_v61 = vld [vmem:[#allocation5 + $0x68] sm:$0xf] }
  0xda   :  { %v6943_v36 = vor.u32 %v8500_v12, %v6942_v32  ;;  %v8492_v12 = vld [vmem:[#allocation5 + $0x74] sm:$0xf0]  ;;  %1233 = vmatmul.bf16.gmra.mxu1 %v9369_v21 }
  0xdb   :  { %v6911_v62 = vor.u32 %v8492_v12, %v6910_v61 }
  0xdc   :  { %v1018_v41 = vpop.f32.mrf.mxu2  ;;  %1305 = vmatpush.bf16.msra.mxu3 %v6943_v36  ;;  %v977_v36 = vadd.f32 %v976_v25, %v927_v24 }
  0xdd   :  { %v1019_v45 = vadd.f32 %v1018_v41, %v970_v57  ;;  %v932_v46 = vpop.f32.mrf.mxu0  ;;  %v9447_v41 = vpop.f32.mrf.mxu3 }
  0xde   :  { %1135 = vmatmul.bf16.gmra.mxu3 %v9299_v39 }
  0xdf   :  { %v9440_v47 = vadd.f32 %v1067_v29, %v1019_v45  ;;  %v981_v51 = vpop.f32.mrf.mxu1  ;;  %v8496_v45 = vld [vmem:[#allocation5 + $0x94] sm:$0xf0] }
  0xe0   :  { %v982_v14 = vadd.f32 %v981_v51, %v932_v46  ;;  %v6927_v46 = vor.u32 %v8496_v45, %v6926_v43  ;;  %v8484_v43 = vld [vmem:[#allocation5 + $0x34] sm:$0xf0] }
  0xe1   :  { %12436 = vst [vmem:[#allocation36_spill] sm:$0xff] %v9440_v47  ;;  %v8544_v47 = vld [vmem:[#allocation5 + $0x214] sm:$0xf0] }
  0xe2   :  { %1306 = vmatpush.bf16.msra.mxu3 %v6927_v46 }
  0xe4   :  { %v1020_v53 = vpop.f32.mrf.mxu2 }
  0xe5   :  { %v1021_v57 = vadd.f32 %v1020_v53, %v972_v31  ;;  %v935_v38 = vpop.f32.mrf.mxu0  ;;  %v9456_v7 = vpop.f32.mrf.mxu3  ;;  %v8488_v31 = vld [vmem:[#allocation5 + $0x54] sm:$0xf0] }
  0xe6   :  { %1307 = vmatpush.bf16.msra.mxu3 %v6911_v62  ;;  %v6895_v32 = vor.u32 %v8488_v31, %v6894_v17  ;;  %v8480_v62 = vld [vmem:[#allocation5 + $0x14] sm:$0xf0] }
  0xe7   :  { %v9445_v29 = vadd.f32 %v1069_v55, %v1021_v57  ;;  %v6878_v57 = vld [vmem:[#allocation5 + $0x28] sm:$0xf] }
  0xe8   :  { %1179 = vmatmul.bf16.gmra.mxu0 %v9272_v15  ;;  %v6879_v46 = vor.u32 %v8484_v43, %v6878_v57 }
  0xe9   :  { %12437 = vst [vmem:[#allocation37_spill] sm:$0xff] %v9445_v29  ;;  %7261 = vmatmul.msk.bf16.gmra.mxu2 %vm886_vm0, %v9129_v42 }
  0xea   :  { %1308 = vmatpush.bf16.msra.mxu3 %v6895_v32  ;;  %1238 = vmatmul.bf16.gmra.mxu1 %v9388_v6  ;;  %v8572_v6 = vld [vmem:[#allocation5 + $0x2f4] sm:$0xf0] }
  0xec   :  { %v1023_v53 = vpop.f32.mrf.mxu2 }
  0xed   :  { %v1024_v51 = vadd.f32 %v1023_v53, %v975_v22  ;;  %v937_v55 = vpop.f32.mrf.mxu0  ;;  %v9464_v12 = vpop.f32.mrf.mxu3  ;;  %v6862_v53 = vld [vmem:[#allocation5 + $0x8] sm:$0xf] }
  0xee   :  { %1140 = vmatmul.bf16.gmra.mxu3 %v9336_v59  ;;  %v6863_v24 = vor.u32 %v8480_v62, %v6862_v53 }
  0xef   :  { %v9454_v4 = vadd.f32 %v9407_v1, %v1024_v51  ;;  %1309 = vmatpush.bf16.msra.mxu3 %v6879_v46  ;;  %v984_v51 = vpop.f32.mrf.mxu1 }
  0xf1   :  { %12438 = vst [vmem:[#allocation38_spill] sm:$0xff] %v9454_v4 }
  0xf3   :  { %1310 = vmatpush.bf16.msra.mxu3 %v6863_v24 }
  0xf4   :  { %v1025_v45 = vpop.f32.mrf.mxu2 }
  0xf5   :  { %v1026_v61 = vadd.f32 %v1025_v45, %v977_v36  ;;  %v9458_v22 = vpop.f32.mrf.mxu0  ;;  %v9476_v32 = vpop.f32.mrf.mxu3 }
  0xf7   :  { %v9462_v1 = vadd.f32 %v9420_v20, %v1026_v61  ;;  %v986_v36 = vpop.f32.mrf.mxu1 }
  0xf8   :  { %1184 = vmatmul.bf16.gmra.mxu0 %v9309_v44 }
  0xf9   :  { %12439 = vst [vmem:[#allocation39_spill] sm:$0xff] %v9462_v1  ;;  %7262 = vmatmul.msk.bf16.gmra.mxu2 %vm886_vm0, %v9165_v13 }
  0xfa   :  { %1243 = vmatmul.bf16.gmra.mxu1 %v9399_v52 }
  0xfc   :  { %v1028_v25 = vpop.f32.mrf.mxu2 }
  0xfd   :  { %v1029_v17 = vadd.f32 %v1028_v25, %v9434_v35  ;;  %v9471_v31 = vpop.f32.mrf.mxu0  ;;  %v9484_v35 = vpop.f32.mrf.mxu3  ;;  %v7102_v25 = vld [vmem:[#allocation5 + $0x1e8] sm:$0xf] }
  0xfe   :  { %1145 = vmatmul.bf16.gmra.mxu3 %v9367_v18 }
  0xff   :  { %v9474_v20 = vadd.f32 %v9427_v26, %v1029_v17  ;;  %v985_v26 = vadd.f32 %v984_v51, %v935_v38  ;;  %v989_v53 = vpop.f32.mrf.mxu1  ;;  %v8540_v17 = vld [vmem:[#allocation5 + $0x1f4] sm:$0xf0] }
 0x101   :  { %12440 = vst [vmem:[#allocation40_spill] sm:$0xff] %v9474_v20 }
 0x104   :  { %v1030_v57 = vpop.f32.mrf.mxu2 }
 0x105   :  { %v1031_v43 = vadd.f32 %v1030_v57, %v982_v14  ;;  %v9478_v45 = vpop.f32.mrf.mxu0  ;;  %v7103_v57 = vor.u32 %v8540_v17, %v7102_v25  ;;  %v8568_v25 = vld [vmem:[#allocation5 + $0x2d4] sm:$0xf0]  ;;  %v8506_v17 = vld [vmem:[#allocation5 + $0xec] sm:$0xf] }
 0x107   :  { %v9482_v46 = vadd.f32 %v9432_v34, %v1031_v43  ;;  %v9495_v34 = vpop.f32.mrf.mxu3  ;;  %v987_v43 = vadd.f32 %v986_v36, %v937_v55  ;;  %1352 = vmatpush.bf16.msra.mxu0 %v7103_v57  ;;  %v7214_v36 = vld [vmem:[#allocation5 + $0x2c8] sm:$0xf] }
 0x108   :  { %1189 = vmatmul.bf16.gmra.mxu0 %v9346_v63  ;;  %v7230_v63 = vld [vmem:[#allocation5 + $0x2e8] sm:$0xf] }
 0x109   :  { %12441 = vst [vmem:[#allocation41_spill] sm:$0xff] %v9482_v46  ;;  %7263 = vmatmul.msk.bf16.gmra.mxu2 %vm886_vm0, %v9202_v37  ;;  %v7231_v38 = vor.u32 %v8572_v6, %v7230_v63  ;;  %v7070_v63 = vld [vmem:[#allocation5 + $0x1a8] sm:$0xf]  ;;  %v8532_v6 = vld [vmem:[#allocation5 + $0x1b4] sm:$0xf0] }
 0x10a   :  { %v7071_v57 = vor.u32 %v8532_v6, %v7070_v63  ;;  %v6960_v63 = vld [vmem:[#allocation5 + $0xd8] sm:$0xf0]  ;;  %1248 = vmatmul.bf16.gmra.mxu1 %v9417_v16 }
 0x10b   :  { %1401 = vmatpush.bf16.msra.mxu1 %v7231_v38  ;;  %v7198_v38 = vld [vmem:[#allocation5 + $0x2a8] sm:$0xf] }
 0x10c   :  { %v1033_v61 = vpop.f32.mrf.mxu2 }
 0x10d   :  { %v1034_v62 = vadd.f32 %v1033_v61, %v985_v26  ;;  %v9490_v14 = vpop.f32.mrf.mxu0  ;;  %v7086_v61 = vld [vmem:[#allocation5 + $0x1c8] sm:$0xf] }
 0x10e   :  { %1150 = vmatmul.bf16.gmra.mxu3 %v9386_v3  ;;  %v8536_v3 = vld [vmem:[#allocation5 + $0x1d4] sm:$0xf0] }
 0x10f   :  { %v9493_v24 = vadd.f32 %v9442_v56, %v1034_v62  ;;  %v9500_v56 = vpop.f32.mrf.mxu1  ;;  %v7087_v62 = vor.u32 %v8536_v3, %v7086_v61  ;;  %v9505_v55 = vpop.f32.mrf.mxu3  ;;  %v6976_v3 = vld [vmem:[#allocation5 + $0xf8] sm:$0xf0] }
 0x111   :  { %12442 = vst [vmem:[#allocation42_spill] sm:$0xff] %v9493_v24  ;;  %1353 = vmatpush.bf16.msra.mxu0 %v7087_v62  ;;  %v7054_v62 = vld [vmem:[#allocation5 + $0x188] sm:$0xf] }
 0x114   :  { %v1035_v37 = vpop.f32.mrf.mxu2 }
 0x115   :  { %v1036_v51 = vadd.f32 %v1035_v37, %v987_v43  ;;  %v9497_v26 = vpop.f32.mrf.mxu0  ;;  %v7215_v37 = vor.u32 %v8568_v25, %v7214_v36  ;;  %v6979_v43 = vor.u32 %v8506_v17, %v6976_v3  ;;  %1354 = vmatpush.bf16.msra.mxu0 %v7071_v57  ;;  %v8528_v25 = vld [vmem:[#allocation5 + $0x194] sm:$0xf0]  ;;  %v7182_v17 = vld [vmem:[#allocation5 + $0x288] sm:$0xf] }
 0x116   :  { %v8560_v3 = vld [vmem:[#allocation5 + $0x294] sm:$0xf0]  ;;  %v7038_v57 = vld [vmem:[#allocation5 + $0x168] sm:$0xf] }
 0x117   :  { %v9503_v18 = vadd.f32 %v9447_v41, %v1036_v51  ;;  %1402 = vmatpush.bf16.msra.mxu1 %v7215_v37  ;;  %v990_v41 = vadd.f32 %v989_v53, %v9458_v22  ;;  %v8564_v51 = vld [vmem:[#allocation5 + $0x2b4] sm:$0xf0]  ;;  %1499 = vmatpush.bf16.msrb.mxu3 %v6979_v43  ;;  %v7055_v37 = vor.u32 %v8528_v25, %v7054_v62  ;;  %v9517_v53 = vpop.f32.mrf.mxu3  ;;  %v6944_v43 = vld [vmem:[#allocation5 + $0xb8] sm:$0xf0]  ;;  %v7166_v25 = vld [vmem:[#allocation5 + $0x268] sm:$0xf] }
 0x118   :  { %1194 = vmatmul.bf16.gmra.mxu0 %v9153_v5  ;;  %v7199_v52 = vor.u32 %v8564_v51, %v7198_v38  ;;  %v7183_v38 = vor.u32 %v8560_v3, %v7182_v17  ;;  %v8524_v51 = vld [vmem:[#allocation5 + $0x174] sm:$0xf0]  ;;  %v8494_v17 = vld [vmem:[#allocation5 + $0x8c] sm:$0xf]  ;;  %v6928_v3 = vld [vmem:[#allocation5 + $0x98] sm:$0xf0] }
 0x119   :  { %12443 = vst [vmem:[#allocation43_spill] sm:$0xff] %v9503_v18  ;;  %7264 = vmatmul.msk.bf16.gmra.mxu2 %vm886_vm0, %v9239_v54  ;;  %v8502_v54 = vld [vmem:[#allocation5 + $0xcc] sm:$0xf]  ;;  %1355 = vmatpush.bf16.msra.mxu0 %v7055_v37  ;;  %v8520_v37 = vld [vmem:[#allocation5 + $0x154] sm:$0xf0] }
 0x11a   :  { %v6963_v6 = vor.u32 %v8502_v54, %v6960_v63  ;;  %v7022_v63 = vld [vmem:[#allocation5 + $0x148] sm:$0xf] }
 0x11b   :  { %1403 = vmatpush.bf16.msra.mxu1 %v7199_v52  ;;  %v7039_v52 = vor.u32 %v8524_v51, %v7038_v57  ;;  %v6931_v57 = vor.u32 %v8494_v17, %v6928_v3  ;;  %v7150_v51 = vld [vmem:[#allocation5 + $0x248] sm:$0xf]  ;;  %v8548_v17 = vld [vmem:[#allocation5 + $0x234] sm:$0xf0] }
 0x11c   :  { %v1038_v61 = vpop.f32.mrf.mxu2  ;;  %1500 = vmatpush.bf16.msrb.mxu3 %v6963_v6  ;;  %v7023_v6 = vor.u32 %v8520_v37, %v7022_v63  ;;  %v7134_v37 = vld [vmem:[#allocation5 + $0x228] sm:$0xf] }
 0x11d   :  { %v1039_v13 = vadd.f32 %v1038_v61, %v990_v41  ;;  %v9512_v36 = vpop.f32.mrf.mxu0  ;;  %v9519_v41 = vpop.f32.mrf.mxu1  ;;  %v8498_v61 = vld [vmem:[#allocation5 + $0xac] sm:$0xf]  ;;  %1356 = vmatpush.bf16.msra.mxu0 %v7039_v52  ;;  %v7006_v52 = vld [vmem:[#allocation5 + $0x128] sm:$0xf] }
 0x11e   :  { %1311 = vmatmul.bf16.vlgmr.msra.gmra.mxu3 %v9151_v2  ;;  %v6947_v62 = vor.u32 %v8498_v61, %v6944_v43  ;;  %v8552_v61 = vld [vmem:[#allocation5 + $0x254] sm:$0xf0]  ;;  %v7118_v5 = vld [vmem:[#allocation5 + $0x208] sm:$0xf] }
 0x11f   :  { %v9515_v22 = vadd.f32 %v9456_v7, %v1039_v13  ;;  %1404 = vmatpush.bf16.msra.mxu1 %v7183_v38  ;;  %v8556_v13 = vld [vmem:[#allocation5 + $0x274] sm:$0xf0]  ;;  %v9526_v38 = vpop.f32.mrf.mxu3  ;;  %v7151_v43 = vor.u32 %v8552_v61, %v7150_v51 }
 0x120   :  { %v7167_v2 = vor.u32 %v8556_v13, %v7166_v25  ;;  %1501 = vmatpush.bf16.msrb.mxu3 %v6947_v62  ;;  %v8516_v25 = vld [vmem:[#allocation5 + $0x134] sm:$0xf0]  ;;  %v8490_v13 = vld [vmem:[#allocation5 + $0x6c] sm:$0xf]  ;;  %v6912_v62 = vld [vmem:[#allocation5 + $0x78] sm:$0xf0] }
 0x121   :  { %12444 = vst [vmem:[#allocation44_spill] sm:$0xff] %v9515_v22  ;;  %1357 = vmatpush.bf16.msra.mxu0 %v7023_v6  ;;  %v6915_v63 = vor.u32 %v8490_v13, %v6912_v62  ;;  %v6990_v6 = vld [vmem:[#allocation5 + $0x108] sm:$0xf]  ;;  %v8512_v61 = vld [vmem:[#allocation5 + $0x114] sm:$0xf0] }
 0x122   :  { %v7246_v13 = vld [vmem:[#allocation5 + $0x308] sm:$0xf]  ;;  %v8576_v62 = vld [vmem:[#allocation5 + $0x314] sm:$0xf0] }
 0x123   :  { %1405 = vmatpush.bf16.msra.mxu1 %v7167_v2  ;;  %v7007_v2 = vor.u32 %v8516_v25, %v7006_v52  ;;  %v7247_v44 = vor.u32 %v8576_v62, %v7246_v13 }
 0x124   :  { %v9521_v7 = vpop.f32.mrf.mxu2  ;;  %1502 = vmatpush.bf16.msrb.mxu3 %v6931_v57  ;;  %v6991_v57 = vor.u32 %v8512_v61, %v6990_v6  ;;  %v8478_v6 = vld [vmem:[#allocation5 + $0xc] sm:$0xf]  ;;  %v6864_v61 = vld [vmem:[#allocation5 + $0x18] sm:$0xf0] }
 0x125   :  { %v9523_v54 = vpop.f32.mrf.mxu0  ;;  %v9531_v16 = vpop.f32.mrf.mxu1  ;;  %1358 = vmatpush.bf16.msra.mxu0 %v7007_v2  ;;  %1457 = vmatpush.bf16.msrb.mxu2 %v7247_v44 }
 0x127   :  { %1406 = vmatpush.bf16.msra.mxu1 %v7151_v43  ;;  %v6896_v43 = vld [vmem:[#allocation5 + $0x58] sm:$0xf0]  ;;  %v1116_v52 = vpop.f32.mrf.mxu3 }
 0x128   :  { %1199 = vmatmul.bf16.gmra.mxu0 %v9190_v30  ;;  %v7135_v30 = vor.u32 %v8548_v17, %v7134_v37  ;;  %1503 = vmatpush.bf16.msrb.mxu3 %v6915_v63  ;;  %v7119_v37 = vor.u32 %v8544_v47, %v7118_v5  ;;  %v8482_v17 = vld [vmem:[#allocation5 + $0x2c] sm:$0xf] }
 0x129   :  { %7265 = vmatmul.msk.bf16.gmra.mxu2 %vm886_vm0, %v9276_v19  ;;  %v8486_v19 = vld [vmem:[#allocation5 + $0x4c] sm:$0xf]  ;;  %1359 = vmatpush.bf16.msra.mxu0 %v6991_v57 }
 0x12a   :  { %v6899_v25 = vor.u32 %v8486_v19, %v6896_v43  ;;  %v6867_v19 = vor.u32 %v8478_v6, %v6864_v61 }
 0x12b   :  { %1407 = vmatpush.bf16.msra.mxu1 %v7135_v30 }
 0x12c   :  { %v9533_v3 = vpop.f32.mrf.mxu2  ;;  %1504 = vmatpush.bf16.msrb.mxu3 %v6899_v25 }
 0x12d   :  { %v9536_v51 = vpop.f32.mrf.mxu0  ;;  %v1214_v2 = vpop.f32.mrf.mxu1 }
 0x12e   :  { %1316 = vmatmul.bf16.gmra.mxu3 %v9188_v27  ;;  %v6880_v27 = vld [vmem:[#allocation5 + $0x38] sm:$0xf0] }
 0x12f   :  { %v6883_v21 = vor.u32 %v8482_v17, %v6880_v27  ;;  %1408 = vmatpush.bf16.msra.mxu1 %v7119_v37  ;;  %v1118_v43 = vpop.f32.mrf.mxu3 }
 0x131   :  { %1505 = vmatpush.bf16.msrb.mxu3 %v6883_v21 }
 0x132   :  { %1409 = vmatmul.bf16.vlgmr.msra.gmra.mxu1 %v9227_v50 }
 0x134   :  { %v1045_v63 = vpop.f32.mrf.mxu2 }
 0x135   :  { %v1165_v30 = vpop.f32.mrf.mxu0  ;;  %1506 = vmatpush.bf16.msrb.mxu3 %v6867_v19  ;;  %v1216_v5 = vpop.f32.mrf.mxu1 }
 0x136   :  { %v1166_v29 = vadd.f32 %v1165_v30, %v1116_v52 }
 0x137   :  { %v1121_v21 = vpop.f32.mrf.mxu3 }
 0x138   :  { %v1215_v13 = vadd.f32 %v1214_v2, %v1166_v29  ;;  %1360 = vmatmul.bf16.vlgmr.msra.gmra.mxu0 %v9161_v8 }
 0x139   :  { %7266 = vmatmul.msk.bf16.gmra.mxu2 %vm886_vm0, %v9313_v48 }
 0x13c   :  { %v1048_v27 = vpop.f32.mrf.mxu2 }
 0x13d   :  { %v1167_v44 = vpop.f32.mrf.mxu0  ;;  %v1219_v52 = vpop.f32.mrf.mxu1 }
 0x13e   :  { %1321 = vmatmul.bf16.gmra.mxu3 %v9225_v49  ;;  %v1168_v47 = vadd.f32 %v1167_v44, %v1118_v43  ;;  %v1005_v44 = vadd.f32 %v9424_v23, %v9523_v54 }
 0x13f   :  { %v1123_v17 = vpop.f32.mrf.mxu3 }
 0x140   :  { %v9543_v57 = vadd.f32 %v1216_v5, %v1168_v47  ;;  %v1007_v47 = vadd.f32 %v9429_v28, %v9536_v51  ;;  %v12446_v28 = vld [vmem:[#allocation23_spill] sm:$0xff] }
 0x142   :  { %1414 = vmatmul.bf16.gmra.mxu1 %v9264_v10 }
 0x144   :  { %v1050_v25 = vpop.f32.mrf.mxu2 }
 0x145   :  { %v1170_v62 = vpop.f32.mrf.mxu0  ;;  %v1221_v2 = vpop.f32.mrf.mxu1 }
 0x146   :  { %v1171_v37 = vadd.f32 %v1170_v62, %v1121_v21 }
 0x147   :  { %v1126_v43 = vpop.f32.mrf.mxu3 }
 0x148   :  { %v9546_v29 = vadd.f32 %v1219_v52, %v1171_v37  ;;  %1365 = vmatmul.bf16.gmra.mxu0 %v9198_v33 }
 0x149   :  { %7267 = vmatmul.msk.bf16.gmra.mxu2 %vm886_vm0, %v9350_v0  ;;  %v1002_v0 = vadd.f32 %v9415_v11, %v9512_v36  ;;  %v997_v36 = vadd.f32 %v9531_v16, %v9490_v14  ;;  %v992_v16 = vadd.f32 %v9500_v56, %v9471_v31 }
 0x14b   :  { %v1051_v23 = vadd.f32 %v1050_v25, %v1002_v0  ;;  %v1046_v0 = vadd.f32 %v1045_v63, %v997_v36  ;;  %v12459_v36 = vld [vmem:[#allocation31_spill] sm:$0xff] }
 0x14c   :  { %v1053_v30 = vpop.f32.mrf.mxu2 }
 0x14d   :  { %v1172_v6 = vpop.f32.mrf.mxu0  ;;  %v1224_v5 = vpop.f32.mrf.mxu1  ;;  %v1054_v52 = vadd.f32 %v1053_v30, %v1005_v44  ;;  %v12448_v30 = vld [vmem:[#allocation16_spill] sm:$0xff] }
 0x14e   :  { %1326 = vmatmul.bf16.gmra.mxu3 %v9262_v9  ;;  %v1173_v61 = vadd.f32 %v1172_v6, %v1123_v17 }
 0x14f   :  { %v9570_v51 = vadd.f32 %v9517_v53, %v1054_v52  ;;  %v1128_v11 = vpop.f32.mrf.mxu3 }
 0x150   :  { %v9552_v19 = vadd.f32 %v1221_v2, %v1173_v61  ;;  %v1000_v2 = vadd.f32 %v9404_v58, %v9497_v26  ;;  %v9581_v58 = vadd.f32 %v9505_v55, %v1051_v23  ;;  %v1041_v55 = vadd.f32 %v9521_v7, %v992_v16  ;;  %v12458_v23 = vld [vmem:[#allocation37_spill] sm:$0xff] }
 0x151   :  { %12447 = vst [vmem:[#allocation23_spill] sm:$0xff] %v9570_v51 }
 0x152   :  { %1419 = vmatmul.bf16.gmra.mxu1 %v9301_v40  ;;  %12449 = vst [vmem:[#allocation16_spill] sm:$0xff] %v9581_v58 }
 0x154   :  { %v1055_v21 = vpop.f32.mrf.mxu2 }
 0x155   :  { %v1056_v62 = vadd.f32 %v1055_v21, %v1007_v47  ;;  %v1175_v37 = vpop.f32.mrf.mxu0  ;;  %v1226_v6 = vpop.f32.mrf.mxu1 }
 0x156   :  { %v1176_v9 = vadd.f32 %v1175_v37, %v1126_v43 }
 0x157   :  { %v9562_v17 = vadd.f32 %v9526_v38, %v1056_v62  ;;  %v1049_v38 = vadd.f32 %v1048_v27, %v1000_v2 }
 0x158   :  { %v9566_v54 = vadd.f32 %v1224_v5, %v1176_v9  ;;  %1370 = vmatmul.bf16.gmra.mxu0 %v12446_v28  ;;  %v995_v9 = vadd.f32 %v9519_v41, %v9478_v45  ;;  %v9595_v41 = vadd.f32 %v9484_v35, %v1046_v0  ;;  %v12462_v0 = vld [vmem:[#allocation19_spill] sm:$0xff] }
 0x159   :  { %12445 = vst [vmem:[#allocation45_spill] sm:$0xff] %v9562_v17  ;;  %7268 = vmatmul.msk.bf16.vlgmr.msrb.gmra.mxu2 %vm886_vm0, %v12448_v30  ;;  %1695 = vmatpush.msra.mxu3 %v9562_v17  ;;  %v9590_v27 = vadd.f32 %v9495_v34, %v1049_v38  ;;  %v9603_v34 = vadd.f32 %v9464_v12, %v1041_v55  ;;  %v12460_v38 = vld [vmem:[#allocation36_spill] sm:$0xff] }
 0x15a   :  { %v1044_v14 = vadd.f32 %v9533_v3, %v995_v9  ;;  %12452 = vst [vmem:[#allocation48_spill] sm:$0xff] %v9595_v41  ;;  %v12461_v9 = vld [vmem:[#allocation27_spill] sm:$0xff] }
 0x15b   :  { %1696 = vmatpush.msra.mxu3 %v9570_v51  ;;  %12451 = vst [vmem:[#allocation47_spill] sm:$0xff] %v9590_v27 }
 0x15c   :  { %v1263_v26 = vpop.f32.mrf.mxu2  ;;  %v9599_v61 = vadd.f32 %v9476_v32, %v1044_v14  ;;  %12454 = vst [vmem:[#allocation50_spill] sm:$0xff] %v9603_v34  ;;  %v12464_v14 = vld [vmem:[#allocation30_spill] sm:$0xff] }
 0x15d   :  { %v9583_v53 = vadd.f32 %v1263_v26, %v1215_v13  ;;  %v1177_v25 = vpop.f32.mrf.mxu0  ;;  %1697 = vmatpush.msra.mxu3 %v9581_v58  ;;  %v1131_v13 = vpop.f32.mrf.mxu3 }
 0x15e   :  { %1331 = vmatmul.bf16.gmra.mxu3 %v9299_v39  ;;  %v1178_v45 = vadd.f32 %v1177_v25, %v1128_v11  ;;  %12453 = vst [vmem:[#allocation49_spill] sm:$0xff] %v9599_v61  ;;  %v1229_v31 = vpop.f32.mrf.mxu1 }
 0x15f   :  { %12450 = vst [vmem:[#allocation46_spill] sm:$0xff] %v9583_v53  ;;  %1698 = vmatpush.msra.mxu3 %v9590_v27  ;;  %v8566_v53 = vld [vmem:[#allocation5 + $0x2cc] sm:$0xf] }
 0x160   :  { %v1227_v63 = vadd.f32 %v1226_v6, %v1178_v45 }
 0x161   :  { %1699 = vmatpush.msra.mxu3 %v9595_v41 }
 0x162   :  { %1424 = vmatmul.bf16.gmra.mxu1 %v9338_v60 }
 0x163   :  { %1700 = vmatpush.msra.mxu3 %v9599_v61 }
 0x164   :  { %v1265_v56 = vpop.f32.mrf.mxu2 }
 0x165   :  { %v9607_v7 = vadd.f32 %v1265_v56, %v9543_v57  ;;  %v1180_v35 = vpop.f32.mrf.mxu0  ;;  %1701 = vmatpush.msra.mxu3 %v9603_v34  ;;  %v1133_v12 = vpop.f32.mrf.mxu3 }
 0x166   :  { %v1181_v3 = vadd.f32 %v1180_v35, %v1131_v13  ;;  %v1231_v43 = vpop.f32.mrf.mxu1 }
 0x167   :  { %12455 = vst [vmem:[#allocation51_spill] sm:$0xff] %v9607_v7  ;;  %1702 = vmatpush.msra.mxu3 %v9515_v22  ;;  %v7216_v7 = vld [vmem:[#allocation5 + $0x2d8] sm:$0xf0] }
 0x168   :  { %v1230_v32 = vadd.f32 %v1229_v31, %v1181_v3  ;;  %1375 = vmatmul.bf16.gmra.mxu0 %v9272_v15  ;;  %v12466_v3 = vld [vmem:[#allocation33_spill] sm:$0xff] }
 0x169   :  { %7269 = vmatmul.msk.bf16.gmra.mxu2 %vm886_vm0, %v9129_v42  ;;  %1703 = vmatpush.msra.mxu3 %v9503_v18 }
 0x16b   :  { %1704 = vmatpush.msra.mxu3 %v9493_v24 }
 0x16c   :  { %v1268_v57 = vpop.f32.mrf.mxu2 }
 0x16d   :  { %v9618_v5 = vadd.f32 %v1268_v57, %v9546_v29  ;;  %v1182_v44 = vpop.f32.mrf.mxu0  ;;  %1705 = vmatpush.msra.mxu3 %v9482_v46  ;;  %v1136_v52 = vpop.f32.mrf.mxu3 }
 0x16e   :  { %1336 = vmatmul.bf16.gmra.mxu3 %v9336_v59  ;;  %v1183_v47 = vadd.f32 %v1182_v44, %v1133_v12  ;;  %v1234_v62 = vpop.f32.mrf.mxu1  ;;  %v12467_v12 = vld [vmem:[#allocation28_spill] sm:$0xff] }
 0x16f   :  { %12456 = vst [vmem:[#allocation52_spill] sm:$0xff] %v9618_v5  ;;  %1706 = vmatpush.msra.mxu3 %v9474_v20  ;;  %v12476_v5 = vld [vmem:[#allocation17_spill] sm:$0xff] }
 0x170   :  { %v1232_v21 = vadd.f32 %v1231_v43, %v1183_v47  ;;  %v12468_v43 = vld [vmem:[#allocation22_spill] sm:$0xff] }
 0x171   :  { %1707 = vmatpush.msra.mxu3 %v9462_v1 }
 0x172   :  { %1429 = vmatmul.bf16.gmra.mxu1 %v12459_v36  ;;  %v12473_v36 = vld [vmem:[#allocation18_spill] sm:$0xff] }
 0x173   :  { %1708 = vmatpush.msra.mxu3 %v9454_v4 }
 0x174   :  { %v1270_v37 = vpop.f32.mrf.mxu2 }
 0x175   :  { %v9626_v2 = vadd.f32 %v1270_v37, %v9552_v19  ;;  %v1185_v29 = vpop.f32.mrf.mxu0  ;;  %1709 = vmatpush.msra.mxu3 %v12458_v23  ;;  %v9634_v26 = vpop.f32.mrf.mxu3 }
 0x176   :  { %v1186_v11 = vadd.f32 %v1185_v29, %v1136_v52  ;;  %v9636_v25 = vpop.f32.mrf.mxu1  ;;  %v12470_v52 = vld [vmem:[#allocation32_spill] sm:$0xff] }
 0x177   :  { %12457 = vst [vmem:[#allocation53_spill] sm:$0xff] %v9626_v2  ;;  %1710 = vmatpush.msra.mxu3 %v12460_v38  ;;  %v8538_v29 = vld [vmem:[#allocation5 + $0x1ec] sm:$0xf] }
 0x178   :  { %v1235_v6 = vadd.f32 %v1234_v62, %v1186_v11  ;;  %1380 = vmatmul.bf16.gmra.mxu0 %v12461_v9  ;;  %v7104_v11 = vld [vmem:[#allocation5 + $0x1f8] sm:$0xf0] }
 0x179   :  { %7270 = vmatmul.msk.bf16.gmra.mxu2 %vm886_vm0, %v12462_v0  ;;  %v7088_v9 = vld [vmem:[#allocation5 + $0x1d8] sm:$0xf0] }
 0x17c   :  { %v1273_v19 = vpop.f32.mrf.mxu2 }
 0x17d   :  { %v9639_v16 = vadd.f32 %v1273_v19, %v9566_v54  ;;  %v9642_v45 = vpop.f32.mrf.mxu0  ;;  %v9644_v55 = vpop.f32.mrf.mxu3  ;;  %v7107_v19 = vor.u32 %v8538_v29, %v7104_v11  ;;  %v12474_v29 = vld [vmem:[#allocation24_spill] sm:$0xff] }
 0x17e   :  { %1341 = vmatmul.bf16.gmra.mxu3 %v12464_v14  ;;  %v9646_v13 = vpop.f32.mrf.mxu1 }
 0x17f   :  { %12463 = vst [vmem:[#allocation54_spill] sm:$0xff] %v9639_v16  ;;  %1548 = vmatpush.bf16.msrb.mxu0 %v7107_v19 }
 0x182   :  { %1434 = vmatmul.bf16.gmra.mxu1 %v12466_v3 }
 0x184   :  { %v1275_v31 = vpop.f32.mrf.mxu2 }
 0x185   :  { %v9648_v56 = vadd.f32 %v1275_v31, %v1227_v63  ;;  %v9650_v35 = vpop.f32.mrf.mxu0  ;;  %v9656_v54 = vpop.f32.mrf.mxu3 }
 0x186   :  { %v9658_v57 = vpop.f32.mrf.mxu1 }
 0x187   :  { %12465 = vst [vmem:[#allocation55_spill] sm:$0xff] %v9648_v56 }
 0x188   :  { %1385 = vmatmul.bf16.gmra.mxu0 %v12467_v12  ;;  %v8570_v12 = vld [vmem:[#allocation5 + $0x2ec] sm:$0xf] }
 0x189   :  { %7271 = vmatmul.msk.bf16.gmra.mxu2 %vm886_vm0, %v12468_v43  ;;  %v7232_v43 = vld [vmem:[#allocation5 + $0x2f8] sm:$0xf0] }
 0x18c   :  { %v1278_v44 = vpop.f32.mrf.mxu2 }
 0x18d   :  { %v9660_v47 = vadd.f32 %v1278_v44, %v1230_v32  ;;  %v9663_v63 = vpop.f32.mrf.mxu0  ;;  %v9665_v62 = vpop.f32.mrf.mxu3  ;;  %v7235_v32 = vor.u32 %v8570_v12, %v7232_v43  ;;  %v12472_v44 = vld [vmem:[#allocation34_spill] sm:$0xff]  ;;  %v8530_v12 = vld [vmem:[#allocation5 + $0x1ac] sm:$0xf] }
 0x18e   :  { %1346 = vmatmul.bf16.gmra.mxu3 %v12470_v52  ;;  %v9667_v37 = vpop.f32.mrf.mxu1  ;;  %v8534_v52 = vld [vmem:[#allocation5 + $0x1cc] sm:$0xf]  ;;  %v7072_v43 = vld [vmem:[#allocation5 + $0x1b8] sm:$0xf0] }
 0x18f   :  { %12469 = vst [vmem:[#allocation56_spill] sm:$0xff] %v9660_v47  ;;  %1597 = vmatpush.bf16.msrb.mxu1 %v7235_v32  ;;  %v7091_v0 = vor.u32 %v8534_v52, %v7088_v9  ;;  %v7075_v19 = vor.u32 %v8530_v12, %v7072_v43  ;;  %v1835_v9 = vmul.f32 %v9562_v17, %v9562_v17  ;;  %v8562_v52 = vld [vmem:[#allocation5 + $0x2ac] sm:$0xf]  ;;  %v7200_v32 = vld [vmem:[#allocation5 + $0x2b8] sm:$0xf0] }
 0x190   :  { %v1827_v43 = vmul.f32 %v9581_v58, %v9581_v58  ;;  %v12478_v58 = vld [vmem:[#allocation21_spill] sm:$0xff] }
 0x191   :  { %1549 = vmatpush.bf16.msrb.mxu0 %v7091_v0  ;;  %v8526_v0 = vld [vmem:[#allocation5 + $0x18c] sm:$0xf] }
 0x192   :  { %1439 = vmatmul.bf16.gmra.mxu1 %v12472_v44 }
 0x194   :  { %v1280_v31 = vpop.f32.mrf.mxu2 }
 0x195   :  { %v9669_v3 = vadd.f32 %v1280_v31, %v1232_v21  ;;  %v9671_v14 = vpop.f32.mrf.mxu0  ;;  %v9677_v11 = vpop.f32.mrf.mxu3  ;;  %v7219_v21 = vor.u32 %v8566_v53, %v7216_v7  ;;  %1550 = vmatpush.bf16.msrb.mxu0 %v7075_v19  ;;  %v7203_v53 = vor.u32 %v8562_v52, %v7200_v32  ;;  %v1831_v7 = vmul.f32 %v9570_v51, %v9570_v51  ;;  %v8522_v52 = vld [vmem:[#allocation5 + $0x16c] sm:$0xf]  ;;  %v7040_v32 = vld [vmem:[#allocation5 + $0x178] sm:$0xf0] }
 0x196   :  { %v9679_v31 = vpop.f32.mrf.mxu1  ;;  %v1823_v19 = vmul.f32 %v9590_v27, %v9590_v27  ;;  %v7168_v51 = vld [vmem:[#allocation5 + $0x278] sm:$0xf0]  ;;  %v8550_v27 = vld [vmem:[#allocation5 + $0x24c] sm:$0xf] }
 0x197   :  { %12471 = vst [vmem:[#allocation57_spill] sm:$0xff] %v9669_v3  ;;  %1598 = vmatpush.bf16.msrb.mxu1 %v7219_v21  ;;  %v7056_v21 = vld [vmem:[#allocation5 + $0x198] sm:$0xf0] }
 0x198   :  { %1390 = vmatmul.bf16.gmra.mxu0 %v12473_v36  ;;  %v7059_v12 = vor.u32 %v8526_v0, %v7056_v21  ;;  %v1819_v0 = vmul.f32 %v9595_v41, %v9595_v41  ;;  %v8554_v21 = vld [vmem:[#allocation5 + $0x26c] sm:$0xf]  ;;  %v7152_v41 = vld [vmem:[#allocation5 + $0x258] sm:$0xf0] }
 0x199   :  { %7272 = vmatmul.msk.bf16.gmra.mxu2 %vm886_vm0, %v12474_v29 }
 0x19a   :  { %1551 = vmatpush.bf16.msrb.mxu0 %v7059_v12 }
 0x19b   :  { %1599 = vmatpush.bf16.msrb.mxu1 %v7203_v53  ;;  %v7043_v53 = vor.u32 %v8522_v52, %v7040_v32  ;;  %v7024_v52 = vld [vmem:[#allocation5 + $0x158] sm:$0xf0]  ;;  %v1811_v32 = vmul.f32 %v9603_v34, %v9603_v34  ;;  %v1803_v34 = vmul.f32 %v9503_v18, %v9503_v18 }
 0x19c   :  { %v1283_v44 = vpop.f32.mrf.mxu2  ;;  %v7120_v18 = vld [vmem:[#allocation5 + $0x218] sm:$0xf0] }
 0x19d   :  { %v9683_v36 = vadd.f32 %v1283_v44, %v1235_v6  ;;  %v9686_v29 = vpop.f32.mrf.mxu0  ;;  %v8558_v6 = vld [vmem:[#allocation5 + $0x28c] sm:$0xf]  ;;  %v7184_v44 = vld [vmem:[#allocation5 + $0x298] sm:$0xf0]  ;;  %v9692_v17 = vpop.f32.mrf.mxu3 }
 0x19e   :  { %1507 = vmatmul.bf16.vlgmr.msrb.gmra.mxu3 %v12476_v5  ;;  %v7187_v5 = vor.u32 %v8558_v6, %v7184_v44  ;;  %1552 = vmatpush.bf16.msrb.mxu0 %v7043_v53  ;;  %v1815_v6 = vmul.f32 %v9599_v61, %v9599_v61  ;;  %v12477_v44 = vld [vmem:[#allocation35_spill] sm:$0xff]  ;;  %v12479_v53 = vld [vmem:[#allocation26_spill] sm:$0xff] }
 0x19f   :  { %12475 = vst [vmem:[#allocation58_spill] sm:$0xff] %v9683_v36  ;;  %1839 = vmatpush.msrb.mxu3 %v1835_v9  ;;  %v9696_v9 = vpop.f32.mrf.mxu1 }
 0x1a0   :  { %1600 = vmatpush.bf16.msrb.mxu1 %v7187_v5  ;;  %v8518_v5 = vld [vmem:[#allocation5 + $0x14c] sm:$0xf] }
 0x1a1   :  { %1840 = vmatpush.msrb.mxu3 %v1831_v7 }
 0x1a2   :  { %1444 = vmatmul.bf16.gmra.mxu1 %v12477_v44 }
 0x1a3   :  { %1841 = vmatpush.msrb.mxu3 %v1827_v43  ;;  %v7171_v43 = vor.u32 %v8554_v21, %v7168_v51  ;;  %v1807_v21 = vmul.f32 %v9515_v22, %v9515_v22  ;;  %v8542_v22 = vld [vmem:[#allocation5 + $0x20c] sm:$0xf] }
 0x1a4   :  { %v9698_v7 = vpop.f32.mrf.mxu2 }
 0x1a5   :  { %1842 = vmatpush.msrb.mxu3 %v1823_v19  ;;  %v9702_v12 = vpop.f32.mrf.mxu0  ;;  %1601 = vmatpush.bf16.msrb.mxu1 %v7171_v43  ;;  %v7027_v19 = vor.u32 %v8518_v5, %v7024_v52  ;;  %v9712_v51 = vpop.f32.mrf.mxu3  ;;  %v7008_v5 = vld [vmem:[#allocation5 + $0x138] sm:$0xf0] }
 0x1a7   :  { %1843 = vmatpush.msrb.mxu3 %v1819_v0  ;;  %1553 = vmatpush.bf16.msrb.mxu0 %v7027_v19  ;;  %v7155_v0 = vor.u32 %v8550_v27, %v7152_v41  ;;  %v9716_v43 = vpop.f32.mrf.mxu1  ;;  %v12480_v41 = vld [vmem:[#allocation20_spill] sm:$0xff] }
 0x1a8   :  { %1395 = vmatmul.bf16.gmra.mxu0 %v12478_v58  ;;  %v8546_v58 = vld [vmem:[#allocation5 + $0x22c] sm:$0xf] }
 0x1a9   :  { %1844 = vmatpush.msrb.mxu3 %v1815_v6  ;;  %7273 = vmatmul.msk.bf16.gmra.mxu2 %vm886_vm0, %v12479_v53  ;;  %v8514_v6 = vld [vmem:[#allocation5 + $0x12c] sm:$0xf]  ;;  %v7136_v53 = vld [vmem:[#allocation5 + $0x238] sm:$0xf0] }
 0x1aa   :  { %1602 = vmatpush.bf16.msrb.mxu1 %v7155_v0  ;;  %v7011_v52 = vor.u32 %v8514_v6, %v7008_v5  ;;  %v7139_v27 = vor.u32 %v8546_v58, %v7136_v53  ;;  %v8510_v0 = vld [vmem:[#allocation5 + $0x10c] sm:$0xf]  ;;  %v6992_v6 = vld [vmem:[#allocation5 + $0x118] sm:$0xf0]  ;;  %v1795_v5 = vmul.f32 %v9482_v46, %v9482_v46  ;;  %v7123_v53 = vor.u32 %v8542_v22, %v7120_v18 }
 0x1ab   :  { %1845 = vmatpush.msrb.mxu3 %v1811_v32  ;;  %v1799_v32 = vmul.f32 %v9493_v24, %v9493_v24  ;;  %v7248_v58 = vld [vmem:[#allocation5 + $0x318] sm:$0xf0]  ;;  %v1779_v22 = vmul.f32 %v12458_v23, %v12458_v23 }
 0x1ac   :  { %v9718_v61 = vpop.f32.mrf.mxu2  ;;  %1554 = vmatpush.bf16.msrb.mxu0 %v7011_v52  ;;  %v8574_v52 = vld [vmem:[#allocation5 + $0x30c] sm:$0xf] }
 0x1ad   :  { %1846 = vmatpush.msrb.mxu3 %v1807_v21  ;;  %v9722_v19 = vpop.f32.mrf.mxu0  ;;  %v6995_v21 = vor.u32 %v8510_v0, %v6992_v6  ;;  %v1312_v44 = vpop.f32.mrf.mxu3  ;;  %v1783_v6 = vmul.f32 %v9454_v4, %v9454_v4 }
 0x1ae   :  { %1512 = vmatmul.bf16.gmra.mxu3 %v12480_v41  ;;  %1603 = vmatpush.bf16.msrb.mxu1 %v7139_v27  ;;  %v7251_v41 = vor.u32 %v8574_v52, %v7248_v58  ;;  %v1775_v52 = vmul.f32 %v12460_v38, %v12460_v38  ;;  %v12346_v38 = vlaneseq }
 0x1af   :  { %1847 = vmatpush.msrb.mxu3 %v1803_v34  ;;  %v1791_v34 = vmul.f32 %v9474_v20, %v9474_v20  ;;  %v1410_v24 = vpop.f32.mrf.mxu1 }
 0x1b0   :  { %1555 = vmatpush.bf16.msrb.mxu0 %v6995_v21  ;;  %1653 = vmatpush.bf16.msra.mxu2 %v7251_v41  ;;  %vm10503_vm1 = vcmp.lt.s32.totalorder %v12346_v38, 512 }
 0x1b1   :  { %1848 = vmatpush.msrb.mxu3 %v1799_v32  ;;  %v1787_v32 = vmul.f32 %v9462_v1, %v9462_v1 }
 0x1b2   :  { %1604 = vmatpush.bf16.msrb.mxu1 %v7123_v53 }
 0x1b3   :  { %1849 = vmatpush.msrb.mxu3 %v1795_v5 }
 0x1b4   :  { %v9731_v27 = vpop.f32.mrf.mxu2 }
 0x1b5   :  { %1850 = vmatpush.msrb.mxu3 %v1791_v34  ;;  %v1361_v0 = vpop.f32.mrf.mxu0  ;;  %1605 = vmatmul.bf16.vlgmr.msrb.gmra.mxu1 %v9227_v50  ;;  %v1314_v5 = vpop.f32.mrf.mxu3 }
 0x1b6   :  { %v1362_v18 = vadd.f32 %v1361_v0, %v1312_v44 }
 0x1b7   :  { %1851 = vmatpush.msrb.mxu3 %v1787_v32  ;;  %v1412_v58 = vpop.f32.mrf.mxu1 }
 0x1b8   :  { %v1411_v21 = vadd.f32 %v1410_v24, %v1362_v18  ;;  %1556 = vmatmul.bf16.vlgmr.msrb.gmra.mxu0 %v9161_v8  ;;  %v12481_v18 = vld [vmem:[#allocation29_spill] sm:$0xff] }
 0x1b9   :  { %1852 = vmatpush.msrb.mxu3 %v1783_v6  ;;  %7274 = vmatmul.msk.bf16.gmra.mxu2 %vm886_vm0, %v9313_v48 }
 0x1bb   :  { %1853 = vmatpush.msrb.mxu3 %v1779_v22 }
 0x1bc   :  { %v1293_v44 = vpop.f32.mrf.mxu2 }
 0x1bd   :  { %1854 = vmatpush.msrb.mxu3 %v1775_v52  ;;  %v1363_v53 = vpop.f32.mrf.mxu0  ;;  %v1317_v24 = vpop.f32.mrf.mxu3 }
 0x1be   :  { %1517 = vmatmul.bf16.gmra.mxu3 %v9225_v49  ;;  %v1364_v50 = vadd.f32 %v1363_v53, %v1314_v5 }
 0x1bf   :  { %v1415_v41 = vpop.f32.mrf.mxu1 }
 0x1c0   :  { %v9746_v34 = vadd.f32 %v1412_v58, %v1364_v50  ;;  %v12482_v58 = vld [vmem:[#allocation25_spill] sm:$0xff]  ;;  %v1201_v50 = vadd.f32 %v9702_v12, %v9692_v17  ;;  %v1191_v12 = vadd.f32 %v9650_v35, %v9644_v55  ;;  %v1188_v55 = vadd.f32 %v9642_v45, %v9634_v26 }
 0x1c2   :  { %v1240_v35 = vadd.f32 %v9646_v13, %v1191_v12  ;;  %v1237_v45 = vadd.f32 %v9636_v25, %v1188_v55  ;;  %v12498_v12 = vld [vmem:[#allocation19_spill] sm:$0xff] }
 0x1c4   :  { %v1295_v8 = vpop.f32.mrf.mxu2  ;;  %v9803_v13 = vadd.f32 %v9718_v61, %v1240_v35 }
 0x1c5   :  { %v1366_v32 = vpop.f32.mrf.mxu0  ;;  %1610 = vmatmul.bf16.gmra.mxu1 %v9264_v10  ;;  %v1319_v22 = vpop.f32.mrf.mxu3  ;;  %v1203_v10 = vadd.f32 %v9722_v19, %v9712_v51 }
 0x1c6   :  { %v1367_v0 = vadd.f32 %v1366_v32, %v1317_v24  ;;  %v1198_v32 = vadd.f32 %v9686_v29, %v9677_v11  ;;  %12489 = vst [vmem:[#allocation61_spill] sm:$0xff] %v9803_v13 }
 0x1c7   :  { %v1417_v52 = vpop.f32.mrf.mxu1 }
 0x1c8   :  { %v9749_v6 = vadd.f32 %v1415_v41, %v1367_v0  ;;  %1561 = vmatmul.bf16.gmra.mxu0 %v9198_v33  ;;  %v1196_v33 = vadd.f32 %v9671_v14, %v9665_v62  ;;  %v1250_v0 = vadd.f32 %v9696_v9, %v1201_v50  ;;  %v1193_v14 = vadd.f32 %v9663_v63, %v9656_v54 }
 0x1c9   :  { %7275 = vmatmul.msk.bf16.gmra.mxu2 %vm886_vm0, %v12481_v18  ;;  %v1247_v29 = vadd.f32 %v9679_v31, %v1198_v32 }
 0x1ca   :  { %v1245_v62 = vadd.f32 %v9667_v37, %v1196_v33  ;;  %v1242_v54 = vadd.f32 %v9658_v57, %v1193_v14 }
 0x1cc   :  { %v1298_v49 = vpop.f32.mrf.mxu2  ;;  %v9791_v63 = vadd.f32 %v1293_v44, %v1245_v62  ;;  %v9795_v31 = vadd.f32 %v9731_v27, %v1242_v54  ;;  %v9809_v27 = vadd.f32 %v9698_v7, %v1237_v45  ;;  %v12501_v54 = vld [vmem:[#allocation30_spill] sm:$0xff] }
 0x1cd   :  { %v1368_v5 = vpop.f32.mrf.mxu0  ;;  %v1322_v41 = vpop.f32.mrf.mxu3  ;;  %v9776_v11 = vadd.f32 %v1298_v49, %v1250_v0 }
 0x1ce   :  { %1522 = vmatmul.bf16.gmra.mxu3 %v12482_v58  ;;  %v1369_v53 = vadd.f32 %v1368_v5, %v1319_v22  ;;  %v1252_v58 = vadd.f32 %v9716_v43, %v1203_v10  ;;  %v9782_v43 = vadd.f32 %v1295_v8, %v1247_v29  ;;  %12486 = vst [vmem:[#allocation25_spill] sm:$0xff] %v9791_v63 }
 0x1cf   :  { %v1420_v22 = vpop.f32.mrf.mxu1  ;;  %12484 = vst [vmem:[#allocation20_spill] sm:$0xff] %v9776_v11  ;;  %v1824_v14 = vmul.f32 %v9791_v63, %v9791_v63 }
 0x1d0   :  { %v9759_v24 = vadd.f32 %v1417_v52, %v1369_v53  ;;  %12485 = vst [vmem:[#allocation29_spill] sm:$0xff] %v9782_v43 }
 0x1d1   :  { %12487 = vst [vmem:[#allocation59_spill] sm:$0xff] %v9795_v31 }
 0x1d2   :  { %12490 = vst [vmem:[#allocation62_spill] sm:$0xff] %v9809_v27 }
 0x1d4   :  { %v1300_v5 = vpop.f32.mrf.mxu2 }
 0x1d5   :  { %v9767_v46 = vadd.f32 %v1300_v5, %v1252_v58  ;;  %v1371_v17 = vpop.f32.mrf.mxu0  ;;  %1615 = vmatmul.bf16.gmra.mxu1 %v9301_v40  ;;  %v1324_v40 = vpop.f32.mrf.mxu3  ;;  %v12497_v5 = vld [vmem:[#allocation31_spill] sm:$0xff] }
 0x1d6   :  { %v1372_v51 = vadd.f32 %v1371_v17, %v1322_v41  ;;  %v12494_v41 = vld [vmem:[#allocation51_spill] sm:$0xff]  ;;  %v1828_v17 = vmul.f32 %v9782_v43, %v9782_v43 }
 0x1d7   :  { %12483 = vst [vmem:[#allocation17_spill] sm:$0xff] %v9767_v46  ;;  %1715 = vmatpush.msra.mxu0 %v9767_v46 }
 0x1d8   :  { %v9779_v9 = vadd.f32 %v1420_v22, %v1372_v51  ;;  %1566 = vmatmul.bf16.gmra.mxu0 %v12446_v28  ;;  %v1422_v28 = vpop.f32.mrf.mxu1  ;;  %v1832_v22 = vmul.f32 %v9776_v11, %v9776_v11  ;;  %v12499_v51 = vld [vmem:[#allocation27_spill] sm:$0xff] }
 0x1d9   :  { %7276 = vmatmul.msk.bf16.vlgmr.msra.gmra.mxu2 %vm886_vm0, %v12448_v30  ;;  %1716 = vmatpush.msra.mxu0 %v9776_v11 }
 0x1db   :  { %1717 = vmatpush.msra.mxu0 %v9782_v43 }
 0x1dc   :  { %v1459_v37 = vpop.f32.mrf.mxu2 }
 0x1dd   :  { %v9797_v30 = vadd.f32 %v1459_v37, %v1411_v21  ;;  %1718 = vmatpush.msra.mxu0 %v9791_v63  ;;  %v1373_v19 = vpop.f32.mrf.mxu0  ;;  %v1327_v21 = vpop.f32.mrf.mxu3  ;;  %v1812_v37 = vmul.f32 %v9809_v27, %v9809_v27 }
 0x1de   :  { %1527 = vmatmul.bf16.gmra.mxu3 %v9299_v39  ;;  %v1374_v26 = vadd.f32 %v1373_v19, %v1324_v40  ;;  %v1820_v40 = vmul.f32 %v9795_v31, %v9795_v31 }
 0x1df   :  { %12488 = vst [vmem:[#allocation60_spill] sm:$0xff] %v9797_v30  ;;  %1719 = vmatpush.msra.mxu0 %v9795_v31 }
 0x1e0   :  { %v9806_v57 = vadd.f32 %v1422_v28, %v1374_v26  ;;  %v1425_v44 = vpop.f32.mrf.mxu1  ;;  %v1816_v28 = vmul.f32 %v9803_v13, %v9803_v13  ;;  %v1808_v26 = vmul.f32 %v9683_v36, %v9683_v36 }
 0x1e1   :  { %1720 = vmatpush.msra.mxu0 %v9803_v13 }
 0x1e3   :  { %1721 = vmatpush.msra.mxu0 %v9809_v27 }
 0x1e4   :  { %v1461_v39 = vpop.f32.mrf.mxu2 }
 0x1e5   :  { %v9814_v8 = vadd.f32 %v1461_v39, %v9746_v34  ;;  %1722 = vmatpush.msra.mxu0 %v9683_v36  ;;  %v1376_v61 = vpop.f32.mrf.mxu0  ;;  %1620 = vmatmul.bf16.gmra.mxu1 %v9338_v60  ;;  %v1329_v52 = vpop.f32.mrf.mxu3 }
 0x1e6   :  { %v1377_v25 = vadd.f32 %v1376_v61, %v1327_v21  ;;  %v1804_v21 = vmul.f32 %v9669_v3, %v9669_v3  ;;  %v1800_v61 = vmul.f32 %v9660_v47, %v9660_v47 }
 0x1e7   :  { %12491 = vst [vmem:[#allocation63_spill] sm:$0xff] %v9814_v8  ;;  %1723 = vmatpush.msra.mxu0 %v9669_v3 }
 0x1e8   :  { %v9819_v7 = vadd.f32 %v1425_v44, %v1377_v25  ;;  %1571 = vmatmul.bf16.gmra.mxu0 %v9272_v15  ;;  %v1427_v34 = vpop.f32.mrf.mxu1  ;;  %v12503_v25 = vld [vmem:[#allocation33_spill] sm:$0xff] }
 0x1e9   :  { %7277 = vmatmul.msk.bf16.gmra.mxu2 %vm886_vm0, %v9129_v42  ;;  %1724 = vmatpush.msra.mxu0 %v9660_v47  ;;  %v12493_v42 = vld [vmem:[#allocation52_spill] sm:$0xff] }
 0x1eb   :  { %1725 = vmatpush.msra.mxu0 %v9648_v56 }
 0x1ec   :  { %v1464_v49 = vpop.f32.mrf.mxu2 }
 0x1ed   :  { %v9827_v53 = vadd.f32 %v1464_v49, %v9749_v6  ;;  %1726 = vmatpush.msra.mxu0 %v9639_v16  ;;  %v1378_v60 = vpop.f32.mrf.mxu0  ;;  %v9835_v10 = vpop.f32.mrf.mxu3  ;;  %v1836_v6 = vmul.f32 %v9767_v46, %v9767_v46  ;;  %v12505_v49 = vld [vmem:[#allocation28_spill] sm:$0xff] }
 0x1ee   :  { %1532 = vmatmul.bf16.gmra.mxu3 %v9336_v59  ;;  %v1379_v50 = vadd.f32 %v1378_v60, %v1329_v52  ;;  %v12496_v59 = vld [vmem:[#allocation46_spill] sm:$0xff]  ;;  %v1796_v52 = vmul.f32 %v9648_v56, %v9648_v56 }
 0x1ef   :  { %12492 = vst [vmem:[#allocation64_spill] sm:$0xff] %v9827_v53  ;;  %1727 = vmatpush.msra.mxu0 %v9626_v2 }
 0x1f0   :  { %v9832_v15 = vadd.f32 %v1427_v34, %v1379_v50  ;;  %v9838_v33 = vpop.f32.mrf.mxu1  ;;  %v12504_v34 = vld [vmem:[#allocation22_spill] sm:$0xff] }
 0x1f1   :  { %1728 = vmatpush.msra.mxu0 %v12493_v42 }
 0x1f3   :  { %1729 = vmatpush.msra.mxu0 %v12494_v41 }
 0x1f4   :  { %v1466_v32 = vpop.f32.mrf.mxu2 }
 0x1f5   :  { %v9843_v0 = vadd.f32 %v1466_v32, %v9759_v24  ;;  %1730 = vmatpush.msra.mxu0 %v12496_v59  ;;  %v9846_v58 = vpop.f32.mrf.mxu0  ;;  %1625 = vmatmul.bf16.gmra.mxu1 %v12497_v5  ;;  %v9856_v24 = vpop.f32.mrf.mxu3  ;;  %v1788_v32 = vmul.f32 %v9626_v2, %v9626_v2 }
 0x1f7   :  { %12495 = vst [vmem:[#allocation65_spill] sm:$0xff] %v9843_v0  ;;  %1859 = vmatpush.msrb.mxu0 %v1836_v6 }
 0x1f8   :  { %1576 = vmatmul.bf16.gmra.mxu0 %v12499_v51  ;;  %v9860_v62 = vpop.f32.mrf.mxu1  ;;  %v1780_v51 = vmul.f32 %v12494_v41, %v12494_v41 }
 0x1f9   :  { %1860 = vmatpush.msrb.mxu0 %v1832_v22  ;;  %7278 = vmatmul.msk.bf16.gmra.mxu2 %vm886_vm0, %v12498_v12  ;;  %v1784_v12 = vmul.f32 %v12493_v42, %v12493_v42 }
 0x1fb   :  { %1861 = vmatpush.msrb.mxu0 %v1828_v17  ;;  %v12507_v17 = vld [vmem:[#allocation32_spill] sm:$0xff] }
 0x1fc   :  { %v1469_v29 = vpop.f32.mrf.mxu2 }
 0x1fd   :  { %1862 = vmatpush.msrb.mxu0 %v1824_v14  ;;  %v9865_v55 = vadd.f32 %v1469_v29, %v9779_v9  ;;  %v9867_v35 = vpop.f32.mrf.mxu0  ;;  %v9874_v19 = vpop.f32.mrf.mxu3  ;;  %v1776_v29 = vmul.f32 %v12496_v59, %v12496_v59  ;;  %v10491_v59 = vld [vmem:[%s12229_s3 + $0x100] sm:$0xff] }
 0x1fe   :  { %1537 = vmatmul.bf16.gmra.mxu3 %v12501_v54 }
 0x1ff   :  { %12500 = vst [vmem:[#allocation31_spill] sm:$0xff] %v9865_v55  ;;  %1863 = vmatpush.msrb.mxu0 %v1820_v40 }
 0x200   :  { %v9878_v9 = vpop.f32.mrf.mxu1 }
 0x201   :  { %1864 = vmatpush.msrb.mxu0 %v1816_v28 }
 0x203   :  { %1865 = vmatpush.msrb.mxu0 %v1812_v37  ;;  %v12509_v37 = vld [vmem:[#allocation34_spill] sm:$0xff] }
 0x204   :  { %v1471_v45 = vpop.f32.mrf.mxu2 }
 0x205   :  { %1866 = vmatpush.msrb.mxu0 %v1808_v26  ;;  %v9883_v44 = vadd.f32 %v1471_v45, %v9806_v57  ;;  %v9885_v39 = vpop.f32.mrf.mxu0  ;;  %1630 = vmatmul.bf16.gmra.mxu1 %v12503_v25  ;;  %v9895_v60 = vpop.f32.mrf.mxu3  ;;  %v1792_v57 = vmul.f32 %v9639_v16, %v9639_v16  ;;  %v12510_v26 = vld [vmem:[#allocation24_spill] sm:$0xff]  ;;  %v12511_v45 = vld [vmem:[#allocation18_spill] sm:$0xff] }
 0x207   :  { %12502 = vst [vmem:[#allocation19_spill] sm:$0xff] %v9883_v44  ;;  %1867 = vmatpush.msrb.mxu0 %v1804_v21 }
 0x208   :  { %1581 = vmatmul.bf16.gmra.mxu0 %v12505_v49  ;;  %v9899_v50 = vpop.f32.mrf.mxu1 }
 0x209   :  { %1868 = vmatpush.msrb.mxu0 %v1800_v61  ;;  %7279 = vmatmul.msk.bf16.gmra.mxu2 %vm886_vm0, %v12504_v34 }
 0x20b   :  { %1869 = vmatpush.msrb.mxu0 %v1796_v52 }
 0x20c   :  { %v1474_v6 = vpop.f32.mrf.mxu2 }
 0x20d   :  { %1870 = vmatpush.msrb.mxu0 %v1792_v57  ;;  %v9904_v22 = vadd.f32 %v1474_v6, %v9819_v7  ;;  %v9906_v5 = vpop.f32.mrf.mxu0  ;;  %v1342_v14 = vpop.f32.mrf.mxu3 }
 0x20e   :  { %1542 = vmatmul.bf16.gmra.mxu3 %v12507_v17  ;;  %v12514_v17 = vld [vmem:[#allocation21_spill] sm:$0xff]  ;;  %v1389_v41 = vadd.f32 %v9906_v5, %v9895_v60 }
 0x20f   :  { %12506 = vst [vmem:[#allocation27_spill] sm:$0xff] %v9904_v22  ;;  %1871 = vmatpush.msrb.mxu0 %v1788_v32  ;;  %v12513_v32 = vld [vmem:[#allocation26_spill] sm:$0xff] }
 0x210   :  { %v1440_v40 = vpop.f32.mrf.mxu1 }
 0x211   :  { %1872 = vmatpush.msrb.mxu0 %v1784_v12 }
 0x213   :  { %1873 = vmatpush.msrb.mxu0 %v1780_v51 }
 0x214   :  { %v1476_v7 = vpop.f32.mrf.mxu2 }
 0x215   :  { %1874 = vmatpush.msrb.mxu0 %v1776_v29  ;;  %v9916_v54 = vadd.f32 %v1476_v7, %v9832_v15  ;;  %v1391_v28 = vpop.f32.mrf.mxu0  ;;  %1635 = vmatmul.bf16.gmra.mxu1 %v12509_v37  ;;  %v1344_v21 = vpop.f32.mrf.mxu3  ;;  %v12512_v15 = vld [vmem:[#allocation35_spill] sm:$0xff] }
 0x216   :  { %v1392_v20 = vadd.f32 %v1391_v28, %v1342_v14 }
 0x217   :  { %12508 = vst [vmem:[#allocation30_spill] sm:$0xff] %v9916_v54 }
 0x218   :  { %1586 = vmatmul.bf16.gmra.mxu0 %v12511_v45  ;;  %v1442_v61 = vpop.f32.mrf.mxu1  ;;  %v1441_v23 = vadd.f32 %v1440_v40, %v1392_v20 }
 0x219   :  { %7280 = vmatmul.msk.bf16.gmra.mxu2 %vm886_vm0, %v12510_v26 }
 0x21c   :  { %v9922_v25 = vpop.f32.mrf.mxu2 }
 0x21d   :  { %v1393_v52 = vpop.f32.mrf.mxu0  ;;  %v1347_v34 = vpop.f32.mrf.mxu3 }
 0x21e   :  { %v1394_v2 = vadd.f32 %v1393_v52, %v1344_v21 }
 0x220   :  { %v1445_v49 = vpop.f32.mrf.mxu1 }
 0x224   :  { %v9924_v57 = vpop.f32.mrf.mxu2 }
 0x225   :  { %v1396_v6 = vpop.f32.mrf.mxu0  ;;  %1640 = vmatmul.bf16.gmra.mxu1 %v12512_v15  ;;  %v1349_v12 = vpop.f32.mrf.mxu3 }
 0x228   :  { %1591 = vmatmul.bf16.gmra.mxu0 %v12514_v17  ;;  %v1447_v51 = vpop.f32.mrf.mxu1 }
 0x229   :  { %7281 = vmatmul.msk.bf16.gmra.mxu2 %vm886_vm0, %v12513_v32 }
 0x22c   :  { %v1484_v29 = vpop.f32.mrf.mxu2 }
 0x22d   :  { %v1398_v7 = vpop.f32.mrf.mxu0  ;;  %v1508_v37 = vpop.f32.mrf.mxu3 }
 0x22e   :  { %v1399_v56 = vadd.f32 %v1398_v7, %v1349_v12 }
 0x230   :  { %v1448_v42 = vadd.f32 %v1447_v51, %v1399_v56 }
 0x232   :  { %v1606_v26 = vpop.f32.mrf.mxu1 }
 0x234   :  { %v1486_v45 = vpop.f32.mrf.mxu2 }
 0x235   :  { %v1557_v46 = vpop.f32.mrf.mxu0  ;;  %v9932_v63 = vpop.f32.mrf.mxu3 }
 0x236   :  { %v1558_v11 = vadd.f32 %v1557_v46, %v1508_v37 }
 0x238   :  { %v1607_v43 = vadd.f32 %v1606_v26, %v1558_v11  ;;  %v1397_v26 = vadd.f32 %v1396_v6, %v1347_v34  ;;  %v1443_v34 = vadd.f32 %v1442_v61, %v1394_v2 }
 0x239   :  { %7282 = vmatmul.msk.bf16.gmra.mxu2 %vm886_vm0, %v9313_v48 }
 0x23a   :  { %v9934_v15 = vpop.f32.mrf.mxu1  ;;  %v1446_v1 = vadd.f32 %v1445_v49, %v1397_v26 }
 0x23c   :  { %v1489_v32 = vpop.f32.mrf.mxu2 }
 0x23d   :  { %v9936_v31 = vpop.f32.mrf.mxu0  ;;  %v1513_v17 = vpop.f32.mrf.mxu3  ;;  %v9966_v2 = vadd.f32 %v1489_v32, %v1441_v23 }
 0x23f   :  { %12518 = vst [vmem:[#allocation32_spill] sm:$0xff] %v9966_v2  ;;  %v1825_v32 = vmul.f32 %v9966_v2, %v9966_v2 }
 0x242   :  { %v1611_v13 = vpop.f32.mrf.mxu1 }
 0x244   :  { %v1491_v27 = vpop.f32.mrf.mxu2 }
 0x245   :  { %v1562_v36 = vpop.f32.mrf.mxu0  ;;  %v9940_v46 = vpop.f32.mrf.mxu3  ;;  %v9955_v56 = vadd.f32 %v1491_v27, %v1443_v34 }
 0x246   :  { %v1563_v3 = vadd.f32 %v1562_v36, %v1513_v17 }
 0x247   :  { %12517 = vst [vmem:[#allocation28_spill] sm:$0xff] %v9955_v56 }
 0x248   :  { %v1612_v47 = vadd.f32 %v1611_v13, %v1563_v3 }
 0x249   :  { %7283 = vmatmul.msk.bf16.gmra.mxu2 %vm886_vm0, %v12481_v18  ;;  %v1387_v18 = vadd.f32 %v9885_v39, %v9874_v19  ;;  %v1382_v19 = vadd.f32 %v9846_v58, %v9835_v10  ;;  %vm6592_vm0 = vcmask 1043456  }
 0x24a   :  { %v9942_v11 = vpop.f32.mrf.mxu1 }
 0x24b   :  { %v1436_v20 = vadd.f32 %v9878_v9, %v1387_v18  ;;  %v1431_v58 = vadd.f32 %v9838_v33, %v1382_v19  ;;  %v1805_v19 = vmul.f32 %v9916_v54, %v9916_v54 }
 0x24c   :  { %v1494_v48 = vpop.f32.mrf.mxu2 }
 0x24d   :  { %v9944_v37 = vpop.f32.mrf.mxu0  ;;  %v1518_v16 = vpop.f32.mrf.mxu3  ;;  %v9952_v6 = vadd.f32 %v1494_v48, %v1446_v1  ;;  %v1438_v1 = vadd.f32 %v9899_v50, %v1389_v41  ;;  %v9980_v41 = vadd.f32 %v1484_v29, %v1436_v20  ;;  %v1829_v29 = vmul.f32 %v9955_v56, %v9955_v56 }
 0x24e   :  { %v1793_v20 = vmul.f32 %v9865_v55, %v9865_v55 }
 0x24f   :  { %12516 = vst [vmem:[#allocation22_spill] sm:$0xff] %v9952_v6  ;;  %v9971_v39 = vadd.f32 %v1486_v45, %v1438_v1 }
 0x250   :  { %12521 = vst [vmem:[#allocation18_spill] sm:$0xff] %v9980_v41 }
 0x251   :  { %12519 = vst [vmem:[#allocation34_spill] sm:$0xff] %v9971_v39  ;;  %v1821_v26 = vmul.f32 %v9971_v39, %v9971_v39 }
 0x252   :  { %v1616_v4 = vpop.f32.mrf.mxu1 }
 0x254   :  { %v1496_v36 = vpop.f32.mrf.mxu2 }
 0x255   :  { %v9946_v3 = vadd.f32 %v1496_v36, %v1448_v42  ;;  %v1567_v13 = vpop.f32.mrf.mxu0  ;;  %v9958_v42 = vpop.f32.mrf.mxu3 }
 0x256   :  { %v1568_v17 = vadd.f32 %v1567_v13, %v1518_v16  ;;  %v1384_v16 = vadd.f32 %v9867_v35, %v9856_v24  ;;  %v1817_v13 = vmul.f32 %v9980_v41, %v9980_v41 }
 0x257   :  { %12515 = vst [vmem:[#allocation33_spill] sm:$0xff] %v9946_v3  ;;  %1735 = vmatpush.msra.mxu1 %v9946_v3  ;;  %v1837_v52 = vmul.f32 %v9946_v3, %v9946_v3 }
 0x258   :  { %v1617_v14 = vadd.f32 %v1616_v4, %v1568_v17  ;;  %v1433_v24 = vadd.f32 %v9860_v62, %v1384_v16  ;;  %v1797_v16 = vmul.f32 %v9883_v44, %v9883_v44 }
 0x259   :  { %1736 = vmatpush.msra.mxu1 %v9952_v6 }
 0x25a   :  { %v9969_v4 = vpop.f32.mrf.mxu1  ;;  %v9984_v23 = vadd.f32 %v9924_v57, %v1433_v24  ;;  %v1785_v24 = vmul.f32 %v9827_v53, %v9827_v53 }
 0x25b   :  { %1737 = vmatpush.msra.mxu1 %v9955_v56 }
 0x25c   :  { %v1655_v27 = vpop.f32.mrf.mxu2  ;;  %12522 = vst [vmem:[#allocation35_spill] sm:$0xff] %v9984_v23  ;;  %v1813_v18 = vmul.f32 %v9984_v23, %v9984_v23 }
 0x25d   :  { %v9973_v60 = vadd.f32 %v1655_v27, %v1607_v43  ;;  %1738 = vmatpush.msra.mxu1 %v9966_v2  ;;  %v9976_v10 = vpop.f32.mrf.mxu0  ;;  %v1523_v35 = vpop.f32.mrf.mxu3  ;;  %v9988_v43 = vadd.f32 %v9922_v25, %v1431_v58  ;;  %v1789_v27 = vmul.f32 %v9843_v0, %v9843_v0 }
 0x25f   :  { %12520 = vst [vmem:[#allocation24_spill] sm:$0xff] %v9973_v60  ;;  %1739 = vmatpush.msra.mxu1 %v9971_v39  ;;  %v1809_v17 = vmul.f32 %v9988_v43, %v9988_v43 }
 0x260   :  { %12523 = vst [vmem:[#allocation26_spill] sm:$0xff] %v9988_v43 }
 0x261   :  { %1740 = vmatpush.msra.mxu1 %v9980_v41 }
 0x262   :  { %v1621_v33 = vpop.f32.mrf.mxu1 }
 0x263   :  { %1741 = vmatpush.msra.mxu1 %v9984_v23 }
 0x264   :  { %v9991_v9 = vpop.f32.mrf.mxu2 }
 0x265   :  { %1742 = vmatpush.msra.mxu1 %v9988_v43  ;;  %v1572_v62 = vpop.f32.mrf.mxu0  ;;  %v9997_v28 = vpop.f32.mrf.mxu3 }
 0x266   :  { %v1573_v50 = vadd.f32 %v1572_v62, %v1523_v35 }
 0x267   :  { %1743 = vmatpush.msra.mxu1 %v9916_v54 }
 0x268   :  { %v1622_v5 = vadd.f32 %v1621_v33, %v1573_v50  ;;  %v1781_v33 = vmul.f32 %v9814_v8, %v9814_v8  ;;  %v1777_v50 = vmul.f32 %v9797_v30, %v9797_v30 }
 0x269   :  { %1744 = vmatpush.msra.mxu1 %v9904_v22 }
 0x26a   :  { %v10004_v25 = vpop.f32.mrf.mxu1 }
 0x26b   :  { %1745 = vmatpush.msra.mxu1 %v9883_v44 }
 0x26c   :  { %v1660_v40 = vpop.f32.mrf.mxu2 }
 0x26d   :  { %v9999_v21 = vadd.f32 %v1660_v40, %v1612_v47  ;;  %1746 = vmatpush.msra.mxu1 %v9865_v55  ;;  %v10002_v61 = vpop.f32.mrf.mxu0  ;;  %v1833_v47 = vmul.f32 %v9952_v6, %v9952_v6  ;;  %v1528_v57 = vpop.f32.mrf.mxu3 }
 0x26f   :  { %12524 = vst [vmem:[#allocation21_spill] sm:$0xff] %v9999_v21  ;;  %1747 = vmatpush.msra.mxu1 %v9843_v0 }
 0x271   :  { %1748 = vmatpush.msra.mxu1 %v9827_v53 }
 0x272   :  { %v1626_v7 = vpop.f32.mrf.mxu1 }
 0x273   :  { %1749 = vmatpush.msra.mxu1 %v9814_v8 }
 0x274   :  { %v10011_v49 = vpop.f32.mrf.mxu2 }
 0x275   :  { %1750 = vmatpush.msra.mxu1 %v9797_v30  ;;  %v1577_v12 = vpop.f32.mrf.mxu0  ;;  %v1530_v35 = vpop.f32.mrf.mxu3 }
 0x276   :  { %v1578_v51 = vadd.f32 %v1577_v12, %v1528_v57 }
 0x277   :  { %1879 = vmatpush.msrb.mxu1 %v1837_v52 }
 0x278   :  { %v1627_v45 = vadd.f32 %v1626_v7, %v1578_v51 }
 0x279   :  { %1880 = vmatpush.msrb.mxu1 %v1833_v47 }
 0x27a   :  { %v1628_v52 = vpop.f32.mrf.mxu1 }
 0x27b   :  { %1881 = vmatpush.msrb.mxu1 %v1829_v29 }
 0x27c   :  { %v1665_v48 = vpop.f32.mrf.mxu2 }
 0x27d   :  { %1882 = vmatpush.msrb.mxu1 %v1825_v32  ;;  %v10022_v36 = vadd.f32 %v1665_v48, %v1617_v14  ;;  %v1801_v14 = vmul.f32 %v9904_v22, %v9904_v22  ;;  %v1579_v62 = vpop.f32.mrf.mxu0  ;;  %v1533_v47 = vpop.f32.mrf.mxu3 }
 0x27f   :  { %12525 = vst [vmem:[#allocation66_spill] sm:$0xff] %v10022_v36  ;;  %1883 = vmatpush.msrb.mxu1 %v1821_v26 }
 0x281   :  { %1884 = vmatpush.msrb.mxu1 %v1817_v13 }
 0x282   :  { %v1631_v51 = vpop.f32.mrf.mxu1 }
 0x283   :  { %1885 = vmatpush.msrb.mxu1 %v1813_v18 }
 0x284   :  { %v10030_v34 = vpop.f32.mrf.mxu2 }
 0x285   :  { %1886 = vmatpush.msrb.mxu1 %v1809_v17  ;;  %v1535_v29 = vpop.f32.mrf.mxu3 }
 0x287   :  { %1887 = vmatpush.msrb.mxu1 %v1805_v19 }
 0x289   :  { %1888 = vmatpush.msrb.mxu1 %v1801_v14 }
 0x28a   :  { %v1633_v48 = vpop.f32.mrf.mxu1 }
 0x28b   :  { %1889 = vmatpush.msrb.mxu1 %v1797_v16 }
 0x28c   :  { %v1670_v1 = vpop.f32.mrf.mxu2 }
 0x28d   :  { %1890 = vmatpush.msrb.mxu1 %v1793_v20  ;;  %v10042_v58 = vadd.f32 %v1670_v1, %v1622_v5  ;;  %v1582_v5 = vpop.f32.mrf.mxu0  ;;  %v1538_v13 = vpop.f32.mrf.mxu3 }
 0x28e   :  { %v1583_v44 = vadd.f32 %v1582_v5, %v1533_v47  ;;  %v10179_v47 = vld [vmem:[%s12229_s3 + $0xe0] sm:$0xff] }
 0x28f   :  { %12526 = vst [vmem:[#allocation67_spill] sm:$0xff] %v10042_v58  ;;  %1891 = vmatpush.msrb.mxu1 %v1789_v27  ;;  %v10186_v5 = vld [vmem:[%s12229_s3 + $0x160] sm:$0xff] }
 0x291   :  { %1892 = vmatpush.msrb.mxu1 %v1785_v24 }
 0x292   :  { %v1636_v17 = vpop.f32.mrf.mxu1 }
 0x293   :  { %1893 = vmatpush.msrb.mxu1 %v1781_v33 }
 0x294   :  { %v1672_v40 = vpop.f32.mrf.mxu2 }
 0x295   :  { %1894 = vmatpush.msrb.mxu1 %v1777_v50  ;;  %v1584_v32 = vpop.f32.mrf.mxu0  ;;  %v1540_v14 = vpop.f32.mrf.mxu3 }
 0x296   :  { %v1585_v55 = vadd.f32 %v1584_v32, %v1535_v29  ;;  %v10194_v29 = vld [vmem:[%s12229_s3 + $0x58] sm:$0xff] }
 0x297   :  { %v10206_v32 = vld [vmem:[%s12229_s3 + $0x158] sm:$0xff] }
 0x29a   :  { %v1638_v20 = vpop.f32.mrf.mxu1 }
 0x29c   :  { %v1675_v57 = vpop.f32.mrf.mxu2 }
 0x29d   :  { %v10050_v12 = vadd.f32 %v1675_v57, %v1627_v45  ;;  %v1587_v18 = vpop.f32.mrf.mxu0  ;;  %v1543_v27 = vpop.f32.mrf.mxu3 }
 0x29e   :  { %v1588_v39 = vadd.f32 %v1587_v18, %v1538_v13  ;;  %v1632_v13 = vadd.f32 %v1631_v51, %v1583_v44  ;;  %v1634_v18 = vadd.f32 %v1633_v48, %v1585_v55 }
 0x29f   :  { %12527 = vst [vmem:[#allocation68_spill] sm:$0xff] %v10050_v12 }
 0x2a0   :  { %v1637_v0 = vadd.f32 %v1636_v17, %v1588_v39  ;;  %v12323_v39 = vmov 1.0   ;;  %v10219_v17 = vld [vmem:[%s12229_s3 + $0xd0] sm:$0xff] }
 0x2a1   :  { %1711 = vmatmul.f32.vlgmr.msra.gmra.mxu3 %v12323_v39  ;;  %1731 = vmatmul.f32.vlgmr.msra.gmra.mxu0 %v12323_v39 }
 0x2a2   :  { %v1641_v50 = vpop.f32.mrf.mxu1  ;;  %1751 = vmatmul.f32.vlgmr.msra.gmra.mxu1 %v12323_v39 }
 0x2a4   :  { %v1677_v7 = vpop.f32.mrf.mxu2 }
 0x2a5   :  { %v1589_v16 = vpop.f32.mrf.mxu0  ;;  %v1545_v45 = vpop.f32.mrf.mxu3 }
 0x2a6   :  { %v1590_v41 = vadd.f32 %v1589_v16, %v1540_v14  ;;  %v10234_v16 = vld [vmem:[%s12229_s3 + $0x48] sm:$0xff] }
 0x2a8   :  { %v1639_v53 = vadd.f32 %v1638_v20, %v1590_v41  ;;  %v1565_v41 = vadd.f32 %v9944_v37, %v9940_v46  ;;  %v10126_v37 = vld [vmem:[%s12229_s3 + $0x178] sm:$0xff]  ;;  %v10239_v20 = vld [vmem:[%s12229_s3 + $0xc8] sm:$0xff] }
 0x2a9   :  { %1855 = vmatmul.f32.vlgmr.msrb.gmra.mxu3 %v12323_v39  ;;  %1875 = vmatmul.f32.vlgmr.msrb.gmra.mxu0 %v12323_v39 }
 0x2aa   :  { %v1643_v2 = vpop.f32.mrf.mxu1  ;;  %1895 = vmatmul.f32.vlgmr.msrb.gmra.mxu1 %v12323_v39 }
 0x2ab   :  { %2152 = vmatpush.msra.mxu1 %v10126_v37 }
 0x2ac   :  { %v1680_v26 = vpop.f32.mrf.mxu2 }
 0x2ad   :  { %v1592_v24 = vpop.f32.mrf.mxu0 }
 0x2ae   :  { %v1593_v6 = vadd.f32 %v1592_v24, %v1543_v27  ;;  %v1580_v27 = vadd.f32 %v1579_v62, %v1530_v35  ;;  %v10159_v35 = vld [vmem:[%s12229_s3 + $0xe8] sm:$0xff]  ;;  %v1810_v24 = vmul.f32 %v10050_v12, %v10050_v12 }
 0x2af   :  { %v10166_v62 = vld [vmem:[%s12229_s3 + $0x168] sm:$0xff] }
 0x2b0   :  { %v1642_v23 = vadd.f32 %v1641_v50, %v1593_v6  ;;  %v10259_v50 = vld [vmem:[%s12229_s3 + $0xc0] sm:$0xff] }
 0x2b4   :  { %v1682_v19 = vpop.f32.mrf.mxu2 }
 0x2b5   :  { %v1594_v57 = vpop.f32.mrf.mxu0 }
 0x2b6   :  { %v1595_v56 = vadd.f32 %v1594_v57, %v1545_v45  ;;  %v10266_v45 = vld [vmem:[%s12229_s3 + $0x140] sm:$0xff] }
 0x2b8   :  { %v1644_v43 = vadd.f32 %v1643_v2, %v1595_v56  ;;  %v1629_v56 = vadd.f32 %v1628_v52, %v1580_v27  ;;  %v10068_v2 = vadd.f32 %v1680_v26, %v1632_v13  ;;  %v10174_v52 = vld [vmem:[%s12229_s3 + $0x60] sm:$0xff]  ;;  %v10214_v26 = vld [vmem:[%s12229_s3 + $0x50] sm:$0xff]  ;;  %v10274_v27 = vld [vmem:[%s12229_s3 + $0x38] sm:$0xff] }
 0x2b9   :  { %v10279_v13 = vld [vmem:[%s12229_s3 + $0xb8] sm:$0xff] }
 0x2ba   :  { %12533 = vst [vmem:[#allocation74_spill] sm:$0xff] %v10068_v2  ;;  %v1818_v48 = vmul.f32 %v10068_v2, %v10068_v2 }
 0x2bc   :  { %v1685_v1 = vpop.f32.mrf.mxu2 }
 0x2bd   :  { %v10060_v6 = vadd.f32 %v1685_v1, %v1637_v0  ;;  %v1570_v0 = vadd.f32 %v9976_v10, %v9958_v42  ;;  %v10246_v1 = vld [vmem:[%s12229_s3 + $0x148] sm:$0xff] }
 0x2bf   :  { %12531 = vst [vmem:[#allocation72_spill] sm:$0xff] %v10060_v6  ;;  %v1619_v42 = vadd.f32 %v9969_v4, %v1570_v0  ;;  %v10299_v0 = vld [vmem:[%s12229_s3 + $0xb0] sm:$0xff] }
 0x2c1   :  { %v10089_v10 = vadd.f32 %v10030_v34, %v1619_v42  ;;  %v10154_v34 = vld [vmem:[%s12229_s3 + $0x68] sm:$0xff] }
 0x2c2   :  { %v10314_v42 = vld [vmem:[%s12229_s3 + $0x28] sm:$0xff] }
 0x2c3   :  { %12536 = vst [vmem:[#allocation77_spill] sm:$0xff] %v10089_v10 }
 0x2c4   :  { %v1687_v33 = vpop.f32.mrf.mxu2 }
 0x2c5   :  { %v10057_v30 = vadd.f32 %v1687_v33, %v1639_v53  ;;  %v10071_v53 = vadd.f32 %v1677_v7, %v1629_v56  ;;  %v10199_v7 = vld [vmem:[%s12229_s3 + $0xd8] sm:$0xff]  ;;  %v10254_v33 = vld [vmem:[%s12229_s3 + $0x40] sm:$0xff]  ;;  %v10294_v56 = vld [vmem:[%s12229_s3 + $0x30] sm:$0xff] }
 0x2c7   :  { %12530 = vst [vmem:[#allocation71_spill] sm:$0xff] %v10057_v30  ;;  %v1814_v14 = vmul.f32 %v10071_v53, %v10071_v53 }
 0x2c8   :  { %12534 = vst [vmem:[#allocation75_spill] sm:$0xff] %v10071_v53 }
 0x2cc   :  { %v1690_v3 = vpop.f32.mrf.mxu2 }
 0x2cd   :  { %v10054_v8 = vadd.f32 %v1690_v3, %v1642_v23  ;;  %v1575_v3 = vadd.f32 %v10002_v61, %v9997_v28  ;;  %v1560_v23 = vadd.f32 %v9936_v31, %v9932_v63  ;;  %v10139_v61 = vld [vmem:[%s12229_s3 + $0xf0] sm:$0xff] }
 0x2cf   :  { %12529 = vst [vmem:[#allocation70_spill] sm:$0xff] %v10054_v8  ;;  %v1624_v55 = vadd.f32 %v10004_v25, %v1575_v3  ;;  %v1609_v46 = vadd.f32 %v9934_v15, %v1560_v23  ;;  %v10121_v15 = vld [vmem:[%s12229_s3 + $0xf8] sm:$0xff]  ;;  %v1834_v4 = vmul.f32 %v10054_v8, %v10054_v8  ;;  %v10146_v25 = vld [vmem:[%s12229_s3 + $0x170] sm:$0xff]  ;;  %v1802_v3 = vmul.f32 %v10042_v58, %v10042_v58  ;;  %v10319_v23 = vld [vmem:[%s12229_s3 + $0xa8] sm:$0xff] }
 0x2d0   :  { %2132 = vmatpush.msra.mxu0 %v10121_v15  ;;  %2153 = vmatpush.msra.mxu1 %v10146_v25 }
 0x2d1   :  { %v10078_v44 = vadd.f32 %v1672_v40, %v1624_v55  ;;  %v10106_v63 = vadd.f32 %v9991_v9, %v1609_v46  ;;  %v10134_v9 = vld [vmem:[%s12229_s3 + $0x70] sm:$0xff]  ;;  %v1826_v40 = vmul.f32 %v10060_v6, %v10060_v6  ;;  %v1794_v46 = vmul.f32 %v10022_v36, %v10022_v36 }
 0x2d2   :  { %2133 = vmatpush.msra.mxu0 %v10139_v61  ;;  %2154 = vmatpush.msra.mxu1 %v10166_v62  ;;  %v10306_v55 = vld [vmem:[%s12229_s3 + $0x130] sm:$0xff] }
 0x2d3   :  { %12535 = vst [vmem:[#allocation76_spill] sm:$0xff] %v10078_v44  ;;  %v1806_v57 = vmul.f32 %v10078_v44, %v10078_v44 }
 0x2d4   :  { %v1692_v54 = vpop.f32.mrf.mxu2  ;;  %12538 = vst [vmem:[#allocation79_spill] sm:$0xff] %v10106_v63  ;;  %2134 = vmatpush.msra.mxu0 %v10159_v35  ;;  %2155 = vmatpush.msra.mxu1 %v10186_v5 }
 0x2d5   :  { %v10052_v22 = vadd.f32 %v1692_v54, %v1644_v43  ;;  %v10063_v54 = vadd.f32 %v1682_v19, %v1634_v18  ;;  %v1614_v43 = vadd.f32 %v9942_v11, %v1565_v41  ;;  %v10116_v11 = vld [vmem:[%s12229_s3 + $0x78] sm:$0xff]  ;;  %v10226_v19 = vld [vmem:[%s12229_s3 + $0x150] sm:$0xff]  ;;  %v1798_v41 = vmul.f32 %v10089_v10, %v10089_v10 }
 0x2d6   :  { %2112 = vmatpush.msra.mxu3 %v10116_v11  ;;  %2135 = vmatpush.msra.mxu0 %v10179_v47  ;;  %v10286_v18 = vld [vmem:[%s12229_s3 + $0x138] sm:$0xff] }
 0x2d7   :  { %12528 = vst [vmem:[#allocation69_spill] sm:$0xff] %v10052_v22  ;;  %1755 = vmatpush.msrb.mxu2 %v10052_v22  ;;  %v10097_v28 = vadd.f32 %v10011_v49, %v1614_v43  ;;  %v1838_v31 = vmul.f32 %v10052_v22, %v10052_v22  ;;  %v1830_v49 = vmul.f32 %v10057_v30, %v10057_v30  ;;  %v10326_v43 = vld [vmem:[%s12229_s3 + $0x128] sm:$0xff] }
 0x2d8   :  { %12532 = vst [vmem:[#allocation73_spill] sm:$0xff] %v10063_v54  ;;  %2113 = vmatpush.msra.mxu3 %v10134_v9  ;;  %v1822_v51 = vmul.f32 %v10063_v54, %v10063_v54  ;;  %2136 = vmatpush.msra.mxu0 %v10199_v7  ;;  %v1778_v22 = vmul.f32 %v9973_v60, %v9973_v60 }
 0x2d9   :  { %1756 = vmatpush.msrb.mxu2 %v10054_v8  ;;  %12537 = vst [vmem:[#allocation78_spill] sm:$0xff] %v10097_v28  ;;  %2156 = vmatpush.msra.mxu1 %v10206_v32  ;;  %v2102_v8 = vld [vmem:[%s12229_s3 + $0x1f8] sm:$0xff] }
 0x2da   :  { %2114 = vmatpush.msra.mxu3 %v10154_v34  ;;  %2137 = vmatpush.msra.mxu0 %v10219_v17 }
 0x2db   :  { %1757 = vmatpush.msrb.mxu2 %v10057_v30  ;;  %2157 = vmatpush.msra.mxu1 %v10226_v19  ;;  %v12541_v30 = vmov 1.0  }
 0x2dc   :  { %2115 = vmatpush.msra.mxu3 %v10174_v52  ;;  %2138 = vmatpush.msra.mxu0 %v10239_v20 }
 0x2dd   :  { %1758 = vmatpush.msrb.mxu2 %v10060_v6  ;;  %2158 = vmatpush.msra.mxu1 %v10246_v1  ;;  %v2100_v6 = vld [vmem:[%s12229_s3 + $0x1e8] sm:$0xff] }
 0x2de   :  { %2116 = vmatpush.msra.mxu3 %v10194_v29  ;;  %2139 = vmatpush.msra.mxu0 %v10259_v50 }
 0x2df   :  { %1759 = vmatpush.msrb.mxu2 %v10063_v54  ;;  %2159 = vmatpush.msra.mxu1 %v10266_v45  ;;  %v2099_v54 = vld [vmem:[%s12229_s3 + $0x1e0] sm:$0xff] }
 0x2e0   :  { %2117 = vmatpush.msra.mxu3 %v10214_v26  ;;  %2140 = vmatpush.msra.mxu0 %v10279_v13 }
 0x2e1   :  { %1760 = vmatpush.msrb.mxu2 %v10068_v2  ;;  %2160 = vmatpush.msra.mxu1 %v10286_v18  ;;  %v2096_v2 = vld [vmem:[%s12229_s3 + $0x1c8] sm:$0xff] }
 0x2e2   :  { %2118 = vmatpush.msra.mxu3 %v10234_v16  ;;  %2141 = vmatpush.msra.mxu0 %v10299_v0 }
 0x2e3   :  { %1761 = vmatpush.msrb.mxu2 %v10071_v53  ;;  %2161 = vmatpush.msra.mxu1 %v10306_v55  ;;  %v2095_v53 = vld [vmem:[%s12229_s3 + $0x1c0] sm:$0xff] }
 0x2e4   :  { %2119 = vmatpush.msra.mxu3 %v10254_v33  ;;  %2142 = vmatpush.msra.mxu0 %v10319_v23 }
 0x2e5   :  { %1762 = vmatpush.msrb.mxu2 %v10050_v12  ;;  %2162 = vmatpush.msra.mxu1 %v10326_v43  ;;  %v2094_v12 = vld [vmem:[%s12229_s3 + $0x1b8] sm:$0xff] }
 0x2e6   :  { %2120 = vmatpush.msra.mxu3 %v10274_v27 }
 0x2e7   :  { %1763 = vmatpush.msrb.mxu2 %v10078_v44  ;;  %v10445_v44 = vld [vmem:[%s12229_s3 + $0x1b0] sm:$0xff] }
 0x2e8   :  { %2121 = vmatpush.msra.mxu3 %v10294_v56 }
 0x2e9   :  { %1764 = vmatpush.msrb.mxu2 %v10042_v58  ;;  %v10450_v58 = vld [vmem:[%s12229_s3 + $0x1a8] sm:$0xff] }
 0x2ea   :  { %2122 = vmatpush.msra.mxu3 %v10314_v42 }
 0x2eb   :  { %1765 = vmatpush.msrb.mxu2 %v10089_v10  ;;  %v10456_v10 = vld [vmem:[%s12229_s3 + $0x1a0] sm:$0xff] }
 0x2ed   :  { %1766 = vmatpush.msrb.mxu2 %v10022_v36  ;;  %v10462_v36 = vld [vmem:[%s12229_s3 + $0x198] sm:$0xff] }
 0x2ef   :  { %1767 = vmatpush.msrb.mxu2 %v10097_v28 }
 0x2f1   :  { %1768 = vmatpush.msrb.mxu2 %v9999_v21 }
 0x2f3   :  { %1769 = vmatpush.msrb.mxu2 %v10106_v63 }
 0x2f5   :  { %1770 = vmatpush.msrb.mxu2 %v9973_v60  ;;  %v10486_v60 = vld [vmem:[%s12229_s3 + $0x80] sm:$0xff] }
 0x2f6   :  { %1771 = vmatmul.f32.vlgmr.msrb.gmra.mxu2 %v12323_v39  ;;  %v10399_v39 = vld [vmem:[%s12229_s3 + $0x88] sm:$0xff] }
 0x2f7   :  { %1899 = vmatpush.msra.mxu2 %v1838_v31  ;;  %v10334_v31 = vld [vmem:[%s12229_s3 + $0x20] sm:$0xff]  ;;  %12539 = vst [vmem:[#allocation80_spill] sm:$0xff] %v10399_v39 }
 0x2f8   :  { %2123 = vmatpush.msra.mxu3 %v10334_v31 }
 0x2f9   :  { %1900 = vmatpush.msra.mxu2 %v1834_v4  ;;  %v10339_v4 = vld [vmem:[%s12229_s3 + $0xa0] sm:$0xff] }
 0x2fa   :  { %2143 = vmatpush.msra.mxu0 %v10339_v4 }
 0x2fb   :  { %1901 = vmatpush.msra.mxu2 %v1830_v49  ;;  %v10346_v49 = vld [vmem:[%s12229_s3 + $0x120] sm:$0xff] }
 0x2fc   :  { %2163 = vmatpush.msra.mxu1 %v10346_v49 }
 0x2fd   :  { %1902 = vmatpush.msra.mxu2 %v1826_v40  ;;  %v1790_v40 = vmul.f32 %v10097_v28, %v10097_v28  ;;  %v10468_v28 = vld [vmem:[%s12229_s3 + $0x190] sm:$0xff] }
 0x2ff   :  { %1903 = vmatpush.msra.mxu2 %v1822_v51  ;;  %v10354_v51 = vld [vmem:[%s12229_s3 + $0x18] sm:$0xff] }
 0x300   :  { %2124 = vmatpush.msra.mxu3 %v10354_v51 }
 0x301   :  { %1904 = vmatpush.msra.mxu2 %v1818_v48  ;;  %v10359_v48 = vld [vmem:[%s12229_s3 + $0x98] sm:$0xff] }
 0x302   :  { %2144 = vmatpush.msra.mxu0 %v10359_v48 }
 0x303   :  { %1905 = vmatpush.msra.mxu2 %v1814_v14  ;;  %v10366_v14 = vld [vmem:[%s12229_s3 + $0x118] sm:$0xff] }
 0x304   :  { %2164 = vmatpush.msra.mxu1 %v10366_v14 }
 0x305   :  { %1906 = vmatpush.msra.mxu2 %v1810_v24  ;;  %v1786_v24 = vmul.f32 %v9999_v21, %v9999_v21  ;;  %v10474_v21 = vld [vmem:[%s12229_s3 + $0x188] sm:$0xff] }
 0x306   :  { %12542 = vst [vmem:[#allocation82_spill] sm:$0xff] %v10474_v21 }
 0x307   :  { %1907 = vmatpush.msra.mxu2 %v1806_v57  ;;  %v10374_v57 = vld [vmem:[%s12229_s3 + $0x10] sm:$0xff] }
 0x308   :  { %2125 = vmatpush.msra.mxu3 %v10374_v57 }
 0x309   :  { %1908 = vmatpush.msra.mxu2 %v1802_v3  ;;  %v10379_v3 = vld [vmem:[%s12229_s3 + $0x90] sm:$0xff] }
 0x30a   :  { %2145 = vmatpush.msra.mxu0 %v10379_v3 }
 0x30b   :  { %1909 = vmatpush.msra.mxu2 %v1798_v41  ;;  %v10386_v41 = vld [vmem:[%s12229_s3 + $0x110] sm:$0xff] }
 0x30c   :  { %2165 = vmatpush.msra.mxu1 %v10386_v41  ;;  %2146 = vmatpush.msra.mxu0 %v10399_v39  ;;  %v9043_v39 = vmov 0.0  }
 0x30d   :  { %1910 = vmatpush.msra.mxu2 %v1794_v46  ;;  %v1782_v46 = vmul.f32 %v10106_v63, %v10106_v63  ;;  %v10481_v63 = vld [vmem:[%s12229_s3] sm:$0xff]  ;;  %1927 = vst.msk [vmem:[#allocation3] sm:$0xf] %vm10503_vm1, %v9043_v39 }
 0x30e   :  { %2147 = vmatpush.msra.mxu0 %v10486_v60  ;;  %1928 = vst.msk [vmem:[#allocation4] sm:$0xf] %vm10503_vm1, %v9043_v39  ;;  %v12545_v39 = vld [vmem:[#allocation80_spill] sm:$0xff] }
 0x30f   :  { %1911 = vmatpush.msra.mxu2 %v1790_v40  ;;  %v10394_v40 = vld [vmem:[%s12229_s3 + $0x8] sm:$0xff] }
 0x310   :  { %2126 = vmatpush.msra.mxu3 %v10394_v40  ;;  %2222 = vmatpush.msrb.mxu0 %v10121_v15 }
 0x311   :  { %1912 = vmatpush.msra.mxu2 %v1786_v24  ;;  %v10406_v24 = vld [vmem:[%s12229_s3 + $0x108] sm:$0xff] }
 0x312   :  { %12540 = vst [vmem:[#allocation81_spill] sm:$0xff] %v10406_v24  ;;  %2166 = vmatpush.msra.mxu1 %v10406_v24  ;;  %2127 = vmatpush.msra.mxu3 %v10481_v63 }
 0x313   :  { %1913 = vmatpush.msra.mxu2 %v1782_v46  ;;  %v2101_v46 = vld [vmem:[%s12229_s3 + $0x1f0] sm:$0xff]  ;;  %2223 = vmatpush.msrb.mxu0 %v10139_v61 }
 0x314   :  { %2167 = vmatpush.msra.mxu1 %v10491_v59  ;;  %2202 = vmatpush.msrb.mxu3 %v10116_v11  ;;  %v12547_v11 = vld [vmem:[#allocation82_spill] sm:$0xff] }
 0x315   :  { %1914 = vmatpush.msra.mxu2 %v1778_v22  ;;  %v2098_v22 = vld [vmem:[%s12229_s3 + $0x1d8] sm:$0xff]  ;;  %2224 = vmatpush.msrb.mxu0 %v10159_v35 }
 0x316   :  { %1915 = vmatmul.f32.vlgmr.msra.gmra.mxu2 %v12541_v30  ;;  %v2097_v30 = vld [vmem:[%s12229_s3 + $0x1d0] sm:$0xff]  ;;  %2242 = vmatpush.msrb.mxu1 %v10126_v37 }
 0x317   :  { %2172 = vmatpush.msrb.mxu2 %v2102_v8  ;;  %2203 = vmatpush.msrb.mxu3 %v10134_v9 }
 0x318   :  { %2243 = vmatpush.msrb.mxu1 %v10146_v25  ;;  %2225 = vmatpush.msrb.mxu0 %v10179_v47 }
 0x319   :  { %2173 = vmatpush.msrb.mxu2 %v2101_v46  ;;  %2204 = vmatpush.msrb.mxu3 %v10154_v34 }
 0x31a   :  { %2244 = vmatpush.msrb.mxu1 %v10166_v62  ;;  %2226 = vmatpush.msrb.mxu0 %v10199_v7 }
 0x31b   :  { %2174 = vmatpush.msrb.mxu2 %v2100_v6  ;;  %2205 = vmatpush.msrb.mxu3 %v10174_v52 }
 0x31c   :  { %2245 = vmatpush.msrb.mxu1 %v10186_v5  ;;  %2227 = vmatpush.msrb.mxu0 %v10219_v17  ;;  %v1950_v5 = vld [vmem:[#allocation4] sm:$0xf] }
 0x31d   :  { %2175 = vmatpush.msrb.mxu2 %v2099_v54  ;;  %2206 = vmatpush.msrb.mxu3 %v10194_v29 }
 0x31e   :  { %2246 = vmatpush.msrb.mxu1 %v10206_v32  ;;  %2228 = vmatpush.msrb.mxu0 %v10239_v20 }
 0x31f   :  { %2176 = vmatpush.msrb.mxu2 %v2098_v22  ;;  %2207 = vmatpush.msrb.mxu3 %v10214_v26 }
 0x320   :  { %2247 = vmatpush.msrb.mxu1 %v10226_v19  ;;  %2229 = vmatpush.msrb.mxu0 %v10259_v50 }
 0x321   :  { %2177 = vmatpush.msrb.mxu2 %v2097_v30  ;;  %2208 = vmatpush.msrb.mxu3 %v10234_v16 }
 0x322   :  { %2248 = vmatpush.msrb.mxu1 %v10246_v1  ;;  %2230 = vmatpush.msrb.mxu0 %v10279_v13  ;;  %v9044_v1 = vmov 128.0  }
 0x323   :  { %2178 = vmatpush.msrb.mxu2 %v2096_v2  ;;  %2209 = vmatpush.msrb.mxu3 %v10254_v33  ;;  %8894 = vrcp.f32 %v9044_v1 }
 0x324   :  { %2249 = vmatpush.msrb.mxu1 %v10266_v45  ;;  %2231 = vmatpush.msrb.mxu0 %v10299_v0 }
 0x325   :  { %2179 = vmatpush.msrb.mxu2 %v2095_v53  ;;  %2210 = vmatpush.msrb.mxu3 %v10274_v27 }
 0x326   :  { %2250 = vmatpush.msrb.mxu1 %v10286_v18  ;;  %2232 = vmatpush.msrb.mxu0 %v10319_v23 }
 0x327   :  { %2180 = vmatpush.msrb.mxu2 %v2094_v12  ;;  %2211 = vmatpush.msrb.mxu3 %v10294_v56 }
 0x328   :  { %2251 = vmatpush.msrb.mxu1 %v10306_v55  ;;  %2233 = vmatpush.msrb.mxu0 %v10339_v4 }
 0x329   :  { %2181 = vmatpush.msrb.mxu2 %v10445_v44  ;;  %2212 = vmatpush.msrb.mxu3 %v10314_v42  ;;  %v8895_v33 = vpop.eup %8894 }
 0x32a   :  { %2252 = vmatpush.msrb.mxu1 %v10326_v43  ;;  %2234 = vmatpush.msrb.mxu0 %v10359_v48  ;;  %v2283_v50 = vmul.f32 128.0, %v8895_v33  ;;  %vm2287_vm5 = vweird.f32 %v8895_v33 }
 0x32b   :  { %2182 = vmatpush.msrb.mxu2 %v10450_v58  ;;  %2213 = vmatpush.msrb.mxu3 %v10334_v31 }
 0x32c   :  { %2253 = vmatpush.msrb.mxu1 %v10346_v49  ;;  %2235 = vmatpush.msrb.mxu0 %v10379_v3  ;;  %v2284_v13 = vsub.f32 1.0, %v2283_v50 }
 0x32d   :  { %2183 = vmatpush.msrb.mxu2 %v10456_v10  ;;  %2214 = vmatpush.msrb.mxu3 %v10354_v51 }
 0x32e   :  { %2254 = vmatpush.msrb.mxu1 %v10366_v14  ;;  %2236 = vmatpush.msrb.mxu0 %v12545_v39  ;;  %v2285_v0 = vmul.f32 %v8895_v33, %v2284_v13 }
 0x32f   :  { %2184 = vmatpush.msrb.mxu2 %v10462_v36  ;;  %2215 = vmatpush.msrb.mxu3 %v10374_v57 }
 0x330   :  { %2255 = vmatpush.msrb.mxu1 %v10386_v41  ;;  %2237 = vmatpush.msrb.mxu0 %v10486_v60  ;;  %v2286_v23 = vadd.f32 %v8895_v33, %v2285_v0  ;;  %v8608_v0 = vld [vmem:[#allocation7 + $0xf8] sm:$0xf0] }
 0x331   :  { %2185 = vmatpush.msrb.mxu2 %v10468_v28  ;;  %2216 = vmatpush.msrb.mxu3 %v10394_v40 }
 0x332   :  { %v2288_v31 = vsel %vm2287_vm5, %v8895_v33, %v2286_v23  ;;  %v7362_v23 = vld [vmem:[#allocation7 + $0x90] sm:$0xf] }
 0x333   :  { %2186 = vmatpush.msrb.mxu2 %v10474_v21  ;;  %v10498_v21 = vld [vmem:[%s12229_s3 + $0x180] sm:$0xff]  ;;  %2217 = vmatpush.msrb.mxu3 %v10481_v63  ;;  %s9045_s3 = smov 8  }
 0x335   :  { %2187 = vmatpush.msrb.mxu2 %v10498_v21 }
 0x337   :  { %2262 = vmatpush.msra.mxu2 %v2102_v8  ;;  %v1752_v8 = vpop.f32.mrf.mxu1 }
 0x339   :  { %2263 = vmatpush.msra.mxu2 %v2101_v46 }
 0x33b   :  { %2264 = vmatpush.msra.mxu2 %v2100_v6  ;;  %v1712_v6 = vpop.f32.mrf.mxu3 }
 0x33d   :  { %2265 = vmatpush.msra.mxu2 %v2099_v54  ;;  %v1935_v54 = vrot.slane %v1752_v8, 6 }
 0x33f   :  { %2266 = vmatpush.msra.mxu2 %v2098_v22  ;;  %v1896_v35 = vpop.f32.mrf.mxu1 }
 0x340   :  { %v1956_v52 = vrot.slane %v1896_v35, 6  ;;  %v7830_v35 = vld [vmem:[#allocation7 + $0x438] sm:$0xf] }
 0x341   :  { %2267 = vmatpush.msra.mxu2 %v2097_v30  ;;  %v1732_v30 = vpop.f32.mrf.mxu0 }
 0x343   :  { %2268 = vmatpush.msra.mxu2 %v2096_v2  ;;  %v1856_v62 = vpop.f32.mrf.mxu3 }
 0x345   :  { %2269 = vmatpush.msra.mxu2 %v2095_v53 }
 0x347   :  { %2270 = vmatpush.msra.mxu2 %v2094_v12  ;;  %v1934_v12 = vrot.slane %v1732_v30, 7 }
 0x349   :  { %2271 = vmatpush.msra.mxu2 %v10445_v44  ;;  %v1938_v53 = vsel %vm1937_vm2, %v1712_v6, %v1934_v12  ;;  %v1929_v44 = vld [vmem:[#allocation3] sm:$0xf]  ;;  %v1876_v63 = vpop.f32.mrf.mxu0 }
 0x34a   :  { %v1955_v60 = vrot.slane %v1876_v63, 7  ;;  %v8635_v63 = vld [vmem:[#allocation7 + $0x1d0] sm:$0xf0] }
 0x34b   :  { %2272 = vmatpush.msra.mxu2 %v10450_v58 }
 0x34d   :  { %2273 = vmatpush.msra.mxu2 %v10456_v10  ;;  %v12546_v10 = vld [vmem:[#allocation81_spill] sm:$0xff] }
 0x34e   :  { %2256 = vmatpush.msrb.mxu1 %v12546_v10 }
 0x34f   :  { %2274 = vmatpush.msra.mxu2 %v10462_v36 }
 0x350   :  { %2257 = vmatpush.msrb.mxu1 %v10491_v59 }
 0x351   :  { %2275 = vmatpush.msra.mxu2 %v10468_v28 }
 0x353   :  { %2276 = vmatpush.msra.mxu2 %v12547_v11 }
 0x355   :  { %2277 = vmatpush.msra.mxu2 %v10498_v21  ;;  %v1958_v21 = vsel %vm1937_vm2, %v1856_v62, %v1955_v60  ;;  %v8716_v60 = vld [vmem:[#allocation7 + $0x458] sm:$0xf0] }
 0x379   :  { %v1772_v58 = vpop.f32.mrf.mxu2 }
 0x37a   :  { %v1936_v2 = vrot.slane %v1772_v58, 5  ;;  %v2037_v58 = vld [vmem:[#allocation12] sm:$0x3] }
 0x37c   :  { %v1940_v36 = vsel %vm1939_vm3, %v1935_v54, %v1936_v2 }
 0x37d   :  { %v1942_v15 = vsel %vm1941_vm4, %v1938_v53, %v1940_v36 }
 0x37e   :  { %v1944_v37 = vadd.f32 %v1942_v15, %v1929_v44  ;;  %v2323_v15 = vld [vmem:[#allocation9] sm:$0xff] }
 0x380   :  { %1949 = vst.msk [vmem:[#allocation3] sm:$0xf] %vm10503_vm1, %v1944_v37  ;;  %v2324_v37 = vld [vmem:[#allocation9 + $0x8] sm:$0xff] }
 0x387   :  { %v2038_v28 = vld [vmem:[#allocation3] sm:$0xf] }
 0x388   :  { %v2104_v9 = vperm.slane %v2038_v28, 0  ;;  %v2107_v61 = vperm.slane %v2038_v28, 3  ;;  %v2105_v25 = vperm.slane %v2038_v28, 1  ;;  %v2106_v34 = vperm.slane %v2038_v28, 2 }
 0x389   :  { %v10577_v28 = vshrl.u32 %v12346_v38, 7 }
 0x38a   :  { %2128 = vmatmul.f32.vlgmr.msra.gmra.mxu3 %v2104_v9  ;;  %2188 = vmatmul.f32.vlgmr.msrb.gmra.mxu2 %v2107_v61  ;;  %v7542_v9 = vld [vmem:[#allocation7 + $0x1f8] sm:$0xf]  ;;  %v8644_v61 = vld [vmem:[#allocation7 + $0x218] sm:$0xf0] }
 0x38b   :  { %2148 = vmatmul.f32.vlgmr.msra.gmra.mxu0 %v2105_v25  ;;  %2168 = vmatmul.f32.vlgmr.msra.gmra.mxu1 %v2106_v34  ;;  %12548 = vst [vmem:[#allocation80_spill] sm:$0xff] %v10577_v28  ;;  %v7506_v25 = vld [vmem:[#allocation7 + $0x1b0] sm:$0xf]  ;;  %v7543_v34 = vor.u32 %v8644_v61, %v7542_v9  ;;  %vm2313_vm9 = vcmp.eq.s32.totalorder %v10577_v28, 0  ;;  %v8851_v61 = vld [vmem:[#allocation7 + $0x890] sm:$0xf0] }
 0x38c   :  { %2346 = vmatpush.msra.mxu3 %v2323_v15  ;;  %v7507_v62 = vor.u32 %v8635_v63, %v7506_v25  ;;  %v8370_v9 = vld [vmem:[#allocation7 + $0x870] sm:$0xf]  ;;  %v8662_v63 = vld [vmem:[#allocation7 + $0x2a8] sm:$0xf0] }
 0x38d   :  { %4531 = vmatpush.bf16.msra.mxu0 %v7543_v34  ;;  %v8371_v25 = vor.u32 %v8851_v61, %v8370_v9  ;;  %v7614_v34 = vld [vmem:[#allocation7 + $0x288] sm:$0xf] }
 0x391   :  { %4532 = vmatpush.bf16.msra.mxu0 %v7507_v62  ;;  %v12550_v62 = vld [vmem:[#allocation46_spill] sm:$0xff] }
 0x399   :  { %v1916_v59 = vpop.f32.mrf.mxu2 }
 0x39a   :  { %v1957_v47 = vrot.slane %v1916_v59, 5  ;;  %v7794_v59 = vld [vmem:[#allocation7 + $0x3f0] sm:$0xf] }
 0x39c   :  { %v1959_v29 = vsel %vm1939_vm3, %v1956_v52, %v1957_v47  ;;  %v7831_v52 = vor.u32 %v8716_v60, %v7830_v35  ;;  %v8707_v47 = vld [vmem:[#allocation7 + $0x410] sm:$0xf0]  ;;  %v7974_v35 = vld [vmem:[#allocation7 + $0x558] sm:$0xf]  ;;  %v12549_v60 = vld [vmem:[#allocation36_spill] sm:$0xff] }
 0x39d   :  { %v1960_v7 = vsel %vm1941_vm4, %v1958_v21, %v1959_v29  ;;  %v7470_v21 = vld [vmem:[#allocation7 + $0x168] sm:$0xf] }
 0x39e   :  { %v1962_v32 = vadd.f32 %v1960_v7, %v1950_v5  ;;  %v8626_v5 = vld [vmem:[#allocation7 + $0x188] sm:$0xf0]  ;;  %4580 = vmatpush.bf16.msra.mxu1 %v7831_v52  ;;  %v7795_v7 = vor.u32 %v8707_v47, %v7794_v59  ;;  %v10588_v52 = vpack.c.bf16 %v12550_v62, %v12549_v60  ;;  %v7615_v59 = vor.u32 %v8662_v63, %v7614_v34  ;;  %v8752_v47 = vld [vmem:[#allocation7 + $0x578] sm:$0xf0] }
 0x39f   :  { %v7471_v50 = vor.u32 %v8626_v5, %v7470_v21  ;;  %v8334_v21 = vld [vmem:[#allocation7 + $0x828] sm:$0xf]  ;;  %v8842_v5 = vld [vmem:[#allocation7 + $0x848] sm:$0xf0] }
 0x3a0   :  { %1963 = vst.msk [vmem:[#allocation4] sm:$0xf] %vm10503_vm1, %v1962_v32  ;;  %v8118_v32 = vld [vmem:[#allocation7 + $0x678] sm:$0xf]  ;;  %vm6589_vm1 = vcmask 31744  }
 0x3a1   :  { %4533 = vmatpush.bf16.msra.mxu0 %v7471_v50 }
 0x3a2   :  { %4581 = vmatpush.bf16.msra.mxu1 %v7795_v7  ;;  %v8335_v7 = vor.u32 %v8842_v5, %v8334_v21  ;;  %v12570_v21 = vld [vmem:[#allocation61_spill] sm:$0xff] }
 0x3a7   :  { %v2192_v26 = vld [vmem:[#allocation4] sm:$0xf] }
 0x3a8   :  { %v2194_v17 = vperm.slane %v2192_v26, 0  ;;  %v2195_v19 = vperm.slane %v2192_v26, 1  ;;  %v2196_v16 = vperm.slane %v2192_v26, 2  ;;  %v2197_v20 = vperm.slane %v2192_v26, 3  ;;  %v8788_v26 = vld [vmem:[#allocation7 + $0x698] sm:$0xf0] }
 0x3a9   :  { %v8119_v1 = vor.u32 %v8788_v26, %v8118_v32  ;;  %v12551_v32 = vld [vmem:[#allocation37_spill] sm:$0xff]  ;;  %v12552_v26 = vld [vmem:[#allocation51_spill] sm:$0xff] }
 0x3aa   :  { %2218 = vmatmul.f32.vlgmr.msrb.gmra.mxu3 %v2194_v17  ;;  %2238 = vmatmul.f32.vlgmr.msrb.gmra.mxu0 %v2195_v19  ;;  %v2325_v19 = vld [vmem:[#allocation9 + $0x10] sm:$0xff] }
 0x3ab   :  { %2258 = vmatmul.f32.vlgmr.msrb.gmra.mxu1 %v2196_v16  ;;  %2278 = vmatmul.f32.vlgmr.msra.gmra.mxu2 %v2197_v20  ;;  %v7758_v16 = vld [vmem:[#allocation7 + $0x3a8] sm:$0xf]  ;;  %v8698_v20 = vld [vmem:[#allocation7 + $0x3c8] sm:$0xf0] }
 0x3ac   :  { %2366 = vmatpush.msrb.mxu3 %v2324_v37  ;;  %4629 = vmatpush.bf16.msrb.mxu2 %v8119_v1  ;;  %v7759_v13 = vor.u32 %v8698_v20, %v7758_v16  ;;  %v12554_v16 = vld [vmem:[#allocation52_spill] sm:$0xff]  ;;  %v12555_v1 = vld [vmem:[#allocation39_spill] sm:$0xff] }
 0x3ae   :  { %4582 = vmatpush.bf16.msra.mxu1 %v7759_v13  ;;  %v7938_v13 = vld [vmem:[#allocation7 + $0x510] sm:$0xf] }
 0x408   :  { %v2149_v27 = vpop.f32.mrf.mxu0  ;;  %v2169_v56 = vpop.f32.mrf.mxu1 }
 0x40d   :  { %v2129_v45 = vpop.f32.mrf.mxu3  ;;  %v2189_v42 = vpop.f32.mrf.mxu2 }
 0x40e   :  { %v2150_v18 = vadd.f32 %v2149_v27, %v2129_v45  ;;  %v7434_v45 = vld [vmem:[#allocation7 + $0x120] sm:$0xf]  ;;  %v8617_v27 = vld [vmem:[#allocation7 + $0x140] sm:$0xf0] }
 0x410   :  { %v2170_v55 = vadd.f32 %v2169_v56, %v2150_v18  ;;  %v7435_v18 = vor.u32 %v8617_v27, %v7434_v45  ;;  %v7398_v56 = vld [vmem:[#allocation7 + $0xd8] sm:$0xf]  ;;  %v7578_v45 = vld [vmem:[#allocation7 + $0x240] sm:$0xf]  ;;  %v8653_v27 = vld [vmem:[#allocation7 + $0x260] sm:$0xf0] }
 0x412   :  { %v2190_v43 = vadd.f32 %v2189_v42, %v2170_v55  ;;  %v2326_v55 = vld [vmem:[#allocation9 + $0x18] sm:$0xff]  ;;  %4534 = vmatpush.bf16.msra.mxu0 %v7435_v18  ;;  %v7399_v42 = vor.u32 %v8608_v0, %v7398_v56  ;;  %v2443_v18 = vunpack.c.l.bf16 %v10588_v52  ;;  %v12557_v56 = vld [vmem:[#allocation40_spill] sm:$0xff] }
 0x413   :  { %v12558_v0 = vld [vmem:[#allocation54_spill] sm:$0xff] }
 0x414   :  { %v2289_v14 = vmul.f32 %v2288_v31, %v2190_v43  ;;  %v8599_v43 = vld [vmem:[#allocation7 + $0xb0] sm:$0xf0] }
 0x416   :  { %v2291_v40 = vmul.f32 %v2289_v14, %v2289_v14  ;;  %4535 = vmatpush.bf16.msra.mxu0 %v7399_v42  ;;  %v7579_v42 = vor.u32 %v8653_v27, %v7578_v45  ;;  %v7866_v27 = vld [vmem:[#allocation7 + $0x480] sm:$0xf] }
 0x427   :  { %v2239_v4 = vpop.f32.mrf.mxu0 }
 0x428   :  { %v2259_v48 = vpop.f32.mrf.mxu1 }
 0x42d   :  { %v2219_v49 = vpop.f32.mrf.mxu3 }
 0x42e   :  { %v2240_v51 = vadd.f32 %v2239_v4, %v2219_v49  ;;  %v2279_v3 = vpop.f32.mrf.mxu2  ;;  %v7363_v4 = vor.u32 %v8599_v43, %v7362_v23  ;;  %v8689_v49 = vld [vmem:[#allocation7 + $0x380] sm:$0xf0]  ;;  %v8743_v23 = vld [vmem:[#allocation7 + $0x530] sm:$0xf0]  ;;  %v8298_v43 = vld [vmem:[#allocation7 + $0x7e0] sm:$0xf] }
 0x430   :  { %v2260_v57 = vadd.f32 %v2259_v48, %v2240_v51  ;;  %v8082_v51 = vld [vmem:[#allocation7 + $0x630] sm:$0xf]  ;;  %v8779_v48 = vld [vmem:[#allocation7 + $0x650] sm:$0xf0]  ;;  %4536 = vmatpush.bf16.msra.mxu0 %v7363_v4  ;;  %v2444_v4 = vunpack.c.h.bf16 %v10588_v52 }
 0x432   :  { %v2280_v41 = vadd.f32 %v2279_v3, %v2260_v57  ;;  %v8083_v57 = vor.u32 %v8779_v48, %v8082_v51  ;;  %v7326_v3 = vld [vmem:[#allocation7 + $0x48] sm:$0xf]  ;;  %v12560_v51 = vld [vmem:[#allocation55_spill] sm:$0xff] }
 0x434   :  { %v2290_v24 = vmul.f32 %v2288_v31, %v2280_v41  ;;  %v7722_v31 = vld [vmem:[#allocation7 + $0x360] sm:$0xf]  ;;  %v8590_v41 = vld [vmem:[#allocation7 + $0x68] sm:$0xf0]  ;;  %4630 = vmatpush.bf16.msrb.mxu2 %v8083_v57 }
 0x436   :  { %v2292_v46 = vsub.f32 %v2290_v24, %v2291_v40  ;;  %v7686_v40 = vld [vmem:[#allocation7 + $0x318] sm:$0xf]  ;;  %v7327_v24 = vor.u32 %v8590_v41, %v7326_v3 }
 0x438   :  { %v2293_v22 = vadd.f32 1e-05, %v2292_v46  ;;  %v8680_v46 = vld [vmem:[#allocation7 + $0x338] sm:$0xf0]  ;;  %4537 = vmatpush.bf16.msra.mxu0 %v7327_v24 }
 0x439   :  { %v12561_v24 = vld [vmem:[#allocation42_spill] sm:$0xff] }
 0x43a   :  { %8896 = vrsqrt.f32 %v2293_v22  ;;  %vm2300_vm7 = vweird.f32 %v2293_v22 }
 0x440   :  { %v8897_v30 = vpop.eup %8896 }
 0x441   :  { %v2295_v8 = vmul.f32 %v8897_v30, %v2293_v22  ;;  %vm2301_vm6 = vweird.f32 %v8897_v30  ;;  %v8046_v22 = vld [vmem:[#allocation7 + $0x5e8] sm:$0xf] }
 0x442   :  { %vm2302_vm8 = vmor %vm2300_vm7, %vm2301_vm6 }
 0x443   :  { %v2296_v12 = vmul.f32 %v8897_v30, %v2295_v8  ;;  %v7687_v8 = vor.u32 %v8680_v46, %v7686_v40  ;;  %v12562_v46 = vld [vmem:[#allocation56_spill] sm:$0xff] }
 0x445   :  { %v2297_v6 = vmul.f32 0.5, %v2296_v12 }
 0x447   :  { %v2298_v54 = vsub.f32 1.5, %v2297_v6  ;;  %v8406_v6 = vld [vmem:[#allocation7 + $0x8b8] sm:$0xf] }
 0x449   :  { %v2299_v2 = vmul.f32 %v8897_v30, %v2298_v54  ;;  %v8860_v54 = vld [vmem:[#allocation7 + $0x8d8] sm:$0xf0] }
 0x44b   :  { %v2303_v53 = vsel %vm2302_vm8, %v8897_v30, %v2299_v2  ;;  %v8770_v30 = vld [vmem:[#allocation7 + $0x608] sm:$0xf0]  ;;  %v7290_v2 = vld [vmem:[#allocation7] sm:$0xf] }
 0x44c   :  { %v2304_v44 = vmul.f32 %v2303_v53, %v2037_v58  ;;  %v8047_v12 = vor.u32 %v8770_v30, %v8046_v22  ;;  %v8581_v53 = vld [vmem:[#allocation7 + $0x20] sm:$0xf0]  ;;  %v10617_v22 = vpack.c.bf16 %v12562_v46, %v12561_v24 }
 0x44d   :  { %v12578_v24 = vld [vmem:[#allocation20_spill] sm:$0xff] }
 0x44e   :  { %v2305_v39 = vmul.f32 %v2304_v44, %v2289_v14  ;;  %v2315_v29 = vperm.slane %v2304_v44, 0  ;;  %v7723_v14 = vor.u32 %v8689_v49, %v7722_v31  ;;  %4631 = vmatpush.bf16.msrb.mxu2 %v8047_v12  ;;  %v7650_v44 = vld [vmem:[#allocation7 + $0x2d0] sm:$0xf]  ;;  %v8833_v31 = vld [vmem:[#allocation7 + $0x800] sm:$0xf0]  ;;  %v2467_v62 = vunpack.c.l.bf16 %v10617_v22 }
 0x44f   :  { %v12559_v49 = vld [vmem:[#allocation41_spill] sm:$0xff]  ;;  %v8299_v57 = vor.u32 %v8833_v31, %v8298_v43  ;;  %v12563_v12 = vld [vmem:[#allocation43_spill] sm:$0xff] }
 0x450   :  { %2307 = vrot.lane.b32.xlu0 %v2305_v39, %s9045_s3  ;;  %4583 = vmatpush.bf16.msra.mxu1 %v7723_v14  ;;  %v7291_v39 = vor.u32 %v8581_v53, %v7290_v2  ;;  %v10610_v48 = vpack.c.bf16 %v12560_v51, %v12559_v49  ;;  %v7939_v14 = vor.u32 %v8743_v23, %v7938_v13  ;;  %v12566_v2 = vld [vmem:[#allocation58_spill] sm:$0xff]  ;;  %v8725_v13 = vld [vmem:[#allocation7 + $0x4a0] sm:$0xf0]  ;;  %v12576_v43 = vld [vmem:[#allocation29_spill] sm:$0xff] }
 0x451   :  { %v12575_v23 = vld [vmem:[#allocation16_spill] sm:$0xff]  ;;  %v7867_v49 = vor.u32 %v8725_v13, %v7866_v27  ;;  %v8815_v51 = vld [vmem:[#allocation7 + $0x770] sm:$0xf0] }
 0x452   :  { %4538 = vmatpush.bf16.msra.mxu0 %v7291_v39  ;;  %v8734_v39 = vld [vmem:[#allocation7 + $0x4e8] sm:$0xf0]  ;;  %v2463_v63 = vunpack.c.l.bf16 %v10610_v48  ;;  %v10659_v31 = vpack.c.bf16 %v12576_v43, %v12575_v23 }
 0x453   :  { %v12586_v23 = vld [vmem:[#allocation21_spill] sm:$0xff] }
 0x454   :  { %4584 = vmatpush.bf16.msra.mxu1 %v7687_v8 }
 0x4c2   :  { %v2308_v36 = vpop.permute.xlu0 %2307 }
 0x4c3   :  { %v2310_v10 = vsub.f32 %v2037_v58, %v2308_v36  ;;  %v8407_v58 = vor.u32 %v8860_v54, %v8406_v6  ;;  %v8671_v36 = vld [vmem:[#allocation7 + $0x2f0] sm:$0xf0] }
 0x4c4   :  { %v7651_v15 = vor.u32 %v8671_v36, %v7650_v44  ;;  %v12564_v6 = vld [vmem:[#allocation57_spill] sm:$0xff]  ;;  %v7902_v44 = vld [vmem:[#allocation7 + $0x4c8] sm:$0xf]  ;;  %v8262_v36 = vld [vmem:[#allocation7 + $0x798] sm:$0xf] }
 0x4c5   :  { %v2318_v11 = vperm.slane %v2310_v10, 0  ;;  %v8010_v10 = vld [vmem:[#allocation7 + $0x5a0] sm:$0xf]  ;;  %v10623_v54 = vpack.c.bf16 %v12564_v6, %v12563_v12  ;;  %v7903_v61 = vor.u32 %v8734_v39, %v7902_v44  ;;  %v12579_v12 = vld [vmem:[#allocation45_spill] sm:$0xff]  ;;  %v12597_v39 = vld [vmem:[#allocation26_spill] sm:$0xff] }
 0x4c6   :  { %4585 = vmatpush.bf16.msra.mxu1 %v7651_v15  ;;  %v12567_v15 = vld [vmem:[#allocation50_spill] sm:$0xff]  ;;  %v12580_v6 = vld [vmem:[#allocation17_spill] sm:$0xff]  ;;  %v12600_v44 = vld [vmem:[#allocation75_spill] sm:$0xff] }
 0x4c7   :  { %2319 = vrot.lane.b32.xlu0 %v2318_v11, %s9046_s6  ;;  %v8761_v11 = vld [vmem:[#allocation7 + $0x5c0] sm:$0xf0] }
 0x4c8   :  { %v8011_v37 = vor.u32 %v8761_v11, %v8010_v10 }
 0x4ca   :  { %4632 = vmatpush.bf16.msrb.mxu2 %v8011_v37  ;;  %4586 = vmatpush.bf16.msra.mxu1 %v7615_v59  ;;  %v12568_v37 = vld [vmem:[#allocation62_spill] sm:$0xff] }
 0x4cb   :  { %v10633_v9 = vpack.c.bf16 %v12568_v37, %v12567_v15  ;;  %v12581_v15 = vld [vmem:[#allocation60_spill] sm:$0xff] }
 0x4cc   :  { %v12582_v37 = vld [vmem:[#allocation24_spill] sm:$0xff] }
 0x4ce   :  { %4587 = vmatpush.bf16.msra.mxu1 %v7579_v42  ;;  %v2479_v42 = vunpack.c.l.bf16 %v10633_v9 }
 0x539   :  { %v2320_v17 = vpop.permute.xlu0 %2319 }
 0x53a   :  { %v2322_v33 = vsel %vm2313_vm9, %v2315_v29, %v2320_v17  ;;  %v7975_v29 = vor.u32 %v8752_v47, %v7974_v35  ;;  %v10592_v17 = vpack.c.bf16 %v12552_v26, %v12551_v32  ;;  %v2464_v35 = vunpack.c.h.bf16 %v10610_v48  ;;  %v12569_v47 = vld [vmem:[#allocation49_spill] sm:$0xff] }
 0x53b   :  { %7284 = vmatmul.msk.f32.vlgmr.msra.gmra.mxu3 %vm2327_vm10, %v2322_v33  ;;  %v10642_v5 = vpack.c.bf16 %v12570_v21, %v12569_v47  ;;  %v2471_v26 = vunpack.c.l.bf16 %v10623_v54  ;;  %v12583_v21 = vld [vmem:[#allocation63_spill] sm:$0xff]  ;;  %v12595_v47 = vld [vmem:[#allocation30_spill] sm:$0xff] }
 0x53c   :  { %2386 = vmatpush.msra.mxu3 %v2325_v19  ;;  %v12553_v19 = vld [vmem:[#allocation38_spill] sm:$0xff]  ;;  %4633 = vmatpush.bf16.msrb.mxu2 %v7975_v29  ;;  %v2447_v3 = vunpack.c.l.bf16 %v10592_v17  ;;  %v2448_v41 = vunpack.c.h.bf16 %v10592_v17  ;;  %v12571_v29 = vld [vmem:[#allocation48_spill] sm:$0xff] }
 0x53d   :  { %v10596_v20 = vpack.c.bf16 %v12554_v16, %v12553_v19 }
 0x53f   :  { %v2451_v40 = vunpack.c.l.bf16 %v10596_v20  ;;  %v2452_v30 = vunpack.c.h.bf16 %v10596_v20 }
 0x540   :  { %4634 = vmatpush.bf16.msrb.mxu2 %v7939_v14 }
 0x543   :  { %7285 = vmatmul.msk.f32.vlgmr.msrb.gmra.mxu3 %vm2327_vm10, %v2322_v33 }
 0x544   :  { %2406 = vmatpush.msrb.mxu3 %v2326_v55  ;;  %v10605_v55 = vpack.c.bf16 %v12558_v0, %v12557_v56  ;;  %4635 = vmatpush.bf16.msrb.mxu2 %v7903_v61  ;;  %v8226_v56 = vld [vmem:[#allocation7 + $0x750] sm:$0xf]  ;;  %v10675_v61 = vpack.c.bf16 %v12582_v37, %v12581_v15  ;;  %v8154_v37 = vld [vmem:[#allocation7 + $0x6c0] sm:$0xf] }
 0x546   :  { %v2459_v11 = vunpack.c.l.bf16 %v10605_v55  ;;  %v2460_v34 = vunpack.c.h.bf16 %v10605_v55  ;;  %v2445_v38 = vunpack.c.l.bf16 %v10675_v61 }
 0x548   :  { %4636 = vmatpush.bf16.msrb.mxu2 %v7867_v49  ;;  %v12588_v49 = vld [vmem:[#allocation78_spill] sm:$0xff] }
 0x54b   :  { %7286 = vmatmul.msk.f32.vlgmr.msra.gmra.mxu3 %vm2327_vm10, %v2322_v33 }
 0x54c   :  { %4678 = vmatpush.bf16.msra.mxu3 %v8407_v58  ;;  %v12565_v58 = vld [vmem:[#allocation44_spill] sm:$0xff] }
 0x54d   :  { %v10627_v53 = vpack.c.bf16 %v12566_v2, %v12565_v58  ;;  %v10668_v58 = vpack.c.bf16 %v12580_v6, %v12579_v12  ;;  %v8227_v2 = vor.u32 %v8815_v51, %v8226_v56  ;;  %v12585_v56 = vld [vmem:[#allocation64_spill] sm:$0xff]  ;;  %v12587_v6 = vld [vmem:[#allocation65_spill] sm:$0xff] }
 0x54e   :  { %v10688_v43 = vpack.c.bf16 %v12586_v23, %v12585_v56  ;;  %v10695_v15 = vpack.c.bf16 %v12588_v49, %v12587_v6  ;;  %v12589_v56 = vld [vmem:[#allocation31_spill] sm:$0xff]  ;;  %v12590_v23 = vld [vmem:[#allocation66_spill] sm:$0xff] }
 0x54f   :  { %v2475_v16 = vunpack.c.l.bf16 %v10627_v53  ;;  %v12593_v6 = vld [vmem:[#allocation27_spill] sm:$0xff] }
 0x550   :  { %4679 = vmatpush.bf16.msra.mxu3 %v8371_v25  ;;  %v8824_v25 = vld [vmem:[#allocation7 + $0x7b8] sm:$0xf0]  ;;  %v12614_v55 = vunpack.c.l.bf16 %v10695_v15 }
 0x551   :  { %v8263_v60 = vor.u32 %v8824_v25, %v8262_v36  ;;  %v12594_v49 = vld [vmem:[#allocation67_spill] sm:$0xff]  ;;  %v12598_v36 = vld [vmem:[#allocation68_spill] sm:$0xff] }
 0x552   :  { %v10711_v13 = vpack.c.bf16 %v12594_v49, %v12593_v6  ;;  %v10724_v6 = vpack.c.bf16 %v12598_v36, %v12597_v39  ;;  %v12599_v49 = vld [vmem:[#allocation35_spill] sm:$0xff]  ;;  %v12601_v36 = vld [vmem:[#allocation18_spill] sm:$0xff]  ;;  %v12607_v39 = vld [vmem:[#allocation28_spill] sm:$0xff] }
 0x553   :  { %7287 = vmatmul.msk.f32.vlgmr.msrb.gmra.mxu3 %vm2327_vm10, %v2322_v33  ;;  %v12556_v33 = vld [vmem:[#allocation53_spill] sm:$0xff] }
 0x554   :  { %v10600_v50 = vpack.c.bf16 %v12556_v33, %v12555_v1  ;;  %4680 = vmatpush.bf16.msra.mxu3 %v8335_v7  ;;  %v12572_v7 = vld [vmem:[#allocation59_spill] sm:$0xff]  ;;  %v12574_v33 = vld [vmem:[#allocation25_spill] sm:$0xff] }
 0x555   :  { %v10646_v32 = vpack.c.bf16 %v12572_v7, %v12571_v29  ;;  %v12573_v1 = vld [vmem:[#allocation47_spill] sm:$0xff] }
 0x556   :  { %v2455_v8 = vunpack.c.l.bf16 %v10600_v50  ;;  %v2456_v10 = vunpack.c.h.bf16 %v10600_v50  ;;  %v10653_v45 = vpack.c.bf16 %v12574_v33, %v12573_v1  ;;  %v12584_v29 = vld [vmem:[#allocation79_spill] sm:$0xff]  ;;  %v8190_v1 = vld [vmem:[#allocation7 + $0x708] sm:$0xf]  ;;  %v8806_v33 = vld [vmem:[#allocation7 + $0x728] sm:$0xf0]  ;;  %v12613_v50 = vunpack.c.l.bf16 %v10688_v43 }
 0x557   :  { %v10682_v7 = vpack.c.bf16 %v12584_v29, %v12583_v21  ;;  %v8191_v51 = vor.u32 %v8806_v33, %v8190_v1  ;;  %v8797_v21 = vld [vmem:[#allocation7 + $0x6e0] sm:$0xf0]  ;;  %v12592_v33 = vld [vmem:[#allocation77_spill] sm:$0xff] }
 0x558   :  { %4681 = vmatpush.bf16.msra.mxu3 %v8299_v57  ;;  %v12577_v57 = vld [vmem:[#allocation23_spill] sm:$0xff]  ;;  %v12596_v29 = vld [vmem:[#allocation76_spill] sm:$0xff] }
 0x559   :  { %v10664_v46 = vpack.c.bf16 %v12578_v24, %v12577_v57  ;;  %v12591_v1 = vld [vmem:[#allocation19_spill] sm:$0xff]  ;;  %v2449_v12 = vunpack.c.l.bf16 %v10682_v7  ;;  %v10715_v27 = vpack.c.bf16 %v12596_v29, %v12595_v47  ;;  %v10728_v47 = vpack.c.bf16 %v12600_v44, %v12599_v49  ;;  %v12603_v44 = vld [vmem:[#allocation34_spill] sm:$0xff]  ;;  %v12604_v49 = vld [vmem:[#allocation73_spill] sm:$0xff] }
 0x55a   :  { %v10705_v57 = vpack.c.bf16 %v12592_v33, %v12591_v1  ;;  %v8155_v1 = vor.u32 %v8797_v21, %v8154_v37  ;;  %v10744_v0 = vpack.c.bf16 %v12604_v49, %v12603_v44  ;;  %v12605_v21 = vld [vmem:[#allocation32_spill] sm:$0xff] }
 0x55b   :  { %v12606_v44 = vld [vmem:[#allocation72_spill] sm:$0xff] }
 0x55c   :  { %4682 = vmatpush.bf16.msra.mxu3 %v8263_v60  ;;  %v10759_v49 = vpack.c.bf16 %v12606_v44, %v12605_v21  ;;  %v12610_v44 = vld [vmem:[#allocation70_spill] sm:$0xff] }
 0x560   :  { %4683 = vmatpush.bf16.msra.mxu3 %v8227_v2  ;;  %v10701_v2 = vpack.c.bf16 %v12590_v23, %v12589_v56  ;;  %v12602_v23 = vld [vmem:[#allocation74_spill] sm:$0xff] }
 0x561   :  { %v10740_v24 = vpack.c.bf16 %v12602_v23, %v12601_v36 }
 0x562   :  { %v12615_v48 = vunpack.c.l.bf16 %v10701_v2 }
 0x564   :  { %4684 = vmatpush.bf16.msra.mxu3 %v8191_v51 }
 0x568   :  { %4685 = vmatpush.bf16.msra.mxu3 %v8155_v1  ;;  %v12609_v1 = vld [vmem:[#allocation22_spill] sm:$0xff] }
 0x5be   :  { %v2348_v29 = vpop.f32.mrf.mxu3 }
 0x5bf   :  { %v10733_v37 = vperm.slane %v2348_v29, 0  ;;  %v10746_v19 = vperm.slane %v2348_v29, 1 }
 0x5c1   :  { %v2511_v60 = vmul.f32 %v10733_v37, %v2443_v18  ;;  %v2515_v25 = vmul.f32 %v10733_v37, %v2447_v3  ;;  %v2519_v3 = vmul.f32 %v10733_v37, %v2451_v40  ;;  %v2523_v23 = vmul.f32 %v10733_v37, %v2455_v8  ;;  %v12608_v8 = vld [vmem:[#allocation71_spill] sm:$0xff] }
 0x5c2   :  { %v2527_v21 = vmul.f32 %v10733_v37, %v2459_v11  ;;  %v10783_v51 = vpack.c.bf16 %v12608_v8, %v12607_v39  ;;  %v2535_v11 = vmul.f32 %v10733_v37, %v2467_v62  ;;  %v2547_v62 = vmul.f32 %v10733_v37, %v2479_v42 }
 0x5c3   :  { %v2579_v59 = vadd.f32 %v10746_v19, %v2511_v60  ;;  %v2583_v18 = vadd.f32 %v10746_v19, %v2515_v25  ;;  %v2531_v60 = vmul.f32 %v10733_v37, %v2463_v63  ;;  %v2591_v36 = vadd.f32 %v10746_v19, %v2523_v23 }
 0x5c4   :  { %v2595_v39 = vadd.f32 %v10746_v19, %v2527_v21  ;;  %v12611_v21 = vld [vmem:[#allocation33_spill] sm:$0xff] }
 0x5c5   :  { %v2643_v29 = vmax.f32 %v2579_v59, 0.0  ;;  %v2647_v40 = vmax.f32 %v2583_v18, 0.0  ;;  %v2587_v59 = vadd.f32 %v10746_v19, %v2519_v3  ;;  %v2539_v18 = vmul.f32 %v10733_v37, %v2471_v26 }
 0x5c6   :  { %v2368_v14 = vpop.f32.mrf.mxu3  ;;  %v2599_v8 = vadd.f32 %v10746_v19, %v2531_v60  ;;  %v12612_v60 = vld [vmem:[#allocation69_spill] sm:$0xff]  ;;  %v2655_v17 = vmax.f32 %v2591_v36, 0.0  ;;  %v2659_v56 = vmax.f32 %v2595_v39, 0.0  ;;  %v2543_v3 = vmul.f32 %v10733_v37, %v2475_v16 }
 0x5c7   :  { %v10788_v63 = vperm.slane %v2368_v14, 0  ;;  %v10790_v25 = vpack.c.bf16 %v2647_v40, %v2643_v29  ;;  %v10804_v29 = vpack.c.bf16 %v12610_v44, %v12609_v1  ;;  %v10806_v40 = vperm.slane %v2368_v14, 1 }
 0x5c8   :  { %v10819_v1 = vpack.c.bf16 %v12612_v60, %v12611_v21  ;;  %v2603_v14 = vadd.f32 %v10746_v19, %v2535_v11  ;;  %v2651_v33 = vmax.f32 %v2587_v59, 0.0 }
 0x5c9   :  { %4539 = vmatmul.bf16.vlgmr.msra.gmra.mxu0 %v10790_v25  ;;  %v2512_v26 = vmul.f32 %v10788_v63, %v2444_v4  ;;  %v2516_v23 = vmul.f32 %v10788_v63, %v2448_v41  ;;  %v2607_v4 = vadd.f32 %v10746_v19, %v2539_v18  ;;  %v2663_v41 = vmax.f32 %v2599_v8, 0.0 }
 0x5ca   :  { %v2667_v36 = vmax.f32 %v2603_v14, 0.0  ;;  %v2520_v16 = vmul.f32 %v10788_v63, %v2452_v30  ;;  %v10840_v21 = vpack.c.bf16 %v2655_v17, %v2651_v33  ;;  %v2524_v30 = vmul.f32 %v10788_v63, %v2456_v10 }
 0x5cb   :  { %v2580_v44 = vadd.f32 %v10806_v40, %v2512_v26  ;;  %v2584_v52 = vadd.f32 %v10806_v40, %v2516_v23  ;;  %v2671_v42 = vmax.f32 %v2607_v4, 0.0  ;;  %v2615_v26 = vadd.f32 %v10746_v19, %v2547_v62 }
 0x5cc   :  { %v2532_v33 = vmul.f32 %v10788_v63, %v2464_v35  ;;  %v12616_v17 = vunpack.c.l.bf16 %v10705_v57 }
 0x5cd   :  { %v2644_v60 = vmax.f32 %v2580_v44, 0.0  ;;  %v2648_v11 = vmax.f32 %v2584_v52, 0.0  ;;  %v10842_v44 = vpack.c.bf16 %v2663_v41, %v2659_v56  ;;  %v2611_v52 = vadd.f32 %v10746_v19, %v2543_v3 }
 0x5ce   :  { %v2388_v18 = vpop.f32.mrf.mxu3  ;;  %v2528_v56 = vmul.f32 %v10788_v63, %v2460_v34  ;;  %v2679_v3 = vmax.f32 %v2615_v26, 0.0 }
 0x5cf   :  { %v10833_v39 = vperm.slane %v2388_v18, 0  ;;  %v10835_v8 = vpack.c.bf16 %v2648_v11, %v2644_v60  ;;  %v10846_v59 = vperm.slane %v2388_v18, 1  ;;  %v2675_v62 = vmax.f32 %v2611_v52, 0.0 }
 0x5d0   :  { %v10881_v18 = vpack.c.bf16 %v2671_v42, %v2667_v36 }
 0x5d1   :  { %4588 = vmatmul.bf16.vlgmr.msra.gmra.mxu1 %v10835_v8  ;;  %v2513_v14 = vmul.f32 %v10833_v39, %v2445_v38  ;;  %v2517_v20 = vmul.f32 %v10833_v39, %v2449_v12  ;;  %v2588_v12 = vadd.f32 %v10806_v40, %v2520_v16  ;;  %v2521_v10 = vmul.f32 %v10833_v39, %v12613_v50 }
 0x5d2   :  { %v2525_v34 = vmul.f32 %v10833_v39, %v12614_v55  ;;  %v2529_v35 = vmul.f32 %v10833_v39, %v12615_v48  ;;  %v2533_v41 = vmul.f32 %v10833_v39, %v12616_v17  ;;  %v10879_v60 = vpack.c.bf16 %v2679_v3, %v2675_v62  ;;  %12618 = vst [vmem:[#allocation82_spill] sm:$0xff] %v10881_v18 }
 0x5d3   :  { %v2581_v38 = vadd.f32 %v10846_v59, %v2513_v14  ;;  %v2585_v4 = vadd.f32 %v10846_v59, %v2517_v20  ;;  %v12619_v16 = vunpack.c.h.bf16 %v10617_v22  ;;  %v2592_v20 = vadd.f32 %v10806_v40, %v2524_v30 }
 0x5d4   :  { %12617 = vst [vmem:[#allocation81_spill] sm:$0xff] %v10879_v60  ;;  %v2596_v50 = vadd.f32 %v10806_v40, %v2528_v56  ;;  %v2600_v55 = vadd.f32 %v10806_v40, %v2532_v33  ;;  %v12620_v48 = vunpack.c.h.bf16 %v10623_v54  ;;  %v2652_v42 = vmax.f32 %v2588_v12, 0.0 }
 0x5d5   :  { %v2645_v11 = vmax.f32 %v2581_v38, 0.0  ;;  %v2649_v26 = vmax.f32 %v2585_v4, 0.0  ;;  %v2536_v52 = vmul.f32 %v10788_v63, %v12619_v16  ;;  %v2589_v22 = vadd.f32 %v10846_v59, %v2521_v10 }
 0x5d6   :  { %v2408_v14 = vpop.f32.mrf.mxu3  ;;  %v2540_v62 = vmul.f32 %v10788_v63, %v12620_v48  ;;  %v2593_v36 = vadd.f32 %v10846_v59, %v2525_v34  ;;  %v2597_v4 = vadd.f32 %v10846_v59, %v2529_v35  ;;  %v2601_v30 = vadd.f32 %v10846_v59, %v2533_v41 }
 0x5d7   :  { %v10892_v3 = vperm.slane %v2408_v14, 0  ;;  %v10894_v38 = vpack.c.bf16 %v2649_v26, %v2645_v11  ;;  %v12621_v56 = vunpack.c.h.bf16 %v10627_v53  ;;  %v10903_v54 = vperm.slane %v2408_v14, 1 }
 0x5d8   :  { %v12622_v12 = vunpack.c.h.bf16 %v10675_v61  ;;  %v12623_v34 = vunpack.c.h.bf16 %v10682_v7  ;;  %v12624_v17 = vunpack.c.h.bf16 %v10688_v43  ;;  %v2656_v41 = vmax.f32 %v2592_v20, 0.0 }
 0x5d9   :  { %v2544_v33 = vmul.f32 %v10788_v63, %v12621_v56  ;;  %4544 = vmatmul.bf16.gmra.mxu0 %v10840_v21  ;;  %4637 = vmatmul.bf16.vlgmr.msrb.gmra.mxu2 %v10894_v38  ;;  %v2660_v11 = vmax.f32 %v2596_v50, 0.0  ;;  %v2664_v26 = vmax.f32 %v2600_v55, 0.0  ;;  %v12625_v16 = vunpack.c.h.bf16 %v10695_v15 }
 0x5da   :  { %v2514_v10 = vmul.f32 %v10892_v3, %v12622_v12  ;;  %v2518_v35 = vmul.f32 %v10892_v3, %v12623_v34  ;;  %v2522_v53 = vmul.f32 %v10892_v3, %v12624_v17  ;;  %v2653_v56 = vmax.f32 %v2589_v22, 0.0 }
 0x5db   :  { %v2526_v14 = vmul.f32 %v10892_v3, %v12625_v16  ;;  %v12626_v7 = vunpack.c.h.bf16 %v10633_v9  ;;  %v2657_v34 = vmax.f32 %v2593_v36, 0.0  ;;  %v2661_v17 = vmax.f32 %v2597_v4, 0.0 }
 0x5dc   :  { %v2582_v48 = vadd.f32 %v10903_v54, %v2514_v10  ;;  %v2586_v61 = vadd.f32 %v10903_v54, %v2518_v35  ;;  %v2590_v43 = vadd.f32 %v10903_v54, %v2522_v53  ;;  %v2665_v20 = vmax.f32 %v2601_v30, 0.0 }
 0x5dd   :  { %v2548_v12 = vmul.f32 %v10788_v63, %v12626_v7  ;;  %v2594_v15 = vadd.f32 %v10903_v54, %v2526_v14  ;;  %v2612_v16 = vadd.f32 %v10806_v40, %v2544_v33  ;;  %v10927_v23 = vpack.c.bf16 %v2656_v41, %v2652_v42 }
 0x5de   :  { %v2646_v50 = vmax.f32 %v2582_v48, 0.0  ;;  %v2650_v55 = vmax.f32 %v2586_v61, 0.0  ;;  %v10930_v10 = vadd.f32 %v10806_v40, %v2536_v52  ;;  %v10933_v9 = vadd.f32 %v10806_v40, %v2540_v62 }
 0x5df   :  { %12627 = vst [vmem:[#allocation36_spill] sm:$0xff] %v10927_v23  ;;  %v2616_v22 = vadd.f32 %v10806_v40, %v2548_v12  ;;  %v12629_v4 = vunpack.c.h.bf16 %v10701_v2  ;;  %v12630_v35 = vunpack.c.h.bf16 %v10705_v57  ;;  %v2676_v42 = vmax.f32 %v2612_v16, 0.0 }
 0x5e0   :  { %v10936_v36 = vpack.c.bf16 %v2650_v55, %v2646_v50  ;;  %v10944_v53 = vpack.c.bf16 %v2657_v34, %v2653_v56  ;;  %v10946_v52 = vpack.c.bf16 %v2664_v26, %v2660_v11  ;;  %v12631_v62 = vunpack.c.l.bf16 %v10642_v5 }
 0x5e1   :  { %v2530_v30 = vmul.f32 %v10892_v3, %v12629_v4  ;;  %v2534_v33 = vmul.f32 %v10892_v3, %v12630_v35  ;;  %v2680_v41 = vmax.f32 %v2616_v22, 0.0  ;;  %4593 = vmatmul.bf16.gmra.mxu1 %v10927_v23  ;;  %v2654_v2 = vmax.f32 %v2590_v43, 0.0 }
 0x5e2   :  { %12628 = vst [vmem:[#allocation46_spill] sm:$0xff] %v10936_v36  ;;  %v2551_v14 = vmul.f32 %v10733_v37, %v12631_v62  ;;  %4686 = vmatmul.bf16.vlgmr.msra.gmra.mxu3 %v10936_v36  ;;  %v2658_v48 = vmax.f32 %v2594_v15, 0.0  ;;  %v10953_v61 = vpack.c.bf16 %v2665_v20, %v2661_v17  ;;  %v12633_v57 = vunpack.c.l.bf16 %v10646_v32 }
 0x5e3   :  { %v10958_v7 = vpack.c.bf16 %v2680_v41, %v2676_v42  ;;  %v12635_v26 = vunpack.c.l.bf16 %v10724_v6  ;;  %v12636_v34 = vunpack.c.l.bf16 %v10728_v47  ;;  %v10968_v43 = vadd.f32 %v10903_v54, %v2530_v30 }
 0x5e4   :  { %12632 = vst [vmem:[#allocation37_spill] sm:$0xff] %v10953_v61  ;;  %v2555_v56 = vmul.f32 %v10733_v37, %v12633_v57  ;;  %v2619_v11 = vadd.f32 %v10746_v19, %v2551_v14  ;;  %v10971_v17 = vadd.f32 %v10903_v54, %v2534_v33  ;;  %v12637_v55 = vunpack.c.h.bf16 %v10642_v5 }
 0x5e5   :  { %12634 = vst [vmem:[#allocation51_spill] sm:$0xff] %v10958_v7  ;;  %v2545_v12 = vmul.f32 %v10833_v39, %v12635_v26  ;;  %v2549_v50 = vmul.f32 %v10833_v39, %v12636_v34  ;;  %v12638_v35 = vunpack.c.h.bf16 %v10646_v32  ;;  %v10982_v30 = vpack.c.bf16 %v2658_v48, %v2654_v2 }
 0x5e6   :  { %v2623_v20 = vadd.f32 %v10746_v19, %v2555_v56  ;;  %v2552_v15 = vmul.f32 %v10788_v63, %v12637_v55  ;;  %v2683_v16 = vmax.f32 %v2619_v11, 0.0  ;;  %v12640_v62 = vunpack.c.h.bf16 %v10724_v6 }
 0x5e7   :  { %v2613_v22 = vadd.f32 %v10846_v59, %v2545_v12  ;;  %v2617_v4 = vadd.f32 %v10846_v59, %v2549_v50  ;;  %v2556_v42 = vmul.f32 %v10788_v63, %v12638_v35  ;;  %12639 = vst [vmem:[#allocation38_spill] sm:$0xff] %v10982_v30  ;;  %v12641_v11 = vunpack.c.h.bf16 %v10728_v47 }
 0x5e8   :  { %v2687_v41 = vmax.f32 %v2623_v20, 0.0  ;;  %v2620_v33 = vadd.f32 %v10806_v40, %v2552_v15  ;;  %v2546_v5 = vmul.f32 %v10892_v3, %v12640_v62  ;;  %v12643_v48 = vunpack.c.l.bf16 %v10653_v45 }
 0x5e9   :  { %v2677_v14 = vmax.f32 %v2613_v22, 0.0  ;;  %v2681_v57 = vmax.f32 %v2617_v4, 0.0  ;;  %v2624_v56 = vadd.f32 %v10806_v40, %v2556_v42  ;;  %v2550_v26 = vmul.f32 %v10892_v3, %v12641_v11  ;;  %4549 = vmatmul.bf16.gmra.mxu0 %v10842_v44  ;;  %4642 = vmatmul.bf16.gmra.mxu2 %v10944_v53 }
 0x5ea   :  { %v10992_v32 = vpack.c.bf16 %v2687_v41, %v2683_v16  ;;  %v2684_v12 = vmax.f32 %v2620_v33, 0.0  ;;  %v2614_v2 = vadd.f32 %v10903_v54, %v2546_v5  ;;  %v2559_v34 = vmul.f32 %v10733_v37, %v12643_v48 }
 0x5eb   :  { %v10998_v6 = vpack.c.bf16 %v2681_v57, %v2677_v14  ;;  %v2688_v50 = vmax.f32 %v2624_v56, 0.0  ;;  %v2618_v20 = vadd.f32 %v10903_v54, %v2550_v26  ;;  %v12645_v55 = vunpack.c.l.bf16 %v10659_v31 }
 0x5ec   :  { %12642 = vst [vmem:[#allocation52_spill] sm:$0xff] %v10992_v32  ;;  %v2678_v15 = vmax.f32 %v2614_v2, 0.0  ;;  %v2627_v16 = vadd.f32 %v10746_v19, %v2559_v34  ;;  %v12646_v22 = vunpack.c.l.bf16 %v10740_v24  ;;  %v12647_v35 = vunpack.c.l.bf16 %v10744_v0 }
 0x5ed   :  { %12644 = vst [vmem:[#allocation39_spill] sm:$0xff] %v10998_v6  ;;  %v2563_v47 = vmul.f32 %v10733_v37, %v12645_v55  ;;  %v11013_v41 = vpack.c.bf16 %v2688_v50, %v2684_v12  ;;  %v2682_v33 = vmax.f32 %v2618_v20, 0.0  ;;  %v12649_v5 = vunpack.c.h.bf16 %v10653_v45 }
 0x5ee   :  { %v2553_v4 = vmul.f32 %v10833_v39, %v12646_v22  ;;  %v2557_v42 = vmul.f32 %v10833_v39, %v12647_v35  ;;  %v2691_v57 = vmax.f32 %v2627_v16, 0.0  ;;  %v12650_v26 = vunpack.c.h.bf16 %v10659_v31 }
 0x5ef   :  { %12648 = vst [vmem:[#allocation53_spill] sm:$0xff] %v11013_v41  ;;  %v2631_v62 = vadd.f32 %v10746_v19, %v2563_v47  ;;  %v2560_v14 = vmul.f32 %v10788_v63, %v12649_v5  ;;  %v11024_v48 = vpack.c.bf16 %v2682_v33, %v2678_v15  ;;  %v12652_v50 = vunpack.c.h.bf16 %v10740_v24 }
 0x5f0   :  { %v2621_v56 = vadd.f32 %v10846_v59, %v2553_v4  ;;  %v2625_v11 = vadd.f32 %v10846_v59, %v2557_v42  ;;  %v2564_v2 = vmul.f32 %v10788_v63, %v12650_v26  ;;  %v12653_v16 = vunpack.c.h.bf16 %v10744_v0 }
 0x5f1   :  { %12651 = vst [vmem:[#allocation40_spill] sm:$0xff] %v11024_v48  ;;  %v2695_v12 = vmax.f32 %v2631_v62, 0.0  ;;  %v2628_v34 = vadd.f32 %v10806_v40, %v2560_v14  ;;  %v2554_v45 = vmul.f32 %v10892_v3, %v12652_v50  ;;  %v12654_v35 = vunpack.c.l.bf16 %v10664_v46  ;;  %4598 = vmatmul.bf16.gmra.mxu1 %v10946_v52 }
 0x5f2   :  { %v2685_v20 = vmax.f32 %v2621_v56, 0.0  ;;  %v2689_v55 = vmax.f32 %v2625_v11, 0.0  ;;  %v2632_v47 = vadd.f32 %v10806_v40, %v2564_v2  ;;  %v2558_v22 = vmul.f32 %v10892_v3, %v12653_v16  ;;  %4691 = vmatmul.bf16.gmra.mxu3 %v10982_v30 }
 0x5f3   :  { %v11034_v31 = vpack.c.bf16 %v2695_v12, %v2691_v57  ;;  %v2692_v4 = vmax.f32 %v2628_v34, 0.0  ;;  %v2622_v15 = vadd.f32 %v10903_v54, %v2554_v45  ;;  %v2567_v42 = vmul.f32 %v10733_v37, %v12654_v35 }
 0x5f4   :  { %v11040_v24 = vpack.c.bf16 %v2689_v55, %v2685_v20  ;;  %v2696_v33 = vmax.f32 %v2632_v47, 0.0  ;;  %v2626_v62 = vadd.f32 %v10903_v54, %v2558_v22  ;;  %v12655_v5 = vunpack.c.l.bf16 %v10668_v58 }
 0x5f5   :  { %v2686_v14 = vmax.f32 %v2622_v15, 0.0  ;;  %v2635_v57 = vadd.f32 %v10746_v19, %v2567_v42  ;;  %v12656_v56 = vunpack.c.l.bf16 %v10759_v49  ;;  %v12657_v26 = vunpack.c.l.bf16 %v10783_v51 }
 0x5f6   :  { %v2571_v0 = vmul.f32 %v10733_v37, %v12655_v5  ;;  %v11055_v12 = vpack.c.bf16 %v2696_v33, %v2692_v4  ;;  %v2690_v34 = vmax.f32 %v2626_v62, 0.0  ;;  %v12658_v50 = vunpack.c.h.bf16 %v10664_v46 }
 0x5f7   :  { %v2561_v11 = vmul.f32 %v10833_v39, %v12656_v56  ;;  %v2565_v2 = vmul.f32 %v10833_v39, %v12657_v26  ;;  %v2699_v20 = vmax.f32 %v2635_v57, 0.0  ;;  %v12659_v16 = vunpack.c.h.bf16 %v10668_v58 }
 0x5f8   :  { %v2639_v37 = vadd.f32 %v10746_v19, %v2571_v0  ;;  %v2568_v45 = vmul.f32 %v10788_v63, %v12658_v50  ;;  %v11066_v15 = vpack.c.bf16 %v2690_v34, %v2686_v14  ;;  %v12661_v19 = vunpack.c.h.bf16 %v10759_v49 }
 0x5f9   :  { %v2629_v55 = vadd.f32 %v10846_v59, %v2561_v11  ;;  %v2633_v47 = vadd.f32 %v10846_v59, %v2565_v2  ;;  %v2572_v22 = vmul.f32 %v10788_v63, %v12659_v16  ;;  %v12662_v5 = vunpack.c.h.bf16 %v10783_v51  ;;  %4554 = vmatmul.bf16.gmra.mxu0 %v10881_v18  ;;  %4647 = vmatmul.bf16.gmra.mxu2 %v10953_v61 }
 0x5fa   :  { %12660 = vst [vmem:[#allocation54_spill] sm:$0xff] %v11066_v15  ;;  %v2703_v4 = vmax.f32 %v2639_v37, 0.0  ;;  %v2636_v35 = vadd.f32 %v10806_v40, %v2568_v45  ;;  %v2562_v46 = vmul.f32 %v10892_v3, %v12661_v19  ;;  %v12663_v57 = vunpack.c.l.bf16 %v10804_v29 }
 0x5fb   :  { %v2693_v42 = vmax.f32 %v2629_v55, 0.0  ;;  %v2697_v33 = vmax.f32 %v2633_v47, 0.0  ;;  %v2640_v62 = vadd.f32 %v10806_v40, %v2572_v22  ;;  %v2566_v0 = vmul.f32 %v10892_v3, %v12662_v5 }
 0x5fc   :  { %v11076_v58 = vpack.c.bf16 %v2703_v4, %v2699_v20  ;;  %v2700_v63 = vmax.f32 %v2636_v35, 0.0  ;;  %v2630_v14 = vadd.f32 %v10903_v54, %v2562_v46  ;;  %v2569_v56 = vmul.f32 %v10833_v39, %v12663_v57 }
 0x5fd   :  { %v11082_v49 = vpack.c.bf16 %v2697_v33, %v2693_v42  ;;  %v2704_v11 = vmax.f32 %v2640_v62, 0.0  ;;  %v2634_v26 = vadd.f32 %v10903_v54, %v2566_v0  ;;  %v12664_v40 = vunpack.c.l.bf16 %v10819_v1 }
 0x5fe   :  { %v2694_v2 = vmax.f32 %v2630_v14, 0.0  ;;  %v2637_v34 = vadd.f32 %v10846_v59, %v2569_v56  ;;  %v12665_v37 = vunpack.c.h.bf16 %v10804_v29  ;;  %v12666_v45 = vunpack.c.h.bf16 %v10819_v1 }
 0x5ff   :  { %v2573_v51 = vmul.f32 %v10833_v39, %v12664_v40  ;;  %v2668_v55 = vmax.f32 %v10930_v10, 0.0  ;;  %v11096_v47 = vpack.c.bf16 %v2704_v11, %v2700_v63  ;;  %v2698_v16 = vmax.f32 %v2634_v26, 0.0 }
 0x600   :  { %v2570_v50 = vmul.f32 %v10892_v3, %v12665_v37  ;;  %v2574_v20 = vmul.f32 %v10892_v3, %v12666_v45  ;;  %v2672_v4 = vmax.f32 %v10933_v9, 0.0  ;;  %v2701_v29 = vmax.f32 %v2637_v34, 0.0  ;;  %v8631_v45 = vld [vmem:[#allocation7 + $0x1b4] sm:$0xf] }
 0x601   :  { %v2641_v22 = vadd.f32 %v10846_v59, %v2573_v51  ;;  %v12667_v19 = vunpack.c.l.bf16 %v10711_v13  ;;  %v12668_v46 = vunpack.c.l.bf16 %v10715_v27  ;;  %v11110_v33 = vpack.c.bf16 %v2698_v16, %v2694_v2 }
 0x602   :  { %v2638_v35 = vadd.f32 %v10903_v54, %v2570_v50  ;;  %v2642_v1 = vadd.f32 %v10903_v54, %v2574_v20  ;;  %v2662_v5 = vmax.f32 %v10968_v43, 0.0  ;;  %v2666_v9 = vmax.f32 %v10971_v17, 0.0 }
 0x603   :  { %v2537_v10 = vmul.f32 %v10833_v39, %v12667_v19  ;;  %v2541_v42 = vmul.f32 %v10833_v39, %v12668_v46  ;;  %v2705_v62 = vmax.f32 %v2641_v22, 0.0  ;;  %v11118_v56 = vpack.c.bf16 %v2672_v4, %v2668_v55  ;;  %v7508_v55 = vld [vmem:[#allocation7 + $0x1d4] sm:$0xf0]  ;;  %v7832_v19 = vld [vmem:[#allocation7 + $0x45c] sm:$0xf0] }
 0x604   :  { %v2702_v0 = vmax.f32 %v2638_v35, 0.0  ;;  %v2706_v63 = vmax.f32 %v2642_v1, 0.0  ;;  %v11120_v11 = vpack.c.bf16 %v2666_v9, %v2662_v5  ;;  %v2470_v40 = vunpack.c.h.bf16 %v10711_v13  ;;  %v7544_v13 = vld [vmem:[#allocation7 + $0x21c] sm:$0xf0]  ;;  %v8712_v35 = vld [vmem:[#allocation7 + $0x43c] sm:$0xf] }
 0x605   :  { %v11114_v14 = vpack.c.bf16 %v2705_v62, %v2701_v29  ;;  %12669 = vst [vmem:[#allocation41_spill] sm:$0xff] %v11118_v56  ;;  %v2605_v26 = vadd.f32 %v10846_v59, %v2537_v10  ;;  %v2609_v39 = vadd.f32 %v10846_v59, %v2541_v42  ;;  %v2474_v43 = vunpack.c.h.bf16 %v10715_v27  ;;  %4603 = vmatmul.bf16.gmra.mxu1 %v11118_v56  ;;  %v8640_v27 = vld [vmem:[#allocation7 + $0x1fc] sm:$0xf]  ;;  %v7472_v29 = vld [vmem:[#allocation7 + $0x18c] sm:$0xf0] }
 0x606   :  { %v11116_v57 = vpack.c.bf16 %v2706_v63, %v2702_v0  ;;  %12670 = vst [vmem:[#allocation55_spill] sm:$0xff] %v11120_v11  ;;  %4696 = vmatmul.bf16.gmra.mxu3 %v11120_v11  ;;  %v2538_v2 = vmul.f32 %v10892_v3, %v2470_v40  ;;  %v7547_v20 = vor.u32 %v8640_v27, %v7544_v13  ;;  %v8613_v10 = vld [vmem:[#allocation7 + $0x124] sm:$0xf]  ;;  %v7436_v46 = vld [vmem:[#allocation7 + $0x144] sm:$0xf0] }
 0x607   :  { %v2669_v17 = vmax.f32 %v2605_v26, 0.0  ;;  %v2673_v51 = vmax.f32 %v2609_v39, 0.0  ;;  %v2542_v34 = vmul.f32 %v10892_v3, %v2474_v43  ;;  %v7511_v4 = vor.u32 %v8631_v45, %v7508_v55  ;;  %v8703_v62 = vld [vmem:[#allocation7 + $0x3f4] sm:$0xf]  ;;  %v7796_v5 = vld [vmem:[#allocation7 + $0x414] sm:$0xf0] }
 0x608   :  { %v2606_v50 = vadd.f32 %v10903_v54, %v2538_v2  ;;  %4727 = vmatpush.bf16.msrb.mxu0 %v7547_v20  ;;  %v7835_v42 = vor.u32 %v8712_v35, %v7832_v19  ;;  %v7439_v9 = vor.u32 %v8613_v10, %v7436_v46  ;;  %v7799_v0 = vor.u32 %v8703_v62, %v7796_v5  ;;  %v8604_v63 = vld [vmem:[#allocation7 + $0xdc] sm:$0xf]  ;;  %v7400_v26 = vld [vmem:[#allocation7 + $0xfc] sm:$0xf0]  ;;  %v8694_v39 = vld [vmem:[#allocation7 + $0x3ac] sm:$0xf] }
 0x609   :  { %v11130_v37 = vpack.c.bf16 %v2673_v51, %v2669_v17  ;;  %v2610_v59 = vadd.f32 %v10903_v54, %v2542_v34  ;;  %4559 = vmatmul.bf16.gmra.mxu0 %v10879_v60  ;;  %v8622_v54 = vld [vmem:[#allocation7 + $0x16c] sm:$0xf]  ;;  %v7403_v40 = vor.u32 %v8604_v63, %v7400_v26  ;;  %v7760_v43 = vld [vmem:[#allocation7 + $0x3cc] sm:$0xf0]  ;;  %v8784_v17 = vld [vmem:[#allocation7 + $0x67c] sm:$0xf] }
 0x60a   :  { %v2670_v16 = vmax.f32 %v2606_v50, 0.0  ;;  %v7475_v1 = vor.u32 %v8622_v54, %v7472_v29  ;;  %4776 = vmatpush.bf16.msrb.mxu1 %v7835_v42  ;;  %v8120_v51 = vld [vmem:[#allocation7 + $0x69c] sm:$0xf0]  ;;  %v7763_v2 = vor.u32 %v8694_v39, %v7760_v43  ;;  %v8595_v50 = vld [vmem:[#allocation7 + $0x94] sm:$0xf] }
 0x60b   :  { %12671 = vst [vmem:[#allocation42_spill] sm:$0xff] %v11130_v37  ;;  %4652 = vmatmul.bf16.gmra.mxu2 %v11130_v37  ;;  %v2674_v22 = vmax.f32 %v2610_v59, 0.0  ;;  %v8123_v34 = vor.u32 %v8784_v17, %v8120_v51  ;;  %v7364_v59 = vld [vmem:[#allocation7 + $0xb4] sm:$0xf0]  ;;  %v8685_v27 = vld [vmem:[#allocation7 + $0x364] sm:$0xf] }
 0x60c   :  { %4728 = vmatpush.bf16.msrb.mxu0 %v7511_v4  ;;  %v7367_v13 = vor.u32 %v8595_v50, %v7364_v59  ;;  %v7724_v45 = vld [vmem:[#allocation7 + $0x384] sm:$0xf0]  ;;  %v8775_v20 = vld [vmem:[#allocation7 + $0x634] sm:$0xf]  ;;  %v8084_v55 = vld [vmem:[#allocation7 + $0x654] sm:$0xf0] }
 0x60d   :  { %v11136_v3 = vpack.c.bf16 %v2674_v22, %v2670_v16  ;;  %4825 = vmatpush.bf16.msra.mxu2 %v8123_v34  ;;  %v7727_v16 = vor.u32 %v8685_v27, %v7724_v45  ;;  %v8087_v22 = vor.u32 %v8775_v20, %v8084_v55  ;;  %v8586_v4 = vld [vmem:[#allocation7 + $0x4c] sm:$0xf]  ;;  %v7328_v54 = vld [vmem:[#allocation7 + $0x6c] sm:$0xf0]  ;;  %v8676_v29 = vld [vmem:[#allocation7 + $0x31c] sm:$0xf] }
 0x60e   :  { %4777 = vmatpush.bf16.msrb.mxu1 %v7799_v0  ;;  %v7331_v35 = vor.u32 %v8586_v4, %v7328_v54  ;;  %v8766_v19 = vld [vmem:[#allocation7 + $0x5ec] sm:$0xf]  ;;  %v8048_v10 = vld [vmem:[#allocation7 + $0x60c] sm:$0xf0]  ;;  %v8856_v62 = vld [vmem:[#allocation7 + $0x8bc] sm:$0xf] }
 0x60f   :  { %12672 = vst [vmem:[#allocation56_spill] sm:$0xff] %v11136_v3  ;;  %v8051_v42 = vor.u32 %v8766_v19, %v8048_v10  ;;  %v8408_v5 = vld [vmem:[#allocation7 + $0x8dc] sm:$0xf0]  ;;  %v8577_v0 = vld [vmem:[#allocation7 + $0x4] sm:$0xf] }
 0x610   :  { %4729 = vmatpush.bf16.msrb.mxu0 %v7475_v1  ;;  %v7688_v1 = vld [vmem:[#allocation7 + $0x33c] sm:$0xf0]  ;;  %v7292_v63 = vld [vmem:[#allocation7 + $0x24] sm:$0xf0]  ;;  %v8667_v26 = vld [vmem:[#allocation7 + $0x2d4] sm:$0xf] }
 0x611   :  { %4826 = vmatpush.bf16.msra.mxu2 %v8087_v22  ;;  %v7691_v46 = vor.u32 %v8676_v29, %v7688_v1  ;;  %v7295_v39 = vor.u32 %v8577_v0, %v7292_v63  ;;  %v8757_v43 = vld [vmem:[#allocation7 + $0x5a4] sm:$0xf]  ;;  %v8012_v17 = vld [vmem:[#allocation7 + $0x5c4] sm:$0xf0]  ;;  %v8847_v34 = vld [vmem:[#allocation7 + $0x874] sm:$0xf] }
 0x612   :  { %4778 = vmatpush.bf16.msrb.mxu1 %v7763_v2  ;;  %v8015_v2 = vor.u32 %v8757_v43, %v8012_v17  ;;  %v8372_v50 = vld [vmem:[#allocation7 + $0x894] sm:$0xf0]  ;;  %v8658_v27 = vld [vmem:[#allocation7 + $0x28c] sm:$0xf]  ;;  %v8748_v45 = vld [vmem:[#allocation7 + $0x55c] sm:$0xf] }
 0x613   :  { %v8375_v59 = vor.u32 %v8847_v34, %v8372_v50  ;;  %v7976_v55 = vld [vmem:[#allocation7 + $0x57c] sm:$0xf0]  ;;  %v8336_v22 = vld [vmem:[#allocation7 + $0x84c] sm:$0xf0]  ;;  %v8649_v29 = vld [vmem:[#allocation7 + $0x244] sm:$0xf] }
 0x614   :  { %4730 = vmatpush.bf16.msrb.mxu0 %v7439_v9  ;;  %v8411_v9 = vor.u32 %v8856_v62, %v8408_v5  ;;  %v7979_v4 = vor.u32 %v8748_v45, %v7976_v55  ;;  %v8739_v1 = vld [vmem:[#allocation7 + $0x514] sm:$0xf]  ;;  %v7940_v10 = vld [vmem:[#allocation7 + $0x534] sm:$0xf0]  ;;  %v7904_v0 = vld [vmem:[#allocation7 + $0x4ec] sm:$0xf0] }
 0x615   :  { %4608 = vmatmul.bf16.gmra.mxu1 %v10958_v7  ;;  %4827 = vmatpush.bf16.msra.mxu2 %v8051_v42  ;;  %v8300_v42 = vld [vmem:[#allocation7 + $0x804] sm:$0xf0]  ;;  %v7943_v62 = vor.u32 %v8739_v1, %v7940_v10  ;;  %v8820_v63 = vld [vmem:[#allocation7 + $0x79c] sm:$0xf]  ;;  %v8721_v43 = vld [vmem:[#allocation7 + $0x484] sm:$0xf] }
 0x616   :  { %4701 = vmatmul.bf16.gmra.mxu3 %v11136_v3  ;;  %4779 = vmatpush.bf16.msrb.mxu1 %v7727_v16  ;;  %v8838_v16 = vld [vmem:[#allocation7 + $0x82c] sm:$0xf]  ;;  %v7868_v17 = vld [vmem:[#allocation7 + $0x4a4] sm:$0xf0]  ;;  %v8228_v34 = vld [vmem:[#allocation7 + $0x774] sm:$0xf0] }
 0x617   :  { %4874 = vmatpush.bf16.msrb.mxu3 %v8411_v9  ;;  %v8339_v54 = vor.u32 %v8838_v16, %v8336_v22  ;;  %v8730_v9 = vld [vmem:[#allocation7 + $0x4cc] sm:$0xf]  ;;  %v8793_v45 = vld [vmem:[#allocation7 + $0x6c4] sm:$0xf] }
 0x618   :  { %4731 = vmatpush.bf16.msrb.mxu0 %v7403_v40  ;;  %v7652_v40 = vld [vmem:[#allocation7 + $0x2f4] sm:$0xf0] }
 0x619   :  { %4564 = vmatmul.bf16.gmra.mxu0 %v10992_v32  ;;  %v7655_v51 = vor.u32 %v8667_v26, %v7652_v40  ;;  %4828 = vmatpush.bf16.msra.mxu2 %v8015_v2  ;;  %v8264_v26 = vld [vmem:[#allocation7 + $0x7bc] sm:$0xf0]  ;;  %v7871_v2 = vor.u32 %v8721_v43, %v7868_v17 }
 0x61a   :  { %4780 = vmatpush.bf16.msrb.mxu1 %v7691_v46  ;;  %v8829_v46 = vld [vmem:[#allocation7 + $0x7e4] sm:$0xf]  ;;  %v8267_v40 = vor.u32 %v8820_v63, %v8264_v26 }
 0x61b   :  { %4657 = vmatmul.bf16.gmra.mxu2 %v10998_v6  ;;  %4875 = vmatpush.bf16.msrb.mxu3 %v8375_v59  ;;  %v8303_v5 = vor.u32 %v8829_v46, %v8300_v42  ;;  %v8802_v59 = vld [vmem:[#allocation7 + $0x70c] sm:$0xf] }
 0x61c   :  { %4732 = vmatpush.bf16.msrb.mxu0 %v7367_v13  ;;  %v7616_v13 = vld [vmem:[#allocation7 + $0x2ac] sm:$0xf0] }
 0x61d   :  { %v7619_v20 = vor.u32 %v8658_v27, %v7616_v13  ;;  %4829 = vmatpush.bf16.msra.mxu2 %v7979_v4  ;;  %v8192_v27 = vld [vmem:[#allocation7 + $0x72c] sm:$0xf0] }
 0x61e   :  { %4781 = vmatpush.bf16.msrb.mxu1 %v7655_v51  ;;  %v8811_v51 = vld [vmem:[#allocation7 + $0x754] sm:$0xf]  ;;  %v8195_v13 = vor.u32 %v8802_v59, %v8192_v27 }
 0x61f   :  { %4876 = vmatpush.bf16.msrb.mxu3 %v8339_v54  ;;  %v8231_v50 = vor.u32 %v8811_v51, %v8228_v34 }
 0x620   :  { %4733 = vmatpush.bf16.msrb.mxu0 %v7331_v35  ;;  %v7580_v35 = vld [vmem:[#allocation7 + $0x264] sm:$0xf0] }
 0x621   :  { %v7583_v19 = vor.u32 %v8649_v29, %v7580_v35  ;;  %4830 = vmatpush.bf16.msra.mxu2 %v7943_v62 }
 0x622   :  { %4782 = vmatpush.bf16.msrb.mxu1 %v7619_v20  ;;  %v8156_v20 = vld [vmem:[#allocation7 + $0x6e4] sm:$0xf0] }
 0x623   :  { %4877 = vmatpush.bf16.msrb.mxu3 %v8303_v5  ;;  %v8159_v55 = vor.u32 %v8793_v45, %v8156_v20 }
 0x624   :  { %4734 = vmatpush.bf16.msrb.mxu0 %v7295_v39  ;;  %v7907_v39 = vor.u32 %v8730_v9, %v7904_v0 }
 0x625   :  { %4613 = vmatmul.bf16.gmra.mxu1 %v11013_v41 }
 0x626   :  { %4706 = vmatmul.bf16.gmra.mxu3 %v11024_v48  ;;  %4783 = vmatpush.bf16.msrb.mxu1 %v7583_v19 }
 0x627   :  { %4831 = vmatpush.bf16.msra.mxu2 %v7907_v39  ;;  %4878 = vmatpush.bf16.msrb.mxu3 %v8267_v40 }
 0x629   :  { %4569 = vmatmul.bf16.gmra.mxu0 %v11034_v31 }
 0x62b   :  { %4662 = vmatmul.bf16.gmra.mxu2 %v11040_v24  ;;  %4879 = vmatpush.bf16.msrb.mxu3 %v8231_v50 }
 0x62c   :  { %4832 = vmatpush.bf16.msra.mxu2 %v7871_v2 }
 0x62f   :  { %4880 = vmatpush.bf16.msrb.mxu3 %v8195_v13 }
 0x633   :  { %4881 = vmatpush.bf16.msrb.mxu3 %v8159_v55 }
 0x635   :  { %4618 = vmatmul.bf16.gmra.mxu1 %v11055_v12 }
 0x636   :  { %4711 = vmatmul.bf16.gmra.mxu3 %v11066_v15 }
 0x639   :  { %4574 = vmatmul.bf16.gmra.mxu0 %v11076_v58 }
 0x63b   :  { %4667 = vmatmul.bf16.gmra.mxu2 %v11082_v49 }
 0x645   :  { %4623 = vmatmul.bf16.gmra.mxu1 %v11096_v47 }
 0x646   :  { %4716 = vmatmul.bf16.gmra.mxu3 %v11110_v33  ;;  %v4540_v16 = vpop.f32.mrf.mxu0 }
 0x649   :  { %4735 = vmatmul.bf16.vlgmr.msrb.gmra.mxu0 %v10790_v25 }
 0x64b   :  { %4672 = vmatmul.bf16.gmra.mxu2 %v11114_v14 }
 0x64e   :  { %v4542_v22 = vpop.f32.mrf.mxu0  ;;  %v4589_v4 = vpop.f32.mrf.mxu1 }
 0x64f   :  { %v4590_v54 = vadd.f32 %v4589_v4, %v4540_v16 }
 0x655   :  { %4784 = vmatmul.bf16.vlgmr.msrb.gmra.mxu1 %v10835_v8 }
 0x656   :  { %4721 = vmatmul.bf16.gmra.mxu3 %v11116_v57  ;;  %v4545_v29 = vpop.f32.mrf.mxu0  ;;  %v4591_v35 = vpop.f32.mrf.mxu1 }
 0x657   :  { %v4592_v1 = vadd.f32 %v4591_v35, %v4542_v22 }
 0x659   :  { %4740 = vmatmul.bf16.gmra.mxu0 %v10840_v21 }
 0x65b   :  { %4833 = vmatmul.bf16.vlgmr.msra.gmra.mxu2 %v10894_v38 }
 0x65c   :  { %v4638_v19 = vpop.f32.mrf.mxu2 }
 0x65d   :  { %v4639_v10 = vadd.f32 %v4638_v19, %v4590_v54 }
 0x65e   :  { %v4547_v46 = vpop.f32.mrf.mxu0  ;;  %v4594_v42 = vpop.f32.mrf.mxu1 }
 0x65f   :  { %v4595_v62 = vadd.f32 %v4594_v42, %v4545_v29 }
 0x664   :  { %v4640_v5 = vpop.f32.mrf.mxu2 }
 0x665   :  { %4789 = vmatmul.bf16.gmra.mxu1 %v10927_v23  ;;  %v4687_v9 = vpop.f32.mrf.mxu3  ;;  %v4641_v0 = vadd.f32 %v4640_v5, %v4592_v1 }
 0x666   :  { %4882 = vmatmul.bf16.vlgmr.msrb.gmra.mxu3 %v10936_v36  ;;  %v11160_v63 = vadd.f32 %v4687_v9, %v4639_v10  ;;  %v4550_v26 = vpop.f32.mrf.mxu0  ;;  %v4596_v39 = vpop.f32.mrf.mxu1 }
 0x667   :  { %v4597_v40 = vadd.f32 %v4596_v39, %v4547_v46  ;;  %v7550_v39 = vld [vmem:[#allocation7 + $0x200] sm:$0xf] }
 0x669   :  { %4745 = vmatmul.bf16.gmra.mxu0 %v10842_v44 }
 0x66b   :  { %4838 = vmatmul.bf16.gmra.mxu2 %v10944_v53 }
 0x66c   :  { %v4643_v43 = vpop.f32.mrf.mxu2 }
 0x66d   :  { %v4689_v17 = vpop.f32.mrf.mxu3  ;;  %v4644_v51 = vadd.f32 %v4643_v43, %v4595_v62 }
 0x66e   :  { %v11164_v2 = vadd.f32 %v4689_v17, %v4641_v0  ;;  %v4552_v34 = vpop.f32.mrf.mxu0  ;;  %v4599_v50 = vpop.f32.mrf.mxu1 }
 0x66f   :  { %v4600_v59 = vadd.f32 %v4599_v50, %v4550_v26 }
 0x674   :  { %v4645_v27 = vpop.f32.mrf.mxu2 }
 0x675   :  { %4794 = vmatmul.bf16.gmra.mxu1 %v10946_v52  ;;  %v4692_v13 = vpop.f32.mrf.mxu3  ;;  %v4646_v45 = vadd.f32 %v4645_v27, %v4597_v40  ;;  %v8645_v40 = vld [vmem:[#allocation7 + $0x220] sm:$0xf0] }
 0x676   :  { %4887 = vmatmul.bf16.gmra.mxu3 %v10982_v30  ;;  %v11168_v20 = vadd.f32 %v4692_v13, %v4644_v51  ;;  %v4555_v55 = vpop.f32.mrf.mxu0  ;;  %v4601_v16 = vpop.f32.mrf.mxu1  ;;  %v7551_v43 = vor.u32 %v8645_v40, %v7550_v39  ;;  %v7442_v40 = vld [vmem:[#allocation7 + $0x128] sm:$0xf] }
 0x677   :  { %v4602_v22 = vadd.f32 %v4601_v16, %v4552_v34 }
 0x678   :  { %4923 = vmatpush.bf16.msra.mxu0 %v7551_v43  ;;  %v8618_v43 = vld [vmem:[#allocation7 + $0x148] sm:$0xf0] }
 0x679   :  { %4750 = vmatmul.bf16.gmra.mxu0 %v10881_v18 }
 0x67b   :  { %4843 = vmatmul.bf16.gmra.mxu2 %v10953_v61 }
 0x67c   :  { %v4648_v4 = vpop.f32.mrf.mxu2 }
 0x67d   :  { %v4694_v54 = vpop.f32.mrf.mxu3  ;;  %v4649_v29 = vadd.f32 %v4648_v4, %v4600_v59  ;;  %v8627_v4 = vld [vmem:[#allocation7 + $0x190] sm:$0xf0] }
 0x67e   :  { %v11172_v35 = vadd.f32 %v4694_v54, %v4646_v45  ;;  %v4557_v1 = vpop.f32.mrf.mxu0  ;;  %v7514_v45 = vld [vmem:[#allocation7 + $0x1b8] sm:$0xf]  ;;  %v7838_v54 = vld [vmem:[#allocation7 + $0x440] sm:$0xf] }
 0x682   :  { %v4604_v19 = vpop.f32.mrf.mxu1 }
 0x683   :  { %v4605_v10 = vadd.f32 %v4604_v19, %v4555_v55  ;;  %v8636_v55 = vld [vmem:[#allocation7 + $0x1d8] sm:$0xf0] }
 0x684   :  { %v4650_v46 = vpop.f32.mrf.mxu2  ;;  %v7515_v16 = vor.u32 %v8636_v55, %v7514_v45  ;;  %v7406_v55 = vld [vmem:[#allocation7 + $0xe0] sm:$0xf] }
 0x685   :  { %4799 = vmatmul.bf16.gmra.mxu1 %v11118_v56  ;;  %v4651_v62 = vadd.f32 %v4650_v46, %v4602_v22  ;;  %v7478_v22 = vld [vmem:[#allocation7 + $0x170] sm:$0xf] }
 0x686   :  { %4892 = vmatmul.bf16.gmra.mxu3 %v11120_v11  ;;  %v4560_v9 = vpop.f32.mrf.mxu0  ;;  %4924 = vmatpush.bf16.msra.mxu0 %v7515_v16  ;;  %v8609_v16 = vld [vmem:[#allocation7 + $0x100] sm:$0xf0] }
 0x689   :  { %v4697_v42 = vpop.f32.mrf.mxu3  ;;  %4755 = vmatmul.bf16.gmra.mxu0 %v10879_v60 }
 0x68a   :  { %v11176_v5 = vadd.f32 %v4697_v42, %v4649_v29  ;;  %v4606_v0 = vpop.f32.mrf.mxu1  ;;  %v7479_v29 = vor.u32 %v8627_v4, %v7478_v22  ;;  %v8699_v22 = vld [vmem:[#allocation7 + $0x3d0] sm:$0xf0]  ;;  %v8126_v4 = vld [vmem:[#allocation7 + $0x680] sm:$0xf] }
 0x68b   :  { %v4607_v26 = vadd.f32 %v4606_v0, %v4557_v1  ;;  %4848 = vmatmul.bf16.gmra.mxu2 %v11130_v37  ;;  %v8717_v1 = vld [vmem:[#allocation7 + $0x460] sm:$0xf0] }
 0x68c   :  { %12673 = vst [vmem:[#allocation43_spill] sm:$0xff] %v11176_v5  ;;  %v7839_v19 = vor.u32 %v8717_v1, %v7838_v54  ;;  %4925 = vmatpush.bf16.msra.mxu0 %v7479_v29  ;;  %v8789_v54 = vld [vmem:[#allocation7 + $0x6a0] sm:$0xf0] }
 0x68d   :  { %v8127_v29 = vor.u32 %v8789_v54, %v8126_v4  ;;  %v8591_v4 = vld [vmem:[#allocation7 + $0x70] sm:$0xf0]  ;;  %v7694_v54 = vld [vmem:[#allocation7 + $0x320] sm:$0xf] }
 0x68e   :  { %v4653_v17 = vpop.f32.mrf.mxu2  ;;  %v4562_v59 = vpop.f32.mrf.mxu0  ;;  %4972 = vmatpush.bf16.msra.mxu1 %v7839_v19 }
 0x68f   :  { %v4654_v34 = vadd.f32 %v4653_v17, %v4605_v10  ;;  %v7802_v17 = vld [vmem:[#allocation7 + $0x3f8] sm:$0xf]  ;;  %5021 = vmatpush.bf16.msrb.mxu2 %v8127_v29  ;;  %v8771_v29 = vld [vmem:[#allocation7 + $0x610] sm:$0xf0] }
 0x691   :  { %v4699_v51 = vpop.f32.mrf.mxu3 }
 0x692   :  { %v11180_v50 = vadd.f32 %v4699_v51, %v4651_v62  ;;  %v4609_v27 = vpop.f32.mrf.mxu1  ;;  %v7443_v51 = vor.u32 %v8618_v43, %v7442_v40 }
 0x693   :  { %v4610_v13 = vadd.f32 %v4609_v27, %v4560_v9  ;;  %v8708_v27 = vld [vmem:[#allocation7 + $0x418] sm:$0xf0] }
 0x694   :  { %v7803_v45 = vor.u32 %v8708_v27, %v7802_v17  ;;  %4926 = vmatpush.bf16.msra.mxu0 %v7443_v51  ;;  %v7370_v17 = vld [vmem:[#allocation7 + $0x98] sm:$0xf]  ;;  %v8600_v51 = vld [vmem:[#allocation7 + $0xb8] sm:$0xf0]  ;;  %v7730_v27 = vld [vmem:[#allocation7 + $0x368] sm:$0xf] }
 0x695   :  { %4804 = vmatmul.bf16.gmra.mxu1 %v10958_v7 }
 0x696   :  { %4897 = vmatmul.bf16.gmra.mxu3 %v11136_v3  ;;  %v4655_v10 = vpop.f32.mrf.mxu2  ;;  %v4565_v9 = vpop.f32.mrf.mxu0  ;;  %4973 = vmatpush.bf16.msra.mxu1 %v7803_v45  ;;  %v8090_v45 = vld [vmem:[#allocation7 + $0x638] sm:$0xf] }
 0x697   :  { %v4656_v42 = vadd.f32 %v4655_v10, %v4607_v26  ;;  %v7766_v26 = vld [vmem:[#allocation7 + $0x3b0] sm:$0xf] }
 0x699   :  { %v4702_v46 = vpop.f32.mrf.mxu3  ;;  %4760 = vmatmul.bf16.gmra.mxu0 %v10992_v32 }
 0x69a   :  { %v11184_v62 = vadd.f32 %v4702_v46, %v4654_v34  ;;  %v4611_v0 = vpop.f32.mrf.mxu1  ;;  %v7407_v34 = vor.u32 %v8609_v16, %v7406_v55  ;;  %v7371_v55 = vor.u32 %v8600_v51, %v7370_v17  ;;  %v8690_v16 = vld [vmem:[#allocation7 + $0x388] sm:$0xf0]  ;;  %v8861_v17 = vld [vmem:[#allocation7 + $0x8e0] sm:$0xf0] }
 0x69b   :  { %v4612_v39 = vadd.f32 %v4611_v0, %v4562_v59  ;;  %4853 = vmatmul.bf16.gmra.mxu2 %v10998_v6  ;;  %v7767_v59 = vor.u32 %v8699_v22, %v7766_v26  ;;  %v8780_v26 = vld [vmem:[#allocation7 + $0x658] sm:$0xf0]  ;;  %v7334_v22 = vld [vmem:[#allocation7 + $0x50] sm:$0xf] }
 0x69c   :  { %12674 = vst [vmem:[#allocation57_spill] sm:$0xff] %v11184_v62  ;;  %4927 = vmatpush.bf16.msra.mxu0 %v7407_v34  ;;  %v8681_v34 = vld [vmem:[#allocation7 + $0x340] sm:$0xf0] }
 0x69d   :  { %4974 = vmatpush.bf16.msra.mxu1 %v7767_v59  ;;  %v8054_v59 = vld [vmem:[#allocation7 + $0x5f0] sm:$0xf] }
 0x69e   :  { %v4658_v1 = vpop.f32.mrf.mxu2  ;;  %v4567_v0 = vpop.f32.mrf.mxu0 }
 0x69f   :  { %v4659_v10 = vadd.f32 %v4658_v1, %v4610_v13  ;;  %v7731_v13 = vor.u32 %v8690_v16, %v7730_v27  ;;  %v7695_v1 = vor.u32 %v8681_v34, %v7694_v54  ;;  %v8018_v54 = vld [vmem:[#allocation7 + $0x5a8] sm:$0xf]  ;;  %v8762_v34 = vld [vmem:[#allocation7 + $0x5c8] sm:$0xf0] }
 0x6a0   :  { %4928 = vmatpush.bf16.msra.mxu0 %v7371_v55 }
 0x6a1   :  { %v4704_v19 = vpop.f32.mrf.mxu3  ;;  %4975 = vmatpush.bf16.msra.mxu1 %v7731_v13  ;;  %v8582_v13 = vld [vmem:[#allocation7 + $0x28] sm:$0xf0] }
 0x6a2   :  { %v11188_v46 = vadd.f32 %v4704_v19, %v4656_v42  ;;  %v4614_v40 = vpop.f32.mrf.mxu1  ;;  %v8091_v42 = vor.u32 %v8780_v26, %v8090_v45  ;;  %v8055_v19 = vor.u32 %v8771_v29, %v8054_v59  ;;  %v7298_v26 = vld [vmem:[#allocation7 + $0x8] sm:$0xf]  ;;  %v8852_v59 = vld [vmem:[#allocation7 + $0x898] sm:$0xf0]  ;;  %v7982_v29 = vld [vmem:[#allocation7 + $0x560] sm:$0xf] }
 0x6a3   :  { %v11190_v43 = vadd.f32 %v4614_v40, %v4565_v9  ;;  %v7335_v9 = vor.u32 %v8591_v4, %v7334_v22  ;;  %v8414_v40 = vld [vmem:[#allocation7 + $0x8c0] sm:$0xf]  ;;  %v7299_v22 = vor.u32 %v8582_v13, %v7298_v26  ;;  %v8672_v4 = vld [vmem:[#allocation7 + $0x2f8] sm:$0xf0] }
 0x6a4   :  { %12675 = vst [vmem:[#allocation44_spill] sm:$0xff] %v11188_v46  ;;  %5022 = vmatpush.bf16.msrb.mxu2 %v8091_v42  ;;  %v7658_v42 = vld [vmem:[#allocation7 + $0x2d8] sm:$0xf]  ;;  %v8416_v46 = vld [vmem:[#allocation7 + $0x8e4] sm:$0xf0] }
 0x6a5   :  { %4809 = vmatmul.bf16.gmra.mxu1 %v11013_v41  ;;  %v8415_v41 = vor.u32 %v8861_v17, %v8414_v40  ;;  %4929 = vmatpush.bf16.msra.mxu0 %v7335_v9  ;;  %v7622_v9 = vld [vmem:[#allocation7 + $0x290] sm:$0xf] }
 0x6a6   :  { %4902 = vmatmul.bf16.gmra.mxu3 %v11024_v48  ;;  %v4660_v51 = vpop.f32.mrf.mxu2  ;;  %v4570_v16 = vpop.f32.mrf.mxu0  ;;  %4976 = vmatpush.bf16.msra.mxu1 %v7695_v1  ;;  %v8753_v1 = vld [vmem:[#allocation7 + $0x580] sm:$0xf0]  ;;  %v8342_v17 = vld [vmem:[#allocation7 + $0x830] sm:$0xf] }
 0x6a7   :  { %v4661_v48 = vadd.f32 %v4660_v51, %v4612_v39  ;;  %5070 = vmatpush.bf16.msra.mxu3 %v8415_v41  ;;  %v8019_v39 = vor.u32 %v8762_v34, %v8018_v54  ;;  %v7983_v40 = vor.u32 %v8753_v1, %v7982_v29  ;;  %v8843_v51 = vld [vmem:[#allocation7 + $0x850] sm:$0xf0]  ;;  %v8834_v29 = vld [vmem:[#allocation7 + $0x808] sm:$0xf0] }
 0x6a8   :  { %5023 = vmatpush.bf16.msrb.mxu2 %v8055_v19  ;;  %v8343_v13 = vor.u32 %v8843_v51, %v8342_v17  ;;  %v8735_v1 = vld [vmem:[#allocation7 + $0x4f0] sm:$0xf0]  ;;  %v8270_v17 = vld [vmem:[#allocation7 + $0x7a0] sm:$0xf] }
 0x6a9   :  { %v4707_v28 = vpop.f32.mrf.mxu3  ;;  %4765 = vmatmul.bf16.gmra.mxu0 %v11034_v31 }
 0x6aa   :  { %v11194_v27 = vadd.f32 %v4707_v28, %v4659_v10  ;;  %v4616_v45 = vpop.f32.mrf.mxu1  ;;  %v7659_v28 = vor.u32 %v8672_v4, %v7658_v42  ;;  %v8378_v10 = vld [vmem:[#allocation7 + $0x878] sm:$0xf]  ;;  %4930 = vmatpush.bf16.msra.mxu0 %v7299_v22 }
 0x6ab   :  { %v4617_v55 = vadd.f32 %v4616_v45, %v4567_v0  ;;  %4858 = vmatmul.bf16.gmra.mxu2 %v11040_v24  ;;  %v8379_v41 = vor.u32 %v8852_v59, %v8378_v10  ;;  %v8663_v0 = vld [vmem:[#allocation7 + $0x2b0] sm:$0xf0]  ;;  %v7586_v10 = vld [vmem:[#allocation7 + $0x248] sm:$0xf] }
 0x6ac   :  { %4977 = vmatpush.bf16.msra.mxu1 %v7659_v28  ;;  %5024 = vmatpush.bf16.msrb.mxu2 %v8019_v39  ;;  %v7623_v19 = vor.u32 %v8663_v0, %v7622_v9  ;;  %v8654_v28 = vld [vmem:[#allocation7 + $0x268] sm:$0xf0]  ;;  %v7946_v39 = vld [vmem:[#allocation7 + $0x518] sm:$0xf]  ;;  %v8744_v9 = vld [vmem:[#allocation7 + $0x538] sm:$0xf0] }
 0x6ad   :  { %5071 = vmatpush.bf16.msra.mxu3 %v8379_v41  ;;  %v7587_v59 = vor.u32 %v8654_v28, %v7586_v10  ;;  %v8306_v0 = vld [vmem:[#allocation7 + $0x7e8] sm:$0xf]  ;;  %v7910_v41 = vld [vmem:[#allocation7 + $0x4d0] sm:$0xf] }
 0x6ae   :  { %v4663_v45 = vpop.f32.mrf.mxu2  ;;  %v4572_v54 = vpop.f32.mrf.mxu0 }
 0x6af   :  { %v4664_v42 = vadd.f32 %v4663_v45, %v11190_v43  ;;  %v7947_v43 = vor.u32 %v8744_v9, %v7946_v39  ;;  %v7874_v39 = vld [vmem:[#allocation7 + $0x488] sm:$0xf]  ;;  %v8726_v9 = vld [vmem:[#allocation7 + $0x4a8] sm:$0xf0] }
 0x6b0   :  { %4978 = vmatpush.bf16.msra.mxu1 %v7623_v19  ;;  %5025 = vmatpush.bf16.msrb.mxu2 %v7983_v40  ;;  %v7911_v19 = vor.u32 %v8735_v1, %v7910_v41 }
 0x6b1   :  { %v4709_v26 = vpop.f32.mrf.mxu3  ;;  %5072 = vmatpush.bf16.msra.mxu3 %v8343_v13 }
 0x6b2   :  { %v11199_v4 = vadd.f32 %v4709_v26, %v4661_v48  ;;  %v4619_v22 = vpop.f32.mrf.mxu1  ;;  %v8307_v48 = vor.u32 %v8834_v29, %v8306_v0  ;;  %v8234_v0 = vld [vmem:[#allocation7 + $0x758] sm:$0xf]  ;;  %v7875_v29 = vor.u32 %v8726_v9, %v7874_v39 }
 0x6b3   :  { %v4620_v34 = vadd.f32 %v4619_v22, %v4570_v16  ;;  %v8825_v16 = vld [vmem:[#allocation7 + $0x7c0] sm:$0xf0] }
 0x6b4   :  { %4979 = vmatpush.bf16.msra.mxu1 %v7587_v59  ;;  %5026 = vmatpush.bf16.msrb.mxu2 %v7947_v43  ;;  %v8271_v45 = vor.u32 %v8825_v16, %v8270_v17  ;;  %v8198_v43 = vld [vmem:[#allocation7 + $0x710] sm:$0xf] }
 0x6b5   :  { %4814 = vmatmul.bf16.gmra.mxu1 %v11055_v12  ;;  %5073 = vmatpush.bf16.msra.mxu3 %v8307_v48  ;;  %v8807_v48 = vld [vmem:[#allocation7 + $0x730] sm:$0xf0] }
 0x6b6   :  { %4907 = vmatmul.bf16.gmra.mxu3 %v11066_v15  ;;  %v4665_v40 = vpop.f32.mrf.mxu2  ;;  %v4575_v22 = vpop.f32.mrf.mxu0  ;;  %v8816_v15 = vld [vmem:[#allocation7 + $0x778] sm:$0xf0]  ;;  %v8199_v41 = vor.u32 %v8807_v48, %v8198_v43 }
 0x6b7   :  { %v4666_v26 = vadd.f32 %v4665_v40, %v4617_v55  ;;  %v8235_v59 = vor.u32 %v8816_v15, %v8234_v0  ;;  %v8162_v40 = vld [vmem:[#allocation7 + $0x6c8] sm:$0xf] }
 0x6b8   :  { %5027 = vmatpush.bf16.msrb.mxu2 %v7911_v19 }
 0x6b9   :  { %v4712_v51 = vpop.f32.mrf.mxu3  ;;  %5074 = vmatpush.bf16.msra.mxu3 %v8271_v45  ;;  %4770 = vmatmul.bf16.gmra.mxu0 %v11076_v58 }
 0x6ba   :  { %v11203_v13 = vadd.f32 %v4712_v51, %v4664_v42  ;;  %v4621_v10 = vpop.f32.mrf.mxu1  ;;  %v8798_v51 = vld [vmem:[#allocation7 + $0x6e8] sm:$0xf0] }
 0x6bb   :  { %v4622_v28 = vadd.f32 %v4621_v10, %v4572_v54  ;;  %4863 = vmatmul.bf16.gmra.mxu2 %v11082_v49  ;;  %v8163_v45 = vor.u32 %v8798_v51, %v8162_v40 }
 0x6bc   :  { %5028 = vmatpush.bf16.msrb.mxu2 %v7875_v29 }
 0x6bd   :  { %5075 = vmatpush.bf16.msra.mxu3 %v8235_v59 }
 0x6be   :  { %v4668_v55 = vpop.f32.mrf.mxu2  ;;  %v4577_v17 = vpop.f32.mrf.mxu0 }
 0x6bf   :  { %v4669_v54 = vadd.f32 %v4668_v55, %v4620_v34 }
 0x6c1   :  { %v4714_v42 = vpop.f32.mrf.mxu3  ;;  %5076 = vmatpush.bf16.msra.mxu3 %v8199_v41 }
 0x6c2   :  { %v11207_v1 = vadd.f32 %v4714_v42, %v4666_v26  ;;  %v4624_v16 = vpop.f32.mrf.mxu1 }
 0x6c3   :  { %v4625_v19 = vadd.f32 %v4624_v16, %v4575_v22 }
 0x6c5   :  { %4819 = vmatmul.bf16.gmra.mxu1 %v11096_v47  ;;  %5077 = vmatpush.bf16.msra.mxu3 %v8163_v45 }
 0x6c6   :  { %4912 = vmatmul.bf16.gmra.mxu3 %v11110_v33  ;;  %v4670_v15 = vpop.f32.mrf.mxu2  ;;  %v4736_v26 = vpop.f32.mrf.mxu0 }
 0x6c7   :  { %v4671_v39 = vadd.f32 %v4670_v15, %v4622_v28 }
 0x6c9   :  { %v4717_v10 = vpop.f32.mrf.mxu3  ;;  %4931 = vmatmul.bf16.vlgmr.msra.gmra.mxu0 %v10790_v25 }
 0x6ca   :  { %v11211_v9 = vadd.f32 %v4717_v10, %v4669_v54  ;;  %v4626_v34 = vpop.f32.mrf.mxu1 }
 0x6cb   :  { %v4627_v0 = vadd.f32 %v4626_v34, %v4577_v17  ;;  %4868 = vmatmul.bf16.gmra.mxu2 %v11114_v14 }
 0x6ce   :  { %v4673_v22 = vpop.f32.mrf.mxu2  ;;  %v4738_v48 = vpop.f32.mrf.mxu0 }
 0x6cf   :  { %v4674_v59 = vadd.f32 %v4673_v22, %v4625_v19 }
 0x6d1   :  { %v4719_v29 = vpop.f32.mrf.mxu3 }
 0x6d2   :  { %v11215_v43 = vadd.f32 %v4719_v29, %v4671_v39  ;;  %v4785_v55 = vpop.f32.mrf.mxu1 }
 0x6d3   :  { %v4786_v42 = vadd.f32 %v4785_v55, %v4736_v26 }
 0x6d5   :  { %4980 = vmatmul.bf16.vlgmr.msra.gmra.mxu1 %v10835_v8 }
 0x6d6   :  { %4917 = vmatmul.bf16.gmra.mxu3 %v11116_v57  ;;  %v4675_v28 = vpop.f32.mrf.mxu2  ;;  %v4741_v16 = vpop.f32.mrf.mxu0 }
 0x6d7   :  { %v4676_v54 = vadd.f32 %v4675_v28, %v4627_v0 }
 0x6d9   :  { %v4722_v41 = vpop.f32.mrf.mxu3  ;;  %4936 = vmatmul.bf16.gmra.mxu0 %v10840_v21 }
 0x6da   :  { %v11219_v17 = vadd.f32 %v4722_v41, %v4674_v59  ;;  %v4787_v40 = vpop.f32.mrf.mxu1 }
 0x6db   :  { %v4788_v51 = vadd.f32 %v4787_v40, %v4738_v48  ;;  %5029 = vmatmul.bf16.vlgmr.msrb.gmra.mxu2 %v10894_v38 }
 0x6de   :  { %v4834_v45 = vpop.f32.mrf.mxu2  ;;  %v4743_v39 = vpop.f32.mrf.mxu0 }
 0x6df   :  { %v4835_v10 = vadd.f32 %v4834_v45, %v4786_v42 }
 0x6e1   :  { %v4724_v19 = vpop.f32.mrf.mxu3 }
 0x6e2   :  { %v11223_v15 = vadd.f32 %v4724_v19, %v4676_v54  ;;  %v4790_v34 = vpop.f32.mrf.mxu1 }
 0x6e3   :  { %v4791_v26 = vadd.f32 %v4790_v34, %v4741_v16 }
 0x6e5   :  { %4985 = vmatmul.bf16.gmra.mxu1 %v10927_v23 }
 0x6e6   :  { %5078 = vmatmul.bf16.vlgmr.msra.gmra.mxu3 %v10936_v36  ;;  %v4836_v0 = vpop.f32.mrf.mxu2  ;;  %v4746_v48 = vpop.f32.mrf.mxu0 }
 0x6e7   :  { %v4837_v29 = vadd.f32 %v4836_v0, %v4788_v51 }
 0x6e9   :  { %v4883_v22 = vpop.f32.mrf.mxu3  ;;  %4941 = vmatmul.bf16.gmra.mxu0 %v10842_v44 }
 0x6ea   :  { %v11227_v59 = vadd.f32 %v4883_v22, %v4835_v10  ;;  %v4792_v55 = vpop.f32.mrf.mxu1 }
 0x6eb   :  { %v4793_v41 = vadd.f32 %v4792_v55, %v4743_v39  ;;  %5034 = vmatmul.bf16.gmra.mxu2 %v10944_v53 }
 0x6ee   :  { %v4839_v42 = vpop.f32.mrf.mxu2  ;;  %v4748_v19 = vpop.f32.mrf.mxu0 }
 0x6ef   :  { %v4840_v16 = vadd.f32 %v4839_v42, %v4791_v26 }
 0x6f1   :  { %v4885_v54 = vpop.f32.mrf.mxu3 }
 0x6f2   :  { %v11233_v40 = vadd.f32 %v4885_v54, %v4837_v29  ;;  %v4795_v45 = vpop.f32.mrf.mxu1 }
 0x6f3   :  { %v4796_v10 = vadd.f32 %v4795_v45, %v4746_v48 }
 0x6f5   :  { %4990 = vmatmul.bf16.gmra.mxu1 %v10946_v52 }
 0x6f6   :  { %5083 = vmatmul.bf16.gmra.mxu3 %v10982_v30  ;;  %v4841_v39 = vpop.f32.mrf.mxu2  ;;  %v4751_v55 = vpop.f32.mrf.mxu0 }
 0x6f7   :  { %v4842_v0 = vadd.f32 %v4841_v39, %v4793_v41 }
 0x6f9   :  { %v4888_v34 = vpop.f32.mrf.mxu3  ;;  %4946 = vmatmul.bf16.gmra.mxu0 %v10881_v18 }
 0x6fa   :  { %v11239_v22 = vadd.f32 %v4888_v34, %v4840_v16  ;;  %v4797_v28 = vpop.f32.mrf.mxu1 }
 0x6fb   :  { %v4798_v29 = vadd.f32 %v4797_v28, %v4748_v19  ;;  %5039 = vmatmul.bf16.gmra.mxu2 %v10953_v61 }
 0x6fe   :  { %v4844_v48 = vpop.f32.mrf.mxu2  ;;  %v4753_v51 = vpop.f32.mrf.mxu0 }
 0x6ff   :  { %v4845_v54 = vadd.f32 %v4844_v48, %v4796_v10 }
 0x701   :  { %v4890_v42 = vpop.f32.mrf.mxu3 }
 0x702   :  { %v11245_v45 = vadd.f32 %v4890_v42, %v4842_v0  ;;  %v4800_v30 = vpop.f32.mrf.mxu1 }
 0x703   :  { %v4801_v16 = vadd.f32 %v4800_v30, %v4751_v55  ;;  %v8641_v30 = vld [vmem:[#allocation7 + $0x204] sm:$0xf]  ;;  %v7552_v55 = vld [vmem:[#allocation7 + $0x224] sm:$0xf0] }
 0x704   :  { %v7555_v48 = vor.u32 %v8641_v30, %v7552_v55  ;;  %v8623_v30 = vld [vmem:[#allocation7 + $0x174] sm:$0xf]  ;;  %v7480_v55 = vld [vmem:[#allocation7 + $0x194] sm:$0xf0] }
 0x705   :  { %4995 = vmatmul.bf16.gmra.mxu1 %v11118_v56 }
 0x706   :  { %5088 = vmatmul.bf16.gmra.mxu3 %v11120_v11  ;;  %v4846_v28 = vpop.f32.mrf.mxu2  ;;  %v4756_v26 = vpop.f32.mrf.mxu0  ;;  %5119 = vmatpush.bf16.msrb.mxu0 %v7555_v48 }
 0x707   :  { %v4847_v39 = vadd.f32 %v4846_v28, %v4798_v29 }
 0x709   :  { %v4893_v19 = vpop.f32.mrf.mxu3  ;;  %4951 = vmatmul.bf16.gmra.mxu0 %v10879_v60 }
 0x70a   :  { %v11251_v34 = vadd.f32 %v4893_v19, %v4845_v54  ;;  %v4802_v61 = vpop.f32.mrf.mxu1  ;;  %v8614_v19 = vld [vmem:[#allocation7 + $0x12c] sm:$0xf] }
 0x70b   :  { %v4803_v0 = vadd.f32 %v4802_v61, %v4753_v51  ;;  %5044 = vmatmul.bf16.gmra.mxu2 %v11130_v37  ;;  %v8632_v61 = vld [vmem:[#allocation7 + $0x1bc] sm:$0xf]  ;;  %v7516_v51 = vld [vmem:[#allocation7 + $0x1dc] sm:$0xf0]  ;;  %v8713_v37 = vld [vmem:[#allocation7 + $0x444] sm:$0xf] }
 0x70c   :  { %12676 = vst [vmem:[#allocation58_spill] sm:$0xff] %v11251_v34  ;;  %v7519_v60 = vor.u32 %v8632_v61, %v7516_v51 }
 0x70e   :  { %v4849_v42 = vpop.f32.mrf.mxu2  ;;  %v4758_v54 = vpop.f32.mrf.mxu0  ;;  %5120 = vmatpush.bf16.msrb.mxu0 %v7519_v60 }
 0x70f   :  { %v4850_v11 = vadd.f32 %v4849_v42, %v4801_v16  ;;  %v7483_v16 = vor.u32 %v8623_v30, %v7480_v55  ;;  %v7804_v30 = vld [vmem:[#allocation7 + $0x41c] sm:$0xf0]  ;;  %v8695_v55 = vld [vmem:[#allocation7 + $0x3b4] sm:$0xf] }
 0x711   :  { %v4895_v41 = vpop.f32.mrf.mxu3 }
 0x712   :  { %v11257_v29 = vadd.f32 %v4895_v41, %v4847_v39  ;;  %v4805_v28 = vpop.f32.mrf.mxu1  ;;  %v7840_v41 = vld [vmem:[#allocation7 + $0x464] sm:$0xf0]  ;;  %5121 = vmatpush.bf16.msrb.mxu0 %v7483_v16  ;;  %v7768_v16 = vld [vmem:[#allocation7 + $0x3d4] sm:$0xf0] }
 0x713   :  { %v4806_v10 = vadd.f32 %v4805_v28, %v4756_v26  ;;  %v7843_v39 = vor.u32 %v8713_v37, %v7840_v41 }
 0x715   :  { %5000 = vmatmul.bf16.gmra.mxu1 %v10958_v7  ;;  %v8704_v7 = vld [vmem:[#allocation7 + $0x3fc] sm:$0xf] }
 0x716   :  { %5093 = vmatmul.bf16.gmra.mxu3 %v11136_v3  ;;  %v4851_v48 = vpop.f32.mrf.mxu2  ;;  %5168 = vmatpush.bf16.msrb.mxu1 %v7843_v39  ;;  %v4761_v26 = vpop.f32.mrf.mxu0  ;;  %v7444_v3 = vld [vmem:[#allocation7 + $0x14c] sm:$0xf0]  ;;  %v7807_v37 = vor.u32 %v8704_v7, %v7804_v30  ;;  %v8785_v39 = vld [vmem:[#allocation7 + $0x684] sm:$0xf]  ;;  %v8596_v30 = vld [vmem:[#allocation7 + $0x9c] sm:$0xf] }
 0x717   :  { %v4852_v34 = vadd.f32 %v4851_v48, %v4803_v0  ;;  %v7447_v60 = vor.u32 %v8614_v19, %v7444_v3  ;;  %v7408_v0 = vld [vmem:[#allocation7 + $0x104] sm:$0xf0]  ;;  %v8056_v7 = vld [vmem:[#allocation7 + $0x614] sm:$0xf0] }
 0x718   :  { %v8128_v48 = vld [vmem:[#allocation7 + $0x6a4] sm:$0xf0] }
 0x719   :  { %v4898_v42 = vpop.f32.mrf.mxu3  ;;  %4956 = vmatmul.bf16.gmra.mxu0 %v10992_v32 }
 0x71a   :  { %v11263_v5 = vadd.f32 %v4898_v42, %v4850_v11  ;;  %v4807_v28 = vpop.f32.mrf.mxu1  ;;  %v8605_v11 = vld [vmem:[#allocation7 + $0xe4] sm:$0xf]  ;;  %5122 = vmatpush.bf16.msrb.mxu0 %v7447_v60  ;;  %5169 = vmatpush.bf16.msrb.mxu1 %v7807_v37  ;;  %v8131_v42 = vor.u32 %v8785_v39, %v8128_v48  ;;  %v8686_v37 = vld [vmem:[#allocation7 + $0x36c] sm:$0xf]  ;;  %v8092_v39 = vld [vmem:[#allocation7 + $0x65c] sm:$0xf0] }
 0x71b   :  { %v4808_v51 = vadd.f32 %v4807_v28, %v4758_v54  ;;  %5049 = vmatmul.bf16.gmra.mxu2 %v10998_v6  ;;  %v7411_v41 = vor.u32 %v8605_v11, %v7408_v0  ;;  %v7771_v54 = vor.u32 %v8695_v55, %v7768_v16  ;;  %v7372_v11 = vld [vmem:[#allocation7 + $0xbc] sm:$0xf0]  ;;  %v7732_v55 = vld [vmem:[#allocation7 + $0x38c] sm:$0xf0]  ;;  %v8776_v16 = vld [vmem:[#allocation7 + $0x63c] sm:$0xf] }
 0x71c   :  { %12677 = vst [vmem:[#allocation50_spill] sm:$0xff] %v11263_v5  ;;  %5217 = vmatpush.bf16.msra.mxu2 %v8131_v42  ;;  %v7375_v0 = vor.u32 %v8596_v30, %v7372_v11  ;;  %v8095_v48 = vor.u32 %v8776_v16, %v8092_v39  ;;  %v7336_v42 = vld [vmem:[#allocation7 + $0x74] sm:$0xf0] }
 0x71e   :  { %v4854_v28 = vpop.f32.mrf.mxu2  ;;  %v4763_v32 = vpop.f32.mrf.mxu0  ;;  %5123 = vmatpush.bf16.msrb.mxu0 %v7411_v41  ;;  %5170 = vmatpush.bf16.msrb.mxu1 %v7771_v54  ;;  %v8587_v41 = vld [vmem:[#allocation7 + $0x54] sm:$0xf] }
 0x71f   :  { %v4855_v3 = vadd.f32 %v4854_v28, %v4806_v10  ;;  %v12679_v10 = vld [vmem:[#allocation53_spill] sm:$0xff]  ;;  %v8677_v28 = vld [vmem:[#allocation7 + $0x324] sm:$0xf] }
 0x720   :  { %v8767_v54 = vld [vmem:[#allocation7 + $0x5f4] sm:$0xf]  ;;  %5218 = vmatpush.bf16.msra.mxu2 %v8095_v48  ;;  %v8668_v48 = vld [vmem:[#allocation7 + $0x2dc] sm:$0xf] }
 0x721   :  { %v4900_v61 = vpop.f32.mrf.mxu3  ;;  %v8059_v11 = vor.u32 %v8767_v54, %v8056_v7  ;;  %v8578_v7 = vld [vmem:[#allocation7 + $0xc] sm:$0xf] }
 0x722   :  { %v11269_v19 = vadd.f32 %v4900_v61, %v4852_v34  ;;  %v4810_v6 = vpop.f32.mrf.mxu1  ;;  %v12680_v34 = vld [vmem:[#allocation40_spill] sm:$0xff]  ;;  %v7735_v61 = vor.u32 %v8686_v37, %v7732_v55  ;;  %5124 = vmatpush.bf16.msrb.mxu0 %v7375_v0 }
 0x723   :  { %v11273_v60 = vadd.f32 %v4810_v6, %v4761_v26  ;;  %v7339_v6 = vor.u32 %v8587_v41, %v7336_v42  ;;  %v7696_v26 = vld [vmem:[#allocation7 + $0x344] sm:$0xf0]  ;;  %v7660_v42 = vld [vmem:[#allocation7 + $0x2fc] sm:$0xf0] }
 0x724   :  { %12678 = vst [vmem:[#allocation62_spill] sm:$0xff] %v11269_v19  ;;  %5171 = vmatpush.bf16.msrb.mxu1 %v7735_v61  ;;  %v7699_v30 = vor.u32 %v8677_v28, %v7696_v26  ;;  %v8857_v19 = vld [vmem:[#allocation7 + $0x8c4] sm:$0xf]  ;;  %5219 = vmatpush.bf16.msra.mxu2 %v8059_v11  ;;  %v7300_v61 = vld [vmem:[#allocation7 + $0x2c] sm:$0xf0] }
 0x725   :  { %5005 = vmatmul.bf16.gmra.mxu1 %v12679_v10  ;;  %v8419_v62 = vor.u32 %v8857_v19, %v8416_v46  ;;  %v7303_v41 = vor.u32 %v8578_v7, %v7300_v61  ;;  %v8758_v46 = vld [vmem:[#allocation7 + $0x5ac] sm:$0xf]  ;;  %v8380_v19 = vld [vmem:[#allocation7 + $0x89c] sm:$0xf0]  ;;  %v7624_v28 = vld [vmem:[#allocation7 + $0x2b4] sm:$0xf0] }
 0x726   :  { %5098 = vmatmul.bf16.gmra.mxu3 %v12680_v34  ;;  %v4856_v5 = vpop.f32.mrf.mxu2  ;;  %v4766_v55 = vpop.f32.mrf.mxu0  ;;  %5125 = vmatpush.bf16.msrb.mxu0 %v7339_v6  ;;  %v8749_v6 = vld [vmem:[#allocation7 + $0x564] sm:$0xf]  ;;  %v7984_v26 = vld [vmem:[#allocation7 + $0x584] sm:$0xf0]  ;;  %v8839_v11 = vld [vmem:[#allocation7 + $0x834] sm:$0xf] }
 0x727   :  { %v4857_v34 = vadd.f32 %v4856_v5, %v4808_v51  ;;  %5266 = vmatpush.bf16.msrb.mxu3 %v8419_v62  ;;  %v8020_v5 = vld [vmem:[#allocation7 + $0x5cc] sm:$0xf0]  ;;  %v7663_v51 = vor.u32 %v8668_v48, %v7660_v42 }
 0x728   :  { %5172 = vmatpush.bf16.msrb.mxu1 %v7699_v30  ;;  %v8023_v62 = vor.u32 %v8758_v46, %v8020_v5  ;;  %v7987_v30 = vor.u32 %v8749_v6, %v7984_v26  ;;  %v8308_v6 = vld [vmem:[#allocation7 + $0x80c] sm:$0xf0] }
 0x729   :  { %v4903_v10 = vpop.f32.mrf.mxu3  ;;  %4961 = vmatmul.bf16.gmra.mxu0 %v11034_v31 }
 0x72a   :  { %v11277_v37 = vadd.f32 %v4903_v10, %v4855_v3  ;;  %v4812_v16 = vpop.f32.mrf.mxu1  ;;  %v8848_v3 = vld [vmem:[#allocation7 + $0x87c] sm:$0xf]  ;;  %v8659_v10 = vld [vmem:[#allocation7 + $0x294] sm:$0xf]  ;;  %5126 = vmatpush.bf16.msrb.mxu0 %v7303_v41  ;;  %5220 = vmatpush.bf16.msra.mxu2 %v8023_v62  ;;  %v7588_v62 = vld [vmem:[#allocation7 + $0x26c] sm:$0xf0] }
 0x72b   :  { %v11281_v39 = vadd.f32 %v4812_v16, %v4763_v32  ;;  %5054 = vmatmul.bf16.gmra.mxu2 %v11040_v24  ;;  %v8383_v32 = vor.u32 %v8848_v3, %v8380_v19  ;;  %v7627_v54 = vor.u32 %v8659_v10, %v7624_v28  ;;  %v8344_v16 = vld [vmem:[#allocation7 + $0x854] sm:$0xf0]  ;;  %v8740_v19 = vld [vmem:[#allocation7 + $0x51c] sm:$0xf]  ;;  %v7948_v28 = vld [vmem:[#allocation7 + $0x53c] sm:$0xf0] }
 0x72c   :  { %5173 = vmatpush.bf16.msrb.mxu1 %v7663_v51  ;;  %v8347_v0 = vor.u32 %v8839_v11, %v8344_v16  ;;  %v8650_v51 = vld [vmem:[#allocation7 + $0x24c] sm:$0xf]  ;;  %v8731_v11 = vld [vmem:[#allocation7 + $0x4d4] sm:$0xf]  ;;  %v7912_v16 = vld [vmem:[#allocation7 + $0x4f4] sm:$0xf0] }
 0x72d   :  { %5267 = vmatpush.bf16.msrb.mxu3 %v8383_v32  ;;  %v7591_v10 = vor.u32 %v8650_v51, %v7588_v62  ;;  %v8830_v32 = vld [vmem:[#allocation7 + $0x7ec] sm:$0xf] }
 0x72e   :  { %v4859_v7 = vpop.f32.mrf.mxu2  ;;  %v4768_v46 = vpop.f32.mrf.mxu0  ;;  %5221 = vmatpush.bf16.msra.mxu2 %v7987_v30  ;;  %v8311_v26 = vor.u32 %v8830_v32, %v8308_v6  ;;  %v8722_v32 = vld [vmem:[#allocation7 + $0x48c] sm:$0xf]  ;;  %v7876_v6 = vld [vmem:[#allocation7 + $0x4ac] sm:$0xf0] }
 0x72f   :  { %v4860_v48 = vadd.f32 %v4859_v7, %v11273_v60  ;;  %v12681_v60 = vld [vmem:[#allocation54_spill] sm:$0xff]  ;;  %v8821_v7 = vld [vmem:[#allocation7 + $0x7a4] sm:$0xf] }
 0x730   :  { %5174 = vmatpush.bf16.msrb.mxu1 %v7627_v54  ;;  %v7915_v54 = vor.u32 %v8731_v11, %v7912_v16  ;;  %v8236_v11 = vld [vmem:[#allocation7 + $0x77c] sm:$0xf0] }
 0x731   :  { %v4905_v61 = vpop.f32.mrf.mxu3  ;;  %5268 = vmatpush.bf16.msrb.mxu3 %v8347_v0 }
 0x732   :  { %v11286_v42 = vadd.f32 %v4905_v61, %v4857_v34  ;;  %v4815_v41 = vpop.f32.mrf.mxu1  ;;  %v7951_v34 = vor.u32 %v8740_v19, %v7948_v28 }
 0x733   :  { %v4816_v3 = vadd.f32 %v4815_v41, %v4766_v55  ;;  %v8272_v55 = vld [vmem:[#allocation7 + $0x7c4] sm:$0xf0] }
 0x734   :  { %5175 = vmatpush.bf16.msrb.mxu1 %v7591_v10  ;;  %5222 = vmatpush.bf16.msra.mxu2 %v7951_v34  ;;  %v8275_v0 = vor.u32 %v8821_v7, %v8272_v55  ;;  %v8812_v10 = vld [vmem:[#allocation7 + $0x75c] sm:$0xf]  ;;  %v7879_v34 = vor.u32 %v8722_v32, %v7876_v6  ;;  %v8794_v32 = vld [vmem:[#allocation7 + $0x6cc] sm:$0xf]  ;;  %v8164_v6 = vld [vmem:[#allocation7 + $0x6ec] sm:$0xf0] }
 0x735   :  { %5010 = vmatmul.bf16.gmra.mxu1 %v11055_v12  ;;  %5269 = vmatpush.bf16.msrb.mxu3 %v8311_v26  ;;  %v8200_v26 = vld [vmem:[#allocation7 + $0x734] sm:$0xf0] }
 0x736   :  { %5103 = vmatmul.bf16.gmra.mxu3 %v12681_v60  ;;  %v4861_v30 = vpop.f32.mrf.mxu2  ;;  %v4771_v62 = vpop.f32.mrf.mxu0 }
 0x737   :  { %v4862_v41 = vadd.f32 %v4861_v30, %v11281_v39  ;;  %v8239_v39 = vor.u32 %v8812_v10, %v8236_v11  ;;  %v8167_v10 = vor.u32 %v8794_v32, %v8164_v6 }
 0x738   :  { %5223 = vmatpush.bf16.msra.mxu2 %v7915_v54 }
 0x739   :  { %v4908_v61 = vpop.f32.mrf.mxu3  ;;  %5270 = vmatpush.bf16.msrb.mxu3 %v8275_v0  ;;  %4966 = vmatmul.bf16.gmra.mxu0 %v11076_v58 }
 0x73a   :  { %v11293_v51 = vadd.f32 %v4908_v61, %v4860_v48  ;;  %v4817_v5 = vpop.f32.mrf.mxu1  ;;  %v8803_v48 = vld [vmem:[#allocation7 + $0x714] sm:$0xf] }
 0x73b   :  { %v4818_v28 = vadd.f32 %v4817_v5, %v4768_v46  ;;  %5059 = vmatmul.bf16.gmra.mxu2 %v11082_v49  ;;  %v8203_v55 = vor.u32 %v8803_v48, %v8200_v26 }
 0x73c   :  { %5224 = vmatpush.bf16.msra.mxu2 %v7879_v34 }
 0x73d   :  { %5271 = vmatpush.bf16.msrb.mxu3 %v8239_v39 }
 0x73e   :  { %v4864_v16 = vpop.f32.mrf.mxu2  ;;  %v4773_v54 = vpop.f32.mrf.mxu0 }
 0x73f   :  { %v4865_v46 = vadd.f32 %v4864_v16, %v4816_v3 }
 0x741   :  { %v4910_v7 = vpop.f32.mrf.mxu3  ;;  %5272 = vmatpush.bf16.msrb.mxu3 %v8203_v55 }
 0x742   :  { %v11299_v5 = vadd.f32 %v4910_v7, %v4862_v41  ;;  %v4820_v30 = vpop.f32.mrf.mxu1 }
 0x743   :  { %v4821_v0 = vadd.f32 %v4820_v30, %v4771_v62 }
 0x745   :  { %5015 = vmatmul.bf16.gmra.mxu1 %v11096_v47  ;;  %5273 = vmatpush.bf16.msrb.mxu3 %v8167_v10 }
 0x746   :  { %5108 = vmatmul.bf16.gmra.mxu3 %v11110_v33  ;;  %v4866_v34 = vpop.f32.mrf.mxu2  ;;  %v4932_v48 = vpop.f32.mrf.mxu0 }
 0x747   :  { %v4867_v3 = vadd.f32 %v4866_v34, %v4818_v28 }
 0x749   :  { %v4913_v11 = vpop.f32.mrf.mxu3  ;;  %5127 = vmatmul.bf16.vlgmr.msrb.gmra.mxu0 %v10790_v25 }
 0x74a   :  { %v11305_v41 = vadd.f32 %v4913_v11, %v4865_v46  ;;  %v4822_v39 = vpop.f32.mrf.mxu1 }
 0x74b   :  { %v4823_v62 = vadd.f32 %v4822_v39, %v4773_v54  ;;  %5064 = vmatmul.bf16.gmra.mxu2 %v11114_v14 }
 0x74e   :  { %v4869_v16 = vpop.f32.mrf.mxu2  ;;  %v4934_v32 = vpop.f32.mrf.mxu0 }
 0x74f   :  { %v4870_v55 = vadd.f32 %v4869_v16, %v4821_v0 }
 0x751   :  { %v4915_v7 = vpop.f32.mrf.mxu3 }
 0x752   :  { %v11311_v30 = vadd.f32 %v4915_v7, %v4867_v3  ;;  %v4981_v6 = vpop.f32.mrf.mxu1 }
 0x753   :  { %v4982_v46 = vadd.f32 %v4981_v6, %v4932_v48 }
 0x755   :  { %5176 = vmatmul.bf16.vlgmr.msrb.gmra.mxu1 %v10835_v8 }
 0x756   :  { %5113 = vmatmul.bf16.gmra.mxu3 %v11116_v57  ;;  %v4871_v54 = vpop.f32.mrf.mxu2  ;;  %v4937_v39 = vpop.f32.mrf.mxu0 }
 0x757   :  { %v4872_v34 = vadd.f32 %v4871_v54, %v4823_v62 }
 0x759   :  { %v4918_v10 = vpop.f32.mrf.mxu3  ;;  %5132 = vmatmul.bf16.gmra.mxu0 %v10840_v21 }
 0x75a   :  { %v11317_v11 = vadd.f32 %v4918_v10, %v4870_v55  ;;  %v4983_v26 = vpop.f32.mrf.mxu1 }
 0x75b   :  { %v4984_v3 = vadd.f32 %v4983_v26, %v4934_v32  ;;  %5225 = vmatmul.bf16.vlgmr.msra.gmra.mxu2 %v10894_v38 }
 0x75e   :  { %v5030_v16 = vpop.f32.mrf.mxu2  ;;  %v4939_v28 = vpop.f32.mrf.mxu0 }
 0x75f   :  { %v5031_v6 = vadd.f32 %v5030_v16, %v4982_v46 }
 0x761   :  { %v4920_v48 = vpop.f32.mrf.mxu3 }
 0x762   :  { %v11323_v7 = vadd.f32 %v4920_v48, %v4872_v34  ;;  %v4986_v61 = vpop.f32.mrf.mxu1  ;;  %v12682_v34 = vmax.f32 %v11160_v63, %v11227_v59  ;;  %v12684_v63 = vld [vmem:[#allocation38_spill] sm:$0xff] }
 0x763   :  { %v4987_v55 = vadd.f32 %v4986_v61, %v4937_v39 }
 0x765   :  { %5181 = vmatmul.bf16.gmra.mxu1 %v10927_v23 }
 0x766   :  { %5274 = vmatmul.bf16.vlgmr.msrb.gmra.mxu3 %v10936_v36  ;;  %v5032_v26 = vpop.f32.mrf.mxu2  ;;  %v4942_v0 = vpop.f32.mrf.mxu0 }
 0x767   :  { %v5033_v54 = vadd.f32 %v5032_v26, %v4984_v3  ;;  %v12683_v3 = vmax.f32 %v11164_v2, %v11233_v40  ;;  %v12686_v2 = vld [vmem:[#allocation37_spill] sm:$0xff] }
 0x769   :  { %v5079_v32 = vpop.f32.mrf.mxu3  ;;  %5137 = vmatmul.bf16.gmra.mxu0 %v10842_v44 }
 0x76a   :  { %v5080_v10 = vadd.f32 %v5079_v32, %v5031_v6  ;;  %v4988_v19 = vpop.f32.mrf.mxu1 }
 0x76b   :  { %v4989_v48 = vadd.f32 %v4988_v19, %v4939_v28  ;;  %5230 = vmatmul.bf16.gmra.mxu2 %v10944_v53 }
 0x76c   :  { %v11332_v46 = vmax.f32 %v12682_v34, %v5080_v10 }
 0x76e   :  { %v5035_v61 = vpop.f32.mrf.mxu2  ;;  %v4944_v36 = vpop.f32.mrf.mxu0 }
 0x76f   :  { %v5036_v16 = vadd.f32 %v5035_v61, %v4987_v55  ;;  %v12685_v55 = vmax.f32 %v11168_v20, %v11239_v22  ;;  %v12689_v20 = vld [vmem:[#allocation55_spill] sm:$0xff] }
 0x771   :  { %v5081_v39 = vpop.f32.mrf.mxu3 }
 0x772   :  { %v5082_v62 = vadd.f32 %v5081_v39, %v5033_v54  ;;  %v4991_v23 = vpop.f32.mrf.mxu1 }
 0x773   :  { %v4992_v26 = vadd.f32 %v4991_v23, %v4942_v0 }
 0x774   :  { %v11339_v6 = vmax.f32 %v12683_v3, %v5082_v62 }
 0x775   :  { %5186 = vmatmul.bf16.gmra.mxu1 %v10946_v52 }
 0x776   :  { %5279 = vmatmul.bf16.gmra.mxu3 %v12684_v63  ;;  %v5037_v59 = vpop.f32.mrf.mxu2  ;;  %v4947_v10 = vpop.f32.mrf.mxu0 }
 0x777   :  { %v5038_v28 = vadd.f32 %v5037_v59, %v4989_v48  ;;  %v12687_v48 = vmax.f32 %v11172_v35, %v11245_v45  ;;  %v12694_v35 = vld [vmem:[#allocation81_spill] sm:$0xff]  ;;  %v12695_v45 = vld [vmem:[#allocation42_spill] sm:$0xff] }
 0x779   :  { %v5084_v19 = vpop.f32.mrf.mxu3  ;;  %5142 = vmatmul.bf16.gmra.mxu0 %v10881_v18 }
 0x77a   :  { %v5085_v32 = vadd.f32 %v5084_v19, %v5036_v16  ;;  %v4993_v34 = vpop.f32.mrf.mxu1 }
 0x77b   :  { %v4994_v61 = vadd.f32 %v4993_v34, %v4944_v36  ;;  %5235 = vmatmul.bf16.gmra.mxu2 %v12686_v2 }
 0x77c   :  { %v11346_v54 = vmax.f32 %v12685_v55, %v5085_v32 }
 0x77e   :  { %v5040_v23 = vpop.f32.mrf.mxu2  ;;  %v4949_v39 = vpop.f32.mrf.mxu0 }
 0x77f   :  { %v5041_v0 = vadd.f32 %v5040_v23, %v4992_v26  ;;  %v12690_v26 = vld [vmem:[#allocation43_spill] sm:$0xff] }
 0x781   :  { %v5086_v40 = vpop.f32.mrf.mxu3 }
 0x782   :  { %v5087_v62 = vadd.f32 %v5086_v40, %v5038_v28  ;;  %v4996_v3 = vpop.f32.mrf.mxu1  ;;  %v12691_v28 = vld [vmem:[#allocation58_spill] sm:$0xff] }
 0x783   :  { %v4997_v59 = vadd.f32 %v4996_v3, %v4947_v10  ;;  %v12692_v23 = vmax.f32 %v12690_v26, %v12691_v28  ;;  %v7558_v10 = vld [vmem:[#allocation7 + $0x208] sm:$0xf]  ;;  %v12696_v26 = vmax.f32 %v11180_v50, %v11257_v29  ;;  %v8637_v28 = vld [vmem:[#allocation7 + $0x1e0] sm:$0xf0] }
 0x784   :  { %v11353_v16 = vmax.f32 %v12687_v48, %v5087_v62  ;;  %v8646_v62 = vld [vmem:[#allocation7 + $0x228] sm:$0xf0] }
 0x785   :  { %5191 = vmatmul.bf16.gmra.mxu1 %v11118_v56  ;;  %v7559_v3 = vor.u32 %v8646_v62, %v7558_v10  ;;  %v7486_v10 = vld [vmem:[#allocation7 + $0x178] sm:$0xf]  ;;  %v8628_v62 = vld [vmem:[#allocation7 + $0x198] sm:$0xf0] }
 0x786   :  { %12688 = vst [vmem:[#allocation49_spill] sm:$0xff] %v11353_v16  ;;  %5284 = vmatmul.bf16.gmra.mxu3 %v12689_v20  ;;  %v5042_v36 = vpop.f32.mrf.mxu2  ;;  %v4952_v34 = vpop.f32.mrf.mxu0 }
 0x787   :  { %v5043_v19 = vadd.f32 %v5042_v36, %v4994_v61  ;;  %5315 = vmatpush.bf16.msra.mxu0 %v7559_v3  ;;  %v7846_v3 = vld [vmem:[#allocation7 + $0x448] sm:$0xf] }
 0x789   :  { %v5089_v22 = vpop.f32.mrf.mxu3  ;;  %5147 = vmatmul.bf16.gmra.mxu0 %v12694_v35  ;;  %v12699_v35 = vld [vmem:[#allocation56_spill] sm:$0xff] }
 0x78a   :  { %v5090_v32 = vadd.f32 %v5089_v22, %v5041_v0  ;;  %v4998_v55 = vpop.f32.mrf.mxu1 }
 0x78b   :  { %v4999_v2 = vadd.f32 %v4998_v55, %v4949_v39  ;;  %5240 = vmatmul.bf16.gmra.mxu2 %v12695_v45  ;;  %v7522_v55 = vld [vmem:[#allocation7 + $0x1c0] sm:$0xf] }
 0x78c   :  { %v11360_v40 = vmax.f32 %v12692_v23, %v5090_v32  ;;  %v7523_v23 = vor.u32 %v8637_v28, %v7522_v55  ;;  %v12698_v45 = vld [vmem:[#allocation51_spill] sm:$0xff] }
 0x78e   :  { %12693 = vst [vmem:[#allocation61_spill] sm:$0xff] %v11360_v40  ;;  %v5045_v48 = vpop.f32.mrf.mxu2  ;;  %v4954_v36 = vpop.f32.mrf.mxu0  ;;  %5316 = vmatpush.bf16.msra.mxu0 %v7523_v23  ;;  %v7810_v23 = vld [vmem:[#allocation7 + $0x400] sm:$0xf] }
 0x78f   :  { %v5046_v61 = vadd.f32 %v5045_v48, %v4997_v59  ;;  %v7487_v59 = vor.u32 %v8628_v62, %v7486_v10  ;;  %v8709_v62 = vld [vmem:[#allocation7 + $0x420] sm:$0xf0] }
 0x791   :  { %v5091_v20 = vpop.f32.mrf.mxu3 }
 0x792   :  { %v5092_v0 = vadd.f32 %v5091_v20, %v5043_v19  ;;  %v5001_v22 = vpop.f32.mrf.mxu1  ;;  %v8718_v20 = vld [vmem:[#allocation7 + $0x468] sm:$0xf0]  ;;  %5317 = vmatpush.bf16.msra.mxu0 %v7487_v59 }
 0x793   :  { %v5002_v39 = vadd.f32 %v5001_v22, %v4952_v34  ;;  %v7847_v19 = vor.u32 %v8718_v20, %v7846_v3  ;;  %v12700_v22 = vld [vmem:[#allocation57_spill] sm:$0xff]  ;;  %v12704_v3 = vld [vmem:[#allocation52_spill] sm:$0xff]  ;;  %v12705_v20 = vld [vmem:[#allocation39_spill] sm:$0xff] }
 0x794   :  { %v11367_v32 = vmax.f32 %v12696_v26, %v5092_v0  ;;  %v12701_v26 = vld [vmem:[#allocation50_spill] sm:$0xff] }
 0x795   :  { %5196 = vmatmul.bf16.gmra.mxu1 %v12698_v45  ;;  %v12702_v55 = vmax.f32 %v12700_v22, %v12701_v26  ;;  %v7450_v45 = vld [vmem:[#allocation7 + $0x130] sm:$0xf]  ;;  %v8134_v22 = vld [vmem:[#allocation7 + $0x688] sm:$0xf] }
 0x796   :  { %12697 = vst [vmem:[#allocation48_spill] sm:$0xff] %v11367_v32  ;;  %5289 = vmatmul.bf16.gmra.mxu3 %v12699_v35  ;;  %v5047_v48 = vpop.f32.mrf.mxu2  ;;  %5364 = vmatpush.bf16.msra.mxu1 %v7847_v19  ;;  %v4957_v34 = vpop.f32.mrf.mxu0  ;;  %v8619_v32 = vld [vmem:[#allocation7 + $0x150] sm:$0xf0]  ;;  %v7774_v19 = vld [vmem:[#allocation7 + $0x3b8] sm:$0xf] }
 0x797   :  { %v5048_v50 = vadd.f32 %v5047_v48, %v4999_v2  ;;  %v7451_v10 = vor.u32 %v8619_v32, %v7450_v45  ;;  %v7811_v2 = vor.u32 %v8709_v62, %v7810_v23  ;;  %v8700_v48 = vld [vmem:[#allocation7 + $0x3d8] sm:$0xf0]  ;;  %v12706_v23 = vld [vmem:[#allocation44_spill] sm:$0xff] }
 0x798   :  { %v12707_v62 = vld [vmem:[#allocation62_spill] sm:$0xff] }
 0x799   :  { %v5094_v40 = vpop.f32.mrf.mxu3  ;;  %5152 = vmatmul.bf16.gmra.mxu0 %v12704_v3 }
 0x79a   :  { %v5095_v29 = vadd.f32 %v5094_v40, %v5046_v61  ;;  %v5003_v0 = vpop.f32.mrf.mxu1  ;;  %v7414_v40 = vld [vmem:[#allocation7 + $0xe8] sm:$0xf]  ;;  %v8610_v61 = vld [vmem:[#allocation7 + $0x108] sm:$0xf0]  ;;  %5318 = vmatpush.bf16.msra.mxu0 %v7451_v10  ;;  %5365 = vmatpush.bf16.msra.mxu1 %v7811_v2  ;;  %v8601_v2 = vld [vmem:[#allocation7 + $0xc0] sm:$0xf0] }
 0x79b   :  { %v5004_v35 = vadd.f32 %v5003_v0, %v4954_v36  ;;  %5245 = vmatmul.bf16.gmra.mxu2 %v12705_v20  ;;  %v7415_v59 = vor.u32 %v8610_v61, %v7414_v40  ;;  %v7775_v36 = vor.u32 %v8700_v48, %v7774_v19  ;;  %v12708_v20 = vmax.f32 %v12706_v23, %v12707_v62  ;;  %v7378_v40 = vld [vmem:[#allocation7 + $0xa0] sm:$0xf]  ;;  %v7738_v61 = vld [vmem:[#allocation7 + $0x370] sm:$0xf]  ;;  %v8691_v48 = vld [vmem:[#allocation7 + $0x390] sm:$0xf0] }
 0x79c   :  { %v11374_v28 = vmax.f32 %v12702_v55, %v5095_v29  ;;  %v8790_v29 = vld [vmem:[#allocation7 + $0x6a8] sm:$0xf0]  ;;  %v7379_v19 = vor.u32 %v8601_v2, %v7378_v40  ;;  %v8422_v40 = vld [vmem:[#allocation7 + $0x8c8] sm:$0xf] }
 0x79d   :  { %v8135_v0 = vor.u32 %v8790_v29, %v8134_v22  ;;  %v8098_v22 = vld [vmem:[#allocation7 + $0x640] sm:$0xf]  ;;  %v12711_v29 = vld [vmem:[#allocation40_spill] sm:$0xff] }
 0x79e   :  { %12703 = vst [vmem:[#allocation59_spill] sm:$0xff] %v11374_v28  ;;  %v5050_v26 = vpop.f32.mrf.mxu2  ;;  %v4959_v3 = vpop.f32.mrf.mxu0  ;;  %5319 = vmatpush.bf16.msra.mxu0 %v7415_v59  ;;  %5366 = vmatpush.bf16.msra.mxu1 %v7775_v36  ;;  %v7739_v59 = vor.u32 %v8691_v48, %v7738_v61  ;;  %v8062_v36 = vld [vmem:[#allocation7 + $0x5f8] sm:$0xf]  ;;  %v8862_v2 = vld [vmem:[#allocation7 + $0x8e8] sm:$0xf0] }
 0x79f   :  { %v5051_v45 = vadd.f32 %v5050_v26, %v5002_v39  ;;  %5413 = vmatpush.bf16.msrb.mxu2 %v8135_v0  ;;  %v8781_v39 = vld [vmem:[#allocation7 + $0x660] sm:$0xf0]  ;;  %v7342_v26 = vld [vmem:[#allocation7 + $0x58] sm:$0xf]  ;;  %v8423_v16 = vor.u32 %v8862_v2, %v8422_v40  ;;  %v8844_v2 = vld [vmem:[#allocation7 + $0x858] sm:$0xf0] }
 0x7a0   :  { %v8099_v0 = vor.u32 %v8781_v39, %v8098_v22  ;;  %v8350_v40 = vld [vmem:[#allocation7 + $0x838] sm:$0xf] }
 0x7a1   :  { %v5096_v55 = vpop.f32.mrf.mxu3  ;;  %5462 = vmatpush.bf16.msra.mxu3 %v8423_v16 }
 0x7a2   :  { %v5097_v32 = vadd.f32 %v5096_v55, %v5048_v50  ;;  %v5006_v28 = vpop.f32.mrf.mxu1  ;;  %v12710_v50 = vld [vmem:[#allocation53_spill] sm:$0xff]  ;;  %v8592_v55 = vld [vmem:[#allocation7 + $0x78] sm:$0xf0]  ;;  %5320 = vmatpush.bf16.msra.mxu0 %v7379_v19  ;;  %5367 = vmatpush.bf16.msra.mxu1 %v7739_v59  ;;  %v12712_v19 = vmax.f32 %v11194_v27, %v11277_v37  ;;  %v8386_v27 = vld [vmem:[#allocation7 + $0x880] sm:$0xf] }
 0x7a3   :  { %v11383_v10 = vadd.f32 %v5006_v28, %v4957_v34  ;;  %v7343_v34 = vor.u32 %v8592_v55, %v7342_v26  ;;  %v8682_v28 = vld [vmem:[#allocation7 + $0x348] sm:$0xf0]  ;;  %5414 = vmatpush.bf16.msrb.mxu2 %v8099_v0  ;;  %v7306_v0 = vld [vmem:[#allocation7 + $0x10] sm:$0xf]  ;;  %v8583_v26 = vld [vmem:[#allocation7 + $0x30] sm:$0xf0] }
 0x7a4   :  { %v11381_v56 = vmax.f32 %v12708_v20, %v5097_v32  ;;  %v7702_v20 = vld [vmem:[#allocation7 + $0x328] sm:$0xf]  ;;  %v8772_v32 = vld [vmem:[#allocation7 + $0x618] sm:$0xf0]  ;;  %v7666_v55 = vld [vmem:[#allocation7 + $0x2e0] sm:$0xf] }
 0x7a5   :  { %5201 = vmatmul.bf16.gmra.mxu1 %v12710_v50  ;;  %v7703_v23 = vor.u32 %v8682_v28, %v7702_v20  ;;  %v8063_v62 = vor.u32 %v8772_v32, %v8062_v36  ;;  %v7307_v20 = vor.u32 %v8583_v26, %v7306_v0  ;;  %v8673_v28 = vld [vmem:[#allocation7 + $0x300] sm:$0xf0]  ;;  %v7990_v36 = vld [vmem:[#allocation7 + $0x568] sm:$0xf]  ;;  %v8754_v32 = vld [vmem:[#allocation7 + $0x588] sm:$0xf0] }
 0x7a6   :  { %12709 = vst [vmem:[#allocation47_spill] sm:$0xff] %v11381_v56  ;;  %5294 = vmatmul.bf16.gmra.mxu3 %v12711_v29  ;;  %v5052_v56 = vpop.f32.mrf.mxu2  ;;  %v4962_v48 = vpop.f32.mrf.mxu0  ;;  %5321 = vmatpush.bf16.msra.mxu0 %v7343_v34  ;;  %v7667_v16 = vor.u32 %v8673_v28, %v7666_v55  ;;  %v8853_v37 = vld [vmem:[#allocation7 + $0x8a0] sm:$0xf0]  ;;  %v8664_v34 = vld [vmem:[#allocation7 + $0x2b8] sm:$0xf0] }
 0x7a7   :  { %v5053_v29 = vadd.f32 %v5052_v56, %v5004_v35  ;;  %5368 = vmatpush.bf16.msra.mxu1 %v7703_v23  ;;  %5415 = vmatpush.bf16.msrb.mxu2 %v8063_v62  ;;  %v8026_v56 = vld [vmem:[#allocation7 + $0x5b0] sm:$0xf]  ;;  %v8763_v35 = vld [vmem:[#allocation7 + $0x5d0] sm:$0xf0]  ;;  %v7991_v62 = vor.u32 %v8754_v32, %v7990_v36  ;;  %v8278_v36 = vld [vmem:[#allocation7 + $0x7a8] sm:$0xf] }
 0x7a9   :  { %v5099_v50 = vpop.f32.mrf.mxu3  ;;  %5157 = vmatmul.bf16.gmra.mxu0 %v11034_v31 }
 0x7aa   :  { %v5100_v61 = vadd.f32 %v5099_v50, %v5051_v45  ;;  %v5008_v22 = vpop.f32.mrf.mxu1  ;;  %v8027_v45 = vor.u32 %v8763_v35, %v8026_v56  ;;  %v7630_v50 = vld [vmem:[#allocation7 + $0x298] sm:$0xf]  ;;  %5322 = vmatpush.bf16.msra.mxu0 %v7307_v20  ;;  %v12713_v20 = vmax.f32 %v11199_v4, %v11286_v42  ;;  %v8736_v42 = vld [vmem:[#allocation7 + $0x4f8] sm:$0xf0] }
 0x7ab   :  { %v11392_v59 = vadd.f32 %v5008_v22, %v4959_v3  ;;  %5250 = vmatmul.bf16.gmra.mxu2 %v11040_v24  ;;  %v8387_v3 = vor.u32 %v8853_v37, %v8386_v27  ;;  %5369 = vmatpush.bf16.msra.mxu1 %v7667_v16  ;;  %v7631_v23 = vor.u32 %v8664_v34, %v7630_v50  ;;  %v7594_v16 = vld [vmem:[#allocation7 + $0x250] sm:$0xf]  ;;  %v7954_v27 = vld [vmem:[#allocation7 + $0x520] sm:$0xf]  ;;  %v8745_v50 = vld [vmem:[#allocation7 + $0x540] sm:$0xf0] }
 0x7ac   :  { %v11390_v39 = vmax.f32 %v12712_v19, %v5100_v61  ;;  %5416 = vmatpush.bf16.msrb.mxu2 %v8027_v45  ;;  %v8351_v19 = vor.u32 %v8844_v2, %v8350_v40  ;;  %v8655_v45 = vld [vmem:[#allocation7 + $0x270] sm:$0xf0]  ;;  %v7918_v4 = vld [vmem:[#allocation7 + $0x4d8] sm:$0xf] }
 0x7ad   :  { %5463 = vmatpush.bf16.msra.mxu3 %v8387_v3  ;;  %v7595_v37 = vor.u32 %v8655_v45, %v7594_v16  ;;  %v8314_v3 = vld [vmem:[#allocation7 + $0x7f0] sm:$0xf]  ;;  %v8835_v34 = vld [vmem:[#allocation7 + $0x810] sm:$0xf0]  ;;  %v7919_v32 = vor.u32 %v8736_v42, %v7918_v4  ;;  %v12715_v42 = vmax.f32 %v11207_v1, %v11299_v5  ;;  %v12716_v1 = vmax.f32 %v11211_v9, %v11305_v41 }
 0x7ae   :  { %v5055_v61 = vpop.f32.mrf.mxu2  ;;  %v4964_v55 = vpop.f32.mrf.mxu0  ;;  %v7882_v16 = vld [vmem:[#allocation7 + $0x490] sm:$0xf]  ;;  %v8727_v45 = vld [vmem:[#allocation7 + $0x4b0] sm:$0xf0] }
 0x7af   :  { %v5056_v0 = vadd.f32 %v5055_v61, %v11383_v10  ;;  %5370 = vmatpush.bf16.msra.mxu1 %v7631_v23  ;;  %v7955_v10 = vor.u32 %v8745_v50, %v7954_v27  ;;  %v8242_v27 = vld [vmem:[#allocation7 + $0x760] sm:$0xf]  ;;  %v8817_v50 = vld [vmem:[#allocation7 + $0x780] sm:$0xf0] }
 0x7b0   :  { %5417 = vmatpush.bf16.msrb.mxu2 %v7991_v62 }
 0x7b1   :  { %v5101_v22 = vpop.f32.mrf.mxu3  ;;  %5464 = vmatpush.bf16.msra.mxu3 %v8351_v19 }
 0x7b2   :  { %v5102_v26 = vadd.f32 %v5101_v22, %v5053_v29  ;;  %v5011_v28 = vpop.f32.mrf.mxu1  ;;  %v8315_v29 = vor.u32 %v8835_v34, %v8314_v3  ;;  %v8808_v3 = vld [vmem:[#allocation7 + $0x738] sm:$0xf0] }
 0x7b3   :  { %v5012_v35 = vadd.f32 %v5011_v28, %v4962_v48  ;;  %v8826_v48 = vld [vmem:[#allocation7 + $0x7c8] sm:$0xf0]  ;;  %5371 = vmatpush.bf16.msra.mxu1 %v7595_v37  ;;  %v7883_v37 = vor.u32 %v8727_v45, %v7882_v16 }
 0x7b4   :  { %v11400_v56 = vmax.f32 %v12713_v20, %v5102_v26  ;;  %5418 = vmatpush.bf16.msrb.mxu2 %v7955_v10  ;;  %v8279_v40 = vor.u32 %v8826_v48, %v8278_v36  ;;  %v12714_v26 = vmax.f32 %v11203_v13, %v11293_v51 }
 0x7b5   :  { %5206 = vmatmul.bf16.gmra.mxu1 %v11055_v12  ;;  %5465 = vmatpush.bf16.msra.mxu3 %v8315_v29 }
 0x7b6   :  { %5299 = vmatmul.bf16.gmra.mxu3 %v12681_v60  ;;  %v5057_v23 = vpop.f32.mrf.mxu2  ;;  %v4967_v22 = vpop.f32.mrf.mxu0 }
 0x7b7   :  { %v5058_v2 = vadd.f32 %v5057_v23, %v11392_v59  ;;  %v8243_v59 = vor.u32 %v8817_v50, %v8242_v27  ;;  %v8799_v23 = vld [vmem:[#allocation7 + $0x6f0] sm:$0xf0] }
 0x7b8   :  { %5419 = vmatpush.bf16.msrb.mxu2 %v7919_v32  ;;  %v8170_v32 = vld [vmem:[#allocation7 + $0x6d0] sm:$0xf] }
 0x7b9   :  { %v5104_v62 = vpop.f32.mrf.mxu3  ;;  %5466 = vmatpush.bf16.msra.mxu3 %v8279_v40  ;;  %5162 = vmatmul.bf16.gmra.mxu0 %v11076_v58 }
 0x7ba   :  { %v5105_v61 = vadd.f32 %v5104_v62, %v5056_v0  ;;  %v5013_v19 = vpop.f32.mrf.mxu1  ;;  %v8206_v0 = vld [vmem:[#allocation7 + $0x718] sm:$0xf]  ;;  %v8171_v62 = vor.u32 %v8799_v23, %v8170_v32 }
 0x7bb   :  { %v5014_v20 = vadd.f32 %v5013_v19, %v4964_v55  ;;  %5255 = vmatmul.bf16.gmra.mxu2 %v11082_v49  ;;  %v8207_v51 = vor.u32 %v8808_v3, %v8206_v0 }
 0x7bc   :  { %v11408_v28 = vmax.f32 %v12714_v26, %v5105_v61  ;;  %5420 = vmatpush.bf16.msrb.mxu2 %v7883_v37 }
 0x7bd   :  { %5467 = vmatpush.bf16.msra.mxu3 %v8243_v59 }
 0x7be   :  { %v5060_v34 = vpop.f32.mrf.mxu2  ;;  %v4969_v29 = vpop.f32.mrf.mxu0 }
 0x7bf   :  { %v5061_v55 = vadd.f32 %v5060_v34, %v5012_v35 }
 0x7c1   :  { %v5106_v13 = vpop.f32.mrf.mxu3  ;;  %5468 = vmatpush.bf16.msra.mxu3 %v8207_v51 }
 0x7c2   :  { %v5107_v10 = vadd.f32 %v5106_v13, %v5058_v2  ;;  %v5016_v4 = vpop.f32.mrf.mxu1 }
 0x7c3   :  { %v5017_v48 = vadd.f32 %v5016_v4, %v4967_v22 }
 0x7c4   :  { %v11415_v36 = vmax.f32 %v12715_v42, %v5107_v10  ;;  %v12718_v10 = vmax.f32 %v11219_v17, %v11317_v11  ;;  %v12720_v17 = vld [vmem:[#allocation36_spill] sm:$0xff]  ;;  %v12721_v11 = vld [vmem:[#allocation46_spill] sm:$0xff] }
 0x7c5   :  { %5211 = vmatmul.bf16.gmra.mxu1 %v11096_v47  ;;  %5469 = vmatpush.bf16.msra.mxu3 %v8171_v62  ;;  %v12719_v62 = vmax.f32 %v11223_v15, %v11323_v7 }
 0x7c6   :  { %5304 = vmatmul.bf16.gmra.mxu3 %v11110_v33  ;;  %v5062_v40 = vpop.f32.mrf.mxu2  ;;  %v5128_v26 = vpop.f32.mrf.mxu0 }
 0x7c7   :  { %v5063_v35 = vadd.f32 %v5062_v40, %v5014_v20  ;;  %v12717_v20 = vmax.f32 %v11215_v43, %v11311_v30 }
 0x7c9   :  { %v5109_v61 = vpop.f32.mrf.mxu3  ;;  %5323 = vmatmul.bf16.vlgmr.msra.gmra.mxu0 %v10790_v25 }
 0x7ca   :  { %v5110_v2 = vadd.f32 %v5109_v61, %v5061_v55  ;;  %v5018_v19 = vpop.f32.mrf.mxu1 }
 0x7cb   :  { %v5019_v22 = vadd.f32 %v5018_v19, %v4969_v29  ;;  %5260 = vmatmul.bf16.gmra.mxu2 %v11114_v14 }
 0x7cc   :  { %v11422_v5 = vmax.f32 %v12716_v1, %v5110_v2 }
 0x7ce   :  { %v5065_v16 = vpop.f32.mrf.mxu2  ;;  %v5130_v50 = vpop.f32.mrf.mxu0 }
 0x7cf   :  { %v5066_v27 = vadd.f32 %v5065_v16, %v5017_v48  ;;  %v12732_v16 = vld [vmem:[#allocation51_spill] sm:$0xff] }
 0x7d1   :  { %v5111_v45 = vpop.f32.mrf.mxu3 }
 0x7d2   :  { %v5112_v37 = vadd.f32 %v5111_v45, %v5063_v35  ;;  %v5177_v59 = vpop.f32.mrf.mxu1 }
 0x7d3   :  { %v5178_v3 = vadd.f32 %v5177_v59, %v5128_v26 }
 0x7d4   :  { %v11429_v0 = vmax.f32 %v12717_v20, %v5112_v37 }
 0x7d5   :  { %5372 = vmatmul.bf16.vlgmr.msra.gmra.mxu1 %v10835_v8 }
 0x7d6   :  { %5309 = vmatmul.bf16.gmra.mxu3 %v11116_v57  ;;  %v5067_v9 = vpop.f32.mrf.mxu2  ;;  %v5133_v51 = vpop.f32.mrf.mxu0 }
 0x7d7   :  { %v5068_v34 = vadd.f32 %v5067_v9, %v5019_v22 }
 0x7d9   :  { %v5114_v41 = vpop.f32.mrf.mxu3  ;;  %5328 = vmatmul.bf16.gmra.mxu0 %v10840_v21 }
 0x7da   :  { %v5115_v13 = vadd.f32 %v5114_v41, %v5066_v27  ;;  %v5179_v55 = vpop.f32.mrf.mxu1 }
 0x7db   :  { %v5180_v4 = vadd.f32 %v5179_v55, %v5130_v50  ;;  %5421 = vmatmul.bf16.vlgmr.msrb.gmra.mxu2 %v10894_v38 }
 0x7dc   :  { %v11436_v29 = vmax.f32 %v12718_v10, %v5115_v13 }
 0x7de   :  { %v5226_v30 = vpop.f32.mrf.mxu2  ;;  %v5135_v32 = vpop.f32.mrf.mxu0 }
 0x7df   :  { %v5227_v48 = vadd.f32 %v5226_v30, %v5178_v3 }
 0x7e1   :  { %v5116_v43 = vpop.f32.mrf.mxu3 }
 0x7e2   :  { %v5117_v42 = vadd.f32 %v5116_v43, %v5068_v34  ;;  %v5182_v23 = vpop.f32.mrf.mxu1  ;;  %v12722_v43 = vld [vmem:[#allocation37_spill] sm:$0xff] }
 0x7e3   :  { %v5183_v61 = vadd.f32 %v5182_v23, %v5133_v51 }
 0x7e4   :  { %v11443_v40 = vmax.f32 %v12719_v62, %v5117_v42 }
 0x7e5   :  { %5377 = vmatmul.bf16.gmra.mxu1 %v12720_v17 }
 0x7e6   :  { %5470 = vmatmul.bf16.vlgmr.msra.gmra.mxu3 %v12721_v11  ;;  %v5228_v35 = vpop.f32.mrf.mxu2  ;;  %v5138_v1 = vpop.f32.mrf.mxu0 }
 0x7e7   :  { %v5229_v19 = vadd.f32 %v5228_v35, %v5180_v4 }
 0x7e9   :  { %v5275_v2 = vpop.f32.mrf.mxu3  ;;  %5333 = vmatmul.bf16.gmra.mxu0 %v10842_v44 }
 0x7ea   :  { %v11447_v26 = vadd.f32 %v5275_v2, %v5227_v48  ;;  %v5184_v22 = vpop.f32.mrf.mxu1 }
 0x7eb   :  { %v5185_v45 = vadd.f32 %v5184_v22, %v5135_v32  ;;  %5426 = vmatmul.bf16.gmra.mxu2 %v10944_v53 }
 0x7ee   :  { %v5231_v15 = vpop.f32.mrf.mxu2  ;;  %v5140_v50 = vpop.f32.mrf.mxu0 }
 0x7ef   :  { %v5232_v27 = vadd.f32 %v5231_v15, %v5183_v61  ;;  %v12723_v61 = vld [vmem:[#allocation49_spill] sm:$0xff] }
 0x7f1   :  { %v5277_v7 = vpop.f32.mrf.mxu3 }
 0x7f2   :  { %v11453_v37 = vadd.f32 %v5277_v7, %v5229_v19  ;;  %v5187_v59 = vpop.f32.mrf.mxu1  ;;  %v12724_v19 = vld [vmem:[#allocation41_spill] sm:$0xff] }
 0x7f3   :  { %v5188_v3 = vadd.f32 %v5187_v59, %v5138_v1  ;;  %v12725_v1 = vld [vmem:[#allocation55_spill] sm:$0xff] }
 0x7f5   :  { %5382 = vmatmul.bf16.gmra.mxu1 %v10946_v52 }
 0x7f6   :  { %5475 = vmatmul.bf16.gmra.mxu3 %v12684_v63  ;;  %v5233_v9 = vpop.f32.mrf.mxu2  ;;  %v5143_v51 = vpop.f32.mrf.mxu0 }
 0x7f7   :  { %v5234_v34 = vadd.f32 %v5233_v9, %v5185_v45 }
 0x7f9   :  { %v5280_v41 = vpop.f32.mrf.mxu3  ;;  %5338 = vmatmul.bf16.gmra.mxu0 %v10881_v18 }
 0x7fa   :  { %v11459_v13 = vadd.f32 %v5280_v41, %v5232_v27  ;;  %v5189_v55 = vpop.f32.mrf.mxu1  ;;  %v12728_v41 = vld [vmem:[#allocation81_spill] sm:$0xff] }
 0x7fb   :  { %v5190_v4 = vadd.f32 %v5189_v55, %v5140_v50  ;;  %5431 = vmatmul.bf16.gmra.mxu2 %v12722_v43  ;;  %v7560_v55 = vld [vmem:[#allocation7 + $0x22c] sm:$0xf0] }
 0x7fe   :  { %v5236_v30 = vpop.f32.mrf.mxu2  ;;  %v5145_v23 = vpop.f32.mrf.mxu0 }
 0x7ff   :  { %v5237_v48 = vadd.f32 %v5236_v30, %v5188_v3 }
 0x801   :  { %v5282_v42 = vpop.f32.mrf.mxu3 }
 0x802   :  { %v11465_v32 = vadd.f32 %v5282_v42, %v5234_v34  ;;  %v5192_v62 = vpop.f32.mrf.mxu1  ;;  %v12729_v34 = vld [vmem:[#allocation42_spill] sm:$0xff] }
 0x803   :  { %v5193_v2 = vadd.f32 %v5192_v62, %v5143_v51  ;;  %v8642_v51 = vld [vmem:[#allocation7 + $0x20c] sm:$0xf] }
 0x804   :  { %v7563_v30 = vor.u32 %v8642_v51, %v7560_v55  ;;  %v8624_v51 = vld [vmem:[#allocation7 + $0x17c] sm:$0xf]  ;;  %v7488_v55 = vld [vmem:[#allocation7 + $0x19c] sm:$0xf0] }
 0x805   :  { %5387 = vmatmul.bf16.gmra.mxu1 %v12724_v19 }
 0x806   :  { %5480 = vmatmul.bf16.gmra.mxu3 %v12725_v1  ;;  %v5238_v22 = vpop.f32.mrf.mxu2  ;;  %v5148_v27 = vpop.f32.mrf.mxu0  ;;  %5511 = vmatpush.bf16.msrb.mxu0 %v7563_v30 }
 0x807   :  { %v5239_v15 = vadd.f32 %v5238_v22, %v5190_v4 }
 0x809   :  { %v5285_v45 = vpop.f32.mrf.mxu3  ;;  %5343 = vmatmul.bf16.gmra.mxu0 %v12728_v41  ;;  %v8714_v41 = vld [vmem:[#allocation7 + $0x44c] sm:$0xf] }
 0x80a   :  { %v11471_v7 = vadd.f32 %v5285_v45, %v5237_v48  ;;  %v5194_v50 = vpop.f32.mrf.mxu1  ;;  %v8136_v45 = vld [vmem:[#allocation7 + $0x6ac] sm:$0xf0] }
 0x80b   :  { %v5195_v9 = vadd.f32 %v5194_v50, %v5145_v23  ;;  %5436 = vmatmul.bf16.gmra.mxu2 %v12729_v34  ;;  %v8633_v23 = vld [vmem:[#allocation7 + $0x1c4] sm:$0xf]  ;;  %v7524_v50 = vld [vmem:[#allocation7 + $0x1e4] sm:$0xf0] }
 0x80c   :  { %12726 = vst [vmem:[#allocation25_spill] sm:$0xff] %v11471_v7  ;;  %v7527_v20 = vor.u32 %v8633_v23, %v7524_v50  ;;  %v12733_v34 = vld [vmem:[#allocation56_spill] sm:$0xff] }
 0x80d   :  { %v8678_v23 = vld [vmem:[#allocation7 + $0x32c] sm:$0xf] }
 0x80e   :  { %v5241_v42 = vpop.f32.mrf.mxu2  ;;  %v5150_v48 = vpop.f32.mrf.mxu0  ;;  %5512 = vmatpush.bf16.msrb.mxu0 %v7527_v20 }
 0x80f   :  { %v5242_v35 = vadd.f32 %v5241_v42, %v5193_v2  ;;  %v7491_v2 = vor.u32 %v8624_v51, %v7488_v55  ;;  %v7812_v51 = vld [vmem:[#allocation7 + $0x424] sm:$0xf0] }
 0x810   :  { %v12736_v55 = vld [vmem:[#allocation52_spill] sm:$0xff] }
 0x811   :  { %v5287_v62 = vpop.f32.mrf.mxu3 }
 0x812   :  { %v11477_v4 = vadd.f32 %v5287_v62, %v5239_v15  ;;  %v5197_v22 = vpop.f32.mrf.mxu1  ;;  %v7848_v15 = vld [vmem:[#allocation7 + $0x46c] sm:$0xf0]  ;;  %5513 = vmatpush.bf16.msrb.mxu0 %v7491_v2  ;;  %v7776_v2 = vld [vmem:[#allocation7 + $0x3dc] sm:$0xf0] }
 0x813   :  { %v5198_v3 = vadd.f32 %v5197_v22, %v5148_v27  ;;  %v7851_v30 = vor.u32 %v8714_v41, %v7848_v15  ;;  %v12737_v41 = vld [vmem:[#allocation39_spill] sm:$0xff]  ;;  %v7416_v15 = vld [vmem:[#allocation7 + $0x10c] sm:$0xf0] }
 0x814   :  { %12730 = vst [vmem:[#allocation16_spill] sm:$0xff] %v11477_v4  ;;  %v8705_v4 = vld [vmem:[#allocation7 + $0x404] sm:$0xf] }
 0x815   :  { %5392 = vmatmul.bf16.gmra.mxu1 %v12732_v16  ;;  %v7452_v16 = vld [vmem:[#allocation7 + $0x154] sm:$0xf0] }
 0x816   :  { %5485 = vmatmul.bf16.gmra.mxu3 %v12733_v34  ;;  %v5243_v42 = vpop.f32.mrf.mxu2  ;;  %5560 = vmatpush.bf16.msrb.mxu1 %v7851_v30  ;;  %v5153_v27 = vpop.f32.mrf.mxu0  ;;  %v8615_v34 = vld [vmem:[#allocation7 + $0x134] sm:$0xf]  ;;  %v8696_v30 = vld [vmem:[#allocation7 + $0x3bc] sm:$0xf] }
 0x817   :  { %v5244_v7 = vadd.f32 %v5243_v42, %v5195_v9  ;;  %v7455_v20 = vor.u32 %v8615_v34, %v7452_v16  ;;  %v7815_v9 = vor.u32 %v8705_v4, %v7812_v51  ;;  %v8064_v51 = vld [vmem:[#allocation7 + $0x61c] sm:$0xf0]  ;;  %v8424_v4 = vld [vmem:[#allocation7 + $0x8ec] sm:$0xf0] }
 0x819   :  { %v5290_v62 = vpop.f32.mrf.mxu3  ;;  %5348 = vmatmul.bf16.gmra.mxu0 %v12736_v55 }
 0x81a   :  { %v11483_v59 = vadd.f32 %v5290_v62, %v5242_v35  ;;  %v5199_v22 = vpop.f32.mrf.mxu1  ;;  %v8606_v35 = vld [vmem:[#allocation7 + $0xec] sm:$0xf]  ;;  %5514 = vmatpush.bf16.msrb.mxu0 %v7455_v20  ;;  %5561 = vmatpush.bf16.msrb.mxu1 %v7815_v9  ;;  %v8687_v9 = vld [vmem:[#allocation7 + $0x374] sm:$0xf] }
 0x81b   :  { %v5200_v10 = vadd.f32 %v5199_v22, %v5150_v48  ;;  %5441 = vmatmul.bf16.gmra.mxu2 %v12737_v41  ;;  %v7419_v42 = vor.u32 %v8606_v35, %v7416_v15  ;;  %v8786_v62 = vld [vmem:[#allocation7 + $0x68c] sm:$0xf]  ;;  %v7779_v48 = vor.u32 %v8696_v30, %v7776_v2  ;;  %v8597_v35 = vld [vmem:[#allocation7 + $0xa4] sm:$0xf]  ;;  %v7380_v15 = vld [vmem:[#allocation7 + $0xc4] sm:$0xf0] }
 0x81c   :  { %12734 = vst [vmem:[#allocation29_spill] sm:$0xff] %v11483_v59  ;;  %v8139_v22 = vor.u32 %v8786_v62, %v8136_v45  ;;  %v7383_v30 = vor.u32 %v8597_v35, %v7380_v15  ;;  %v7740_v45 = vld [vmem:[#allocation7 + $0x394] sm:$0xf0]  ;;  %v8777_v2 = vld [vmem:[#allocation7 + $0x644] sm:$0xf] }
 0x81d   :  { %v8100_v62 = vld [vmem:[#allocation7 + $0x664] sm:$0xf0] }
 0x81e   :  { %v5246_v50 = vpop.f32.mrf.mxu2  ;;  %5609 = vmatpush.bf16.msra.mxu2 %v8139_v22  ;;  %v5155_v55 = vpop.f32.mrf.mxu0  ;;  %5515 = vmatpush.bf16.msrb.mxu0 %v7419_v42  ;;  %v8588_v42 = vld [vmem:[#allocation7 + $0x5c] sm:$0xf]  ;;  %v7344_v22 = vld [vmem:[#allocation7 + $0x7c] sm:$0xf0] }
 0x81f   :  { %v5247_v16 = vadd.f32 %v5246_v50, %v5198_v3  ;;  %5562 = vmatpush.bf16.msrb.mxu1 %v7779_v48  ;;  %v12740_v3 = vld [vmem:[#allocation53_spill] sm:$0xff]  ;;  %v8103_v50 = vor.u32 %v8777_v2, %v8100_v62  ;;  %v8768_v48 = vld [vmem:[#allocation7 + $0x5fc] sm:$0xf] }
 0x820   :  { %v8067_v15 = vor.u32 %v8768_v48, %v8064_v51  ;;  %v7308_v51 = vld [vmem:[#allocation7 + $0x34] sm:$0xf0] }
 0x821   :  { %v5292_v59 = vpop.f32.mrf.mxu3 }
 0x822   :  { %v11489_v34 = vadd.f32 %v5292_v59, %v5244_v7  ;;  %v5202_v41 = vpop.f32.mrf.mxu1  ;;  %v12741_v7 = vld [vmem:[#allocation40_spill] sm:$0xff]  ;;  %v7743_v59 = vor.u32 %v8687_v9, %v7740_v45  ;;  %5516 = vmatpush.bf16.msrb.mxu0 %v7383_v30  ;;  %5610 = vmatpush.bf16.msra.mxu2 %v8103_v50 }
 0x823   :  { %v11493_v20 = vadd.f32 %v5202_v41, %v5153_v27  ;;  %v7347_v27 = vor.u32 %v8588_v42, %v7344_v22  ;;  %v7704_v41 = vld [vmem:[#allocation7 + $0x34c] sm:$0xf0]  ;;  %v7668_v42 = vld [vmem:[#allocation7 + $0x304] sm:$0xf0]  ;;  %v7632_v22 = vld [vmem:[#allocation7 + $0x2bc] sm:$0xf0] }
 0x824   :  { %12738 = vst [vmem:[#allocation23_spill] sm:$0xff] %v11489_v34  ;;  %5563 = vmatpush.bf16.msrb.mxu1 %v7743_v59  ;;  %v7707_v35 = vor.u32 %v8678_v23, %v7704_v41  ;;  %v8858_v34 = vld [vmem:[#allocation7 + $0x8cc] sm:$0xf]  ;;  %v8579_v23 = vld [vmem:[#allocation7 + $0x14] sm:$0xf] }
 0x825   :  { %5397 = vmatmul.bf16.gmra.mxu1 %v12740_v3  ;;  %v8427_v19 = vor.u32 %v8858_v34, %v8424_v4  ;;  %v8669_v59 = vld [vmem:[#allocation7 + $0x2e4] sm:$0xf]  ;;  %v7311_v50 = vor.u32 %v8579_v23, %v7308_v51  ;;  %v8759_v34 = vld [vmem:[#allocation7 + $0x5b4] sm:$0xf]  ;;  %v8388_v4 = vld [vmem:[#allocation7 + $0x8a4] sm:$0xf0] }
 0x826   :  { %5490 = vmatmul.bf16.gmra.mxu3 %v12741_v7  ;;  %v5248_v1 = vpop.f32.mrf.mxu2  ;;  %v5158_v45 = vpop.f32.mrf.mxu0  ;;  %5517 = vmatpush.bf16.msrb.mxu0 %v7347_v27  ;;  %v8750_v27 = vld [vmem:[#allocation7 + $0x56c] sm:$0xf]  ;;  %v7992_v41 = vld [vmem:[#allocation7 + $0x58c] sm:$0xf0] }
 0x827   :  { %v5249_v7 = vadd.f32 %v5248_v1, %v5200_v10  ;;  %5658 = vmatpush.bf16.msrb.mxu3 %v8427_v19  ;;  %5611 = vmatpush.bf16.msra.mxu2 %v8067_v15  ;;  %v8028_v10 = vld [vmem:[#allocation7 + $0x5d4] sm:$0xf0]  ;;  %v7671_v1 = vor.u32 %v8669_v59, %v7668_v42  ;;  %v8840_v15 = vld [vmem:[#allocation7 + $0x83c] sm:$0xf] }
 0x828   :  { %5564 = vmatpush.bf16.msrb.mxu1 %v7707_v35  ;;  %v8031_v19 = vor.u32 %v8759_v34, %v8028_v10  ;;  %v7995_v35 = vor.u32 %v8750_v27, %v7992_v41  ;;  %v8316_v27 = vld [vmem:[#allocation7 + $0x814] sm:$0xf0]  ;;  %v8732_v41 = vld [vmem:[#allocation7 + $0x4dc] sm:$0xf] }
 0x829   :  { %v5295_v3 = vpop.f32.mrf.mxu3  ;;  %5353 = vmatmul.bf16.gmra.mxu0 %v11034_v31 }
 0x82a   :  { %v11497_v9 = vadd.f32 %v5295_v3, %v5247_v16  ;;  %v5204_v2 = vpop.f32.mrf.mxu1  ;;  %v8849_v16 = vld [vmem:[#allocation7 + $0x884] sm:$0xf]  ;;  %v8660_v3 = vld [vmem:[#allocation7 + $0x29c] sm:$0xf]  ;;  %5518 = vmatpush.bf16.msrb.mxu0 %v7311_v50 }
 0x82b   :  { %v11501_v62 = vadd.f32 %v5204_v2, %v5155_v55  ;;  %5446 = vmatmul.bf16.gmra.mxu2 %v11040_v24  ;;  %v8391_v55 = vor.u32 %v8849_v16, %v8388_v4  ;;  %v7635_v48 = vor.u32 %v8660_v3, %v7632_v22  ;;  %v8352_v2 = vld [vmem:[#allocation7 + $0x85c] sm:$0xf0]  ;;  %v8741_v4 = vld [vmem:[#allocation7 + $0x524] sm:$0xf]  ;;  %v7956_v22 = vld [vmem:[#allocation7 + $0x544] sm:$0xf0] }
 0x82c   :  { %5565 = vmatpush.bf16.msrb.mxu1 %v7671_v1  ;;  %5612 = vmatpush.bf16.msra.mxu2 %v8031_v19  ;;  %v8355_v30 = vor.u32 %v8840_v15, %v8352_v2  ;;  %v8651_v1 = vld [vmem:[#allocation7 + $0x254] sm:$0xf]  ;;  %v7596_v19 = vld [vmem:[#allocation7 + $0x274] sm:$0xf0]  ;;  %v7920_v15 = vld [vmem:[#allocation7 + $0x4fc] sm:$0xf0] }
 0x82d   :  { %5659 = vmatpush.bf16.msrb.mxu3 %v8391_v55  ;;  %v7599_v3 = vor.u32 %v8651_v1, %v7596_v19  ;;  %v8831_v55 = vld [vmem:[#allocation7 + $0x7f4] sm:$0xf]  ;;  %v8822_v2 = vld [vmem:[#allocation7 + $0x7ac] sm:$0xf] }
 0x82e   :  { %v5251_v23 = vpop.f32.mrf.mxu2  ;;  %v5160_v34 = vpop.f32.mrf.mxu0 }
 0x82f   :  { %v5252_v59 = vadd.f32 %v5251_v23, %v11493_v20  ;;  %v7959_v20 = vor.u32 %v8741_v4, %v7956_v22 }
 0x830   :  { %5566 = vmatpush.bf16.msrb.mxu1 %v7635_v48  ;;  %5613 = vmatpush.bf16.msra.mxu2 %v7995_v35  ;;  %v7923_v48 = vor.u32 %v8732_v41, %v7920_v15  ;;  %v8244_v41 = vld [vmem:[#allocation7 + $0x784] sm:$0xf0] }
 0x831   :  { %v5297_v51 = vpop.f32.mrf.mxu3  ;;  %5660 = vmatpush.bf16.msrb.mxu3 %v8355_v30 }
 0x832   :  { %v11506_v42 = vadd.f32 %v5297_v51, %v5249_v7  ;;  %v5207_v50 = vpop.f32.mrf.mxu1  ;;  %v8319_v7 = vor.u32 %v8831_v55, %v8316_v27  ;;  %v8723_v55 = vld [vmem:[#allocation7 + $0x494] sm:$0xf]  ;;  %v7884_v27 = vld [vmem:[#allocation7 + $0x4b4] sm:$0xf0] }
 0x833   :  { %v5208_v16 = vadd.f32 %v5207_v50, %v5158_v45  ;;  %v8280_v45 = vld [vmem:[#allocation7 + $0x7cc] sm:$0xf0] }
 0x834   :  { %5567 = vmatpush.bf16.msrb.mxu1 %v7599_v3  ;;  %5614 = vmatpush.bf16.msra.mxu2 %v7959_v20  ;;  %v8283_v30 = vor.u32 %v8822_v2, %v8280_v45  ;;  %v8813_v3 = vld [vmem:[#allocation7 + $0x764] sm:$0xf]  ;;  %v7887_v20 = vor.u32 %v8723_v55, %v7884_v27  ;;  %v8795_v55 = vld [vmem:[#allocation7 + $0x6d4] sm:$0xf]  ;;  %v8172_v27 = vld [vmem:[#allocation7 + $0x6f4] sm:$0xf0] }
 0x835   :  { %5402 = vmatmul.bf16.gmra.mxu1 %v11055_v12  ;;  %5661 = vmatpush.bf16.msrb.mxu3 %v8319_v7  ;;  %v8208_v7 = vld [vmem:[#allocation7 + $0x73c] sm:$0xf0] }
 0x836   :  { %5495 = vmatmul.bf16.gmra.mxu3 %v12681_v60  ;;  %v5253_v35 = vpop.f32.mrf.mxu2  ;;  %v5163_v1 = vpop.f32.mrf.mxu0 }
 0x837   :  { %v5254_v51 = vadd.f32 %v5253_v35, %v11501_v62  ;;  %v8247_v62 = vor.u32 %v8813_v3, %v8244_v41  ;;  %v8175_v3 = vor.u32 %v8795_v55, %v8172_v27 }
 0x838   :  { %5615 = vmatpush.bf16.msra.mxu2 %v7923_v48 }
 0x839   :  { %v5300_v23 = vpop.f32.mrf.mxu3  ;;  %5662 = vmatpush.bf16.msrb.mxu3 %v8283_v30  ;;  %5358 = vmatmul.bf16.gmra.mxu0 %v11076_v58 }
 0x83a   :  { %v11513_v50 = vadd.f32 %v5300_v23, %v5252_v59  ;;  %v5209_v19 = vpop.f32.mrf.mxu1  ;;  %v8804_v59 = vld [vmem:[#allocation7 + $0x71c] sm:$0xf] }
 0x83b   :  { %v5210_v22 = vadd.f32 %v5209_v19, %v5160_v34  ;;  %5451 = vmatmul.bf16.gmra.mxu2 %v11082_v49  ;;  %v8211_v45 = vor.u32 %v8804_v59, %v8208_v7 }
 0x83c   :  { %5616 = vmatpush.bf16.msra.mxu2 %v7887_v20 }
 0x83d   :  { %5663 = vmatpush.bf16.msrb.mxu3 %v8247_v62 }
 0x83e   :  { %v5256_v15 = vpop.f32.mrf.mxu2  ;;  %v5165_v35 = vpop.f32.mrf.mxu0 }
 0x83f   :  { %v5257_v34 = vadd.f32 %v5256_v15, %v5208_v16 }
 0x841   :  { %v5302_v2 = vpop.f32.mrf.mxu3  ;;  %5664 = vmatpush.bf16.msrb.mxu3 %v8211_v45 }
 0x842   :  { %v11519_v48 = vadd.f32 %v5302_v2, %v5254_v51  ;;  %v5212_v23 = vpop.f32.mrf.mxu1 }
 0x843   :  { %v5213_v19 = vadd.f32 %v5212_v23, %v5163_v1 }
 0x845   :  { %5407 = vmatmul.bf16.gmra.mxu1 %v11096_v47  ;;  %5665 = vmatpush.bf16.msrb.mxu3 %v8175_v3 }
 0x846   :  { %5500 = vmatmul.bf16.gmra.mxu3 %v11110_v33  ;;  %v5258_v20 = vpop.f32.mrf.mxu2  ;;  %v5324_v59 = vpop.f32.mrf.mxu0 }
 0x847   :  { %v5259_v16 = vadd.f32 %v5258_v20, %v5210_v22 }
 0x849   :  { %v5305_v41 = vpop.f32.mrf.mxu3  ;;  %5519 = vmatmul.bf16.vlgmr.msrb.gmra.mxu0 %v10790_v25 }
 0x84a   :  { %v11525_v51 = vadd.f32 %v5305_v41, %v5257_v34  ;;  %v5214_v62 = vpop.f32.mrf.mxu1 }
 0x84b   :  { %v5215_v1 = vadd.f32 %v5214_v62, %v5165_v35  ;;  %5456 = vmatmul.bf16.gmra.mxu2 %v11114_v14 }
 0x84e   :  { %v5261_v15 = vpop.f32.mrf.mxu2  ;;  %v5326_v55 = vpop.f32.mrf.mxu0 }
 0x84f   :  { %v5262_v45 = vadd.f32 %v5261_v15, %v5213_v19 }
 0x851   :  { %v5307_v2 = vpop.f32.mrf.mxu3 }
 0x852   :  { %v11531_v23 = vadd.f32 %v5307_v2, %v5259_v16  ;;  %v5373_v27 = vpop.f32.mrf.mxu1 }
 0x853   :  { %v5374_v34 = vadd.f32 %v5373_v27, %v5324_v59 }
 0x855   :  { %5568 = vmatmul.bf16.vlgmr.msrb.gmra.mxu1 %v10835_v8 }
 0x856   :  { %5505 = vmatmul.bf16.gmra.mxu3 %v11116_v57  ;;  %v5263_v35 = vpop.f32.mrf.mxu2  ;;  %v5329_v62 = vpop.f32.mrf.mxu0 }
 0x857   :  { %v5264_v20 = vadd.f32 %v5263_v35, %v5215_v1 }
 0x859   :  { %v5310_v3 = vpop.f32.mrf.mxu3  ;;  %5524 = vmatmul.bf16.gmra.mxu0 %v10840_v21 }
 0x85a   :  { %v11537_v41 = vadd.f32 %v5310_v3, %v5262_v45  ;;  %v5375_v7 = vpop.f32.mrf.mxu1 }
 0x85b   :  { %v5376_v16 = vadd.f32 %v5375_v7, %v5326_v55  ;;  %5617 = vmatmul.bf16.vlgmr.msra.gmra.mxu2 %v10894_v38 }
 0x85e   :  { %v5422_v15 = vpop.f32.mrf.mxu2  ;;  %v5331_v22 = vpop.f32.mrf.mxu0 }
 0x85f   :  { %v5423_v27 = vadd.f32 %v5422_v15, %v5374_v34 }
 0x861   :  { %v5312_v59 = vpop.f32.mrf.mxu3 }
 0x862   :  { %v11543_v2 = vadd.f32 %v5312_v59, %v5264_v20  ;;  %v5378_v30 = vpop.f32.mrf.mxu1  ;;  %v12742_v20 = vmax.f32 %v11332_v46, %v11447_v26 }
 0x863   :  { %v5379_v45 = vadd.f32 %v5378_v30, %v5329_v62 }
 0x865   :  { %5573 = vmatmul.bf16.gmra.mxu1 %v12720_v17 }
 0x866   :  { %5666 = vmatmul.bf16.vlgmr.msrb.gmra.mxu3 %v12721_v11  ;;  %v5424_v7 = vpop.f32.mrf.mxu2  ;;  %v5334_v19 = vpop.f32.mrf.mxu0 }
 0x867   :  { %v5425_v35 = vadd.f32 %v5424_v7, %v5376_v16  ;;  %v12743_v16 = vmax.f32 %v11339_v6, %v11453_v37 }
 0x869   :  { %v5471_v55 = vpop.f32.mrf.mxu3  ;;  %5529 = vmatmul.bf16.gmra.mxu0 %v10842_v44 }
 0x86a   :  { %v5472_v3 = vadd.f32 %v5471_v55, %v5423_v27  ;;  %v5380_v4 = vpop.f32.mrf.mxu1 }
 0x86b   :  { %v5381_v59 = vadd.f32 %v5380_v4, %v5331_v22  ;;  %5622 = vmatmul.bf16.gmra.mxu2 %v10944_v53 }
 0x86c   :  { %v11552_v34 = vmax.f32 %v12742_v20, %v5472_v3 }
 0x86e   :  { %v5427_v30 = vpop.f32.mrf.mxu2  ;;  %v5336_v10 = vpop.f32.mrf.mxu0 }
 0x86f   :  { %v5428_v15 = vadd.f32 %v5427_v30, %v5379_v45  ;;  %v12744_v45 = vmax.f32 %v11346_v54, %v11459_v13  ;;  %v12747_v54 = vld [vmem:[#allocation41_spill] sm:$0xff]  ;;  %v12748_v13 = vld [vmem:[#allocation55_spill] sm:$0xff] }
 0x871   :  { %v5473_v62 = vpop.f32.mrf.mxu3 }
 0x872   :  { %v5474_v1 = vadd.f32 %v5473_v62, %v5425_v35  ;;  %v5383_v11 = vpop.f32.mrf.mxu1 }
 0x873   :  { %v5384_v7 = vadd.f32 %v5383_v11, %v5334_v19 }
 0x874   :  { %v11559_v27 = vmax.f32 %v12743_v16, %v5474_v1 }
 0x875   :  { %5578 = vmatmul.bf16.gmra.mxu1 %v10946_v52 }
 0x876   :  { %5671 = vmatmul.bf16.gmra.mxu3 %v12684_v63  ;;  %v5429_v46 = vpop.f32.mrf.mxu2  ;;  %v5339_v55 = vpop.f32.mrf.mxu0 }
 0x877   :  { %v5430_v4 = vadd.f32 %v5429_v46, %v5381_v59  ;;  %v12745_v59 = vmax.f32 %v12723_v61, %v11465_v32  ;;  %v12753_v32 = vld [vmem:[#allocation81_spill] sm:$0xff]  ;;  %v12754_v61 = vld [vmem:[#allocation42_spill] sm:$0xff] }
 0x879   :  { %v5476_v26 = vpop.f32.mrf.mxu3  ;;  %5534 = vmatmul.bf16.gmra.mxu0 %v10881_v18 }
 0x87a   :  { %v5477_v22 = vadd.f32 %v5476_v26, %v5428_v15  ;;  %v5385_v3 = vpop.f32.mrf.mxu1 }
 0x87b   :  { %v5386_v20 = vadd.f32 %v5385_v3, %v5336_v10  ;;  %5627 = vmatmul.bf16.gmra.mxu2 %v12722_v43 }
 0x87c   :  { %v11566_v35 = vmax.f32 %v12744_v45, %v5477_v22 }
 0x87e   :  { %v5432_v6 = vpop.f32.mrf.mxu2  ;;  %v5341_v1 = vpop.f32.mrf.mxu0 }
 0x87f   :  { %v5433_v37 = vadd.f32 %v5432_v6, %v5384_v7  ;;  %v12749_v7 = vld [vmem:[#allocation61_spill] sm:$0xff] }
 0x881   :  { %v5478_v11 = vpop.f32.mrf.mxu3 }
 0x882   :  { %v5479_v19 = vadd.f32 %v5478_v11, %v5430_v4  ;;  %v5388_v30 = vpop.f32.mrf.mxu1  ;;  %v12750_v4 = vld [vmem:[#allocation25_spill] sm:$0xff] }
 0x883   :  { %v5389_v15 = vadd.f32 %v5388_v30, %v5339_v55  ;;  %v12751_v45 = vmax.f32 %v12749_v7, %v12750_v4  ;;  %v7566_v55 = vld [vmem:[#allocation7 + $0x210] sm:$0xf]  ;;  %v8638_v4 = vld [vmem:[#allocation7 + $0x1e8] sm:$0xf0] }
 0x884   :  { %v11573_v62 = vmax.f32 %v12745_v59, %v5479_v19  ;;  %v8647_v19 = vld [vmem:[#allocation7 + $0x230] sm:$0xf0] }
 0x885   :  { %5583 = vmatmul.bf16.gmra.mxu1 %v12747_v54  ;;  %v7567_v30 = vor.u32 %v8647_v19, %v7566_v55  ;;  %v12755_v54 = vld [vmem:[#allocation48_spill] sm:$0xff]  ;;  %v7494_v55 = vld [vmem:[#allocation7 + $0x180] sm:$0xf] }
 0x886   :  { %12746 = vst [vmem:[#allocation20_spill] sm:$0xff] %v11573_v62  ;;  %5676 = vmatmul.bf16.gmra.mxu3 %v12748_v13  ;;  %v5434_v10 = vpop.f32.mrf.mxu2  ;;  %v5344_v22 = vpop.f32.mrf.mxu0  ;;  %v12756_v62 = vld [vmem:[#allocation16_spill] sm:$0xff] }
 0x887   :  { %v5435_v46 = vadd.f32 %v5434_v10, %v5386_v20  ;;  %5707 = vmatpush.bf16.msra.mxu0 %v7567_v30  ;;  %v12757_v7 = vmax.f32 %v12755_v54, %v12756_v62  ;;  %v8629_v19 = vld [vmem:[#allocation7 + $0x1a0] sm:$0xf0]  ;;  %v7854_v30 = vld [vmem:[#allocation7 + $0x450] sm:$0xf] }
 0x889   :  { %v5481_v16 = vpop.f32.mrf.mxu3  ;;  %5539 = vmatmul.bf16.gmra.mxu0 %v12753_v32  ;;  %v12760_v32 = vld [vmem:[#allocation56_spill] sm:$0xff] }
 0x88a   :  { %v5482_v26 = vadd.f32 %v5481_v16, %v5433_v37  ;;  %v5390_v3 = vpop.f32.mrf.mxu1 }
 0x88b   :  { %v5391_v11 = vadd.f32 %v5390_v3, %v5341_v1  ;;  %5632 = vmatmul.bf16.gmra.mxu2 %v12754_v61  ;;  %v7530_v3 = vld [vmem:[#allocation7 + $0x1c8] sm:$0xf]  ;;  %v12759_v61 = vld [vmem:[#allocation51_spill] sm:$0xff] }
 0x88c   :  { %v11580_v6 = vmax.f32 %v12751_v45, %v5482_v26  ;;  %v7531_v45 = vor.u32 %v8638_v4, %v7530_v3 }
 0x88e   :  { %12752 = vst [vmem:[#allocation45_spill] sm:$0xff] %v11580_v6  ;;  %v5437_v59 = vpop.f32.mrf.mxu2  ;;  %v5346_v10 = vpop.f32.mrf.mxu0  ;;  %5708 = vmatpush.bf16.msra.mxu0 %v7531_v45  ;;  %v7818_v45 = vld [vmem:[#allocation7 + $0x408] sm:$0xf] }
 0x88f   :  { %v5438_v20 = vadd.f32 %v5437_v59, %v5389_v15  ;;  %v7495_v15 = vor.u32 %v8629_v19, %v7494_v55  ;;  %v8710_v19 = vld [vmem:[#allocation7 + $0x428] sm:$0xf0] }
 0x891   :  { %v5483_v13 = vpop.f32.mrf.mxu3 }
 0x892   :  { %v5484_v37 = vadd.f32 %v5483_v13, %v5435_v46  ;;  %v5393_v16 = vpop.f32.mrf.mxu1  ;;  %v8719_v13 = vld [vmem:[#allocation7 + $0x470] sm:$0xf0]  ;;  %5709 = vmatpush.bf16.msra.mxu0 %v7495_v15 }
 0x893   :  { %v5394_v1 = vadd.f32 %v5393_v16, %v5344_v22  ;;  %v7855_v46 = vor.u32 %v8719_v13, %v7854_v30  ;;  %v12761_v16 = vld [vmem:[#allocation59_spill] sm:$0xff]  ;;  %v12765_v30 = vld [vmem:[#allocation52_spill] sm:$0xff] }
 0x894   :  { %v11587_v26 = vmax.f32 %v12757_v7, %v5484_v37  ;;  %v12762_v7 = vld [vmem:[#allocation29_spill] sm:$0xff]  ;;  %v12766_v13 = vld [vmem:[#allocation39_spill] sm:$0xff] }
 0x895   :  { %5588 = vmatmul.bf16.gmra.mxu1 %v12759_v61  ;;  %v12763_v3 = vmax.f32 %v12761_v16, %v12762_v7  ;;  %v7458_v61 = vld [vmem:[#allocation7 + $0x138] sm:$0xf]  ;;  %v8142_v16 = vld [vmem:[#allocation7 + $0x690] sm:$0xf] }
 0x896   :  { %12758 = vst [vmem:[#allocation17_spill] sm:$0xff] %v11587_v26  ;;  %5681 = vmatmul.bf16.gmra.mxu3 %v12760_v32  ;;  %v5439_v59 = vpop.f32.mrf.mxu2  ;;  %5756 = vmatpush.bf16.msra.mxu1 %v7855_v46  ;;  %v5349_v22 = vpop.f32.mrf.mxu0  ;;  %v8620_v26 = vld [vmem:[#allocation7 + $0x158] sm:$0xf0]  ;;  %v7782_v46 = vld [vmem:[#allocation7 + $0x3c0] sm:$0xf] }
 0x897   :  { %v5440_v62 = vadd.f32 %v5439_v59, %v5391_v11  ;;  %v7459_v55 = vor.u32 %v8620_v26, %v7458_v61  ;;  %v7422_v11 = vld [vmem:[#allocation7 + $0xf0] sm:$0xf]  ;;  %v8701_v59 = vld [vmem:[#allocation7 + $0x3e0] sm:$0xf0] }
 0x899   :  { %v5486_v6 = vpop.f32.mrf.mxu3  ;;  %5544 = vmatmul.bf16.gmra.mxu0 %v12765_v30 }
 0x89a   :  { %v5487_v54 = vadd.f32 %v5486_v6, %v5438_v20  ;;  %v5395_v37 = vpop.f32.mrf.mxu1  ;;  %v7819_v6 = vor.u32 %v8710_v19, %v7818_v45  ;;  %v8611_v20 = vld [vmem:[#allocation7 + $0x110] sm:$0xf0]  ;;  %5710 = vmatpush.bf16.msra.mxu0 %v7459_v55  ;;  %v12767_v45 = vld [vmem:[#allocation47_spill] sm:$0xff] }
 0x89b   :  { %v5396_v32 = vadd.f32 %v5395_v37, %v5346_v10  ;;  %5637 = vmatmul.bf16.gmra.mxu2 %v12766_v13  ;;  %v7423_v15 = vor.u32 %v8611_v20, %v7422_v11  ;;  %v7783_v10 = vor.u32 %v8701_v59, %v7782_v46  ;;  %v12768_v19 = vld [vmem:[#allocation23_spill] sm:$0xff]  ;;  %v7386_v11 = vld [vmem:[#allocation7 + $0xa8] sm:$0xf]  ;;  %v7746_v20 = vld [vmem:[#allocation7 + $0x378] sm:$0xf] }
 0x89c   :  { %v11594_v4 = vmax.f32 %v12763_v3, %v5487_v54  ;;  %v8791_v54 = vld [vmem:[#allocation7 + $0x6b0] sm:$0xf0]  ;;  %5757 = vmatpush.bf16.msra.mxu1 %v7819_v6  ;;  %v12769_v13 = vmax.f32 %v12767_v45, %v12768_v19  ;;  %v8602_v6 = vld [vmem:[#allocation7 + $0xc8] sm:$0xf0]  ;;  %v8692_v59 = vld [vmem:[#allocation7 + $0x398] sm:$0xf0] }
 0x89d   :  { %v8143_v37 = vor.u32 %v8791_v54, %v8142_v16  ;;  %v7387_v46 = vor.u32 %v8602_v6, %v7386_v11  ;;  %v8106_v16 = vld [vmem:[#allocation7 + $0x648] sm:$0xf]  ;;  %v8430_v11 = vld [vmem:[#allocation7 + $0x8d0] sm:$0xf]  ;;  %v8863_v6 = vld [vmem:[#allocation7 + $0x8f0] sm:$0xf0] }
 0x89e   :  { %12764 = vst [vmem:[#allocation60_spill] sm:$0xff] %v11594_v4  ;;  %v5442_v7 = vpop.f32.mrf.mxu2  ;;  %v5351_v30 = vpop.f32.mrf.mxu0  ;;  %5711 = vmatpush.bf16.msra.mxu0 %v7423_v15  ;;  %v12772_v54 = vld [vmem:[#allocation40_spill] sm:$0xff]  ;;  %v7747_v15 = vor.u32 %v8692_v59, %v7746_v20  ;;  %v8431_v18 = vor.u32 %v8863_v6, %v8430_v11  ;;  %v8358_v11 = vld [vmem:[#allocation7 + $0x840] sm:$0xf] }
 0x89f   :  { %v5443_v61 = vadd.f32 %v5442_v7, %v5394_v1  ;;  %5805 = vmatpush.bf16.msrb.mxu2 %v8143_v37  ;;  %v8782_v1 = vld [vmem:[#allocation7 + $0x668] sm:$0xf0]  ;;  %v7350_v7 = vld [vmem:[#allocation7 + $0x60] sm:$0xf]  ;;  %v8845_v6 = vld [vmem:[#allocation7 + $0x860] sm:$0xf0] }
 0x8a0   :  { %5758 = vmatpush.bf16.msra.mxu1 %v7783_v10  ;;  %v8107_v37 = vor.u32 %v8782_v1, %v8106_v16  ;;  %v8070_v10 = vld [vmem:[#allocation7 + $0x600] sm:$0xf]  ;;  %5854 = vmatpush.bf16.msra.mxu3 %v8431_v18 }
 0x8a1   :  { %v5488_v3 = vpop.f32.mrf.mxu3 }
 0x8a2   :  { %v5489_v26 = vadd.f32 %v5488_v3, %v5440_v62  ;;  %v5398_v4 = vpop.f32.mrf.mxu1  ;;  %v12771_v62 = vld [vmem:[#allocation53_spill] sm:$0xff]  ;;  %v8593_v3 = vld [vmem:[#allocation7 + $0x80] sm:$0xf0]  ;;  %5712 = vmatpush.bf16.msra.mxu0 %v7387_v46  ;;  %v12773_v46 = vmax.f32 %v11390_v39, %v11497_v9  ;;  %v8394_v39 = vld [vmem:[#allocation7 + $0x888] sm:$0xf] }
 0x8a3   :  { %v11603_v55 = vadd.f32 %v5398_v4, %v5349_v22  ;;  %v7351_v22 = vor.u32 %v8593_v3, %v7350_v7  ;;  %v8683_v4 = vld [vmem:[#allocation7 + $0x350] sm:$0xf0]  ;;  %5806 = vmatpush.bf16.msrb.mxu2 %v8107_v37  ;;  %v7314_v37 = vld [vmem:[#allocation7 + $0x18] sm:$0xf]  ;;  %v8584_v7 = vld [vmem:[#allocation7 + $0x38] sm:$0xf0] }
 0x8a4   :  { %v11601_v43 = vmax.f32 %v12769_v13, %v5489_v26  ;;  %v7710_v13 = vld [vmem:[#allocation7 + $0x330] sm:$0xf]  ;;  %v8773_v26 = vld [vmem:[#allocation7 + $0x620] sm:$0xf0]  ;;  %5759 = vmatpush.bf16.msra.mxu1 %v7747_v15  ;;  %v7674_v3 = vld [vmem:[#allocation7 + $0x2e8] sm:$0xf] }
 0x8a5   :  { %5593 = vmatmul.bf16.gmra.mxu1 %v12771_v62  ;;  %v7711_v45 = vor.u32 %v8683_v4, %v7710_v13  ;;  %v8071_v19 = vor.u32 %v8773_v26, %v8070_v10  ;;  %v7315_v13 = vor.u32 %v8584_v7, %v7314_v37  ;;  %v8674_v4 = vld [vmem:[#allocation7 + $0x308] sm:$0xf0]  ;;  %v7998_v10 = vld [vmem:[#allocation7 + $0x570] sm:$0xf]  ;;  %v8755_v26 = vld [vmem:[#allocation7 + $0x590] sm:$0xf0] }
 0x8a6   :  { %12770 = vst [vmem:[#allocation24_spill] sm:$0xff] %v11601_v43  ;;  %5686 = vmatmul.bf16.gmra.mxu3 %v12772_v54  ;;  %v5444_v43 = vpop.f32.mrf.mxu2  ;;  %v5354_v59 = vpop.f32.mrf.mxu0  ;;  %5713 = vmatpush.bf16.msra.mxu0 %v7351_v22  ;;  %v7675_v18 = vor.u32 %v8674_v4, %v7674_v3  ;;  %v8854_v9 = vld [vmem:[#allocation7 + $0x8a8] sm:$0xf0]  ;;  %v8665_v22 = vld [vmem:[#allocation7 + $0x2c0] sm:$0xf0] }
 0x8a7   :  { %v5445_v54 = vadd.f32 %v5444_v43, %v5396_v32  ;;  %5807 = vmatpush.bf16.msrb.mxu2 %v8071_v19  ;;  %v8034_v43 = vld [vmem:[#allocation7 + $0x5b8] sm:$0xf]  ;;  %v8764_v32 = vld [vmem:[#allocation7 + $0x5d8] sm:$0xf0]  ;;  %v7999_v19 = vor.u32 %v8755_v26, %v7998_v10  ;;  %v8286_v10 = vld [vmem:[#allocation7 + $0x7b0] sm:$0xf] }
 0x8a8   :  { %5760 = vmatpush.bf16.msra.mxu1 %v7711_v45 }
 0x8a9   :  { %v5491_v62 = vpop.f32.mrf.mxu3  ;;  %5549 = vmatmul.bf16.gmra.mxu0 %v11034_v31 }
 0x8aa   :  { %v5492_v20 = vadd.f32 %v5491_v62, %v5443_v61  ;;  %v5400_v16 = vpop.f32.mrf.mxu1  ;;  %v8035_v61 = vor.u32 %v8764_v32, %v8034_v43  ;;  %v7638_v62 = vld [vmem:[#allocation7 + $0x2a0] sm:$0xf]  ;;  %5714 = vmatpush.bf16.msra.mxu0 %v7315_v13  ;;  %v12774_v13 = vmax.f32 %v11400_v56, %v11506_v42  ;;  %v8737_v42 = vld [vmem:[#allocation7 + $0x500] sm:$0xf0] }
 0x8ab   :  { %v11612_v15 = vadd.f32 %v5400_v16, %v5351_v30  ;;  %5642 = vmatmul.bf16.gmra.mxu2 %v11040_v24  ;;  %v8395_v30 = vor.u32 %v8854_v9, %v8394_v39  ;;  %v7639_v45 = vor.u32 %v8665_v22, %v7638_v62  ;;  %v7962_v39 = vld [vmem:[#allocation7 + $0x528] sm:$0xf]  ;;  %v8746_v62 = vld [vmem:[#allocation7 + $0x548] sm:$0xf0]  ;;  %v8836_v22 = vld [vmem:[#allocation7 + $0x818] sm:$0xf0] }
 0x8ac   :  { %v11610_v1 = vmax.f32 %v12773_v46, %v5492_v20  ;;  %5761 = vmatpush.bf16.msra.mxu1 %v7675_v18  ;;  %5808 = vmatpush.bf16.msrb.mxu2 %v8035_v61  ;;  %v8359_v46 = vor.u32 %v8845_v6, %v8358_v11  ;;  %v7602_v18 = vld [vmem:[#allocation7 + $0x258] sm:$0xf]  ;;  %v8656_v61 = vld [vmem:[#allocation7 + $0x278] sm:$0xf0]  ;;  %v7926_v56 = vld [vmem:[#allocation7 + $0x4e0] sm:$0xf] }
 0x8ad   :  { %5855 = vmatpush.bf16.msra.mxu3 %v8395_v30  ;;  %v7603_v9 = vor.u32 %v8656_v61, %v7602_v18  ;;  %v8322_v30 = vld [vmem:[#allocation7 + $0x7f8] sm:$0xf]  ;;  %v7927_v26 = vor.u32 %v8737_v42, %v7926_v56  ;;  %v8728_v61 = vld [vmem:[#allocation7 + $0x4b8] sm:$0xf0]  ;;  %v12776_v42 = vmax.f32 %v11415_v36, %v11519_v48  ;;  %v12777_v36 = vmax.f32 %v11422_v5, %v11525_v51 }
 0x8ae   :  { %v5447_v20 = vpop.f32.mrf.mxu2  ;;  %v5356_v3 = vpop.f32.mrf.mxu0  ;;  %v7890_v18 = vld [vmem:[#allocation7 + $0x498] sm:$0xf] }
 0x8af   :  { %v5448_v37 = vadd.f32 %v5447_v20, %v11603_v55  ;;  %v7963_v55 = vor.u32 %v8746_v62, %v7962_v39  ;;  %v8250_v39 = vld [vmem:[#allocation7 + $0x768] sm:$0xf]  ;;  %v8818_v62 = vld [vmem:[#allocation7 + $0x788] sm:$0xf0] }
 0x8b0   :  { %5762 = vmatpush.bf16.msra.mxu1 %v7639_v45  ;;  %5809 = vmatpush.bf16.msrb.mxu2 %v7999_v19 }
 0x8b1   :  { %v5493_v16 = vpop.f32.mrf.mxu3  ;;  %5856 = vmatpush.bf16.msra.mxu3 %v8359_v46 }
 0x8b2   :  { %v5494_v7 = vadd.f32 %v5493_v16, %v5445_v54  ;;  %v5403_v4 = vpop.f32.mrf.mxu1  ;;  %v8323_v54 = vor.u32 %v8836_v22, %v8322_v30  ;;  %v8809_v30 = vld [vmem:[#allocation7 + $0x740] sm:$0xf0] }
 0x8b3   :  { %v5404_v32 = vadd.f32 %v5403_v4, %v5354_v59  ;;  %v8827_v59 = vld [vmem:[#allocation7 + $0x7d0] sm:$0xf0] }
 0x8b4   :  { %v11620_v43 = vmax.f32 %v12774_v13, %v5494_v7  ;;  %5763 = vmatpush.bf16.msra.mxu1 %v7603_v9  ;;  %5810 = vmatpush.bf16.msrb.mxu2 %v7963_v55  ;;  %v8287_v11 = vor.u32 %v8827_v59, %v8286_v10  ;;  %v12775_v7 = vmax.f32 %v11408_v28, %v11513_v50 }
 0x8b5   :  { %5598 = vmatmul.bf16.gmra.mxu1 %v11055_v12  ;;  %5857 = vmatpush.bf16.msra.mxu3 %v8323_v54  ;;  %v7891_v9 = vor.u32 %v8728_v61, %v7890_v18 }
 0x8b6   :  { %5691 = vmatmul.bf16.gmra.mxu3 %v12681_v60  ;;  %v5449_v45 = vpop.f32.mrf.mxu2  ;;  %v5359_v16 = vpop.f32.mrf.mxu0 }
 0x8b7   :  { %v5450_v6 = vadd.f32 %v5449_v45, %v11612_v15  ;;  %v8251_v15 = vor.u32 %v8818_v62, %v8250_v39  ;;  %v8800_v45 = vld [vmem:[#allocation7 + $0x6f8] sm:$0xf0] }
 0x8b8   :  { %5811 = vmatpush.bf16.msrb.mxu2 %v7927_v26  ;;  %v8178_v26 = vld [vmem:[#allocation7 + $0x6d8] sm:$0xf] }
 0x8b9   :  { %v5496_v19 = vpop.f32.mrf.mxu3  ;;  %5858 = vmatpush.bf16.msra.mxu3 %v8287_v11  ;;  %5554 = vmatmul.bf16.gmra.mxu0 %v11076_v58 }
 0x8ba   :  { %v5497_v20 = vadd.f32 %v5496_v19, %v5448_v37  ;;  %v5405_v46 = vpop.f32.mrf.mxu1  ;;  %v8214_v37 = vld [vmem:[#allocation7 + $0x720] sm:$0xf]  ;;  %v8179_v19 = vor.u32 %v8800_v45, %v8178_v26 }
 0x8bb   :  { %v5406_v13 = vadd.f32 %v5405_v46, %v5356_v3  ;;  %5647 = vmatmul.bf16.gmra.mxu2 %v11082_v49  ;;  %v8215_v50 = vor.u32 %v8809_v30, %v8214_v37 }
 0x8bc   :  { %v11628_v4 = vmax.f32 %v12775_v7, %v5497_v20  ;;  %5812 = vmatpush.bf16.msrb.mxu2 %v7891_v9 }
 0x8bd   :  { %5859 = vmatpush.bf16.msra.mxu3 %v8251_v15 }
 0x8be   :  { %v5452_v22 = vpop.f32.mrf.mxu2  ;;  %v5361_v54 = vpop.f32.mrf.mxu0 }
 0x8bf   :  { %v5453_v3 = vadd.f32 %v5452_v22, %v5404_v32 }
 0x8c1   :  { %v5498_v28 = vpop.f32.mrf.mxu3  ;;  %5860 = vmatpush.bf16.msra.mxu3 %v8215_v50 }
 0x8c2   :  { %v5499_v55 = vadd.f32 %v5498_v28, %v5450_v6  ;;  %v5408_v56 = vpop.f32.mrf.mxu1 }
 0x8c3   :  { %v5409_v59 = vadd.f32 %v5408_v56, %v5359_v16 }
 0x8c4   :  { %v11635_v10 = vmax.f32 %v12776_v42, %v5499_v55  ;;  %v12779_v55 = vmax.f32 %v11436_v29, %v11537_v41  ;;  %v12781_v29 = vld [vmem:[#allocation46_spill] sm:$0xff] }
 0x8c5   :  { %5603 = vmatmul.bf16.gmra.mxu1 %v11096_v47  ;;  %5861 = vmatpush.bf16.msra.mxu3 %v8179_v19  ;;  %v12780_v19 = vmax.f32 %v11443_v40, %v11543_v2 }
 0x8c6   :  { %5696 = vmatmul.bf16.gmra.mxu3 %v11110_v33  ;;  %v5454_v11 = vpop.f32.mrf.mxu2  ;;  %v5520_v7 = vpop.f32.mrf.mxu0 }
 0x8c7   :  { %v5455_v32 = vadd.f32 %v5454_v11, %v5406_v13  ;;  %v12778_v13 = vmax.f32 %v11429_v0, %v11531_v23 }
 0x8c9   :  { %v5501_v20 = vpop.f32.mrf.mxu3  ;;  %5715 = vmatmul.bf16.vlgmr.msra.gmra.mxu0 %v10790_v25 }
 0x8ca   :  { %v5502_v6 = vadd.f32 %v5501_v20, %v5453_v3  ;;  %v5410_v46 = vpop.f32.mrf.mxu1 }
 0x8cb   :  { %v5411_v16 = vadd.f32 %v5410_v46, %v5361_v54  ;;  %5652 = vmatmul.bf16.gmra.mxu2 %v11114_v14 }
 0x8cc   :  { %v11642_v48 = vmax.f32 %v12777_v36, %v5502_v6 }
 0x8ce   :  { %v5457_v18 = vpop.f32.mrf.mxu2  ;;  %v5522_v62 = vpop.f32.mrf.mxu0 }
 0x8cf   :  { %v5458_v39 = vadd.f32 %v5457_v18, %v5409_v59 }
 0x8d1   :  { %v5503_v61 = vpop.f32.mrf.mxu3 }
 0x8d2   :  { %v5504_v9 = vadd.f32 %v5503_v61, %v5455_v32  ;;  %v5569_v15 = vpop.f32.mrf.mxu1 }
 0x8d3   :  { %v5570_v30 = vadd.f32 %v5569_v15, %v5520_v7 }
 0x8d4   :  { %v11649_v37 = vmax.f32 %v12778_v13, %v5504_v9 }
 0x8d5   :  { %5764 = vmatmul.bf16.vlgmr.msra.gmra.mxu1 %v10835_v8 }
 0x8d6   :  { %5701 = vmatmul.bf16.gmra.mxu3 %v11116_v57  ;;  %v5459_v5 = vpop.f32.mrf.mxu2  ;;  %v5525_v50 = vpop.f32.mrf.mxu0 }
 0x8d7   :  { %v5460_v22 = vadd.f32 %v5459_v5, %v5411_v16  ;;  %v12793_v16 = vld [vmem:[#allocation51_spill] sm:$0xff] }
 0x8d9   :  { %v5506_v51 = vpop.f32.mrf.mxu3  ;;  %5720 = vmatmul.bf16.gmra.mxu0 %v10840_v21 }
 0x8da   :  { %v5507_v28 = vadd.f32 %v5506_v51, %v5458_v39  ;;  %v5571_v3 = vpop.f32.mrf.mxu1 }
 0x8db   :  { %v5572_v56 = vadd.f32 %v5571_v3, %v5522_v62  ;;  %5813 = vmatmul.bf16.vlgmr.msrb.gmra.mxu2 %v10894_v38 }
 0x8dc   :  { %v11656_v54 = vmax.f32 %v12779_v55, %v5507_v28 }
 0x8de   :  { %v5618_v23 = vpop.f32.mrf.mxu2  ;;  %v5527_v26 = vpop.f32.mrf.mxu0 }
 0x8df   :  { %v5619_v59 = vadd.f32 %v5618_v23, %v5570_v30 }
 0x8e1   :  { %v5508_v0 = vpop.f32.mrf.mxu3 }
 0x8e2   :  { %v5509_v42 = vadd.f32 %v5508_v0, %v5460_v22  ;;  %v5574_v45 = vpop.f32.mrf.mxu1  ;;  %v12783_v0 = vld [vmem:[#allocation37_spill] sm:$0xff] }
 0x8e3   :  { %v5575_v20 = vadd.f32 %v5574_v45, %v5525_v50 }
 0x8e4   :  { %v11663_v11 = vmax.f32 %v12780_v19, %v5509_v42 }
 0x8e5   :  { %5769 = vmatmul.bf16.gmra.mxu1 %v12720_v17 }
 0x8e6   :  { %5862 = vmatmul.bf16.vlgmr.msra.gmra.mxu3 %v12781_v29  ;;  %v5620_v41 = vpop.f32.mrf.mxu2  ;;  %v5530_v7 = vpop.f32.mrf.mxu0 }
 0x8e7   :  { %v5621_v6 = vadd.f32 %v5620_v41, %v5572_v56  ;;  %v12782_v56 = vld [vmem:[#allocation82_spill] sm:$0xff] }
 0x8e9   :  { %v5667_v32 = vpop.f32.mrf.mxu3  ;;  %5725 = vmatmul.bf16.gmra.mxu0 %v10842_v44 }
 0x8ea   :  { %v11667_v46 = vadd.f32 %v5667_v32, %v5619_v59  ;;  %v5576_v36 = vpop.f32.mrf.mxu1 }
 0x8eb   :  { %v5577_v18 = vadd.f32 %v5576_v36, %v5527_v26  ;;  %5818 = vmatmul.bf16.gmra.mxu2 %v10944_v53 }
 0x8ee   :  { %v5623_v40 = vpop.f32.mrf.mxu2  ;;  %v5532_v9 = vpop.f32.mrf.mxu0 }
 0x8ef   :  { %v5624_v61 = vadd.f32 %v5623_v40, %v5575_v20  ;;  %v12784_v20 = vld [vmem:[#allocation20_spill] sm:$0xff] }
 0x8f1   :  { %v5669_v2 = vpop.f32.mrf.mxu3 }
 0x8f2   :  { %v11673_v39 = vadd.f32 %v5669_v2, %v5621_v6  ;;  %v5579_v62 = vpop.f32.mrf.mxu1  ;;  %v12785_v6 = vld [vmem:[#allocation41_spill] sm:$0xff] }
 0x8f3   :  { %v5580_v13 = vadd.f32 %v5579_v62, %v5530_v7  ;;  %v12786_v7 = vld [vmem:[#allocation55_spill] sm:$0xff] }
 0x8f5   :  { %5774 = vmatmul.bf16.gmra.mxu1 %v10946_v52 }
 0x8f6   :  { %5867 = vmatmul.bf16.gmra.mxu3 %v12684_v63  ;;  %v5625_v30 = vpop.f32.mrf.mxu2  ;;  %v5535_v28 = vpop.f32.mrf.mxu0 }
 0x8f7   :  { %v5626_v51 = vadd.f32 %v5625_v30, %v5577_v18 }
 0x8f9   :  { %v5672_v5 = vpop.f32.mrf.mxu3  ;;  %5730 = vmatmul.bf16.gmra.mxu0 %v12782_v56 }
 0x8fa   :  { %v11679_v22 = vadd.f32 %v5672_v5, %v5624_v61  ;;  %v5581_v50 = vpop.f32.mrf.mxu1  ;;  %v12789_v5 = vld [vmem:[#allocation81_spill] sm:$0xff] }
 0x8fb   :  { %v5582_v55 = vadd.f32 %v5581_v50, %v5532_v9  ;;  %5823 = vmatmul.bf16.gmra.mxu2 %v12783_v0  ;;  %v7568_v50 = vld [vmem:[#allocation7 + $0x234] sm:$0xf0] }
 0x8fe   :  { %v5628_v23 = vpop.f32.mrf.mxu2  ;;  %v5537_v45 = vpop.f32.mrf.mxu0 }
 0x8ff   :  { %v5629_v59 = vadd.f32 %v5628_v23, %v5580_v13 }
 0x901   :  { %v5674_v42 = vpop.f32.mrf.mxu3 }
 0x902   :  { %v11685_v26 = vadd.f32 %v5674_v42, %v5626_v51  ;;  %v5584_v19 = vpop.f32.mrf.mxu1  ;;  %v12790_v51 = vld [vmem:[#allocation42_spill] sm:$0xff] }
 0x903   :  { %v5585_v32 = vadd.f32 %v5584_v19, %v5535_v28  ;;  %v8643_v28 = vld [vmem:[#allocation7 + $0x214] sm:$0xf] }
 0x904   :  { %v7571_v23 = vor.u32 %v8643_v28, %v7568_v50  ;;  %v8625_v28 = vld [vmem:[#allocation7 + $0x184] sm:$0xf]  ;;  %v7496_v50 = vld [vmem:[#allocation7 + $0x1a4] sm:$0xf0] }
 0x905   :  { %5779 = vmatmul.bf16.gmra.mxu1 %v12785_v6 }
 0x906   :  { %5872 = vmatmul.bf16.gmra.mxu3 %v12786_v7  ;;  %v5630_v36 = vpop.f32.mrf.mxu2  ;;  %v5540_v61 = vpop.f32.mrf.mxu0  ;;  %5903 = vmatpush.bf16.msrb.mxu0 %v7571_v23 }
 0x907   :  { %v5631_v40 = vadd.f32 %v5630_v36, %v5582_v55 }
 0x909   :  { %v5677_v18 = vpop.f32.mrf.mxu3  ;;  %5735 = vmatmul.bf16.gmra.mxu0 %v12789_v5  ;;  %v8715_v5 = vld [vmem:[#allocation7 + $0x454] sm:$0xf] }
 0x90a   :  { %v11691_v2 = vadd.f32 %v5677_v18, %v5629_v59  ;;  %v5586_v9 = vpop.f32.mrf.mxu1  ;;  %v8144_v18 = vld [vmem:[#allocation7 + $0x6b4] sm:$0xf0] }
 0x90b   :  { %v5587_v30 = vadd.f32 %v5586_v9, %v5537_v45  ;;  %5828 = vmatmul.bf16.gmra.mxu2 %v12790_v51  ;;  %v8634_v45 = vld [vmem:[#allocation7 + $0x1cc] sm:$0xf]  ;;  %v7532_v9 = vld [vmem:[#allocation7 + $0x1ec] sm:$0xf0] }
 0x90c   :  { %12787 = vst [vmem:[#allocation63_spill] sm:$0xff] %v11691_v2  ;;  %v7535_v15 = vor.u32 %v8634_v45, %v7532_v9  ;;  %v12794_v51 = vld [vmem:[#allocation56_spill] sm:$0xff]  ;;  %v8679_v45 = vld [vmem:[#allocation7 + $0x334] sm:$0xf] }
 0x90e   :  { %v5633_v42 = vpop.f32.mrf.mxu2  ;;  %v5542_v59 = vpop.f32.mrf.mxu0  ;;  %5904 = vmatpush.bf16.msrb.mxu0 %v7535_v15 }
 0x90f   :  { %v5634_v41 = vadd.f32 %v5633_v42, %v5585_v32  ;;  %v7499_v32 = vor.u32 %v8625_v28, %v7496_v50  ;;  %v7820_v28 = vld [vmem:[#allocation7 + $0x42c] sm:$0xf0]  ;;  %v12797_v50 = vld [vmem:[#allocation52_spill] sm:$0xff] }
 0x911   :  { %v5679_v19 = vpop.f32.mrf.mxu3 }
 0x912   :  { %v11697_v55 = vadd.f32 %v5679_v19, %v5631_v40  ;;  %v5589_v36 = vpop.f32.mrf.mxu1  ;;  %v7856_v40 = vld [vmem:[#allocation7 + $0x474] sm:$0xf0]  ;;  %5905 = vmatpush.bf16.msrb.mxu0 %v7499_v32  ;;  %v7784_v32 = vld [vmem:[#allocation7 + $0x3e4] sm:$0xf0] }
 0x913   :  { %v5590_v13 = vadd.f32 %v5589_v36, %v5540_v61  ;;  %v7859_v23 = vor.u32 %v8715_v5, %v7856_v40  ;;  %v12798_v5 = vld [vmem:[#allocation39_spill] sm:$0xff]  ;;  %v7424_v40 = vld [vmem:[#allocation7 + $0x114] sm:$0xf0] }
 0x914   :  { %12791 = vst [vmem:[#allocation79_spill] sm:$0xff] %v11697_v55  ;;  %v8706_v55 = vld [vmem:[#allocation7 + $0x40c] sm:$0xf] }
 0x915   :  { %5784 = vmatmul.bf16.gmra.mxu1 %v12793_v16  ;;  %v7460_v16 = vld [vmem:[#allocation7 + $0x15c] sm:$0xf0] }
 0x916   :  { %5877 = vmatmul.bf16.gmra.mxu3 %v12794_v51  ;;  %v5635_v42 = vpop.f32.mrf.mxu2  ;;  %5952 = vmatpush.bf16.msrb.mxu1 %v7859_v23  ;;  %v5545_v61 = vpop.f32.mrf.mxu0  ;;  %v8616_v51 = vld [vmem:[#allocation7 + $0x13c] sm:$0xf]  ;;  %v8697_v23 = vld [vmem:[#allocation7 + $0x3c4] sm:$0xf] }
 0x917   :  { %v5636_v2 = vadd.f32 %v5635_v42, %v5587_v30  ;;  %v7463_v15 = vor.u32 %v8616_v51, %v7460_v16  ;;  %v7823_v30 = vor.u32 %v8706_v55, %v7820_v28  ;;  %v8072_v28 = vld [vmem:[#allocation7 + $0x624] sm:$0xf0]  ;;  %v8432_v55 = vld [vmem:[#allocation7 + $0x8f4] sm:$0xf0] }
 0x919   :  { %v5682_v19 = vpop.f32.mrf.mxu3  ;;  %5740 = vmatmul.bf16.gmra.mxu0 %v12797_v50 }
 0x91a   :  { %v11703_v62 = vadd.f32 %v5682_v19, %v5634_v41  ;;  %v5591_v36 = vpop.f32.mrf.mxu1  ;;  %v8607_v41 = vld [vmem:[#allocation7 + $0xf4] sm:$0xf]  ;;  %5906 = vmatpush.bf16.msrb.mxu0 %v7463_v15  ;;  %5953 = vmatpush.bf16.msrb.mxu1 %v7823_v30  ;;  %v8688_v30 = vld [vmem:[#allocation7 + $0x37c] sm:$0xf] }
 0x91b   :  { %v5592_v3 = vadd.f32 %v5591_v36, %v5542_v59  ;;  %5833 = vmatmul.bf16.gmra.mxu2 %v12798_v5  ;;  %v7427_v42 = vor.u32 %v8607_v41, %v7424_v40  ;;  %v8787_v19 = vld [vmem:[#allocation7 + $0x694] sm:$0xf]  ;;  %v7787_v59 = vor.u32 %v8697_v23, %v7784_v32  ;;  %v8598_v41 = vld [vmem:[#allocation7 + $0xac] sm:$0xf]  ;;  %v7388_v40 = vld [vmem:[#allocation7 + $0xcc] sm:$0xf0] }
 0x91c   :  { %12795 = vst [vmem:[#allocation64_spill] sm:$0xff] %v11703_v62  ;;  %v8147_v36 = vor.u32 %v8787_v19, %v8144_v18  ;;  %v7391_v23 = vor.u32 %v8598_v41, %v7388_v40  ;;  %v7748_v18 = vld [vmem:[#allocation7 + $0x39c] sm:$0xf0]  ;;  %v8778_v32 = vld [vmem:[#allocation7 + $0x64c] sm:$0xf] }
 0x91d   :  { %v8108_v19 = vld [vmem:[#allocation7 + $0x66c] sm:$0xf0] }
 0x91e   :  { %v5638_v9 = vpop.f32.mrf.mxu2  ;;  %6001 = vmatpush.bf16.msra.mxu2 %v8147_v36  ;;  %v5547_v50 = vpop.f32.mrf.mxu0  ;;  %5907 = vmatpush.bf16.msrb.mxu0 %v7427_v42  ;;  %v8589_v42 = vld [vmem:[#allocation7 + $0x64] sm:$0xf]  ;;  %v7352_v36 = vld [vmem:[#allocation7 + $0x84] sm:$0xf0] }
 0x91f   :  { %v5639_v16 = vadd.f32 %v5638_v9, %v5590_v13  ;;  %5954 = vmatpush.bf16.msrb.mxu1 %v7787_v59  ;;  %v12801_v13 = vld [vmem:[#allocation53_spill] sm:$0xff]  ;;  %v8111_v9 = vor.u32 %v8778_v32, %v8108_v19  ;;  %v8769_v59 = vld [vmem:[#allocation7 + $0x604] sm:$0xf] }
 0x920   :  { %v8075_v40 = vor.u32 %v8769_v59, %v8072_v28  ;;  %v7316_v28 = vld [vmem:[#allocation7 + $0x3c] sm:$0xf0] }
 0x921   :  { %v5684_v62 = vpop.f32.mrf.mxu3 }
 0x922   :  { %v11709_v51 = vadd.f32 %v5684_v62, %v5636_v2  ;;  %v5594_v5 = vpop.f32.mrf.mxu1  ;;  %v12802_v2 = vld [vmem:[#allocation40_spill] sm:$0xff]  ;;  %v7751_v62 = vor.u32 %v8688_v30, %v7748_v18  ;;  %5908 = vmatpush.bf16.msrb.mxu0 %v7391_v23  ;;  %6002 = vmatpush.bf16.msra.mxu2 %v8111_v9 }
 0x923   :  { %v11713_v15 = vadd.f32 %v5594_v5, %v5545_v61  ;;  %v7355_v61 = vor.u32 %v8589_v42, %v7352_v36  ;;  %v7712_v5 = vld [vmem:[#allocation7 + $0x354] sm:$0xf0]  ;;  %v7676_v42 = vld [vmem:[#allocation7 + $0x30c] sm:$0xf0]  ;;  %v7640_v36 = vld [vmem:[#allocation7 + $0x2c4] sm:$0xf0] }
 0x924   :  { %12799 = vst [vmem:[#allocation21_spill] sm:$0xff] %v11709_v51  ;;  %5955 = vmatpush.bf16.msrb.mxu1 %v7751_v62  ;;  %v7715_v41 = vor.u32 %v8679_v45, %v7712_v5  ;;  %v8859_v51 = vld [vmem:[#allocation7 + $0x8d4] sm:$0xf]  ;;  %v8580_v45 = vld [vmem:[#allocation7 + $0x1c] sm:$0xf] }
 0x925   :  { %5789 = vmatmul.bf16.gmra.mxu1 %v12801_v13  ;;  %v8435_v6 = vor.u32 %v8859_v51, %v8432_v55  ;;  %v8670_v62 = vld [vmem:[#allocation7 + $0x2ec] sm:$0xf]  ;;  %v7319_v9 = vor.u32 %v8580_v45, %v7316_v28  ;;  %v8760_v51 = vld [vmem:[#allocation7 + $0x5bc] sm:$0xf]  ;;  %v8396_v55 = vld [vmem:[#allocation7 + $0x8ac] sm:$0xf0] }
 0x926   :  { %5882 = vmatmul.bf16.gmra.mxu3 %v12802_v2  ;;  %v5640_v7 = vpop.f32.mrf.mxu2  ;;  %v5550_v18 = vpop.f32.mrf.mxu0  ;;  %5909 = vmatpush.bf16.msrb.mxu0 %v7355_v61  ;;  %v8751_v61 = vld [vmem:[#allocation7 + $0x574] sm:$0xf]  ;;  %v8000_v5 = vld [vmem:[#allocation7 + $0x594] sm:$0xf0] }
 0x927   :  { %v5641_v2 = vadd.f32 %v5640_v7, %v5592_v3  ;;  %6050 = vmatpush.bf16.msrb.mxu3 %v8435_v6  ;;  %6003 = vmatpush.bf16.msra.mxu2 %v8075_v40  ;;  %v8036_v3 = vld [vmem:[#allocation7 + $0x5dc] sm:$0xf0]  ;;  %v7679_v7 = vor.u32 %v8670_v62, %v7676_v42  ;;  %v8841_v40 = vld [vmem:[#allocation7 + $0x844] sm:$0xf] }
 0x928   :  { %5956 = vmatpush.bf16.msrb.mxu1 %v7715_v41  ;;  %v8039_v6 = vor.u32 %v8760_v51, %v8036_v3  ;;  %v8003_v41 = vor.u32 %v8751_v61, %v8000_v5  ;;  %v8324_v61 = vld [vmem:[#allocation7 + $0x81c] sm:$0xf0]  ;;  %v8733_v5 = vld [vmem:[#allocation7 + $0x4e4] sm:$0xf] }
 0x929   :  { %v5687_v13 = vpop.f32.mrf.mxu3  ;;  %5745 = vmatmul.bf16.gmra.mxu0 %v11034_v31 }
 0x92a   :  { %v11717_v30 = vadd.f32 %v5687_v13, %v5639_v16  ;;  %v5596_v32 = vpop.f32.mrf.mxu1  ;;  %v8850_v16 = vld [vmem:[#allocation7 + $0x88c] sm:$0xf]  ;;  %v8661_v13 = vld [vmem:[#allocation7 + $0x2a4] sm:$0xf]  ;;  %5910 = vmatpush.bf16.msrb.mxu0 %v7319_v9 }
 0x92b   :  { %v11721_v19 = vadd.f32 %v5596_v32, %v5547_v50  ;;  %5838 = vmatmul.bf16.gmra.mxu2 %v11040_v24  ;;  %v8399_v50 = vor.u32 %v8850_v16, %v8396_v55  ;;  %v7643_v59 = vor.u32 %v8661_v13, %v7640_v36  ;;  %v8360_v32 = vld [vmem:[#allocation7 + $0x864] sm:$0xf0]  ;;  %v8742_v55 = vld [vmem:[#allocation7 + $0x52c] sm:$0xf]  ;;  %v7964_v36 = vld [vmem:[#allocation7 + $0x54c] sm:$0xf0] }
 0x92c   :  { %5957 = vmatpush.bf16.msrb.mxu1 %v7679_v7  ;;  %6004 = vmatpush.bf16.msra.mxu2 %v8039_v6  ;;  %v8363_v23 = vor.u32 %v8841_v40, %v8360_v32  ;;  %v8652_v7 = vld [vmem:[#allocation7 + $0x25c] sm:$0xf]  ;;  %v7604_v6 = vld [vmem:[#allocation7 + $0x27c] sm:$0xf0]  ;;  %v7928_v40 = vld [vmem:[#allocation7 + $0x504] sm:$0xf0] }
 0x92d   :  { %6051 = vmatpush.bf16.msrb.mxu3 %v8399_v50  ;;  %v7607_v13 = vor.u32 %v8652_v7, %v7604_v6  ;;  %v8832_v50 = vld [vmem:[#allocation7 + $0x7fc] sm:$0xf]  ;;  %v8823_v32 = vld [vmem:[#allocation7 + $0x7b4] sm:$0xf] }
 0x92e   :  { %v5643_v45 = vpop.f32.mrf.mxu2  ;;  %v5552_v51 = vpop.f32.mrf.mxu0 }
 0x92f   :  { %v5644_v62 = vadd.f32 %v5643_v45, %v11713_v15  ;;  %v7967_v15 = vor.u32 %v8742_v55, %v7964_v36 }
 0x930   :  { %5958 = vmatpush.bf16.msrb.mxu1 %v7643_v59  ;;  %6005 = vmatpush.bf16.msra.mxu2 %v8003_v41  ;;  %v7931_v59 = vor.u32 %v8733_v5, %v7928_v40  ;;  %v8252_v5 = vld [vmem:[#allocation7 + $0x78c] sm:$0xf0] }
 0x931   :  { %v5689_v28 = vpop.f32.mrf.mxu3  ;;  %6052 = vmatpush.bf16.msrb.mxu3 %v8363_v23 }
 0x932   :  { %v11726_v42 = vadd.f32 %v5689_v28, %v5641_v2  ;;  %v5599_v9 = vpop.f32.mrf.mxu1  ;;  %v8327_v2 = vor.u32 %v8832_v50, %v8324_v61  ;;  %v8724_v50 = vld [vmem:[#allocation7 + $0x49c] sm:$0xf]  ;;  %v7892_v61 = vld [vmem:[#allocation7 + $0x4bc] sm:$0xf0] }
 0x933   :  { %v5600_v16 = vadd.f32 %v5599_v9, %v5550_v18  ;;  %v8288_v18 = vld [vmem:[#allocation7 + $0x7d4] sm:$0xf0] }
 0x934   :  { %5959 = vmatpush.bf16.msrb.mxu1 %v7607_v13  ;;  %6006 = vmatpush.bf16.msra.mxu2 %v7967_v15  ;;  %v8291_v23 = vor.u32 %v8823_v32, %v8288_v18  ;;  %v8814_v13 = vld [vmem:[#allocation7 + $0x76c] sm:$0xf]  ;;  %v7895_v15 = vor.u32 %v8724_v50, %v7892_v61  ;;  %v8796_v50 = vld [vmem:[#allocation7 + $0x6dc] sm:$0xf]  ;;  %v8180_v61 = vld [vmem:[#allocation7 + $0x6fc] sm:$0xf0] }
 0x935   :  { %5794 = vmatmul.bf16.gmra.mxu1 %v11055_v12  ;;  %6053 = vmatpush.bf16.msrb.mxu3 %v8327_v2  ;;  %v8216_v2 = vld [vmem:[#allocation7 + $0x744] sm:$0xf0] }
 0x936   :  { %5887 = vmatmul.bf16.gmra.mxu3 %v12681_v60  ;;  %v5645_v41 = vpop.f32.mrf.mxu2  ;;  %v5555_v7 = vpop.f32.mrf.mxu0 }
 0x937   :  { %v5646_v28 = vadd.f32 %v5645_v41, %v11721_v19  ;;  %v8255_v19 = vor.u32 %v8814_v13, %v8252_v5  ;;  %v8183_v13 = vor.u32 %v8796_v50, %v8180_v61 }
 0x938   :  { %6007 = vmatpush.bf16.msra.mxu2 %v7931_v59 }
 0x939   :  { %v5692_v45 = vpop.f32.mrf.mxu3  ;;  %6054 = vmatpush.bf16.msrb.mxu3 %v8291_v23  ;;  %5750 = vmatmul.bf16.gmra.mxu0 %v11076_v58 }
 0x93a   :  { %v11733_v9 = vadd.f32 %v5692_v45, %v5644_v62  ;;  %v5601_v6 = vpop.f32.mrf.mxu1  ;;  %v8805_v62 = vld [vmem:[#allocation7 + $0x724] sm:$0xf] }
 0x93b   :  { %v5602_v36 = vadd.f32 %v5601_v6, %v5552_v51  ;;  %5843 = vmatmul.bf16.gmra.mxu2 %v11082_v49  ;;  %v8219_v18 = vor.u32 %v8805_v62, %v8216_v2 }
 0x93c   :  { %6008 = vmatpush.bf16.msra.mxu2 %v7895_v15 }
 0x93d   :  { %6055 = vmatpush.bf16.msrb.mxu3 %v8255_v19 }
 0x93e   :  { %v5648_v40 = vpop.f32.mrf.mxu2  ;;  %v5557_v41 = vpop.f32.mrf.mxu0 }
 0x93f   :  { %v5649_v51 = vadd.f32 %v5648_v40, %v5600_v16 }
 0x941   :  { %v5694_v32 = vpop.f32.mrf.mxu3  ;;  %6056 = vmatpush.bf16.msrb.mxu3 %v8219_v18 }
 0x942   :  { %v11739_v59 = vadd.f32 %v5694_v32, %v5646_v28  ;;  %v5604_v45 = vpop.f32.mrf.mxu1 }
 0x943   :  { %v5605_v6 = vadd.f32 %v5604_v45, %v5555_v7 }
 0x945   :  { %5799 = vmatmul.bf16.gmra.mxu1 %v11096_v47  ;;  %6057 = vmatpush.bf16.msrb.mxu3 %v8183_v13 }
 0x946   :  { %5892 = vmatmul.bf16.gmra.mxu3 %v11110_v33  ;;  %v5650_v15 = vpop.f32.mrf.mxu2  ;;  %v5716_v62 = vpop.f32.mrf.mxu0 }
 0x947   :  { %v5651_v16 = vadd.f32 %v5650_v15, %v5602_v36 }
 0x949   :  { %v5697_v5 = vpop.f32.mrf.mxu3  ;;  %5911 = vmatmul.bf16.vlgmr.msrb.gmra.mxu0 %v10790_v25 }
 0x94a   :  { %v11745_v28 = vadd.f32 %v5697_v5, %v5649_v51  ;;  %v5606_v19 = vpop.f32.mrf.mxu1 }
 0x94b   :  { %v5607_v7 = vadd.f32 %v5606_v19, %v5557_v41  ;;  %5848 = vmatmul.bf16.gmra.mxu2 %v11114_v14 }
 0x94e   :  { %v5653_v40 = vpop.f32.mrf.mxu2  ;;  %v5718_v50 = vpop.f32.mrf.mxu0 }
 0x94f   :  { %v5654_v18 = vadd.f32 %v5653_v40, %v5605_v6 }
 0x951   :  { %v5699_v32 = vpop.f32.mrf.mxu3 }
 0x952   :  { %v11751_v45 = vadd.f32 %v5699_v32, %v5651_v16  ;;  %v5765_v61 = vpop.f32.mrf.mxu1 }
 0x953   :  { %v5766_v51 = vadd.f32 %v5765_v61, %v5716_v62 }
 0x955   :  { %5960 = vmatmul.bf16.vlgmr.msrb.gmra.mxu1 %v10835_v8 }
 0x956   :  { %5897 = vmatmul.bf16.gmra.mxu3 %v11116_v57  ;;  %v5655_v41 = vpop.f32.mrf.mxu2  ;;  %v5721_v19 = vpop.f32.mrf.mxu0 }
 0x957   :  { %v5656_v15 = vadd.f32 %v5655_v41, %v5607_v7 }
 0x959   :  { %v5702_v13 = vpop.f32.mrf.mxu3  ;;  %5916 = vmatmul.bf16.gmra.mxu0 %v10840_v21 }
 0x95a   :  { %v11757_v5 = vadd.f32 %v5702_v13, %v5654_v18  ;;  %v5767_v2 = vpop.f32.mrf.mxu1 }
 0x95b   :  { %v5768_v16 = vadd.f32 %v5767_v2, %v5718_v50  ;;  %6009 = vmatmul.bf16.vlgmr.msra.gmra.mxu2 %v10894_v38 }
 0x95e   :  { %v5814_v40 = vpop.f32.mrf.mxu2  ;;  %v5723_v36 = vpop.f32.mrf.mxu0 }
 0x95f   :  { %v5815_v61 = vadd.f32 %v5814_v40, %v5766_v51 }
 0x961   :  { %v5704_v62 = vpop.f32.mrf.mxu3 }
 0x962   :  { %v11763_v32 = vadd.f32 %v5704_v62, %v5656_v15  ;;  %v5770_v23 = vpop.f32.mrf.mxu1  ;;  %v12803_v15 = vmax.f32 %v11552_v34, %v11667_v46 }
 0x963   :  { %v5771_v18 = vadd.f32 %v5770_v23, %v5721_v19 }
 0x965   :  { %5965 = vmatmul.bf16.gmra.mxu1 %v12720_v17 }
 0x966   :  { %6058 = vmatmul.bf16.vlgmr.msrb.gmra.mxu3 %v12781_v29  ;;  %v5816_v2 = vpop.f32.mrf.mxu2  ;;  %v5726_v6 = vpop.f32.mrf.mxu0 }
 0x967   :  { %v5817_v41 = vadd.f32 %v5816_v2, %v5768_v16  ;;  %v12804_v16 = vmax.f32 %v11559_v27, %v11673_v39 }
 0x969   :  { %v5863_v50 = vpop.f32.mrf.mxu3  ;;  %5921 = vmatmul.bf16.gmra.mxu0 %v10842_v44 }
 0x96a   :  { %v5864_v13 = vadd.f32 %v5863_v50, %v5815_v61  ;;  %v5772_v55 = vpop.f32.mrf.mxu1 }
 0x96b   :  { %v5773_v62 = vadd.f32 %v5772_v55, %v5723_v36  ;;  %6014 = vmatmul.bf16.gmra.mxu2 %v10944_v53 }
 0x96c   :  { %v11772_v51 = vmax.f32 %v12803_v15, %v5864_v13 }
 0x96e   :  { %v5819_v23 = vpop.f32.mrf.mxu2  ;;  %v5728_v3 = vpop.f32.mrf.mxu0 }
 0x96f   :  { %v5820_v40 = vadd.f32 %v5819_v23, %v5771_v18  ;;  %v12805_v18 = vmax.f32 %v11566_v35, %v11679_v22  ;;  %v12808_v35 = vld [vmem:[#allocation41_spill] sm:$0xff]  ;;  %v12809_v22 = vld [vmem:[#allocation55_spill] sm:$0xff] }
 0x971   :  { %v5865_v19 = vpop.f32.mrf.mxu3 }
 0x972   :  { %v5866_v7 = vadd.f32 %v5865_v19, %v5817_v41  ;;  %v5775_v29 = vpop.f32.mrf.mxu1 }
 0x973   :  { %v5776_v2 = vadd.f32 %v5775_v29, %v5726_v6 }
 0x974   :  { %v11779_v61 = vmax.f32 %v12804_v16, %v5866_v7 }
 0x975   :  { %5970 = vmatmul.bf16.gmra.mxu1 %v10946_v52 }
 0x976   :  { %6063 = vmatmul.bf16.gmra.mxu3 %v12684_v63  ;;  %v5821_v34 = vpop.f32.mrf.mxu2  ;;  %v5731_v50 = vpop.f32.mrf.mxu0 }
 0x977   :  { %v5822_v55 = vadd.f32 %v5821_v34, %v5773_v62  ;;  %v12806_v62 = vmax.f32 %v12784_v20, %v11685_v26  ;;  %v12814_v26 = vld [vmem:[#allocation81_spill] sm:$0xff]  ;;  %v12815_v20 = vld [vmem:[#allocation42_spill] sm:$0xff] }
 0x979   :  { %v5868_v46 = vpop.f32.mrf.mxu3  ;;  %5926 = vmatmul.bf16.gmra.mxu0 %v12782_v56 }
 0x97a   :  { %v5869_v36 = vadd.f32 %v5868_v46, %v5820_v40  ;;  %v5777_v13 = vpop.f32.mrf.mxu1 }
 0x97b   :  { %v5778_v15 = vadd.f32 %v5777_v13, %v5728_v3  ;;  %6019 = vmatmul.bf16.gmra.mxu2 %v12783_v0 }
 0x97c   :  { %v11786_v41 = vmax.f32 %v12805_v18, %v5869_v36 }
 0x97e   :  { %v5824_v27 = vpop.f32.mrf.mxu2  ;;  %v5733_v7 = vpop.f32.mrf.mxu0 }
 0x97f   :  { %v5825_v39 = vadd.f32 %v5824_v27, %v5776_v2  ;;  %v12810_v2 = vld [vmem:[#allocation45_spill] sm:$0xff] }
 0x981   :  { %v5870_v29 = vpop.f32.mrf.mxu3 }
 0x982   :  { %v5871_v6 = vadd.f32 %v5870_v29, %v5822_v55  ;;  %v5780_v23 = vpop.f32.mrf.mxu1  ;;  %v12811_v55 = vld [vmem:[#allocation63_spill] sm:$0xff] }
 0x983   :  { %v5781_v40 = vadd.f32 %v5780_v23, %v5731_v50  ;;  %v12812_v18 = vmax.f32 %v12810_v2, %v12811_v55  ;;  %v7574_v50 = vld [vmem:[#allocation7 + $0x218] sm:$0xf]  ;;  %v8639_v55 = vld [vmem:[#allocation7 + $0x1f0] sm:$0xf0] }
 0x984   :  { %v11793_v19 = vmax.f32 %v12806_v62, %v5871_v6  ;;  %v8648_v6 = vld [vmem:[#allocation7 + $0x238] sm:$0xf0] }
 0x985   :  { %5975 = vmatmul.bf16.gmra.mxu1 %v12808_v35  ;;  %v7575_v23 = vor.u32 %v8648_v6, %v7574_v50  ;;  %v12816_v35 = vld [vmem:[#allocation17_spill] sm:$0xff]  ;;  %v7502_v50 = vld [vmem:[#allocation7 + $0x188] sm:$0xf] }
 0x986   :  { %12807 = vst [vmem:[#allocation65_spill] sm:$0xff] %v11793_v19  ;;  %6068 = vmatmul.bf16.gmra.mxu3 %v12809_v22  ;;  %v5826_v3 = vpop.f32.mrf.mxu2  ;;  %v5736_v36 = vpop.f32.mrf.mxu0  ;;  %v12817_v19 = vld [vmem:[#allocation79_spill] sm:$0xff]  ;;  %v8630_v6 = vld [vmem:[#allocation7 + $0x1a8] sm:$0xf0] }
 0x987   :  { %v5827_v34 = vadd.f32 %v5826_v3, %v5778_v15  ;;  %6099 = vmatpush.bf16.msra.mxu0 %v7575_v23  ;;  %v12818_v2 = vmax.f32 %v12816_v35, %v12817_v19  ;;  %v7862_v23 = vld [vmem:[#allocation7 + $0x458] sm:$0xf] }
 0x989   :  { %v5873_v16 = vpop.f32.mrf.mxu3  ;;  %5931 = vmatmul.bf16.gmra.mxu0 %v12814_v26  ;;  %v12821_v26 = vld [vmem:[#allocation56_spill] sm:$0xff] }
 0x98a   :  { %v5874_v46 = vadd.f32 %v5873_v16, %v5825_v39  ;;  %v5782_v13 = vpop.f32.mrf.mxu1 }
 0x98b   :  { %v5783_v29 = vadd.f32 %v5782_v13, %v5733_v7  ;;  %6024 = vmatmul.bf16.gmra.mxu2 %v12815_v20  ;;  %v7538_v13 = vld [vmem:[#allocation7 + $0x1d0] sm:$0xf]  ;;  %v12820_v20 = vld [vmem:[#allocation51_spill] sm:$0xff] }
 0x98c   :  { %v11800_v27 = vmax.f32 %v12812_v18, %v5874_v46  ;;  %v7539_v18 = vor.u32 %v8639_v55, %v7538_v13 }
 0x98e   :  { %12813 = vst [vmem:[#allocation78_spill] sm:$0xff] %v11800_v27  ;;  %v5829_v62 = vpop.f32.mrf.mxu2  ;;  %v5738_v3 = vpop.f32.mrf.mxu0  ;;  %6100 = vmatpush.bf16.msra.mxu0 %v7539_v18  ;;  %v7826_v18 = vld [vmem:[#allocation7 + $0x410] sm:$0xf] }
 0x98f   :  { %v5830_v15 = vadd.f32 %v5829_v62, %v5781_v40  ;;  %v7503_v40 = vor.u32 %v8630_v6, %v7502_v50  ;;  %v8711_v6 = vld [vmem:[#allocation7 + $0x430] sm:$0xf0] }
 0x991   :  { %v5875_v22 = vpop.f32.mrf.mxu3 }
 0x992   :  { %v5876_v39 = vadd.f32 %v5875_v22, %v5827_v34  ;;  %v5785_v16 = vpop.f32.mrf.mxu1  ;;  %v8720_v22 = vld [vmem:[#allocation7 + $0x478] sm:$0xf0]  ;;  %6101 = vmatpush.bf16.msra.mxu0 %v7503_v40 }
 0x993   :  { %v5786_v7 = vadd.f32 %v5785_v16, %v5736_v36  ;;  %v7863_v34 = vor.u32 %v8720_v22, %v7862_v23  ;;  %v12822_v16 = vld [vmem:[#allocation60_spill] sm:$0xff]  ;;  %v12827_v22 = vld [vmem:[#allocation39_spill] sm:$0xff] }
 0x994   :  { %v11807_v46 = vmax.f32 %v12818_v2, %v5876_v39  ;;  %v12823_v2 = vld [vmem:[#allocation64_spill] sm:$0xff] }
 0x995   :  { %5980 = vmatmul.bf16.gmra.mxu1 %v12820_v20  ;;  %v12824_v13 = vmax.f32 %v12822_v16, %v12823_v2  ;;  %v7466_v20 = vld [vmem:[#allocation7 + $0x140] sm:$0xf]  ;;  %v12826_v23 = vld [vmem:[#allocation52_spill] sm:$0xff]  ;;  %v8150_v16 = vld [vmem:[#allocation7 + $0x698] sm:$0xf] }
 0x996   :  { %12819 = vst [vmem:[#allocation31_spill] sm:$0xff] %v11807_v46  ;;  %6073 = vmatmul.bf16.gmra.mxu3 %v12821_v26  ;;  %v5831_v62 = vpop.f32.mrf.mxu2  ;;  %6148 = vmatpush.bf16.msra.mxu1 %v7863_v34  ;;  %v5741_v36 = vpop.f32.mrf.mxu0  ;;  %v8621_v46 = vld [vmem:[#allocation7 + $0x160] sm:$0xf0]  ;;  %v7790_v34 = vld [vmem:[#allocation7 + $0x3c8] sm:$0xf] }
 0x997   :  { %v5832_v19 = vadd.f32 %v5831_v62, %v5783_v29  ;;  %v7467_v50 = vor.u32 %v8621_v46, %v7466_v20  ;;  %v7430_v29 = vld [vmem:[#allocation7 + $0xf8] sm:$0xf]  ;;  %v8702_v62 = vld [vmem:[#allocation7 + $0x3e8] sm:$0xf0] }
 0x999   :  { %v5878_v27 = vpop.f32.mrf.mxu3  ;;  %5936 = vmatmul.bf16.gmra.mxu0 %v12826_v23 }
 0x99a   :  { %v5879_v35 = vadd.f32 %v5878_v27, %v5830_v15  ;;  %v5787_v39 = vpop.f32.mrf.mxu1  ;;  %v7827_v27 = vor.u32 %v8711_v6, %v7826_v18  ;;  %v8612_v15 = vld [vmem:[#allocation7 + $0x118] sm:$0xf0]  ;;  %6102 = vmatpush.bf16.msra.mxu0 %v7467_v50  ;;  %v12828_v18 = vld [vmem:[#allocation24_spill] sm:$0xff]  ;;  %v12829_v6 = vld [vmem:[#allocation21_spill] sm:$0xff] }
 0x99b   :  { %v5788_v26 = vadd.f32 %v5787_v39, %v5738_v3  ;;  %6029 = vmatmul.bf16.gmra.mxu2 %v12827_v22  ;;  %v7431_v40 = vor.u32 %v8612_v15, %v7430_v29  ;;  %v7791_v3 = vor.u32 %v8702_v62, %v7790_v34  ;;  %v12830_v22 = vmax.f32 %v12828_v18, %v12829_v6  ;;  %v7394_v29 = vld [vmem:[#allocation7 + $0xb0] sm:$0xf]  ;;  %v7754_v15 = vld [vmem:[#allocation7 + $0x380] sm:$0xf]  ;;  %v8693_v62 = vld [vmem:[#allocation7 + $0x3a0] sm:$0xf0] }
 0x99c   :  { %v11814_v55 = vmax.f32 %v12824_v13, %v5879_v35  ;;  %v8792_v35 = vld [vmem:[#allocation7 + $0x6b8] sm:$0xf0]  ;;  %6149 = vmatpush.bf16.msra.mxu1 %v7827_v27  ;;  %v8603_v27 = vld [vmem:[#allocation7 + $0xd0] sm:$0xf0] }
 0x99d   :  { %v8151_v39 = vor.u32 %v8792_v35, %v8150_v16  ;;  %v7395_v34 = vor.u32 %v8603_v27, %v7394_v29  ;;  %v8114_v16 = vld [vmem:[#allocation7 + $0x650] sm:$0xf]  ;;  %v12833_v35 = vld [vmem:[#allocation40_spill] sm:$0xff]  ;;  %v8438_v29 = vld [vmem:[#allocation7 + $0x8d8] sm:$0xf] }
 0x99e   :  { %12825 = vst [vmem:[#allocation66_spill] sm:$0xff] %v11814_v55  ;;  %v5834_v2 = vpop.f32.mrf.mxu2  ;;  %v5743_v23 = vpop.f32.mrf.mxu0  ;;  %6103 = vmatpush.bf16.msra.mxu0 %v7431_v40  ;;  %v7755_v40 = vor.u32 %v8693_v62, %v7754_v15  ;;  %v8864_v27 = vld [vmem:[#allocation7 + $0x8f8] sm:$0xf0] }
 0x99f   :  { %v5835_v20 = vadd.f32 %v5834_v2, %v5786_v7  ;;  %6197 = vmatpush.bf16.msrb.mxu2 %v8151_v39  ;;  %v8783_v7 = vld [vmem:[#allocation7 + $0x670] sm:$0xf0]  ;;  %v7358_v2 = vld [vmem:[#allocation7 + $0x68] sm:$0xf]  ;;  %v8439_v56 = vor.u32 %v8864_v27, %v8438_v29  ;;  %v8846_v27 = vld [vmem:[#allocation7 + $0x868] sm:$0xf0] }
 0x9a0   :  { %6150 = vmatpush.bf16.msra.mxu1 %v7791_v3  ;;  %v8115_v39 = vor.u32 %v8783_v7, %v8114_v16  ;;  %v8078_v3 = vld [vmem:[#allocation7 + $0x608] sm:$0xf] }
 0x9a1   :  { %v5880_v13 = vpop.f32.mrf.mxu3  ;;  %6246 = vmatpush.bf16.msra.mxu3 %v8439_v56  ;;  %v8366_v29 = vld [vmem:[#allocation7 + $0x848] sm:$0xf] }
 0x9a2   :  { %v5881_v46 = vadd.f32 %v5880_v13, %v5832_v19  ;;  %v5790_v55 = vpop.f32.mrf.mxu1  ;;  %v12832_v19 = vld [vmem:[#allocation53_spill] sm:$0xff]  ;;  %6104 = vmatpush.bf16.msra.mxu0 %v7395_v34  ;;  %v12834_v34 = vmax.f32 %v11610_v1, %v11717_v30 }
 0x9a3   :  { %v11823_v50 = vadd.f32 %v5790_v55, %v5741_v36  ;;  %v8594_v13 = vld [vmem:[#allocation7 + $0x88] sm:$0xf0]  ;;  %v8684_v55 = vld [vmem:[#allocation7 + $0x358] sm:$0xf0]  ;;  %6198 = vmatpush.bf16.msrb.mxu2 %v8115_v39  ;;  %v7322_v39 = vld [vmem:[#allocation7 + $0x20] sm:$0xf] }
 0x9a4   :  { %v11821_v0 = vmax.f32 %v12830_v22, %v5881_v46  ;;  %v7718_v22 = vld [vmem:[#allocation7 + $0x338] sm:$0xf]  ;;  %v7359_v36 = vor.u32 %v8594_v13, %v7358_v2  ;;  %v8774_v46 = vld [vmem:[#allocation7 + $0x628] sm:$0xf0]  ;;  %6151 = vmatpush.bf16.msra.mxu1 %v7755_v40  ;;  %v8585_v2 = vld [vmem:[#allocation7 + $0x40] sm:$0xf0] }
 0x9a5   :  { %5985 = vmatmul.bf16.gmra.mxu1 %v12832_v19  ;;  %v7719_v18 = vor.u32 %v8684_v55, %v7718_v22  ;;  %v8079_v6 = vor.u32 %v8774_v46, %v8078_v3  ;;  %v7682_v13 = vld [vmem:[#allocation7 + $0x2f0] sm:$0xf]  ;;  %v7323_v22 = vor.u32 %v8585_v2, %v7322_v39  ;;  %v8675_v55 = vld [vmem:[#allocation7 + $0x310] sm:$0xf0]  ;;  %v8006_v3 = vld [vmem:[#allocation7 + $0x578] sm:$0xf] }
 0x9a6   :  { %12831 = vst [vmem:[#allocation19_spill] sm:$0xff] %v11821_v0  ;;  %6078 = vmatmul.bf16.gmra.mxu3 %v12833_v35  ;;  %v5836_v0 = vpop.f32.mrf.mxu2  ;;  %v5746_v62 = vpop.f32.mrf.mxu0  ;;  %6105 = vmatpush.bf16.msra.mxu0 %v7359_v36  ;;  %v7683_v56 = vor.u32 %v8675_v55, %v7682_v13  ;;  %v8402_v1 = vld [vmem:[#allocation7 + $0x890] sm:$0xf]  ;;  %v8855_v30 = vld [vmem:[#allocation7 + $0x8b0] sm:$0xf0] }
 0x9a7   :  { %v5837_v35 = vadd.f32 %v5836_v0, %v5788_v26  ;;  %6199 = vmatpush.bf16.msrb.mxu2 %v8079_v6  ;;  %v8042_v0 = vld [vmem:[#allocation7 + $0x5c0] sm:$0xf]  ;;  %v8765_v26 = vld [vmem:[#allocation7 + $0x5e0] sm:$0xf0]  ;;  %v8666_v36 = vld [vmem:[#allocation7 + $0x2c8] sm:$0xf0] }
 0x9a8   :  { %6152 = vmatpush.bf16.msra.mxu1 %v7719_v18  ;;  %v8756_v46 = vld [vmem:[#allocation7 + $0x598] sm:$0xf0] }
 0x9a9   :  { %v5883_v19 = vpop.f32.mrf.mxu3  ;;  %5941 = vmatmul.bf16.gmra.mxu0 %v11034_v31  ;;  %v8007_v6 = vor.u32 %v8756_v46, %v8006_v3  ;;  %v8294_v3 = vld [vmem:[#allocation7 + $0x7b8] sm:$0xf] }
 0x9aa   :  { %v5884_v15 = vadd.f32 %v5883_v19, %v5835_v20  ;;  %v5792_v16 = vpop.f32.mrf.mxu1  ;;  %v8043_v20 = vor.u32 %v8765_v26, %v8042_v0  ;;  %v7646_v19 = vld [vmem:[#allocation7 + $0x2a8] sm:$0xf]  ;;  %6106 = vmatpush.bf16.msra.mxu0 %v7323_v22  ;;  %v12835_v22 = vmax.f32 %v11620_v43, %v11726_v42  ;;  %v8738_v42 = vld [vmem:[#allocation7 + $0x508] sm:$0xf0] }
 0x9ab   :  { %v11832_v40 = vadd.f32 %v5792_v16, %v5743_v23  ;;  %6034 = vmatmul.bf16.gmra.mxu2 %v11040_v24  ;;  %v8403_v23 = vor.u32 %v8855_v30, %v8402_v1  ;;  %v7647_v18 = vor.u32 %v8666_v36, %v7646_v19  ;;  %v7970_v1 = vld [vmem:[#allocation7 + $0x530] sm:$0xf]  ;;  %v8747_v19 = vld [vmem:[#allocation7 + $0x550] sm:$0xf0]  ;;  %v8837_v36 = vld [vmem:[#allocation7 + $0x820] sm:$0xf0] }
 0x9ac   :  { %v11830_v7 = vmax.f32 %v12834_v34, %v5884_v15  ;;  %6153 = vmatpush.bf16.msra.mxu1 %v7683_v56  ;;  %6200 = vmatpush.bf16.msrb.mxu2 %v8043_v20  ;;  %v8367_v34 = vor.u32 %v8846_v27, %v8366_v29  ;;  %v7610_v56 = vld [vmem:[#allocation7 + $0x260] sm:$0xf]  ;;  %v8657_v20 = vld [vmem:[#allocation7 + $0x280] sm:$0xf0]  ;;  %v7934_v43 = vld [vmem:[#allocation7 + $0x4e8] sm:$0xf] }
 0x9ad   :  { %6247 = vmatpush.bf16.msra.mxu3 %v8403_v23  ;;  %v7611_v30 = vor.u32 %v8657_v20, %v7610_v56  ;;  %v8330_v23 = vld [vmem:[#allocation7 + $0x800] sm:$0xf]  ;;  %v7935_v46 = vor.u32 %v8738_v42, %v7934_v43  ;;  %v8729_v20 = vld [vmem:[#allocation7 + $0x4c0] sm:$0xf0]  ;;  %v12837_v42 = vmax.f32 %v11635_v10, %v11739_v59  ;;  %v12838_v10 = vmax.f32 %v11642_v48, %v11745_v28 }
 0x9ae   :  { %v5839_v15 = vpop.f32.mrf.mxu2  ;;  %v5748_v13 = vpop.f32.mrf.mxu0  ;;  %v7898_v56 = vld [vmem:[#allocation7 + $0x4a0] sm:$0xf] }
 0x9af   :  { %v5840_v39 = vadd.f32 %v5839_v15, %v11823_v50  ;;  %v7971_v50 = vor.u32 %v8747_v19, %v7970_v1  ;;  %v8258_v1 = vld [vmem:[#allocation7 + $0x770] sm:$0xf]  ;;  %v8819_v19 = vld [vmem:[#allocation7 + $0x790] sm:$0xf0] }
 0x9b0   :  { %6154 = vmatpush.bf16.msra.mxu1 %v7647_v18  ;;  %6201 = vmatpush.bf16.msrb.mxu2 %v8007_v6 }
 0x9b1   :  { %v5885_v16 = vpop.f32.mrf.mxu3  ;;  %6248 = vmatpush.bf16.msra.mxu3 %v8367_v34 }
 0x9b2   :  { %v5886_v2 = vadd.f32 %v5885_v16, %v5837_v35  ;;  %v5795_v55 = vpop.f32.mrf.mxu1  ;;  %v8331_v35 = vor.u32 %v8837_v36, %v8330_v23  ;;  %v8810_v23 = vld [vmem:[#allocation7 + $0x748] sm:$0xf0] }
 0x9b3   :  { %v5796_v26 = vadd.f32 %v5795_v55, %v5746_v62  ;;  %v8828_v62 = vld [vmem:[#allocation7 + $0x7d8] sm:$0xf0] }
 0x9b4   :  { %v11840_v0 = vmax.f32 %v12835_v22, %v5886_v2  ;;  %6155 = vmatpush.bf16.msra.mxu1 %v7611_v30  ;;  %6202 = vmatpush.bf16.msrb.mxu2 %v7971_v50  ;;  %v8295_v29 = vor.u32 %v8828_v62, %v8294_v3  ;;  %v12836_v2 = vmax.f32 %v11628_v4, %v11733_v9 }
 0x9b5   :  { %5990 = vmatmul.bf16.gmra.mxu1 %v11055_v12  ;;  %6249 = vmatpush.bf16.msra.mxu3 %v8331_v35  ;;  %v7899_v30 = vor.u32 %v8729_v20, %v7898_v56 }
 0x9b6   :  { %6083 = vmatmul.bf16.gmra.mxu3 %v12681_v60  ;;  %v5841_v18 = vpop.f32.mrf.mxu2  ;;  %v5751_v16 = vpop.f32.mrf.mxu0 }
 0x9b7   :  { %v5842_v27 = vadd.f32 %v5841_v18, %v11832_v40  ;;  %v8259_v40 = vor.u32 %v8819_v19, %v8258_v1  ;;  %v8801_v18 = vld [vmem:[#allocation7 + $0x700] sm:$0xf0] }
 0x9b8   :  { %6203 = vmatpush.bf16.msrb.mxu2 %v7935_v46  ;;  %v8186_v46 = vld [vmem:[#allocation7 + $0x6e0] sm:$0xf] }
 0x9b9   :  { %v5888_v6 = vpop.f32.mrf.mxu3  ;;  %6250 = vmatpush.bf16.msra.mxu3 %v8295_v29  ;;  %5946 = vmatmul.bf16.gmra.mxu0 %v11076_v58 }
 0x9ba   :  { %v5889_v15 = vadd.f32 %v5888_v6, %v5840_v39  ;;  %v5797_v34 = vpop.f32.mrf.mxu1  ;;  %v8222_v39 = vld [vmem:[#allocation7 + $0x728] sm:$0xf]  ;;  %v8187_v6 = vor.u32 %v8801_v18, %v8186_v46  ;;  %v12841_v46 = vmax.f32 %v11663_v11, %v11763_v32 }
 0x9bb   :  { %v5798_v22 = vadd.f32 %v5797_v34, %v5748_v13  ;;  %6039 = vmatmul.bf16.gmra.mxu2 %v11082_v49  ;;  %v8223_v9 = vor.u32 %v8810_v23, %v8222_v39 }
 0x9bc   :  { %v11848_v55 = vmax.f32 %v12836_v2, %v5889_v15  ;;  %6204 = vmatpush.bf16.msrb.mxu2 %v7899_v30 }
 0x9bd   :  { %6251 = vmatpush.bf16.msra.mxu3 %v8259_v40 }
 0x9be   :  { %v5844_v36 = vpop.f32.mrf.mxu2  ;;  %v5753_v35 = vpop.f32.mrf.mxu0 }
 0x9bf   :  { %v5845_v13 = vadd.f32 %v5844_v36, %v5796_v26 }
 0x9c1   :  { %v5890_v4 = vpop.f32.mrf.mxu3  ;;  %6252 = vmatpush.bf16.msra.mxu3 %v8223_v9 }
 0x9c2   :  { %v5891_v50 = vadd.f32 %v5890_v4, %v5842_v27  ;;  %v5800_v43 = vpop.f32.mrf.mxu1 }
 0x9c3   :  { %v5801_v62 = vadd.f32 %v5800_v43, %v5751_v16 }
 0x9c4   :  { %v11855_v3 = vmax.f32 %v12837_v42, %v5891_v50 }
 0x9c5   :  { %5995 = vmatmul.bf16.gmra.mxu1 %v11096_v47  ;;  %6253 = vmatpush.bf16.msra.mxu3 %v8187_v6 }
 0x9c6   :  { %6088 = vmatmul.bf16.gmra.mxu3 %v11110_v33  ;;  %v5846_v29 = vpop.f32.mrf.mxu2  ;;  %v5912_v2 = vpop.f32.mrf.mxu0 }
 0x9c7   :  { %v5847_v26 = vadd.f32 %v5846_v29, %v5798_v22  ;;  %v12839_v22 = vmax.f32 %v11649_v37, %v11751_v45 }
 0x9c9   :  { %v5893_v15 = vpop.f32.mrf.mxu3  ;;  %6107 = vmatmul.bf16.vlgmr.msra.gmra.mxu0 %v10790_v25 }
 0x9ca   :  { %v5894_v27 = vadd.f32 %v5893_v15, %v5845_v13  ;;  %v5802_v34 = vpop.f32.mrf.mxu1  ;;  %v12840_v13 = vmax.f32 %v11656_v54, %v11757_v5  ;;  %v12842_v54 = vld [vmem:[#allocation46_spill] sm:$0xff] }
 0x9cb   :  { %v5803_v16 = vadd.f32 %v5802_v34, %v5753_v35  ;;  %6044 = vmatmul.bf16.gmra.mxu2 %v11114_v14 }
 0x9cc   :  { %v11862_v59 = vmax.f32 %v12838_v10, %v5894_v27 }
 0x9ce   :  { %v5849_v56 = vpop.f32.mrf.mxu2  ;;  %v5914_v19 = vpop.f32.mrf.mxu0 }
 0x9cf   :  { %v5850_v1 = vadd.f32 %v5849_v56, %v5801_v62 }
 0x9d1   :  { %v5895_v20 = vpop.f32.mrf.mxu3 }
 0x9d2   :  { %v5896_v30 = vadd.f32 %v5895_v20, %v5847_v26  ;;  %v5961_v40 = vpop.f32.mrf.mxu1 }
 0x9d3   :  { %v5962_v23 = vadd.f32 %v5961_v40, %v5912_v2 }
 0x9d4   :  { %v11869_v39 = vmax.f32 %v12839_v22, %v5896_v30 }
 0x9d5   :  { %6156 = vmatmul.bf16.vlgmr.msra.gmra.mxu1 %v10835_v8 }
 0x9d6   :  { %6093 = vmatmul.bf16.gmra.mxu3 %v11116_v57  ;;  %v5851_v48 = vpop.f32.mrf.mxu2  ;;  %v5917_v4 = vpop.f32.mrf.mxu0 }
 0x9d7   :  { %v5852_v36 = vadd.f32 %v5851_v48, %v5803_v16  ;;  %v12843_v48 = vld [vmem:[#allocation82_spill] sm:$0xff] }
 0x9d9   :  { %v5898_v28 = vpop.f32.mrf.mxu3  ;;  %6112 = vmatmul.bf16.gmra.mxu0 %v10840_v21 }
 0x9da   :  { %v5899_v25 = vadd.f32 %v5898_v28, %v5850_v1  ;;  %v5963_v9 = vpop.f32.mrf.mxu1  ;;  %v12844_v28 = vld [vmem:[#allocation37_spill] sm:$0xff] }
 0x9db   :  { %v5964_v35 = vadd.f32 %v5963_v9, %v5914_v19  ;;  %6205 = vmatmul.bf16.vlgmr.msrb.gmra.mxu2 %v10894_v38 }
 0x9dc   :  { %v11876_v50 = vmax.f32 %v12840_v13, %v5899_v25  ;;  %v12845_v13 = vld [vmem:[#allocation65_spill] sm:$0xff] }
 0x9de   :  { %v6010_v45 = vpop.f32.mrf.mxu2  ;;  %v5919_v42 = vpop.f32.mrf.mxu0 }
 0x9df   :  { %v6011_v8 = vadd.f32 %v6010_v45, %v5962_v23  ;;  %v12846_v45 = vld [vmem:[#allocation41_spill] sm:$0xff] }
 0x9e1   :  { %v5900_v37 = vpop.f32.mrf.mxu3 }
 0x9e2   :  { %v5901_v43 = vadd.f32 %v5900_v37, %v5852_v36  ;;  %v5966_v62 = vpop.f32.mrf.mxu1 }
 0x9e3   :  { %v5967_v6 = vadd.f32 %v5966_v62, %v5917_v4 }
 0x9e4   :  { %v11883_v18 = vmax.f32 %v12841_v46, %v5901_v43  ;;  %v12847_v43 = vld [vmem:[#allocation55_spill] sm:$0xff] }
 0x9e5   :  { %6161 = vmatmul.bf16.gmra.mxu1 %v12720_v17 }
 0x9e6   :  { %6254 = vmatmul.bf16.vlgmr.msra.gmra.mxu3 %v12842_v54  ;;  %v6012_v5 = vpop.f32.mrf.mxu2  ;;  %v5922_v15 = vpop.f32.mrf.mxu0 }
 0x9e7   :  { %v6013_v29 = vadd.f32 %v6012_v5, %v5964_v35  ;;  %v12848_v5 = vld [vmem:[#allocation78_spill] sm:$0xff] }
 0x9e9   :  { %v6059_v21 = vpop.f32.mrf.mxu3  ;;  %6117 = vmatmul.bf16.gmra.mxu0 %v10842_v44 }
 0x9ea   :  { %v11887_v38 = vadd.f32 %v6059_v21, %v6011_v8  ;;  %v5968_v26 = vpop.f32.mrf.mxu1 }
 0x9eb   :  { %v5969_v34 = vadd.f32 %v5968_v26, %v5919_v42  ;;  %6210 = vmatmul.bf16.gmra.mxu2 %v10944_v53  ;;  %v12850_v26 = vld [vmem:[#allocation42_spill] sm:$0xff] }
 0x9ec   :  { %v6391_v27 = vmax.f32 %v11772_v51, %v11887_v38 }
 0x9ee   :  { %v6015_v11 = vpop.f32.mrf.mxu2  ;;  %v5924_v10 = vpop.f32.mrf.mxu0 }
 0x9ef   :  { %v6016_v17 = vadd.f32 %v6015_v11, %v5967_v6 }
 0x9f1   :  { %v6061_v32 = vpop.f32.mrf.mxu3 }
 0x9f2   :  { %v11893_v2 = vadd.f32 %v6061_v32, %v6013_v29  ;;  %v5971_v16 = vpop.f32.mrf.mxu1 }
 0x9f3   :  { %v5972_v20 = vadd.f32 %v5971_v16, %v5922_v15  ;;  %v12849_v15 = vld [vmem:[#allocation81_spill] sm:$0xff] }
 0x9f4   :  { %v6392_v56 = vmax.f32 %v11779_v61, %v11893_v2 }
 0x9f5   :  { %6166 = vmatmul.bf16.gmra.mxu1 %v10946_v52 }
 0x9f6   :  { %6259 = vmatmul.bf16.gmra.mxu3 %v12684_v63  ;;  %v6017_v1 = vpop.f32.mrf.mxu2  ;;  %v5927_v53 = vpop.f32.mrf.mxu0 }
 0x9f7   :  { %v6018_v44 = vadd.f32 %v6017_v1, %v5969_v34 }
 0x9f9   :  { %v6064_v30 = vpop.f32.mrf.mxu3  ;;  %6122 = vmatmul.bf16.gmra.mxu0 %v12843_v48 }
 0x9fa   :  { %v11899_v19 = vadd.f32 %v6064_v30, %v6016_v17  ;;  %v5973_v40 = vpop.f32.mrf.mxu1  ;;  %v12852_v30 = vld [vmem:[#allocation51_spill] sm:$0xff] }
 0x9fb   :  { %v5974_v23 = vadd.f32 %v5973_v40, %v5924_v10  ;;  %6215 = vmatmul.bf16.gmra.mxu2 %v12844_v28 }
 0x9fc   :  { %v6393_v22 = vmax.f32 %v11786_v41, %v11899_v19 }
 0x9fe   :  { %v6020_v36 = vpop.f32.mrf.mxu2  ;;  %v5929_v63 = vpop.f32.mrf.mxu0 }
 0x9ff   :  { %v6021_v52 = vadd.f32 %v6020_v36, %v5972_v20  ;;  %v12851_v20 = vld [vmem:[#allocation31_spill] sm:$0xff] }
 0xa01   :  { %v6066_v25 = vpop.f32.mrf.mxu3 }
 0xa02   :  { %v11905_v4 = vadd.f32 %v6066_v25, %v6018_v44  ;;  %v5976_v9 = vpop.f32.mrf.mxu1  ;;  %v12853_v44 = vld [vmem:[#allocation56_spill] sm:$0xff]  ;;  %v12854_v25 = vld [vmem:[#allocation66_spill] sm:$0xff] }
 0xa03   :  { %v5977_v37 = vadd.f32 %v5976_v9, %v5927_v53  ;;  %v12856_v9 = vld [vmem:[#allocation39_spill] sm:$0xff] }
 0xa04   :  { %v6394_v35 = vmax.f32 %v12845_v13, %v11905_v4 }
 0xa05   :  { %6171 = vmatmul.bf16.gmra.mxu1 %v12846_v45 }
 0xa06   :  { %6264 = vmatmul.bf16.gmra.mxu3 %v12847_v43  ;;  %v6022_v8 = vpop.f32.mrf.mxu2  ;;  %v11913_v6 = vpop.f32.mrf.mxu0 }
 0xa07   :  { %v6023_v62 = vadd.f32 %v6022_v8, %v5974_v23 }
 0xa09   :  { %v6069_v42 = vpop.f32.mrf.mxu3  ;;  %6127 = vmatmul.bf16.gmra.mxu0 %v12849_v15  ;;  %v12858_v15 = vld [vmem:[#allocation53_spill] sm:$0xff] }
 0xa0a   :  { %v11911_v46 = vadd.f32 %v6069_v42, %v6021_v52  ;;  %v5978_v54 = vpop.f32.mrf.mxu1 }
 0xa0b   :  { %v5979_v29 = vadd.f32 %v5978_v54, %v5929_v63  ;;  %6220 = vmatmul.bf16.gmra.mxu2 %v12850_v26  ;;  %v12855_v63 = vld [vmem:[#allocation52_spill] sm:$0xff] }
 0xa0c   :  { %v6395_v21 = vmax.f32 %v12848_v5, %v11911_v46  ;;  %v12859_v26 = vld [vmem:[#allocation40_spill] sm:$0xff] }
 0xa0e   :  { %v6025_v34 = vpop.f32.mrf.mxu2  ;;  %v5934_v10 = vpop.f32.mrf.mxu0 }
 0xa0f   :  { %v6026_v32 = vadd.f32 %v6025_v34, %v5977_v37 }
 0xa11   :  { %v6071_v11 = vpop.f32.mrf.mxu3 }
 0xa12   :  { %v11919_v17 = vadd.f32 %v6071_v11, %v6023_v62  ;;  %v11921_v16 = vpop.f32.mrf.mxu1  ;;  %v12857_v62 = vld [vmem:[#allocation19_spill] sm:$0xff] }
 0xa14   :  { %v6396_v1 = vmax.f32 %v12851_v20, %v11919_v17 }
 0xa15   :  { %6176 = vmatmul.bf16.gmra.mxu1 %v12852_v30 }
 0xa16   :  { %6269 = vmatmul.bf16.gmra.mxu3 %v12853_v44  ;;  %v6027_v53 = vpop.f32.mrf.mxu2  ;;  %v5937_v28 = vpop.f32.mrf.mxu0 }
 0xa17   :  { %v6028_v23 = vadd.f32 %v6027_v53, %v5979_v29 }
 0xa19   :  { %v6074_v40 = vpop.f32.mrf.mxu3  ;;  %6132 = vmatmul.bf16.gmra.mxu0 %v12855_v63 }
 0xa1a   :  { %v11927_v48 = vadd.f32 %v6074_v40, %v6026_v32  ;;  %v5983_v36 = vpop.f32.mrf.mxu1 }
 0xa1b   :  { %6225 = vmatmul.bf16.gmra.mxu2 %v12856_v9  ;;  %v5984_v53 = vadd.f32 %v5983_v36, %v5934_v10 }
 0xa1c   :  { %v6397_v52 = vmax.f32 %v12854_v25, %v11927_v48 }
 0xa1e   :  { %v11933_v37 = vpop.f32.mrf.mxu2  ;;  %v5939_v8 = vpop.f32.mrf.mxu0 }
 0xa21   :  { %v6076_v45 = vpop.f32.mrf.mxu3 }
 0xa22   :  { %v11935_v43 = vadd.f32 %v6076_v45, %v6028_v23  ;;  %v5986_v42 = vpop.f32.mrf.mxu1 }
 0xa23   :  { %v5987_v29 = vadd.f32 %v5986_v42, %v5937_v28 }
 0xa24   :  { %v6398_v54 = vmax.f32 %v12857_v62, %v11935_v43 }
 0xa25   :  { %6181 = vmatmul.bf16.gmra.mxu1 %v12858_v15 }
 0xa26   :  { %6274 = vmatmul.bf16.gmra.mxu3 %v12859_v26  ;;  %v6032_v34 = vpop.f32.mrf.mxu2  ;;  %v5942_v32 = vpop.f32.mrf.mxu0 }
 0xa27   :  { %v6033_v40 = vadd.f32 %v6032_v34, %v5984_v53 }
 0xa29   :  { %v11941_v11 = vpop.f32.mrf.mxu3  ;;  %6137 = vmatmul.bf16.gmra.mxu0 %v11034_v31 }
 0xa2a   :  { %v5988_v30 = vpop.f32.mrf.mxu1 }
 0xa2b   :  { %v5989_v44 = vadd.f32 %v5988_v30, %v5939_v8  ;;  %6230 = vmatmul.bf16.gmra.mxu2 %v11040_v24 }
 0xa2e   :  { %v6035_v23 = vpop.f32.mrf.mxu2  ;;  %v5944_v45 = vpop.f32.mrf.mxu0 }
 0xa2f   :  { %v6036_v9 = vadd.f32 %v6035_v23, %v5987_v29 }
 0xa31   :  { %v6081_v63 = vpop.f32.mrf.mxu3 }
 0xa32   :  { %v11945_v28 = vadd.f32 %v6081_v63, %v6033_v40  ;;  %v5991_v42 = vpop.f32.mrf.mxu1 }
 0xa33   :  { %v5992_v26 = vadd.f32 %v5991_v42, %v5942_v32 }
 0xa35   :  { %6186 = vmatmul.bf16.gmra.mxu1 %v11055_v12 }
 0xa36   :  { %6279 = vmatmul.bf16.gmra.mxu3 %v12681_v60  ;;  %v6037_v10 = vpop.f32.mrf.mxu2  ;;  %v5947_v8 = vpop.f32.mrf.mxu0 }
 0xa37   :  { %v6038_v36 = vadd.f32 %v6037_v10, %v5989_v44 }
 0xa39   :  { %v6084_v31 = vpop.f32.mrf.mxu3  ;;  %6142 = vmatmul.bf16.gmra.mxu0 %v11076_v58 }
 0xa3a   :  { %v11951_v24 = vadd.f32 %v6084_v31, %v6036_v9  ;;  %v5993_v34 = vpop.f32.mrf.mxu1 }
 0xa3b   :  { %v5994_v30 = vadd.f32 %v5993_v34, %v5944_v45  ;;  %6235 = vmatmul.bf16.gmra.mxu2 %v11082_v49 }
 0xa3e   :  { %v6040_v32 = vpop.f32.mrf.mxu2  ;;  %v5949_v60 = vpop.f32.mrf.mxu0 }
 0xa3f   :  { %v6041_v12 = vadd.f32 %v6040_v32, %v5992_v26 }
 0xa41   :  { %v6086_v53 = vpop.f32.mrf.mxu3 }
 0xa42   :  { %v11957_v40 = vadd.f32 %v6086_v53, %v6038_v36  ;;  %v5996_v23 = vpop.f32.mrf.mxu1 }
 0xa43   :  { %v5997_v63 = vadd.f32 %v5996_v23, %v5947_v8 }
 0xa45   :  { %6191 = vmatmul.bf16.gmra.mxu1 %v11096_v47 }
 0xa46   :  { %6284 = vmatmul.bf16.gmra.mxu3 %v11110_v33  ;;  %v6042_v9 = vpop.f32.mrf.mxu2  ;;  %v6108_v10 = vpop.f32.mrf.mxu0 }
 0xa47   :  { %v6043_v58 = vadd.f32 %v6042_v9, %v5994_v30 }
 0xa49   :  { %v6089_v45 = vpop.f32.mrf.mxu3 }
 0xa4a   :  { %v11963_v42 = vadd.f32 %v6089_v45, %v6041_v12  ;;  %v5998_v49 = vpop.f32.mrf.mxu1 }
 0xa4b   :  { %v5999_v31 = vadd.f32 %v5998_v49, %v5949_v60  ;;  %6240 = vmatmul.bf16.gmra.mxu2 %v11114_v14 }
 0xa4e   :  { %v6045_v36 = vpop.f32.mrf.mxu2  ;;  %v6110_v47 = vpop.f32.mrf.mxu0 }
 0xa4f   :  { %v6046_v8 = vadd.f32 %v6045_v36, %v5997_v63 }
 0xa51   :  { %v6091_v34 = vpop.f32.mrf.mxu3 }
 0xa52   :  { %v11968_v32 = vadd.f32 %v6091_v34, %v6043_v58  ;;  %v6157_v33 = vpop.f32.mrf.mxu1 }
 0xa53   :  { %v6158_v53 = vadd.f32 %v6157_v33, %v6108_v10 }
 0xa56   :  { %6289 = vmatmul.bf16.gmra.mxu3 %v11116_v57  ;;  %v6047_v12 = vpop.f32.mrf.mxu2  ;;  %v6113_v60 = vpop.f32.mrf.mxu0 }
 0xa57   :  { %v6048_v9 = vadd.f32 %v6047_v12, %v5999_v31 }
 0xa59   :  { %v6094_v23 = vpop.f32.mrf.mxu3 }
 0xa5a   :  { %v11973_v45 = vadd.f32 %v6094_v23, %v6046_v8  ;;  %v6159_v14 = vpop.f32.mrf.mxu1 }
 0xa5b   :  { %v6160_v58 = vadd.f32 %v6159_v14, %v6110_v47 }
 0xa5e   :  { %v6206_v36 = vpop.f32.mrf.mxu2  ;;  %v6115_v29 = vpop.f32.mrf.mxu0 }
 0xa5f   :  { %v6207_v15 = vadd.f32 %v6206_v36, %v6158_v53 }
 0xa61   :  { %v6096_v49 = vpop.f32.mrf.mxu3 }
 0xa62   :  { %v11977_v34 = vadd.f32 %v6096_v49, %v6048_v9  ;;  %v6162_v10 = vpop.f32.mrf.mxu1 }
 0xa63   :  { %v6163_v33 = vadd.f32 %v6162_v10, %v6113_v60 }
 0xa66   :  { %v6208_v31 = vpop.f32.mrf.mxu2  ;;  %v6118_v44 = vpop.f32.mrf.mxu0 }
 0xa67   :  { %v6209_v12 = vadd.f32 %v6208_v31, %v6160_v58 }
 0xa69   :  { %v6255_v8 = vpop.f32.mrf.mxu3 }
 0xa6a   :  { %v6256_v23 = vadd.f32 %v6255_v8, %v6207_v15  ;;  %v6164_v26 = vpop.f32.mrf.mxu1 }
 0xa6b   :  { %v6165_v9 = vadd.f32 %v6164_v26, %v6115_v29 }
 0xa6c   :  { %v11984_v47 = vmax.f32 %v6391_v27, %v6256_v23 }
 0xa6e   :  { %12860 = vst [vmem:[#allocation77_spill] sm:$0xff] %v11984_v47  ;;  %v6211_v14 = vpop.f32.mrf.mxu2  ;;  %v6120_v58 = vpop.f32.mrf.mxu0 }
 0xa6f   :  { %v6212_v49 = vadd.f32 %v6211_v14, %v6163_v33 }
 0xa71   :  { %v6257_v53 = vpop.f32.mrf.mxu3 }
 0xa72   :  { %v6258_v36 = vadd.f32 %v6257_v53, %v6209_v12  ;;  %v6167_v30 = vpop.f32.mrf.mxu1 }
 0xa73   :  { %v6168_v15 = vadd.f32 %v6167_v30, %v6118_v44 }
 0xa74   :  { %v11989_v60 = vmax.f32 %v6392_v56, %v6258_v36 }
 0xa76   :  { %12861 = vst [vmem:[#allocation27_spill] sm:$0xff] %v11989_v60  ;;  %v6213_v10 = vpop.f32.mrf.mxu2  ;;  %v6123_v29 = vpop.f32.mrf.mxu0 }
 0xa77   :  { %v6214_v8 = vadd.f32 %v6213_v10, %v6165_v9 }
 0xa79   :  { %v6260_v31 = vpop.f32.mrf.mxu3 }
 0xa7a   :  { %v6261_v57 = vadd.f32 %v6260_v31, %v6212_v49  ;;  %v6169_v51 = vpop.f32.mrf.mxu1 }
 0xa7b   :  { %v6170_v27 = vadd.f32 %v6169_v51, %v6120_v58 }
 0xa7c   :  { %v11994_v38 = vmax.f32 %v6393_v22, %v6261_v57 }
 0xa7e   :  { %v6216_v26 = vpop.f32.mrf.mxu2  ;;  %v6125_v30 = vpop.f32.mrf.mxu0 }
 0xa7f   :  { %v6217_v12 = vadd.f32 %v6216_v26, %v6168_v15  ;;  %v5982_v26 = vadd.f32 %v11921_v16, %v11913_v6 }
 0xa81   :  { %v6262_v33 = vpop.f32.mrf.mxu3 }
 0xa82   :  { %v6263_v61 = vadd.f32 %v6262_v33, %v6214_v8  ;;  %v6172_v2 = vpop.f32.mrf.mxu1 }
 0xa83   :  { %v6173_v44 = vadd.f32 %v6172_v2, %v6123_v29 }
 0xa84   :  { %v11999_v56 = vmax.f32 %v6394_v35, %v6263_v61 }
 0xa86   :  { %v6218_v23 = vpop.f32.mrf.mxu2  ;;  %v6128_v4 = vpop.f32.mrf.mxu0 }
 0xa87   :  { %v6219_v14 = vadd.f32 %v6218_v23, %v6170_v27 }
 0xa89   :  { %v6265_v9 = vpop.f32.mrf.mxu3 }
 0xa8a   :  { %v6266_v41 = vadd.f32 %v6265_v9, %v6217_v12  ;;  %v6174_v19 = vpop.f32.mrf.mxu1 }
 0xa8b   :  { %v6175_v57 = vadd.f32 %v6174_v19, %v6125_v30 }
 0xa8c   :  { %v12004_v22 = vmax.f32 %v6395_v21, %v6266_v41 }
 0xa8e   :  { %v6221_v53 = vpop.f32.mrf.mxu2  ;;  %v6130_v21 = vpop.f32.mrf.mxu0 }
 0xa8f   :  { %v6222_v36 = vadd.f32 %v6221_v53, %v6173_v44 }
 0xa91   :  { %v6267_v49 = vpop.f32.mrf.mxu3 }
 0xa92   :  { %v6268_v58 = vadd.f32 %v6267_v49, %v6219_v14  ;;  %v6177_v13 = vpop.f32.mrf.mxu1 }
 0xa93   :  { %v6178_v15 = vadd.f32 %v6177_v13, %v6128_v4 }
 0xa94   :  { %v12009_v35 = vmax.f32 %v6396_v1, %v6268_v58  ;;  %v6031_v1 = vadd.f32 %v11933_v37, %v5982_v26 }
 0xa96   :  { %v6223_v10 = vpop.f32.mrf.mxu2  ;;  %v6080_v48 = vadd.f32 %v11941_v11, %v6031_v1  ;;  %v6133_v2 = vpop.f32.mrf.mxu0 }
 0xa97   :  { %v6224_v8 = vadd.f32 %v6223_v10, %v6175_v57 }
 0xa98   :  { %v6399_v61 = vmax.f32 %v11830_v7, %v6080_v48 }
 0xa99   :  { %v6270_v31 = vpop.f32.mrf.mxu3 }
 0xa9a   :  { %v6271_v51 = vadd.f32 %v6270_v31, %v6222_v36  ;;  %v6179_v5 = vpop.f32.mrf.mxu1 }
 0xa9c   :  { %v12014_v46 = vmax.f32 %v6397_v52, %v6271_v51 }
 0xa9e   :  { %v6226_v27 = vpop.f32.mrf.mxu2  ;;  %v6135_v37 = vpop.f32.mrf.mxu0 }
 0xa9f   :  { %v6227_v17 = vadd.f32 %v6226_v27, %v6178_v15 }
 0xaa1   :  { %v6272_v29 = vpop.f32.mrf.mxu3 }
 0xaa2   :  { %v6273_v20 = vadd.f32 %v6272_v29, %v6224_v8  ;;  %v6182_v25 = vpop.f32.mrf.mxu1 }
 0xaa3   :  { %v6183_v63 = vadd.f32 %v6182_v25, %v6133_v2  ;;  %v12868_v2 = vmax.f32 %v11840_v0, %v11945_v28  ;;  %v6458_v28 = vld [vmem:[%s12231_s5 + $0x50] sm:$0xff] }
 0xaa4   :  { %v12022_v33 = vmax.f32 %v6398_v54, %v6273_v20 }
 0xaa6   :  { %v6228_v52 = vpop.f32.mrf.mxu2  ;;  %v6138_v62 = vpop.f32.mrf.mxu0 }
 0xaa9   :  { %v6275_v12 = vpop.f32.mrf.mxu3 }
 0xaaa   :  { %v6276_v44 = vadd.f32 %v6275_v12, %v6227_v17  ;;  %v6184_v23 = vpop.f32.mrf.mxu1 }
 0xaab   :  { %v6185_v48 = vadd.f32 %v6184_v23, %v6135_v37  ;;  %v12864_v23 = vmax.f32 %v11869_v39, %v11968_v32  ;;  %v6462_v32 = vld [vmem:[%s12231_s5 + $0x70] sm:$0xff] }
 0xaac   :  { %v12026_v30 = vmax.f32 %v6399_v61, %v6276_v44 }
 0xaae   :  { %v6231_v6 = vpop.f32.mrf.mxu2  ;;  %v6140_v19 = vpop.f32.mrf.mxu0 }
 0xab1   :  { %v6277_v16 = vpop.f32.mrf.mxu3 }
 0xab2   :  { %v6187_v43 = vpop.f32.mrf.mxu1 }
 0xab3   :  { %v6188_v29 = vadd.f32 %v6187_v43, %v6138_v62  ;;  %v6180_v62 = vadd.f32 %v6179_v5, %v6130_v21  ;;  %v12866_v5 = vmax.f32 %v11855_v3, %v11957_v40  ;;  %v6460_v40 = vld [vmem:[%s12231_s5 + $0x60] sm:$0xff] }
 0xab6   :  { %v6233_v9 = vpop.f32.mrf.mxu2  ;;  %v6143_v36 = vpop.f32.mrf.mxu0 }
 0xab7   :  { %v6234_v47 = vadd.f32 %v6233_v9, %v6185_v48  ;;  %v6457_v9 = vld [vmem:[%s12231_s5 + $0x48] sm:$0xff]  ;;  %v12871_v48 = vld [vmem:[#allocation77_spill] sm:$0xff] }
 0xab9   :  { %v6280_v14 = vpop.f32.mrf.mxu3 }
 0xaba   :  { %v6189_v11 = vpop.f32.mrf.mxu1 }
 0xabb   :  { %v6190_v8 = vadd.f32 %v6189_v11, %v6140_v19  ;;  %v12863_v11 = vmax.f32 %v11883_v18, %v11977_v34  ;;  %v6232_v19 = vadd.f32 %v6231_v6, %v6183_v63  ;;  %v6463_v18 = vld [vmem:[%s12231_s5 + $0x78] sm:$0xff]  ;;  %v12865_v63 = vmax.f32 %v11862_v59, %v11963_v42  ;;  %v6461_v42 = vld [vmem:[%s12231_s5 + $0x68] sm:$0xff] }
 0xabc   :  { %6520 = vmatpush.msrb.mxu3 %v6463_v18  ;;  %6464 = vmatpush.msrb.mxu1 %v6463_v18 }
 0xabe   :  { %v6236_v54 = vpop.f32.mrf.mxu2  ;;  %v6145_v10 = vpop.f32.mrf.mxu0  ;;  %6521 = vmatpush.msrb.mxu3 %v6462_v32  ;;  %6465 = vmatpush.msrb.mxu1 %v6462_v32 }
 0xabf   :  { %v6237_v12 = vadd.f32 %v6236_v54, %v6188_v29  ;;  %v6456_v54 = vld [vmem:[%s12231_s5 + $0x40] sm:$0xff] }
 0xac0   :  { %6522 = vmatpush.msrb.mxu3 %v6461_v42  ;;  %6466 = vmatpush.msrb.mxu1 %v6461_v42 }
 0xac1   :  { %v6282_v41 = vpop.f32.mrf.mxu3 }
 0xac2   :  { %v6192_v49 = vpop.f32.mrf.mxu1  ;;  %6523 = vmatpush.msrb.mxu3 %v6460_v40  ;;  %6467 = vmatpush.msrb.mxu1 %v6460_v40 }
 0xac3   :  { %v6193_v15 = vadd.f32 %v6192_v49, %v6143_v36  ;;  %v12862_v49 = vmax.f32 %v11876_v50, %v11973_v45  ;;  %v6229_v50 = vadd.f32 %v6228_v52, %v6180_v62  ;;  %v6281_v45 = vadd.f32 %v6280_v14, %v6232_v19 }
 0xac4   :  { %v6492_v14 = vmul.f32 %v12026_v30, %v12026_v30  ;;  %v9047_v62 = vmov 32.0  }
 0xac5   :  { %8898 = vrcp.f32 %v9047_v62 }
 0xac6   :  { %v6238_v57 = vpop.f32.mrf.mxu2 }
 0xac7   :  { %v6239_v26 = vadd.f32 %v6238_v57, %v6190_v8  ;;  %v6283_v57 = vadd.f32 %v6282_v41, %v6234_v47  ;;  %v6278_v47 = vadd.f32 %v6277_v16, %v6229_v50  ;;  %v6491_v41 = vmul.f32 %v12022_v33, %v12022_v33  ;;  %v6451_v8 = vld [vmem:[%s12231_s5 + $0x18] sm:$0xff] }
 0xac9   :  { %v6285_v53 = vpop.f32.mrf.mxu3  ;;  %v12063_v21 = vmax.f32 %v12866_v5, %v6283_v57  ;;  %v12085_v6 = vmax.f32 %v12868_v2, %v6278_v47 }
 0xaca   :  { %v6194_v13 = vpop.f32.mrf.mxu1  ;;  %v6286_v60 = vadd.f32 %v6285_v53, %v6237_v12  ;;  %v6455_v53 = vld [vmem:[%s12231_s5 + $0x38] sm:$0xff]  ;;  %v6484_v12 = vmul.f32 %v12871_v48, %v12871_v48 }
 0xacb   :  { %v6195_v51 = vadd.f32 %v6194_v13, %v6145_v10  ;;  %v6493_v16 = vmul.f32 %v12085_v6, %v12085_v6  ;;  %v6453_v13 = vld [vmem:[%s12231_s5 + $0x28] sm:$0xff]  ;;  %v6452_v10 = vld [vmem:[%s12231_s5 + $0x20] sm:$0xff]  ;;  %v8899_v19 = vpop.eup %8898 }
 0xacc   :  { %v12052_v34 = vmax.f32 %v12865_v63, %v6286_v60  ;;  %v12867_v60 = vmax.f32 %v11848_v55, %v11951_v24  ;;  %v6495_v55 = vmul.f32 %v12063_v21, %v12063_v21  ;;  %v6459_v24 = vld [vmem:[%s12231_s5 + $0x58] sm:$0xff]  ;;  %v6541_v57 = vmul.f32 32.0, %v8899_v19 }
 0xacd   :  { %6524 = vmatpush.msrb.mxu3 %v6459_v24  ;;  %6468 = vmatpush.msrb.mxu1 %v6459_v24  ;;  %vm6545_vm12 = vweird.f32 %v8899_v19 }
 0xace   :  { %v6241_v58 = vpop.f32.mrf.mxu2  ;;  %v12074_v52 = vmax.f32 %v12867_v60, %v6281_v45  ;;  %v6496_v3 = vmul.f32 %v12052_v34, %v12052_v34 }
 0xacf   :  { %v6242_v27 = vadd.f32 %v6241_v58, %v6193_v15  ;;  %6525 = vmatpush.msrb.mxu3 %v6458_v28  ;;  %6469 = vmatpush.msrb.mxu1 %v6458_v28  ;;  %v6454_v58 = vld [vmem:[%s12231_s5 + $0x30] sm:$0xff]  ;;  %v6488_v15 = vmul.f32 %v12004_v22, %v12004_v22  ;;  %v12163_v28 = vld [vmem:[#allocation12] sm:$0x3] }
 0xad0   :  { %v6494_v0 = vmul.f32 %v12074_v52, %v12074_v52 }
 0xad1   :  { %v6287_v7 = vpop.f32.mrf.mxu3  ;;  %6526 = vmatpush.msrb.mxu3 %v6457_v9  ;;  %6470 = vmatpush.msrb.mxu1 %v6457_v9 }
 0xad2   :  { %v6288_v61 = vadd.f32 %v6287_v7, %v6239_v26  ;;  %v6490_v7 = vmul.f32 %v12014_v46, %v12014_v46  ;;  %v6450_v26 = vld [vmem:[%s12231_s5 + $0x10] sm:$0xff] }
 0xad3   :  { %6527 = vmatpush.msrb.mxu3 %v6456_v54  ;;  %6471 = vmatpush.msrb.mxu1 %v6456_v54 }
 0xad4   :  { %v12041_v37 = vmax.f32 %v12864_v23, %v6288_v61  ;;  %v12872_v61 = vmov 1.0   ;;  %v6542_v23 = vsub.f32 1.0, %v6541_v57 }
 0xad5   :  { %6528 = vmatpush.msrb.mxu3 %v6455_v53  ;;  %6472 = vmatpush.msrb.mxu1 %v6455_v53 }
 0xad6   :  { %v6243_v31 = vpop.f32.mrf.mxu2  ;;  %v6497_v59 = vmul.f32 %v12041_v37, %v12041_v37 }
 0xad7   :  { %v6244_v17 = vadd.f32 %v6243_v31, %v6195_v51  ;;  %6529 = vmatpush.msrb.mxu3 %v6454_v58  ;;  %6473 = vmatpush.msrb.mxu1 %v6454_v58  ;;  %v6487_v31 = vmul.f32 %v11999_v56, %v11999_v56  ;;  %v6486_v51 = vmul.f32 %v11994_v38, %v11994_v38  ;;  %v6585_v58 = vld [vmem:[#allocation10] sm:$0xf] }
 0xad9   :  { %v6290_v4 = vpop.f32.mrf.mxu3  ;;  %6530 = vmatpush.msrb.mxu3 %v6453_v13  ;;  %6474 = vmatpush.msrb.mxu1 %v6453_v13 }
 0xada   :  { %v6291_v20 = vadd.f32 %v6290_v4, %v6242_v27  ;;  %v6489_v4 = vmul.f32 %v12009_v35, %v12009_v35  ;;  %v12869_v27 = vlaneseq }
 0xadb   :  { %6531 = vmatpush.msrb.mxu3 %v6452_v10  ;;  %6475 = vmatpush.msrb.mxu1 %v6452_v10 }
 0xadc   :  { %v12031_v36 = vmax.f32 %v12862_v49, %v6291_v20  ;;  %v6424_v29 = vand.u32 127, %v12869_v27 }
 0xadd   :  { %6532 = vmatpush.msrb.mxu3 %v6451_v8  ;;  %6476 = vmatpush.msrb.mxu1 %v6451_v8 }
 0xade   :  { %v6498_v39 = vmul.f32 %v12031_v36, %v12031_v36  ;;  %vm6425_vm11 = vcmp.lt.s32.totalorder %v6424_v29, 2 }
 0xadf   :  { %6533 = vmatpush.msrb.mxu3 %v6450_v26  ;;  %6477 = vmatpush.msrb.mxu1 %v6450_v26 }
 0xae1   :  { %v6292_v1 = vpop.f32.mrf.mxu3 }
 0xae2   :  { %v6293_v44 = vadd.f32 %v6292_v1, %v6244_v17  ;;  %v12870_v17 = vld [vmem:[#allocation27_spill] sm:$0xff] }
 0xae3   :  { %v6485_v20 = vmul.f32 %v12870_v17, %v12870_v17  ;;  %v6449_v1 = vld [vmem:[%s12231_s5 + $0x8] sm:$0xff] }
 0xae4   :  { %v12036_v43 = vmax.f32 %v12863_v11, %v6293_v44  ;;  %6534 = vmatpush.msrb.mxu3 %v6449_v1  ;;  %6478 = vmatpush.msrb.mxu1 %v6449_v1  ;;  %v6448_v44 = vld [vmem:[%s12231_s5] sm:$0xff]  ;;  %s9048_s5 = smov 112  }
 0xae6   :  { %v6499_v25 = vmul.f32 %v12036_v43, %v12036_v43  ;;  %6428 = vmatpush.msrb.mxu0 %v12036_v43  ;;  %6535 = vmatpush.msrb.mxu3 %v6448_v44 }
 0xae7   :  { %6479 = vmatpush.msrb.mxu1 %v6448_v44 }
 0xae8   :  { %6429 = vmatpush.msrb.mxu0 %v12031_v36  ;;  %6500 = vmatpush.msra.mxu2 %v6499_v25  ;;  %v6543_v25 = vmul.f32 %v8899_v19, %v6542_v23 }
 0xaea   :  { %6430 = vmatpush.msrb.mxu0 %v12041_v37  ;;  %6501 = vmatpush.msra.mxu2 %v6498_v39  ;;  %v6544_v50 = vadd.f32 %v8899_v19, %v6543_v25 }
 0xaec   :  { %6431 = vmatpush.msrb.mxu0 %v12052_v34  ;;  %6502 = vmatpush.msra.mxu2 %v6497_v59  ;;  %v6546_v45 = vsel %vm6545_vm12, %v8899_v19, %v6544_v50 }
 0xaee   :  { %6432 = vmatpush.msrb.mxu0 %v12063_v21  ;;  %6503 = vmatpush.msra.mxu2 %v6496_v3 }
 0xaf0   :  { %6433 = vmatpush.msrb.mxu0 %v12074_v52  ;;  %6504 = vmatpush.msra.mxu2 %v6495_v55 }
 0xaf2   :  { %6434 = vmatpush.msrb.mxu0 %v12085_v6  ;;  %6505 = vmatpush.msra.mxu2 %v6494_v0 }
 0xaf4   :  { %6435 = vmatpush.msrb.mxu0 %v12026_v30  ;;  %6506 = vmatpush.msra.mxu2 %v6493_v16 }
 0xaf6   :  { %6436 = vmatpush.msrb.mxu0 %v12022_v33  ;;  %6507 = vmatpush.msra.mxu2 %v6492_v14 }
 0xaf8   :  { %6437 = vmatpush.msrb.mxu0 %v12014_v46  ;;  %6508 = vmatpush.msra.mxu2 %v6491_v41 }
 0xafa   :  { %6438 = vmatpush.msrb.mxu0 %v12009_v35  ;;  %6509 = vmatpush.msra.mxu2 %v6490_v7 }
 0xafc   :  { %6439 = vmatpush.msrb.mxu0 %v12004_v22  ;;  %6510 = vmatpush.msra.mxu2 %v6489_v4 }
 0xafe   :  { %6440 = vmatpush.msrb.mxu0 %v11999_v56  ;;  %6511 = vmatpush.msra.mxu2 %v6488_v15 }
 0xb00   :  { %6441 = vmatpush.msrb.mxu0 %v11994_v38  ;;  %6512 = vmatpush.msra.mxu2 %v6487_v31 }
 0xb02   :  { %6442 = vmatpush.msrb.mxu0 %v12870_v17  ;;  %6513 = vmatpush.msra.mxu2 %v6486_v51 }
 0xb04   :  { %6443 = vmatpush.msrb.mxu0 %v12871_v48  ;;  %6514 = vmatpush.msra.mxu2 %v6485_v20 }
 0xb05   :  { %8441 = vmatmul.msk.f32.vlgmr.msrb.gmra.mxu0 %vm6425_vm11, %v12872_v61 }
 0xb06   :  { %6515 = vmatpush.msra.mxu2 %v6484_v12  ;;  %8443 = vmatpush.msk.msra.mxu0 %vm6592_vm0, %v6585_v58 }
 0xb07   :  { %8442 = vmatmul.msk.f32.vlgmr.msra.gmra.mxu2 %vm6425_vm11, %v12872_v61 }
 0xb82   :  { %v6445_v49 = vpop.f32.mrf.mxu0 }
 0xb83   :  { %6480 = vmatmul.f32.vlgmr.msrb.gmra.mxu1 %v6445_v49 }
 0xb8a   :  { %v6517_v11 = vpop.f32.mrf.mxu2 }
 0xb8b   :  { %6536 = vmatmul.f32.vlgmr.msrb.gmra.mxu3 %v6517_v11 }
 0xc00   :  { %v6481_v18 = vpop.f32.mrf.mxu1 }
 0xc01   :  { %v6547_v63 = vmul.f32 %v6546_v45, %v6481_v18 }
 0xc03   :  { %v6549_v39 = vmul.f32 %v6547_v63, %v6547_v63 }
 0xc0e   :  { %v6537_v32 = vpop.f32.mrf.mxu3 }
 0xc0f   :  { %v6548_v47 = vmul.f32 %v6546_v45, %v6537_v32 }
 0xc11   :  { %v6550_v5 = vsub.f32 %v6548_v47, %v6549_v39 }
 0xc13   :  { %v6551_v59 = vadd.f32 1e-05, %v6550_v5  ;;  %v9051_v5 = vmov 24  }
 0xc14   :  { %8892 = vset.pattern.permute.xlu1 %v9051_v5  ;;  %8893 = vset.pattern.permute.xlu0 %v9051_v5 }
 0xc15   :  { %8900 = vrsqrt.f32 %v6551_v59  ;;  %vm6558_vm14 = vweird.f32 %v6551_v59 }
 0xc1b   :  { %v8901_v42 = vpop.eup %8900 }
 0xc1c   :  { %v6553_v60 = vmul.f32 %v8901_v42, %v6551_v59  ;;  %vm6559_vm13 = vweird.f32 %v8901_v42 }
 0xc1d   :  { %vm6560_vm15 = vmor %vm6558_vm14, %vm6559_vm13 }
 0xc1e   :  { %v6554_v3 = vmul.f32 %v8901_v42, %v6553_v60 }
 0xc20   :  { %v6555_v40 = vmul.f32 0.5, %v6554_v3 }
 0xc22   :  { %v6556_v2 = vsub.f32 1.5, %v6555_v40 }
 0xc24   :  { %v6557_v55 = vmul.f32 %v8901_v42, %v6556_v2 }
 0xc26   :  { %v6561_v24 = vsel %vm6560_vm15, %v8901_v42, %v6557_v55 }
 0xc27   :  { %6563 = vrot.lane.b32.xlu1 %v6561_v24, %s9039_s24 }
 0xc99   :  { %v6564_v0 = vpop.permute.xlu1 %6563 }
 0xc9a   :  { %v6566_v16 = vmul.f32 %v12163_v28, %v6564_v0 }
 0xc9c   :  { %v6568_v9 = vperm.slane %v6566_v16, 0 }
 0xc9e   :  { %6569 = vrot.lane.b32.xlu1 %v6568_v9, %s9048_s5 }
 0xca6   :  { %6668 = vperm.xlu1 %8892, %v12163_v28  }
 0xd10   :  { %v6570_v14 = vpop.permute.xlu1 %6569 }
 0xd11   :  { %v6572_v54 = vmul.f32 %v6570_v14, %v6547_v63 }
 0xd13   :  { %6574 = vrot.lane.b32.xlu2 %v6572_v54, %s9049_s28  ;;  %v6672_v54 = vperm.slane %v12163_v28, 1 }
 0xd6d   :  { %v6575_v41 = vpop.permute.xlu2 %6574 }
 0xd6e   :  { %v6577_v53 = vsub.f32 %v12163_v28, %v6575_v41  ;;  %v6669_v41 = vpop.permute.xlu1 %6668 }
 0xd70   :  { %v6580_v7 = vperm.slane %v6577_v53, 0  ;;  %v6671_v53 = vperm.slane %v6669_v41, 0 }
 0xd72   :  { %6581 = vrot.lane.b32.xlu2 %v6580_v7, %s9050_s1 }
 0xdcc   :  { %v6582_v4 = vpop.permute.xlu2 %6581 }
 0xdcd   :  { %v6584_v15 = vsel %vm2313_vm9, %v6568_v9, %v6582_v4 }
 0xdce   :  { %6587 = vrot.lane.b32.xlu0 %v6584_v15, %s9048_s5 }
 0xe40   :  { %v6588_v10 = vpop.permute.xlu0 %6587 }
 0xe41   :  { %8444 = vmatmul.msk.f32.vlgmr.msra.gmra.mxu0 %vm6589_vm1, %v6588_v10 }
 0xebe   :  { %v6613_v31 = vpop.f32.mrf.mxu0 }
 0xebf   :  { %v12169_v8 = vperm.slane %v6613_v31, 0  ;;  %v12171_v51 = vperm.slane %v6613_v31, 1 }
 0xec1   :  { %v6632_v27 = vmul.f32 %v12169_v8, %v12036_v43  ;;  %v6631_v29 = vmul.f32 %v12169_v8, %v12031_v36  ;;  %v6630_v12 = vmul.f32 %v12169_v8, %v12041_v37  ;;  %v6629_v49 = vmul.f32 %v12169_v8, %v12052_v34 }
 0xec2   :  { %v6628_v36 = vmul.f32 %v12169_v8, %v12063_v21  ;;  %v6627_v37 = vmul.f32 %v12169_v8, %v12074_v52  ;;  %v6626_v34 = vmul.f32 %v12169_v8, %v12085_v6  ;;  %v6625_v21 = vmul.f32 %v12169_v8, %v12026_v30 }
 0xec3   :  { %v6649_v26 = vadd.f32 %v12171_v51, %v6632_v27  ;;  %v6648_v1 = vadd.f32 %v12171_v51, %v6631_v29  ;;  %v6647_v44 = vadd.f32 %v12171_v51, %v6630_v12  ;;  %v6646_v11 = vadd.f32 %v12171_v51, %v6629_v49 }
 0xec4   :  { %v6645_v19 = vadd.f32 %v12171_v51, %v6628_v36  ;;  %v6644_v23 = vadd.f32 %v12171_v51, %v6627_v37  ;;  %v6643_v50 = vadd.f32 %v12171_v51, %v6626_v34  ;;  %v6642_v45 = vadd.f32 %v12171_v51, %v6625_v21 }
 0xec5   :  { %v6665_v20 = vmax.f32 %v6649_v26, 0.0  ;;  %v6664_v61 = vmax.f32 %v6648_v1, 0.0  ;;  %v6663_v43 = vmax.f32 %v6647_v44, 0.0  ;;  %v6662_v62 = vmax.f32 %v6646_v11, 0.0 }
 0xec6   :  { %v6661_v57 = vmax.f32 %v6645_v19, 0.0  ;;  %v6660_v25 = vmax.f32 %v6644_v23, 0.0  ;;  %v6659_v18 = vmax.f32 %v6643_v50, 0.0  ;;  %v6624_v52 = vmul.f32 %v12169_v8, %v12022_v33 }
 0xec7   :  { %6674 = vmatpush.xpose.msra.mxu1 %v6665_v20  ;;  %v6658_v63 = vmax.f32 %v6642_v45, 0.0  ;;  %v6623_v6 = vmul.f32 %v12169_v8, %v12014_v46  ;;  %v6622_v30 = vmul.f32 %v12169_v8, %v12009_v35  ;;  %v6621_v42 = vmul.f32 %v12169_v8, %v12004_v22 }
 0xec8   :  { %v6641_v39 = vadd.f32 %v12171_v51, %v6624_v52  ;;  %v6620_v3 = vmul.f32 %v12169_v8, %v11999_v56  ;;  %v6619_v2 = vmul.f32 %v12169_v8, %v11994_v38  ;;  %v6618_v22 = vmul.f32 %v12169_v8, %v12870_v17 }
 0xec9   :  { %v6640_v47 = vadd.f32 %v12171_v51, %v6623_v6  ;;  %v6639_v59 = vadd.f32 %v12171_v51, %v6622_v30  ;;  %v6638_v60 = vadd.f32 %v12171_v51, %v6621_v42  ;;  %v6617_v56 = vmul.f32 %v12169_v8, %v12871_v48 }
 0xeca   :  { %v6657_v32 = vmax.f32 %v6641_v39, 0.0  ;;  %v6637_v40 = vadd.f32 %v12171_v51, %v6620_v3  ;;  %v6636_v24 = vadd.f32 %v12171_v51, %v6619_v2  ;;  %v6635_v16 = vadd.f32 %v12171_v51, %v6618_v22 }
 0xecb   :  { %6675 = vmatpush.xpose.msra.mxu1 %v6664_v61  ;;  %v6656_v33 = vmax.f32 %v6640_v47, 0.0  ;;  %v6655_v46 = vmax.f32 %v6639_v59, 0.0  ;;  %v6654_v35 = vmax.f32 %v6638_v60, 0.0  ;;  %v6634_v14 = vadd.f32 %v12171_v51, %v6617_v56 }
 0xecc   :  { %v6653_v55 = vmax.f32 %v6637_v40, 0.0  ;;  %v6652_v0 = vmax.f32 %v6636_v24, 0.0  ;;  %v6651_v9 = vmax.f32 %v6635_v16, 0.0 }
 0xecd   :  { %v6650_v38 = vmax.f32 %v6634_v14, 0.0 }
 0xecf   :  { %6676 = vmatpush.xpose.msra.mxu1 %v6663_v43 }
 0xed3   :  { %6677 = vmatpush.xpose.msra.mxu1 %v6662_v62 }
 0xed7   :  { %6678 = vmatpush.xpose.msra.mxu1 %v6661_v57 }
 0xedb   :  { %6679 = vmatpush.xpose.msra.mxu1 %v6660_v25 }
 0xedf   :  { %6680 = vmatpush.xpose.msra.mxu1 %v6659_v18 }
 0xee3   :  { %6681 = vmatpush.xpose.msra.mxu1 %v6658_v63 }
 0xee7   :  { %6682 = vmatpush.xpose.msra.mxu1 %v6657_v32 }
 0xeeb   :  { %6683 = vmatpush.xpose.msra.mxu1 %v6656_v33 }
 0xeef   :  { %6684 = vmatpush.xpose.msra.mxu1 %v6655_v46 }
 0xef3   :  { %6685 = vmatpush.xpose.msra.mxu1 %v6654_v35 }
 0xef7   :  { %6686 = vmatpush.xpose.msra.mxu1 %v6653_v55 }
 0xefb   :  { %6687 = vmatpush.xpose.msra.mxu1 %v6652_v0 }
 0xeff   :  { %6688 = vmatpush.xpose.msra.mxu1 %v6651_v9 }
 0xf03   :  { %6689 = vmatpush.xpose.msra.mxu1 %v6650_v38 }
 0xf06   :  { %6690 = vmatmul.f32.vlgmr.msra.gmra.mxu1 %v6672_v54 }
 0xf83   :  { %v6691_v17 = vpop.f32.mrf.mxu1 }
 0xf84   :  { %v6692_v7 = vadd.f32 %v6691_v17, %v6671_v53 }
 0xf86   :  { %v6694_v58 = vsub.f32 0.0, %v6692_v7 }
 0xf88   :  { %v6695_v4 = vmul.f32 0.01, %v6694_v58 }
 0xf8a   :  { %v6696_v13 = vmul.f32 1.442695, %v6695_v4 }
 0xf8c   :  { %8902 = vpow2.f32 %v6696_v13 }
 0xf92   :  { %v8903_v15 = vpop.eup %8902 }
 0xf93   :  { %v6698_v48 = vadd.f32 1.0, %v8903_v15 }
 0xf95   :  { %8904 = vrcp.f32 %v6698_v48  ;;  %v6710_v51 = vand.u32 2147483648, %v6698_v48  ;;  %v6708_v28 = vand.u32 2147483647, %v6698_v48  ;;  %vm6704_vm3 = vweird.f32 %v6698_v48 }
 0xf97   :  { %v6711_v26 = vor.u32 1.1754944e-38, %v6710_v51  ;;  %vm6709_vm5 = vcmp.eq.f32.partialorder %v6708_v28, 8.507059e+37 }
 0xf9b   :  { %v8905_v10 = vpop.eup %8904 }
 0xf9c   :  { %v6700_v31 = vmul.f32 %v8905_v10, %v6698_v48  ;;  %vm6705_vm2 = vweird.f32 %v8905_v10 }
 0xf9d   :  { %vm6706_vm4 = vmor %vm6704_vm3, %vm6705_vm2 }
 0xf9e   :  { %v6701_v8 = vsub.f32 1.0, %v6700_v31 }
 0xfa0   :  { %v6702_v27 = vmul.f32 %v8905_v10, %v6701_v8 }
 0xfa2   :  { %v6703_v29 = vadd.f32 %v8905_v10, %v6702_v27 }
 0xfa4   :  { %v6707_v20 = vsel %vm6706_vm4, %v8905_v10, %v6703_v29 }
 0xfa5   :  { %v6712_v1 = vsel %vm6709_vm5, %v6711_v26, %v6707_v20 }
 0xfa6   :  { %6714 = vst [vmem:[%s12234_s8] sm:$0x1] %v6712_v1 }
 0xfa7   :  { %6719 = vsyncpa [#allocation6], 1 }
 0xfa8   :  { %6720 = vsyncpa [#allocation8], 1 }
 0xfa9   :  { %6721 = vsyncpa [#allocation11], 1 }

</bundles_post_ra>
